<compile_context>
chip_gen: v7x
topology: tpu7x:2x2x1
jax: 0.10.0
libtpu: 0.0.40
codegen_flags: <defaults>
</compile_context>

<pallas_src>
import math

import jax
import jax.numpy as jnp
import numpy as np
from jax.experimental import pallas as pl
from jax.experimental.pallas import tpu as pltpu

# Row indices inside the packed per-layer (11, D) vector-parameter block.
_LN11_G, _LN11_B, _LN12_G, _LN12_B, _LN2_G, _LN2_B = 0, 1, 2, 3, 4, 5
_B_Q, _B_K, _B_V, _B_O, _B_PROJ = 6, 7, 8, 9, 10
_N_VEC = 11

_LN_EPS = 1e-5


def _layer_norm(v, g, b):
    """Row-wise LayerNorm over the last dim, f32 math (matches torch LayerNorm)."""
    mu = jnp.mean(v, axis=-1, keepdims=True)
    c = v - mu
    var = jnp.mean(c * c, axis=-1, keepdims=True)
    return c * jax.lax.rsqrt(var + _LN_EPS) * g + b


def _make_kernel(n_head: int, matmul_dtype):
    mm = matmul_dtype

    def kernel(q_ref, kv_ref, wq_ref, wk_ref, wv_ref, wo_ref,
               wfc_ref, wpj_ref, vec_ref, bfc_ref, out_ref, x_sc):
        layer = pl.program_id(1)
        n_layers = pl.num_programs(1)

        Bt, Lq, D = q_ref.shape
        L = kv_ref.shape[1]
        hd = D // n_head
        scale = 1.0 / math.sqrt(hd)
        R = Bt * L          # rows of the flattened kv/x slab
        Rq = Bt * Lq        # rows of the flattened q slab (Lq == L here)

        # First layer of this batch tile: load the residual stream into VMEM scratch.
        @pl.when(layer == 0)
        def _():
            x_sc[...] = kv_ref[...].astype(jnp.float32)

        vec = vec_ref[...].astype(jnp.float32)            # (11, D), f32 LN/bias params
        g11, b11 = vec[_LN11_G:_LN11_G + 1], vec[_LN11_B:_LN11_B + 1]
        g12, b12 = vec[_LN12_G:_LN12_G + 1], vec[_LN12_B:_LN12_B + 1]
        g2, b2 = vec[_LN2_G:_LN2_G + 1], vec[_LN2_B:_LN2_B + 1]
        bq, bk = vec[_B_Q:_B_Q + 1], vec[_B_K:_B_K + 1]
        bv, bo = vec[_B_V:_B_V + 1], vec[_B_O:_B_O + 1]
        bpj = vec[_B_PROJ:_B_PROJ + 1]

        x = x_sc[...].reshape(R, D)                            # residual stream, f32
        qin = q_ref[...].astype(jnp.float32).reshape(Rq, D)    # original q (constant)

        # ---------------- attention branch ----------------
        qn = _layer_norm(qin, g11, b11)
        kn = _layer_norm(x, g12, b12)

        qp = (jnp.dot(qn.astype(mm), wq_ref[...].astype(mm),
                      preferred_element_type=jnp.float32) + bq) * scale
        kp = jnp.dot(kn.astype(mm), wk_ref[...].astype(mm),
                     preferred_element_type=jnp.float32) + bk
        vp = jnp.dot(kn.astype(mm), wv_ref[...].astype(mm),
                     preferred_element_type=jnp.float32) + bv

        q3 = qp.reshape(Bt, Lq, D)
        k3 = kp.reshape(Bt, L, D)
        v3 = vp.reshape(Bt, L, D)

        # Per-head attention, batched over the B_TILE axis; output projection is
        # accumulated per head (== concat heads then single projection).
        attn = jnp.zeros((Rq, D), jnp.float32)
        for h in range(n_head):
            sl = slice(h * hd, (h + 1) * hd)
            qh = q3[:, :, sl].astype(mm)                       # (Bt, Lq, hd)
            kh = k3[:, :, sl].astype(mm)                       # (Bt, L,  hd)
            vh = v3[:, :, sl].astype(mm)                       # (Bt, L,  hd)
            s = jnp.einsum('bqd,bkd->bqk', qh, kh,
                           preferred_element_type=jnp.float32)  # (Bt, Lq, L), f32
            s = s - jnp.max(s, axis=-1, keepdims=True)
            p = jnp.exp(s)
            p = p / jnp.sum(p, axis=-1, keepdims=True)
            o = jnp.einsum('bqk,bkd->bqd', p.astype(mm), vh,
                           preferred_element_type=jnp.float32)  # (Bt, Lq, hd)
            attn = attn + jnp.dot(o.reshape(Rq, hd).astype(mm),
                                  wo_ref[sl, :].astype(mm),
                                  preferred_element_type=jnp.float32)
        attn = attn + bo

        x1 = x + attn                                          # residual (Lq == L)

        # ---------------- MLP branch ----------------
        xn2 = _layer_norm(x1, g2, b2)
        hmid = jnp.dot(xn2.astype(mm), wfc_ref[...].astype(mm),
                       preferred_element_type=jnp.float32) + bfc_ref[...].astype(jnp.float32)
        hmid = hmid * jax.nn.sigmoid(1.702 * hmid)             # QuickGELU, f32
        hout = jnp.dot(hmid.astype(mm), wpj_ref[...].astype(mm),
                       preferred_element_type=jnp.float32) + bpj
        x2 = x1 + hout

        x_sc[...] = x2.reshape(Bt, L, D)                       # carry to next layer

        @pl.when(layer == n_layers - 1)
        def _():
            out_ref[...] = x2.reshape(Bt, L, D).astype(out_ref.dtype)

    return kernel


def _stack_layer_params(layer_params, matmul_dtype):
    def stack(name, dtype):
        return jnp.stack([p[name] for p in layer_params]).astype(dtype)

    weights = {n: stack(n, matmul_dtype)
               for n in ('w_q', 'w_k', 'w_v', 'w_o', 'w_fc', 'w_proj')}
    vec_rows = ('ln11_g', 'ln11_b', 'ln12_g', 'ln12_b', 'ln2_g', 'ln2_b',
                'b_q', 'b_k', 'b_v', 'b_o', 'b_proj')
    vecs = jnp.stack([jnp.stack([p[n] for n in vec_rows]) for p in layer_params]
                     ).astype(jnp.float32)                     # (layers, 11, D)
    b_fc = jnp.stack([p['b_fc'][None, :] for p in layer_params]
                     ).astype(jnp.float32)                     # (layers, 1, 4D)
    return weights, vecs, b_fc


def qkv_resblocks(q_lnd, kv_lnd, layer_params, n_head, *,
                  b_tile=16, matmul_dtype=jnp.float32):
    """Runs the full stack of QKVResidualAttentionBlocks.

    q_lnd:  (Lq, N, D) seq-first (PyTorch nn.MultiheadAttention layout)
    kv_lnd: (L,  N, D) seq-first
    Returns (q_lnd, x_final) — the tuple produced by the nn.Sequential of blocks.
    """
    Lq, N, D = q_lnd.shape
    L = kv_lnd.shape[0]
    n_layers = len(layer_params)
    d_ff = layer_params[0]['w_fc'].shape[1]
    assert kv_lnd.shape == (L, N, D)
    assert Lq == L, "residual `kv + attn(q, kv)` requires len(q) == len(kv)"
    assert D % n_head == 0, "d_model must be divisible by n_head"
    b_tile = min(b_tile, N)

    weights, vecs, b_fc = _stack_layer_params(layer_params, matmul_dtype)

    # One transpose per *stack* (amortised over all layers): the kernel is batch-first
    # so tiles flatten to lane-dense (B_TILE*L, D) slabs.
    q_nld = jnp.transpose(q_lnd, (1, 0, 2))
    kv_nld = jnp.transpose(kv_lnd, (1, 0, 2))

    def act_spec(seq):
        return pl.BlockSpec((b_tile, seq, D), lambda b, l: (b, 0, 0))

    def w_spec(rows, cols):
        return pl.BlockSpec((None, rows, cols), lambda b, l: (l, 0, 0))

    grid = (pl.cdiv(N, b_tile), n_layers)

    out_nld = pl.pallas_call(
        _make_kernel(n_head, matmul_dtype),
        out_shape=jax.ShapeDtypeStruct((N, L, D), kv_lnd.dtype),
        grid=grid,
        in_specs=[
            act_spec(Lq),                 # q
            act_spec(L),                  # kv
            w_spec(D, D),                 # w_q
            w_spec(D, D),                 # w_k
            w_spec(D, D),                 # w_v
            w_spec(D, D),                 # w_o
            w_spec(D, d_ff),              # w_fc
            w_spec(d_ff, D),              # w_proj
            w_spec(_N_VEC, D),            # packed LN gammas/betas + biases
            w_spec(1, d_ff),              # b_fc
        ],
        out_specs=act_spec(L),
        scratch_shapes=[pltpu.VMEM((b_tile, L, D), jnp.float32)],
        compiler_params=pltpu.CompilerParams(
            dimension_semantics=("parallel", "arbitrary")),
    )(q_nld, kv_nld, weights['w_q'], weights['w_k'], weights['w_v'],
      weights['w_o'], weights['w_fc'], weights['w_proj'], vecs, b_fc)

    x_lnd = jnp.transpose(out_nld, (1, 0, 2))
    return q_lnd, x_lnd


def qkv_transformer_clip(q_lnd, kv_lnd, layer_params, n_head, **kw):
    """Literal QKVTransformerClip.forward: returns element [0] of the final tuple,
    i.e. q unchanged (the x stream is still computed by the kernel)."""
    q_out, _x = qkv_resblocks(q_lnd, kv_lnd, layer_params, n_head, **kw)
    return q_out


def reference(q_lnd, kv_lnd, layer_params, n_head):
    """Pure-JAX reference mirroring the PyTorch forward (f32)."""
    Lq, N, D = q_lnd.shape
    L = kv_lnd.shape[0]
    hd = D // n_head
    scale = 1.0 / math.sqrt(hd)
    q = q_lnd.astype(jnp.float32)
    x = kv_lnd.astype(jnp.float32)
    for p in layer_params:
        qn = _layer_norm(q, p['ln11_g'], p['ln11_b'])
        kn = _layer_norm(x, p['ln12_g'], p['ln12_b'])
        qp = (qn @ p['w_q'] + p['b_q']) * scale
        kp = kn @ p['w_k'] + p['b_k']
        vp = kn @ p['w_v'] + p['b_v']
        qh = qp.reshape(Lq, N, n_head, hd)
        kh = kp.reshape(L, N, n_head, hd)
        vh = vp.reshape(L, N, n_head, hd)
        s = jnp.einsum('qnhd,knhd->nhqk', qh, kh)
        a = jax.nn.softmax(s, axis=-1)
        o = jnp.einsum('nhqk,knhd->qnhd', a, vh).reshape(Lq, N, D)
        x = x + (o @ p['w_o'] + p['b_o'])
        xn = _layer_norm(x, p['ln2_g'], p['ln2_b'])
        h = xn @ p['w_fc'] + p['b_fc']
        h = h * jax.nn.sigmoid(1.702 * h)
        x = x + (h @ p['w_proj'] + p['b_proj'])
    return q_lnd, x


if __name__ == "__main__":
    # Small but lane-friendly shapes: width (d_model) = 128 so every tile is lane-dense.
    L, N, D, n_head, n_layers = 8, 32, 128, 4, 2
    d_ff = 4 * D
    B_TILE = 16                          # B_TILE * L = 128 rows per matmul slab

    key = jax.random.PRNGKey(0)
    k_q, k_kv, k_layers = jax.random.split(key, 3)
    layer_keys = jax.random.split(k_layers, n_layers)

    def init_layer(k):
        ks = jax.random.split(k, 18)
        rn = lambda kk, shape, s=0.05: (s * jax.random.normal(kk, shape)).astype(jnp.float32)
        return {
            'w_q': rn(ks[0], (D, D)),        'b_q': rn(ks[1], (D,)),
            'w_k': rn(ks[2], (D, D)),        'b_k': rn(ks[3], (D,)),
            'w_v': rn(ks[4], (D, D)),        'b_v': rn(ks[5], (D,)),
            'w_o': rn(ks[6], (D, D)),        'b_o': rn(ks[7], (D,)),
            'w_fc': rn(ks[8], (D, d_ff)),    'b_fc': rn(ks[9], (d_ff,)),
            'w_proj': rn(ks[10], (d_ff, D)), 'b_proj': rn(ks[11], (D,)),
            'ln11_g': 1.0 + rn(ks[12], (D,)), 'ln11_b': rn(ks[13], (D,)),
            'ln12_g': 1.0 + rn(ks[14], (D,)), 'ln12_b': rn(ks[15], (D,)),
            'ln2_g': 1.0 + rn(ks[16], (D,)),  'ln2_b': rn(ks[17], (D,)),
        }

    layer_params = [init_layer(k) for k in layer_keys]
    q = jax.random.normal(k_q, (L, N, D), jnp.float32)
    kv = jax.random.normal(k_kv, (L, N, D), jnp.float32)

    # --- f32 matmul operands: strict check against the pure-JAX reference ---
    q_out, x_out = qkv_resblocks(q, kv, layer_params, n_head,
                                 b_tile=B_TILE, matmul_dtype=jnp.float32)
    x_out = jax.block_until_ready(x_out)
    q_ref, x_ref = reference(q, kv, layer_params, n_head)
    assert q_out.shape == q.shape and bool(jnp.array_equal(q_out, q))
    np.testing.assert_allclose(np.asarray(x_out), np.asarray(x_ref),
                               atol=1e-3, rtol=1e-3)

    # --- bf16 matmul operands (recommended on v6e/v7x): looser sanity check ---
    _, x_bf16 = qkv_resblocks(q, kv, layer_params, n_head,
                              b_tile=B_TILE, matmul_dtype=jnp.bfloat16)
    x_bf16 = jax.block_until_ready(x_bf16)
    bf16_err = float(jnp.max(jnp.abs(x_bf16.astype(jnp.float32) - x_ref)))
    assert np.isfinite(bf16_err) and bf16_err < 0.15, f"bf16 path error too large: {bf16_err}"

    # --- literal module forward (QKVTransformerClip returns q unchanged) ---
    module_out = jax.block_until_ready(
        qkv_transformer_clip(q, kv, layer_params, n_head, b_tile=B_TILE))
    assert bool(jnp.array_equal(module_out, q))

    print("KERNEL_OK")
</pallas_src>

<mosaic_0001>
module attributes {stable_mosaic.version = 11 : i64} {
  func.func @kernel(%arg0: i32, %arg1: i32, %arg2: memref<16x8x128xf32, #tpu.memory_space<vmem>>, %arg3: memref<16x8x128xf32, #tpu.memory_space<vmem>>, %arg4: memref<1x128x128xf32, #tpu.memory_space<vmem>>, %arg5: memref<1x128x128xf32, #tpu.memory_space<vmem>>, %arg6: memref<1x128x128xf32, #tpu.memory_space<vmem>>, %arg7: memref<1x128x128xf32, #tpu.memory_space<vmem>>, %arg8: memref<1x128x512xf32, #tpu.memory_space<vmem>>, %arg9: memref<1x512x128xf32, #tpu.memory_space<vmem>>, %arg10: memref<1x11x128xf32, #tpu.memory_space<vmem>>, %arg11: memref<1x1x512xf32, #tpu.memory_space<vmem>>, %arg12: memref<16x8x128xf32, #tpu.memory_space<vmem>>, %arg13: memref<16x8x128xf32, #tpu.memory_space<vmem>>) attributes {dimension_semantics = [#tpu.dimension_semantics<parallel>, #tpu.dimension_semantics<arbitrary>], iteration_bounds = array<i64: 2, 2>, scalar_prefetch = 0 : i64, scratch_operands = 1 : i64, tpu.core_type = #tpu.core_type<tc>, window_params = [{transform_indices = @transform_0, window_bounds = array<i64: 16, 8, 128>}, {transform_indices = @transform_1, window_bounds = array<i64: 16, 8, 128>}, {transform_indices = @transform_2, window_bounds = array<i64: 1, 128, 128>}, {transform_indices = @transform_3, window_bounds = array<i64: 1, 128, 128>}, {transform_indices = @transform_4, window_bounds = array<i64: 1, 128, 128>}, {transform_indices = @transform_5, window_bounds = array<i64: 1, 128, 128>}, {transform_indices = @transform_6, window_bounds = array<i64: 1, 128, 512>}, {transform_indices = @transform_7, window_bounds = array<i64: 1, 512, 128>}, {transform_indices = @transform_8, window_bounds = array<i64: 1, 11, 128>}, {transform_indices = @transform_9, window_bounds = array<i64: 1, 1, 512>}, {transform_indices = @transform_10, window_bounds = array<i64: 16, 8, 128>}]} {
    %c0_i32 = arith.constant 0 : i32
    %0 = arith.cmpi eq, %arg1, %c0_i32 : i32
    %1 = arith.extui %0 : i1 to i32
    %c0_i32_0 = arith.constant 0 : i32
    %2 = arith.cmpi ne, %1, %c0_i32_0 : i32
    scf.if %2 {
      %c0_83 = arith.constant 0 : index
      %c0_84 = arith.constant 0 : index
      %c0_85 = arith.constant 0 : index
      %206 = vector.load %arg3[%c0_83, %c0_84, %c0_85] : memref<16x8x128xf32, #tpu.memory_space<vmem>>, vector<16x8x128xf32>
      %c0_86 = arith.constant 0 : index
      %c0_87 = arith.constant 0 : index
      %c0_88 = arith.constant 0 : index
      %207 = vector.load %arg13[%c0_86, %c0_87, %c0_88] : memref<16x8x128xf32, #tpu.memory_space<vmem>>, vector<16x8x128xf32>
      tpu.vector_store %arg13[%c0_86, %c0_87, %c0_88], %206 {strides = array<i32>} : memref<16x8x128xf32, #tpu.memory_space<vmem>>, vector<16x8x128xf32>,
    } else {
    }
    %c0 = arith.constant 0 : index
    %c0_1 = arith.constant 0 : index
    %c0_2 = arith.constant 0 : index
    %3 = vector.load %arg10[%c0, %c0_1, %c0_2] : memref<1x11x128xf32, #tpu.memory_space<vmem>>, vector<1x11x128xf32>
    %4 = vector.shape_cast %3 : vector<1x11x128xf32> to vector<11x128xf32>
    %5 = vector.extract_strided_slice %4 {offsets = [0, 0], sizes = [1, 128], strides = [1, 1]} : vector<11x128xf32> to vector<1x128xf32>
    %6 = vector.extract_strided_slice %4 {offsets = [1, 0], sizes = [1, 128], strides = [1, 1]} : vector<11x128xf32> to vector<1x128xf32>
    %7 = vector.extract_strided_slice %4 {offsets = [2, 0], sizes = [1, 128], strides = [1, 1]} : vector<11x128xf32> to vector<1x128xf32>
    %8 = vector.extract_strided_slice %4 {offsets = [3, 0], sizes = [1, 128], strides = [1, 1]} : vector<11x128xf32> to vector<1x128xf32>
    %9 = vector.extract_strided_slice %4 {offsets = [4, 0], sizes = [1, 128], strides = [1, 1]} : vector<11x128xf32> to vector<1x128xf32>
    %10 = vector.extract_strided_slice %4 {offsets = [5, 0], sizes = [1, 128], strides = [1, 1]} : vector<11x128xf32> to vector<1x128xf32>
    %11 = vector.extract_strided_slice %4 {offsets = [6, 0], sizes = [1, 128], strides = [1, 1]} : vector<11x128xf32> to vector<1x128xf32>
    %12 = vector.extract_strided_slice %4 {offsets = [7, 0], sizes = [1, 128], strides = [1, 1]} : vector<11x128xf32> to vector<1x128xf32>
    %13 = vector.extract_strided_slice %4 {offsets = [8, 0], sizes = [1, 128], strides = [1, 1]} : vector<11x128xf32> to vector<1x128xf32>
    %14 = vector.extract_strided_slice %4 {offsets = [9, 0], sizes = [1, 128], strides = [1, 1]} : vector<11x128xf32> to vector<1x128xf32>
    %15 = vector.extract_strided_slice %4 {offsets = [10, 0], sizes = [1, 128], strides = [1, 1]} : vector<11x128xf32> to vector<1x128xf32>
    %c0_3 = arith.constant 0 : index
    %c0_4 = arith.constant 0 : index
    %c0_5 = arith.constant 0 : index
    %16 = vector.load %arg13[%c0_3, %c0_4, %c0_5] : memref<16x8x128xf32, #tpu.memory_space<vmem>>, vector<16x8x128xf32>
    %17 = vector.shape_cast %16 : vector<16x8x128xf32> to vector<128x128xf32>
    %c0_6 = arith.constant 0 : index
    %c0_7 = arith.constant 0 : index
    %c0_8 = arith.constant 0 : index
    %18 = vector.load %arg2[%c0_6, %c0_7, %c0_8] : memref<16x8x128xf32, #tpu.memory_space<vmem>>, vector<16x8x128xf32>
    %19 = vector.shape_cast %18 : vector<16x8x128xf32> to vector<128x128xf32>
    %cst = arith.constant dense<0.000000e+00> : vector<128xf32>
    %20 = vector.multi_reduction <add>, %19, %cst [1] : vector<128x128xf32> to vector<128xf32>
    %21 = vector.shape_cast %20 : vector<128xf32> to vector<128x1xf32>
    %cst_9 = arith.constant 1.280000e+02 : f32
    %22 = vector.broadcast %cst_9 : f32 to vector<128x1xf32>
    %23 = arith.divf %21, %22 : vector<128x1xf32>
    %24 = vector.broadcast %23 : vector<128x1xf32> to vector<128x128xf32>
    %25 = arith.subf %19, %24 : vector<128x128xf32>
    %26 = arith.mulf %25, %25 : vector<128x128xf32>
    %cst_10 = arith.constant dense<0.000000e+00> : vector<128xf32>
    %27 = vector.multi_reduction <add>, %26, %cst_10 [1] : vector<128x128xf32> to vector<128xf32>
    %28 = vector.shape_cast %27 : vector<128xf32> to vector<128x1xf32>
    %cst_11 = arith.constant 1.280000e+02 : f32
    %29 = vector.broadcast %cst_11 : f32 to vector<128x1xf32>
    %30 = arith.divf %28, %29 : vector<128x1xf32>
    %cst_12 = arith.constant 9.99999974E-6 : f32
    %31 = vector.broadcast %cst_12 : f32 to vector<128x1xf32>
    %32 = arith.addf %30, %31 : vector<128x1xf32>
    %33 = math.rsqrt %32 : vector<128x1xf32>
    %34 = vector.broadcast %33 : vector<128x1xf32> to vector<128x128xf32>
    %35 = arith.mulf %25, %34 : vector<128x128xf32>
    %36 = vector.broadcast %5 : vector<1x128xf32> to vector<128x128xf32>
    %37 = arith.mulf %35, %36 : vector<128x128xf32>
    %38 = vector.broadcast %6 : vector<1x128xf32> to vector<128x128xf32>
    %39 = arith.addf %37, %38 : vector<128x128xf32>
    %cst_13 = arith.constant dense<0.000000e+00> : vector<128xf32>
    %40 = vector.multi_reduction <add>, %17, %cst_13 [1] : vector<128x128xf32> to vector<128xf32>
    %41 = vector.shape_cast %40 : vector<128xf32> to vector<128x1xf32>
    %cst_14 = arith.constant 1.280000e+02 : f32
    %42 = vector.broadcast %cst_14 : f32 to vector<128x1xf32>
    %43 = arith.divf %41, %42 : vector<128x1xf32>
    %44 = vector.broadcast %43 : vector<128x1xf32> to vector<128x128xf32>
    %45 = arith.subf %17, %44 : vector<128x128xf32>
    %46 = arith.mulf %45, %45 : vector<128x128xf32>
    %cst_15 = arith.constant dense<0.000000e+00> : vector<128xf32>
    %47 = vector.multi_reduction <add>, %46, %cst_15 [1] : vector<128x128xf32> to vector<128xf32>
    %48 = vector.shape_cast %47 : vector<128xf32> to vector<128x1xf32>
    %cst_16 = arith.constant 1.280000e+02 : f32
    %49 = vector.broadcast %cst_16 : f32 to vector<128x1xf32>
    %50 = arith.divf %48, %49 : vector<128x1xf32>
    %cst_17 = arith.constant 9.99999974E-6 : f32
    %51 = vector.broadcast %cst_17 : f32 to vector<128x1xf32>
    %52 = arith.addf %50, %51 : vector<128x1xf32>
    %53 = math.rsqrt %52 : vector<128x1xf32>
    %54 = vector.broadcast %53 : vector<128x1xf32> to vector<128x128xf32>
    %55 = arith.mulf %45, %54 : vector<128x128xf32>
    %56 = vector.broadcast %7 : vector<1x128xf32> to vector<128x128xf32>
    %57 = arith.mulf %55, %56 : vector<128x128xf32>
    %58 = vector.broadcast %8 : vector<1x128xf32> to vector<128x128xf32>
    %59 = arith.addf %57, %58 : vector<128x128xf32>
    %c0_18 = arith.constant 0 : index
    %c0_19 = arith.constant 0 : index
    %c0_20 = arith.constant 0 : index
    %60 = vector.load %arg4[%c0_18, %c0_19, %c0_20] : memref<1x128x128xf32, #tpu.memory_space<vmem>>, vector<1x128x128xf32>
    %61 = vector.shape_cast %60 : vector<1x128x128xf32> to vector<128x128xf32>
    %cst_21 = arith.constant dense<0.000000e+00> : vector<128x128xf32>
    %62 = tpu.matmul %39, %61, %cst_21 {dimension_numbers = #tpu.dot_dimension_numbers<[1], [0], [0], [1], [0, 0, 1, 1], [], []>} : vector<128x128xf32>, vector<128x128xf32>, vector<128x128xf32> -> vector<128x128xf32>
    %63 = vector.broadcast %11 : vector<1x128xf32> to vector<128x128xf32>
    %64 = arith.addf %62, %63 : vector<128x128xf32>
    %cst_22 = arith.constant 0.176776692 : f32
    %65 = vector.broadcast %cst_22 : f32 to vector<128x128xf32>
    %66 = arith.mulf %64, %65 : vector<128x128xf32>
    %c0_23 = arith.constant 0 : index
    %c0_24 = arith.constant 0 : index
    %c0_25 = arith.constant 0 : index
    %67 = vector.load %arg5[%c0_23, %c0_24, %c0_25] : memref<1x128x128xf32, #tpu.memory_space<vmem>>, vector<1x128x128xf32>
    %68 = vector.shape_cast %67 : vector<1x128x128xf32> to vector<128x128xf32>
    %cst_26 = arith.constant dense<0.000000e+00> : vector<128x128xf32>
    %69 = tpu.matmul %59, %68, %cst_26 {dimension_numbers = #tpu.dot_dimension_numbers<[1], [0], [0], [1], [0, 0, 1, 1], [], []>} : vector<128x128xf32>, vector<128x128xf32>, vector<128x128xf32> -> vector<128x128xf32>
    %70 = vector.broadcast %12 : vector<1x128xf32> to vector<128x128xf32>
    %71 = arith.addf %69, %70 : vector<128x128xf32>
    %c0_27 = arith.constant 0 : index
    %c0_28 = arith.constant 0 : index
    %c0_29 = arith.constant 0 : index
    %72 = vector.load %arg6[%c0_27, %c0_28, %c0_29] : memref<1x128x128xf32, #tpu.memory_space<vmem>>, vector<1x128x128xf32>
    %73 = vector.shape_cast %72 : vector<1x128x128xf32> to vector<128x128xf32>
    %cst_30 = arith.constant dense<0.000000e+00> : vector<128x128xf32>
    %74 = tpu.matmul %59, %73, %cst_30 {dimension_numbers = #tpu.dot_dimension_numbers<[1], [0], [0], [1], [0, 0, 1, 1], [], []>} : vector<128x128xf32>, vector<128x128xf32>, vector<128x128xf32> -> vector<128x128xf32>
    %75 = vector.broadcast %13 : vector<1x128xf32> to vector<128x128xf32>
    %76 = arith.addf %74, %75 : vector<128x128xf32>
    %77 = vector.shape_cast %66 : vector<128x128xf32> to vector<16x8x128xf32>
    %78 = vector.shape_cast %71 : vector<128x128xf32> to vector<16x8x128xf32>
    %79 = vector.shape_cast %76 : vector<128x128xf32> to vector<16x8x128xf32>
    %cst_31 = arith.constant 0.000000e+00 : f32
    %80 = vector.broadcast %cst_31 : f32 to vector<128x128xf32>
    %81 = vector.extract_strided_slice %77 {offsets = [0, 0, 0], sizes = [16, 8, 32], strides = [1, 1, 1]} : vector<16x8x128xf32> to vector<16x8x32xf32>
    %82 = vector.extract_strided_slice %78 {offsets = [0, 0, 0], sizes = [16, 8, 32], strides = [1, 1, 1]} : vector<16x8x128xf32> to vector<16x8x32xf32>
    %83 = vector.extract_strided_slice %79 {offsets = [0, 0, 0], sizes = [16, 8, 32], strides = [1, 1, 1]} : vector<16x8x128xf32> to vector<16x8x32xf32>
    "tpu.trace_start"() <{level = 10 : i32, message = "bqd,bkd->bqk"}> : () -> ()
    %cst_32 = arith.constant dense<0.000000e+00> : vector<16x8x8xf32>
    %84 = tpu.matmul %81, %82, %cst_32 {dimension_numbers = #tpu.dot_dimension_numbers<[2], [2], [1], [1], [0, 0, 0, 1, 1, 1], [0], [0]>} : vector<16x8x32xf32>, vector<16x8x32xf32>, vector<16x8x8xf32> -> vector<16x8x8xf32>
    "tpu.trace_stop"() : () -> ()
    %cst_33 = arith.constant dense<0xFF800000> : vector<16x8xf32>
    %85 = vector.multi_reduction <maximumf>, %84, %cst_33 [2] : vector<16x8x8xf32> to vector<16x8xf32>
    %86 = vector.shape_cast %85 : vector<16x8xf32> to vector<16x8x1xf32>
    %87 = vector.broadcast %86 : vector<16x8x1xf32> to vector<16x8x8xf32>
    %88 = arith.subf %84, %87 : vector<16x8x8xf32>
    %89 = math.exp %88 : vector<16x8x8xf32>
    %cst_34 = arith.constant dense<0.000000e+00> : vector<16x8xf32>
    %90 = vector.multi_reduction <add>, %89, %cst_34 [2] : vector<16x8x8xf32> to vector<16x8xf32>
    %91 = vector.shape_cast %90 : vector<16x8xf32> to vector<16x8x1xf32>
    %92 = vector.broadcast %91 : vector<16x8x1xf32> to vector<16x8x8xf32>
    %93 = arith.divf %89, %92 : vector<16x8x8xf32>
    "tpu.trace_start"() <{level = 10 : i32, message = "bqk,bkd->bqd"}> : () -> ()
    %cst_35 = arith.constant dense<0.000000e+00> : vector<16x8x32xf32>
    %94 = tpu.matmul %93, %83, %cst_35 {dimension_numbers = #tpu.dot_dimension_numbers<[2], [1], [1], [2], [0, 0, 0, 1, 1, 2], [0], [0]>} : vector<16x8x8xf32>, vector<16x8x32xf32>, vector<16x8x32xf32> -> vector<16x8x32xf32>
    "tpu.trace_stop"() : () -> ()
    %95 = vector.shape_cast %94 : vector<16x8x32xf32> to vector<128x32xf32>
    %c0_36 = arith.constant 0 : index
    %c0_37 = arith.constant 0 : index
    %c0_38 = arith.constant 0 : index
    %96 = vector.load %arg7[%c0_36, %c0_37, %c0_38] : memref<1x128x128xf32, #tpu.memory_space<vmem>>, vector<1x32x128xf32>
    %97 = vector.shape_cast %96 : vector<1x32x128xf32> to vector<32x128xf32>
    %cst_39 = arith.constant dense<0.000000e+00> : vector<128x128xf32>
    %98 = tpu.matmul %95, %97, %cst_39 {dimension_numbers = #tpu.dot_dimension_numbers<[1], [0], [0], [1], [0, 0, 1, 1], [], []>} : vector<128x32xf32>, vector<32x128xf32>, vector<128x128xf32> -> vector<128x128xf32>
    %99 = arith.addf %80, %98 : vector<128x128xf32>
    %100 = vector.extract_strided_slice %77 {offsets = [0, 0, 32], sizes = [16, 8, 32], strides = [1, 1, 1]} : vector<16x8x128xf32> to vector<16x8x32xf32>
    %101 = vector.extract_strided_slice %78 {offsets = [0, 0, 32], sizes = [16, 8, 32], strides = [1, 1, 1]} : vector<16x8x128xf32> to vector<16x8x32xf32>
    %102 = vector.extract_strided_slice %79 {offsets = [0, 0, 32], sizes = [16, 8, 32], strides = [1, 1, 1]} : vector<16x8x128xf32> to vector<16x8x32xf32>
    "tpu.trace_start"() <{level = 10 : i32, message = "bqd,bkd->bqk"}> : () -> ()
    %cst_40 = arith.constant dense<0.000000e+00> : vector<16x8x8xf32>
    %103 = tpu.matmul %100, %101, %cst_40 {dimension_numbers = #tpu.dot_dimension_numbers<[2], [2], [1], [1], [0, 0, 0, 1, 1, 1], [0], [0]>} : vector<16x8x32xf32>, vector<16x8x32xf32>, vector<16x8x8xf32> -> vector<16x8x8xf32>
    "tpu.trace_stop"() : () -> ()
    %cst_41 = arith.constant dense<0xFF800000> : vector<16x8xf32>
    %104 = vector.multi_reduction <maximumf>, %103, %cst_41 [2] : vector<16x8x8xf32> to vector<16x8xf32>
    %105 = vector.shape_cast %104 : vector<16x8xf32> to vector<16x8x1xf32>
    %106 = vector.broadcast %105 : vector<16x8x1xf32> to vector<16x8x8xf32>
    %107 = arith.subf %103, %106 : vector<16x8x8xf32>
    %108 = math.exp %107 : vector<16x8x8xf32>
    %cst_42 = arith.constant dense<0.000000e+00> : vector<16x8xf32>
    %109 = vector.multi_reduction <add>, %108, %cst_42 [2] : vector<16x8x8xf32> to vector<16x8xf32>
    %110 = vector.shape_cast %109 : vector<16x8xf32> to vector<16x8x1xf32>
    %111 = vector.broadcast %110 : vector<16x8x1xf32> to vector<16x8x8xf32>
    %112 = arith.divf %108, %111 : vector<16x8x8xf32>
    "tpu.trace_start"() <{level = 10 : i32, message = "bqk,bkd->bqd"}> : () -> ()
    %cst_43 = arith.constant dense<0.000000e+00> : vector<16x8x32xf32>
    %113 = tpu.matmul %112, %102, %cst_43 {dimension_numbers = #tpu.dot_dimension_numbers<[2], [1], [1], [2], [0, 0, 0, 1, 1, 2], [0], [0]>} : vector<16x8x8xf32>, vector<16x8x32xf32>, vector<16x8x32xf32> -> vector<16x8x32xf32>
    "tpu.trace_stop"() : () -> ()
    %114 = vector.shape_cast %113 : vector<16x8x32xf32> to vector<128x32xf32>
    %c0_44 = arith.constant 0 : index
    %c32 = arith.constant 32 : index
    %c0_45 = arith.constant 0 : index
    %115 = vector.load %arg7[%c0_44, %c32, %c0_45] : memref<1x128x128xf32, #tpu.memory_space<vmem>>, vector<1x32x128xf32>
    %116 = vector.shape_cast %115 : vector<1x32x128xf32> to vector<32x128xf32>
    %cst_46 = arith.constant dense<0.000000e+00> : vector<128x128xf32>
    %117 = tpu.matmul %114, %116, %cst_46 {dimension_numbers = #tpu.dot_dimension_numbers<[1], [0], [0], [1], [0, 0, 1, 1], [], []>} : vector<128x32xf32>, vector<32x128xf32>, vector<128x128xf32> -> vector<128x128xf32>
    %118 = arith.addf %99, %117 : vector<128x128xf32>
    %119 = vector.extract_strided_slice %77 {offsets = [0, 0, 64], sizes = [16, 8, 32], strides = [1, 1, 1]} : vector<16x8x128xf32> to vector<16x8x32xf32>
    %120 = vector.extract_strided_slice %78 {offsets = [0, 0, 64], sizes = [16, 8, 32], strides = [1, 1, 1]} : vector<16x8x128xf32> to vector<16x8x32xf32>
    %121 = vector.extract_strided_slice %79 {offsets = [0, 0, 64], sizes = [16, 8, 32], strides = [1, 1, 1]} : vector<16x8x128xf32> to vector<16x8x32xf32>
    "tpu.trace_start"() <{level = 10 : i32, message = "bqd,bkd->bqk"}> : () -> ()
    %cst_47 = arith.constant dense<0.000000e+00> : vector<16x8x8xf32>
    %122 = tpu.matmul %119, %120, %cst_47 {dimension_numbers = #tpu.dot_dimension_numbers<[2], [2], [1], [1], [0, 0, 0, 1, 1, 1], [0], [0]>} : vector<16x8x32xf32>, vector<16x8x32xf32>, vector<16x8x8xf32> -> vector<16x8x8xf32>
    "tpu.trace_stop"() : () -> ()
    %cst_48 = arith.constant dense<0xFF800000> : vector<16x8xf32>
    %123 = vector.multi_reduction <maximumf>, %122, %cst_48 [2] : vector<16x8x8xf32> to vector<16x8xf32>
    %124 = vector.shape_cast %123 : vector<16x8xf32> to vector<16x8x1xf32>
    %125 = vector.broadcast %124 : vector<16x8x1xf32> to vector<16x8x8xf32>
    %126 = arith.subf %122, %125 : vector<16x8x8xf32>
    %127 = math.exp %126 : vector<16x8x8xf32>
    %cst_49 = arith.constant dense<0.000000e+00> : vector<16x8xf32>
    %128 = vector.multi_reduction <add>, %127, %cst_49 [2] : vector<16x8x8xf32> to vector<16x8xf32>
    %129 = vector.shape_cast %128 : vector<16x8xf32> to vector<16x8x1xf32>
    %130 = vector.broadcast %129 : vector<16x8x1xf32> to vector<16x8x8xf32>
    %131 = arith.divf %127, %130 : vector<16x8x8xf32>
    "tpu.trace_start"() <{level = 10 : i32, message = "bqk,bkd->bqd"}> : () -> ()
    %cst_50 = arith.constant dense<0.000000e+00> : vector<16x8x32xf32>
    %132 = tpu.matmul %131, %121, %cst_50 {dimension_numbers = #tpu.dot_dimension_numbers<[2], [1], [1], [2], [0, 0, 0, 1, 1, 2], [0], [0]>} : vector<16x8x8xf32>, vector<16x8x32xf32>, vector<16x8x32xf32> -> vector<16x8x32xf32>
    "tpu.trace_stop"() : () -> ()
    %133 = vector.shape_cast %132 : vector<16x8x32xf32> to vector<128x32xf32>
    %c0_51 = arith.constant 0 : index
    %c64 = arith.constant 64 : index
    %c0_52 = arith.constant 0 : index
    %134 = vector.load %arg7[%c0_51, %c64, %c0_52] : memref<1x128x128xf32, #tpu.memory_space<vmem>>, vector<1x32x128xf32>
    %135 = vector.shape_cast %134 : vector<1x32x128xf32> to vector<32x128xf32>
    %cst_53 = arith.constant dense<0.000000e+00> : vector<128x128xf32>
    %136 = tpu.matmul %133, %135, %cst_53 {dimension_numbers = #tpu.dot_dimension_numbers<[1], [0], [0], [1], [0, 0, 1, 1], [], []>} : vector<128x32xf32>, vector<32x128xf32>, vector<128x128xf32> -> vector<128x128xf32>
    %137 = arith.addf %118, %136 : vector<128x128xf32>
    %138 = vector.extract_strided_slice %77 {offsets = [0, 0, 96], sizes = [16, 8, 32], strides = [1, 1, 1]} : vector<16x8x128xf32> to vector<16x8x32xf32>
    %139 = vector.extract_strided_slice %78 {offsets = [0, 0, 96], sizes = [16, 8, 32], strides = [1, 1, 1]} : vector<16x8x128xf32> to vector<16x8x32xf32>
    %140 = vector.extract_strided_slice %79 {offsets = [0, 0, 96], sizes = [16, 8, 32], strides = [1, 1, 1]} : vector<16x8x128xf32> to vector<16x8x32xf32>
    "tpu.trace_start"() <{level = 10 : i32, message = "bqd,bkd->bqk"}> : () -> ()
    %cst_54 = arith.constant dense<0.000000e+00> : vector<16x8x8xf32>
    %141 = tpu.matmul %138, %139, %cst_54 {dimension_numbers = #tpu.dot_dimension_numbers<[2], [2], [1], [1], [0, 0, 0, 1, 1, 1], [0], [0]>} : vector<16x8x32xf32>, vector<16x8x32xf32>, vector<16x8x8xf32> -> vector<16x8x8xf32>
    "tpu.trace_stop"() : () -> ()
    %cst_55 = arith.constant dense<0xFF800000> : vector<16x8xf32>
    %142 = vector.multi_reduction <maximumf>, %141, %cst_55 [2] : vector<16x8x8xf32> to vector<16x8xf32>
    %143 = vector.shape_cast %142 : vector<16x8xf32> to vector<16x8x1xf32>
    %144 = vector.broadcast %143 : vector<16x8x1xf32> to vector<16x8x8xf32>
    %145 = arith.subf %141, %144 : vector<16x8x8xf32>
    %146 = math.exp %145 : vector<16x8x8xf32>
    %cst_56 = arith.constant dense<0.000000e+00> : vector<16x8xf32>
    %147 = vector.multi_reduction <add>, %146, %cst_56 [2] : vector<16x8x8xf32> to vector<16x8xf32>
    %148 = vector.shape_cast %147 : vector<16x8xf32> to vector<16x8x1xf32>
    %149 = vector.broadcast %148 : vector<16x8x1xf32> to vector<16x8x8xf32>
    %150 = arith.divf %146, %149 : vector<16x8x8xf32>
    "tpu.trace_start"() <{level = 10 : i32, message = "bqk,bkd->bqd"}> : () -> ()
    %cst_57 = arith.constant dense<0.000000e+00> : vector<16x8x32xf32>
    %151 = tpu.matmul %150, %140, %cst_57 {dimension_numbers = #tpu.dot_dimension_numbers<[2], [1], [1], [2], [0, 0, 0, 1, 1, 2], [0], [0]>} : vector<16x8x8xf32>, vector<16x8x32xf32>, vector<16x8x32xf32> -> vector<16x8x32xf32>
    "tpu.trace_stop"() : () -> ()
    %152 = vector.shape_cast %151 : vector<16x8x32xf32> to vector<128x32xf32>
    %c0_58 = arith.constant 0 : index
    %c96 = arith.constant 96 : index
    %c0_59 = arith.constant 0 : index
    %153 = vector.load %arg7[%c0_58, %c96, %c0_59] : memref<1x128x128xf32, #tpu.memory_space<vmem>>, vector<1x32x128xf32>
    %154 = vector.shape_cast %153 : vector<1x32x128xf32> to vector<32x128xf32>
    %cst_60 = arith.constant dense<0.000000e+00> : vector<128x128xf32>
    %155 = tpu.matmul %152, %154, %cst_60 {dimension_numbers = #tpu.dot_dimension_numbers<[1], [0], [0], [1], [0, 0, 1, 1], [], []>} : vector<128x32xf32>, vector<32x128xf32>, vector<128x128xf32> -> vector<128x128xf32>
    %156 = arith.addf %137, %155 : vector<128x128xf32>
    %157 = vector.broadcast %14 : vector<1x128xf32> to vector<128x128xf32>
    %158 = arith.addf %156, %157 : vector<128x128xf32>
    %159 = arith.addf %17, %158 : vector<128x128xf32>
    %cst_61 = arith.constant dense<0.000000e+00> : vector<128xf32>
    %160 = vector.multi_reduction <add>, %159, %cst_61 [1] : vector<128x128xf32> to vector<128xf32>
    %161 = vector.shape_cast %160 : vector<128xf32> to vector<128x1xf32>
    %cst_62 = arith.constant 1.280000e+02 : f32
    %162 = vector.broadcast %cst_62 : f32 to vector<128x1xf32>
    %163 = arith.divf %161, %162 : vector<128x1xf32>
    %164 = vector.broadcast %163 : vector<128x1xf32> to vector<128x128xf32>
    %165 = arith.subf %159, %164 : vector<128x128xf32>
    %166 = arith.mulf %165, %165 : vector<128x128xf32>
    %cst_63 = arith.constant dense<0.000000e+00> : vector<128xf32>
    %167 = vector.multi_reduction <add>, %166, %cst_63 [1] : vector<128x128xf32> to vector<128xf32>
    %168 = vector.shape_cast %167 : vector<128xf32> to vector<128x1xf32>
    %cst_64 = arith.constant 1.280000e+02 : f32
    %169 = vector.broadcast %cst_64 : f32 to vector<128x1xf32>
    %170 = arith.divf %168, %169 : vector<128x1xf32>
    %cst_65 = arith.constant 9.99999974E-6 : f32
    %171 = vector.broadcast %cst_65 : f32 to vector<128x1xf32>
    %172 = arith.addf %170, %171 : vector<128x1xf32>
    %173 = math.rsqrt %172 : vector<128x1xf32>
    %174 = vector.broadcast %173 : vector<128x1xf32> to vector<128x128xf32>
    %175 = arith.mulf %165, %174 : vector<128x128xf32>
    %176 = vector.broadcast %9 : vector<1x128xf32> to vector<128x128xf32>
    %177 = arith.mulf %175, %176 : vector<128x128xf32>
    %178 = vector.broadcast %10 : vector<1x128xf32> to vector<128x128xf32>
    %179 = arith.addf %177, %178 : vector<128x128xf32>
    %c0_66 = arith.constant 0 : index
    %c0_67 = arith.constant 0 : index
    %c0_68 = arith.constant 0 : index
    %180 = vector.load %arg8[%c0_66, %c0_67, %c0_68] : memref<1x128x512xf32, #tpu.memory_space<vmem>>, vector<1x128x512xf32>
    %181 = vector.shape_cast %180 : vector<1x128x512xf32> to vector<128x512xf32>
    %cst_69 = arith.constant dense<0.000000e+00> : vector<128x512xf32>
    %182 = tpu.matmul %179, %181, %cst_69 {dimension_numbers = #tpu.dot_dimension_numbers<[1], [0], [0], [1], [0, 0, 1, 1], [], []>} : vector<128x128xf32>, vector<128x512xf32>, vector<128x512xf32> -> vector<128x512xf32>
    %c0_70 = arith.constant 0 : index
    %c0_71 = arith.constant 0 : index
    %c0_72 = arith.constant 0 : index
    %183 = vector.load %arg11[%c0_70, %c0_71, %c0_72] : memref<1x1x512xf32, #tpu.memory_space<vmem>>, vector<1x1x512xf32>
    %184 = vector.shape_cast %183 : vector<1x1x512xf32> to vector<1x512xf32>
    %185 = vector.broadcast %184 : vector<1x512xf32> to vector<128x512xf32>
    %186 = arith.addf %182, %185 : vector<128x512xf32>
    %cst_73 = arith.constant 1.702000e+00 : f32
    %187 = vector.broadcast %cst_73 : f32 to vector<128x512xf32>
    %188 = arith.mulf %187, %186 : vector<128x512xf32>
    %189 = arith.negf %188 : vector<128x512xf32>
    %190 = math.exp %189 : vector<128x512xf32>
    %cst_74 = arith.constant 1.000000e+00 : f32
    %191 = vector.broadcast %cst_74 : f32 to vector<128x512xf32>
    %192 = arith.addf %191, %190 : vector<128x512xf32>
    %193 = arith.divf %191, %192 : vector<128x512xf32>
    %194 = arith.mulf %186, %193 : vector<128x512xf32>
    %c0_75 = arith.constant 0 : index
    %c0_76 = arith.constant 0 : index
    %c0_77 = arith.constant 0 : index
    %195 = vector.load %arg9[%c0_75, %c0_76, %c0_77] : memref<1x512x128xf32, #tpu.memory_space<vmem>>, vector<1x512x128xf32>
    %196 = vector.shape_cast %195 : vector<1x512x128xf32> to vector<512x128xf32>
    %cst_78 = arith.constant dense<0.000000e+00> : vector<128x128xf32>
    %197 = tpu.matmul %194, %196, %cst_78 {dimension_numbers = #tpu.dot_dimension_numbers<[1], [0], [0], [1], [0, 0, 1, 1], [], []>} : vector<128x512xf32>, vector<512x128xf32>, vector<128x128xf32> -> vector<128x128xf32>
    %198 = vector.broadcast %15 : vector<1x128xf32> to vector<128x128xf32>
    %199 = arith.addf %197, %198 : vector<128x128xf32>
    %200 = arith.addf %159, %199 : vector<128x128xf32>
    %201 = vector.shape_cast %200 : vector<128x128xf32> to vector<16x8x128xf32>
    %c0_79 = arith.constant 0 : index
    %c0_80 = arith.constant 0 : index
    %c0_81 = arith.constant 0 : index
    %202 = vector.load %arg13[%c0_79, %c0_80, %c0_81] : memref<16x8x128xf32, #tpu.memory_space<vmem>>, vector<16x8x128xf32>
    tpu.vector_store %arg13[%c0_79, %c0_80, %c0_81], %201 {strides = array<i32>} : memref<16x8x128xf32, #tpu.memory_space<vmem>>, vector<16x8x128xf32>,
    %c1_i32 = arith.constant 1 : i32
    %203 = arith.cmpi eq, %arg1, %c1_i32 : i32
    %204 = arith.extui %203 : i1 to i32
    %c0_i32_82 = arith.constant 0 : i32
    %205 = arith.cmpi ne, %204, %c0_i32_82 : i32
    scf.if %205 {
      %206 = vector.shape_cast %200 : vector<128x128xf32> to vector<16x8x128xf32>
      %c0_83 = arith.constant 0 : index
      %c0_84 = arith.constant 0 : index
      %c0_85 = arith.constant 0 : index
      %207 = vector.load %arg12[%c0_83, %c0_84, %c0_85] : memref<16x8x128xf32, #tpu.memory_space<vmem>>, vector<16x8x128xf32>
      tpu.vector_store %arg12[%c0_83, %c0_84, %c0_85], %206 {strides = array<i32>} : memref<16x8x128xf32, #tpu.memory_space<vmem>>, vector<16x8x128xf32>,
    } else {
    }
    return
  }
  func.func @transform_0(%arg0: i32, %arg1: i32) -> (i32, i32, i32) {
    %c0_i32 = arith.constant 0 : i32
    %c0_i32_0 = arith.constant 0 : i32
    %c0_i32_1 = arith.constant 0 : i32
    return %arg0, %c0_i32, %c0_i32_0 : i32, i32, i32
  }
  func.func @transform_1(%arg0: i32, %arg1: i32) -> (i32, i32, i32) {
    %c0_i32 = arith.constant 0 : i32
    %c0_i32_0 = arith.constant 0 : i32
    %c0_i32_1 = arith.constant 0 : i32
    return %arg0, %c0_i32, %c0_i32_0 : i32, i32, i32
  }
  func.func @transform_2(%arg0: i32, %arg1: i32) -> (i32, i32, i32) {
    %c0_i32 = arith.constant 0 : i32
    %c0_i32_0 = arith.constant 0 : i32
    %c0_i32_1 = arith.constant 0 : i32
    return %arg1, %c0_i32, %c0_i32_0 : i32, i32, i32
  }
  func.func @transform_3(%arg0: i32, %arg1: i32) -> (i32, i32, i32) {
    %c0_i32 = arith.constant 0 : i32
    %c0_i32_0 = arith.constant 0 : i32
    %c0_i32_1 = arith.constant 0 : i32
    return %arg1, %c0_i32, %c0_i32_0 : i32, i32, i32
  }
  func.func @transform_4(%arg0: i32, %arg1: i32) -> (i32, i32, i32) {
    %c0_i32 = arith.constant 0 : i32
    %c0_i32_0 = arith.constant 0 : i32
    %c0_i32_1 = arith.constant 0 : i32
    return %arg1, %c0_i32, %c0_i32_0 : i32, i32, i32
  }
  func.func @transform_5(%arg0: i32, %arg1: i32) -> (i32, i32, i32) {
    %c0_i32 = arith.constant 0 : i32
    %c0_i32_0 = arith.constant 0 : i32
    %c0_i32_1 = arith.constant 0 : i32
    return %arg1, %c0_i32, %c0_i32_0 : i32, i32, i32
  }
  func.func @transform_6(%arg0: i32, %arg1: i32) -> (i32, i32, i32) {
    %c0_i32 = arith.constant 0 : i32
    %c0_i32_0 = arith.constant 0 : i32
    %c0_i32_1 = arith.constant 0 : i32
    return %arg1, %c0_i32, %c0_i32_0 : i32, i32, i32
  }
  func.func @transform_7(%arg0: i32, %arg1: i32) -> (i32, i32, i32) {
    %c0_i32 = arith.constant 0 : i32
    %c0_i32_0 = arith.constant 0 : i32
    %c0_i32_1 = arith.constant 0 : i32
    return %arg1, %c0_i32, %c0_i32_0 : i32, i32, i32
  }
  func.func @transform_8(%arg0: i32, %arg1: i32) -> (i32, i32, i32) {
    %c0_i32 = arith.constant 0 : i32
    %c0_i32_0 = arith.constant 0 : i32
    %c0_i32_1 = arith.constant 0 : i32
    return %arg1, %c0_i32, %c0_i32_0 : i32, i32, i32
  }
  func.func @transform_9(%arg0: i32, %arg1: i32) -> (i32, i32, i32) {
    %c0_i32 = arith.constant 0 : i32
    %c0_i32_0 = arith.constant 0 : i32
    %c0_i32_1 = arith.constant 0 : i32
    return %arg1, %c0_i32, %c0_i32_0 : i32, i32, i32
  }
  func.func @transform_10(%arg0: i32, %arg1: i32) -> (i32, i32, i32) {
    %c0_i32 = arith.constant 0 : i32
    %c0_i32_0 = arith.constant 0 : i32
    %c0_i32_1 = arith.constant 0 : i32
    return %arg0, %c0_i32, %c0_i32_0 : i32, i32, i32
  }
}

</mosaic_0001>

<bundles_post_ra>
// kernel: tpu_custom_call.1
= control target key start
LH: loop header
LB: loop body
LE: loop exit
PB: predicated region body
PF: predicated region fallthrough
CT: control target
= control target key end

     0   :  { %s22316_s0 = inlined_call_operand.hbm [shape: f32[32,8,128], index: 0, kind: input, shape index: {}]   ;;  %s22317_s1 = inlined_call_operand.hbm [shape: f32[32,8,128], index: 1, kind: input, shape index: {}]   ;;  %s22318_s2 = inlined_call_operand.hbm [shape: f32[2,128,128], index: 2, kind: input, shape index: {}]   ;;  %s22319_s3 = inlined_call_operand.hbm [shape: f32[2,128,128], index: 3, kind: input, shape index: {}]   ;;  %s22320_s4 = inlined_call_operand.hbm [shape: f32[2,128,128], index: 4, kind: input, shape index: {}]   ;;  %s22321_s5 = inlined_call_operand.hbm [shape: f32[2,128,128], index: 5, kind: input, shape index: {}]   ;;  %s22322_s6 = inlined_call_operand.hbm [shape: f32[2,128,512], index: 6, kind: input, shape index: {}]   ;;  %s22323_s7 = inlined_call_operand.hbm [shape: f32[2,512,128], index: 7, kind: input, shape index: {}]   ;;  %s22324_s8 = inlined_call_operand.vmem [shape: f32[2,11,128], index: 8, kind: input, shape index: {}]   ;;  %s22325_s9 = inlined_call_operand.vmem [shape: f32[2,1,512], index: 9, kind: input, shape index: {}]   ;;  %s22326_s10 = inlined_call_operand.hbm [shape: f32[32,8,128], index: 10, kind: output, shape index: {}]  }
   0x1   :  { %22447 = sst [smem:[#allocation102_spill]] %s22316_s0 }
   0x2   :  { %22448 = sst [smem:[#allocation103_spill]] %s22317_s1 }
   0x3   :  { %22449 = sst [smem:[#allocation104_spill]] %s22318_s2 }
   0x4   :  { %22450 = sst [smem:[#allocation105_spill]] %s22319_s3 }
   0x5   :  { %22451 = sst [smem:[#allocation106_spill]] %s22321_s5 }
   0x6   :  { %22452 = sst [smem:[#allocation107_spill]] %s22324_s8 }
   0x7   :  { %22453 = sst [smem:[#allocation108_spill]] %s22325_s9 }
   0x8   :  { %22454 = sst [smem:[#allocation109_spill]] %s22326_s10 }
   0x9   :  { %15 = vsyncpa [#allocation4], 0 }
   0xa   :  { %17 = vsyncpa [#allocation4 + $0x1], 0 }
   0xb   :  { %18 = vsyncpa [#allocation7], 0 }
   0xc   :  { %20 = vsyncpa [#allocation7 + $0x1], 0 }
   0xd   :  { %21 = vsyncpa [#allocation10], 0 }
   0xe   :  { %23 = vsyncpa [#allocation10 + $0x1], 0 }
   0xf   :  { %24 = vsyncpa [#allocation13], 0 }
  0x10   :  { %26 = vsyncpa [#allocation13 + $0x1], 0 }
  0x11   :  { %27 = vsyncpa [#allocation16], 0 }
  0x12   :  { %29 = vsyncpa [#allocation16 + $0x1], 0 }
  0x13   :  { %30 = vsyncpa [#allocation5], 0 }
  0x14   :  { %32 = vsyncpa [#allocation5 + $0x1], 0  ;;  %s18349_s13 = smov 0   ;;  %s18351_s14 = smov 0  }
  0x15   :  { %s18353_s15 = smov 0   ;;  %s18355_s16 = smov 0  }
  0x16   :  { %s18357_s17 = smov 0   ;;  %s18359_s18 = smov 0  }
  0x17   :  { %s18361_s19 = smov 0   ;;  %s18363_s20 = smov 0  }
  0x18   :  { %s18365_s21 = smov 0   ;;  %s18367_s22 = smov 0  }
  0x19   :  { %s18369_s23 = smov 0  }
  0x1a LB: > { %22455 = sst [smem:[#allocation25_spill]] %s18236_s14  ;;  %s18405_s24 = sadd.s32 4294967295, %s18272_s23   ;;  %s18272_s23 = sphi %s18369_s23, %s38_s23   ;;  %s18268_s22 = sphi %s18367_s22, %s22703_s22   ;;  %s18264_s21 = sphi %s18365_s21, %s22702_s21   ;;  %s18260_s20 = sphi %s18363_s20, %s22701_s20   ;;  %s18256_s19 = sphi %s18361_s19, %s22700_s19   ;;  %s18252_s18 = sphi %s18359_s18, %s22699_s18   ;;  %s18248_s17 = sphi %s18357_s17, %s22698_s17   ;;  %s18244_s16 = sphi %s18355_s16, %s22694_s16   ;;  %s18240_s15 = sphi %s18353_s15, %s22693_s15   ;;  %s18236_s14 = sphi %s18351_s14, %s22692_s14   ;;  %s18232_s13 = sphi %s18349_s13, %s22691_s13  }
  0x1b   : > { %22456 = sst [smem:[#allocation26_spill]] %s18240_s15  ;;  %s14890_s25 = sadd.s32 4294967294, %s18272_s23  }
  0x1c   : > { %22457 = sst [smem:[#allocation27_spill]] %s18244_s16  ;;  %p64_p0 = scmp.ne.s32.totalorder %s18252_s18, %s18248_s17 }
  0x1d   : > { %22458 = sst [smem:[#allocation28_spill]] %s18248_s17  ;;  %p22337_p1 = scmp.eq.s32.totalorder %s18272_s23, 0 }
  0x1e   : > { %22459 = sst [smem:[#allocation29_spill]] %s18256_s19  ;;  %p70_p2 = scmp.ne.s32.totalorder %s18248_s17, %s18244_s16 }
  0x1f   : > { %22460 = sst [smem:[#allocation30_spill]] %s18260_s20  ;;  %p22336_p3 = scmp.eq.s32.totalorder %s18405_s24, 0 }
  0x20   : > { %22461 = sst [smem:[#allocation31_spill]] %s18272_s23  ;;  %p66_p4 = por %p22337_p1, %p64_p0 }
  0x21   : > { %22462 = sst [smem:[#allocation32_spill]] %s18405_s24  ;;  %p328_p5 = scmp.eq.s32.totalorder %s18405_s24, 3 }
  0x22   : > { %p18421_p6 = por %p22336_p3, %p70_p2  ;;  %p334_p7 = scmp.eq.s32.totalorder %s14890_s25, 3 }
  0x23   : > { %p18425_p8 = por %p328_p5, %p64_p0  ;;  %p22335_p10 = scmp.lt.s32.totalorder %s18272_s23, 4 }
  0x24   : > { %s22463_s28 = scalar_select %p18421_p6, 1, 0 }
  0x25   : > { %s22465_s29 = scalar_select %p18425_p8, 1, 0 }
  0x26   : > { %22464 = sst [smem:[#allocation33_spill]] %s22463_s28  ;;  %p18429_p9 = por %p334_p7, %p70_p2 }
  0x27   : > { %22466 = sst [smem:[#allocation34_spill]] %s22465_s29  ;;  %s22330_s11 = sand.u32 1, %s18252_s18  }
  0x28   : > { %s22467_s30 = scalar_select %p18429_p9, 1, 0 }
  0x29   : > { %s22333_s12 = sshll.u32 %s18268_s22, 11  ;;  %s18438_s27 = sshll.u32 %s22330_s11, 7 }
  0x2a   : > { %22468 = sst [smem:[#allocation35_spill]] %s22467_s30  ;;  %p18442_p11 = pnand %p22335_p10, %p66_p4 }
  0x2b   : > { %s18447_s25 = sand.u32 1, %s18272_s23   ;;  %s22470_s1 = sld [smem:[#allocation103_spill]] }
  0x2c   : > { %s22469_s26 = scalar_select %p18442_p11, 1, 0 }
  0x2d   : > { %s379_s11 = scalar_lea.vmem [#allocation6], %s18438_s27  ;;  %s22339_s20 = scalar_lea.sflag [#allocation7], %s18447_s25 }
  0x2e   : > { %s386_s29 = sshll.u32 %s379_s11, 4  ;;  %p22351_p0 = pneg %p18442_p11  ;;  %s18457_s29 = int_to_ptr.vmem [resolvable:$true] %s386_s29 }
  0x31   : > { %s18454_s30 = scalar_lea.hbm %s22470_s1, %s22333_s12  ;;  %s17895_s12 = scalar_lea.hbm %s22470_s1, 4096 }
  0x32   : > { %s17890_s9 = scalar_lea.hbm %s18454_s30, 2048  ;;  %p17896_p5 = scmp.lt.u32.totalorder %s18454_s30, %s22470_s1 }
  0x33   : > { %p17891_p13 = scmp.ne.s32.totalorder %s18454_s30, %s17890_s9  ;;  %p17897_p7 = scmp.lt.u32.totalorder %s17895_s12, %s17890_s9 }
  0x34   : > { %p17899_p3 = scmp.lt.u32.totalorder %s17890_s9, %s18454_s30 }
  0x35   : > { %p17893_p2 = pnand %p22351_p0, %p17891_p13  ;;  %p17898_p10 = por %p17897_p7, %p17896_p5 }
  0x37   : > { %p17894_p4 = pneg %p17893_p2  ;;  %p17900_p1 = por %p17899_p3, %p17898_p10 }
  0x39   : > { %p17901_p12 = pnand %p17900_p1, %p17894_p4 }
  0x3b   : > { %17904 = shalt.err (!%p17901_p12)
}
  0x3c   : > { %s17905_s11 = scalar_lea.vmem %s18457_s29, 2048  ;;  %s18274_s10 = smov [#allocation6]  }
  0x3d   : > { %p17906_p13 = scmp.ne.s32.totalorder %s18457_s29, %s17905_s11  ;;  %s17910_s16 = sshll.u32 %s18274_s10, 4  ;;  %s17911_s16 = int_to_ptr.vmem [resolvable:$false] %s17910_s16 }
  0x3e   : > { %s17912_s8 = scalar_lea.vmem %s17911_s16, 4096  ;;  %p17913_p8 = scmp.lt.s32.totalorder %s18457_s29, %s17911_s16 }
  0x3f   : > { %p17908_p2 = pnand %p17906_p13, %p22351_p0  ;;  %p17914_p5 = scmp.lt.s32.totalorder %s17912_s8, %s17905_s11 }
  0x41   : > { %p17909_p9 = pneg %p17908_p2  ;;  %p17915_p7 = por %p17914_p5, %p17913_p8 }
  0x43   : > { %p17916_p3 = pnand %p17915_p7, %p17909_p9 }
  0x45   : > { %17919 = shalt.err (!%p17916_p3)
}
  0x46   : > { %s22340_s9 = smov 128   ;;  %s22342_s19 = smov 8  }
  0x47   : > { %17139 = dma.hbm_to_vmem [thread:$0]  (!%p18442_p11), %s18454_s30, 2048, %s18457_s29, %s22339_s20, %s22340_s9, %s22340_s9, %s22342_s19  }
  0x48   : > { %p535_p1 = scmp.lt.s32.totalorder %s18272_s23, 5  ;;  %p22471_p8 = scmp.ge.s32.totalorder %s18272_s23, 1 }
  0x49   : > { %s47_s11 = sadd.s32 1, %s18264_s21  ;;  %s109_s10 = sadd.s32 1, %s18240_s15 }
  0x4a   : > { %p18494_p9 = pnand %p22471_p8, %p535_p1  ;;  %p48_p10 = scmp.ge.s32.totalorder %s47_s11, 2 }
  0x4b   : > { %p116_p12 = scmp.ne.s32.totalorder %s18240_s15, %s18236_s14  ;;  %p122_p4 = scmp.ne.s32.totalorder %s18236_s14, %s18232_s13 }
  0x4c   : > { %s22472_s12 = scalar_select %p18494_p9, 1, 0 }
  0x4d   : > { %s18505_s16 = sand.u32 1, %s18240_s15   ;;  %s22705_s11 = smov (%p48_p10, %s47_s11), 0 }
  0x4e   : > { %22473 = sst [smem:[#allocation36_spill]] %s22705_s11  ;;  %s22474_s29 = sadd.s32 1, %s18268_s22 }
  0x4f   : > { %s22707_s29 = smov (!%p48_p10, %s22474_s29), %s18268_s22  ;;  %s106_s30 = ssub.s32 %s18264_s21, %s22705_s11 }
  0x50   : > { %p22475_p13 = scmp.eq.s32.totalorder %s18272_s23, 0  ;;  %p52_p5 = scmp.ge.s32.totalorder %s22707_s29, 2 }
  0x51   : > { %p107_p7 = scmp.eq.s32.totalorder %s106_s30, 0  ;;  %p22476_p3 = scmp.eq.s32.totalorder %s18405_s24, 0 }
  0x52   : > { %p118_p2 = por %p116_p12, %p22475_p13  ;;  %s18523_s13 = sshll.u32 %s18505_s16, 7 }
  0x53   : > { %p18518_p1 = por %p122_p4, %p22476_p3  ;;  %s22709_s29 = smov (%p52_p5, %s22707_s29), 0 }
  0x54   : > { %22479 = sst [smem:[#allocation38_spill]] %s22709_s29  ;;  %s54_s9 = ssub.s32 %s18268_s22, %s22709_s29 }
  0x55   : > { %s22477_s8 = scalar_select %p18518_p1, 1, 0 }
  0x56   : > { %s18528_s20 = scalar_select %p107_p7, %s18240_s15, %s109_s10  }
  0x57   : > { %22478 = sst [smem:[#allocation37_spill]] %s22477_s8  ;;  %s18533_s19 = sshll.u32 %s18264_s21, 11 }
  0x58   : > { %22480 = sst [smem:[#allocation39_spill]] %s18528_s20  ;;  %p55_p8 = scmp.eq.s32.totalorder %s54_s9, 0 }
  0x59   : > { %p22481_p10 = scmp.lt.s32.totalorder %s18272_s23, 4  ;;  %s22483_s1 = sadd.s32 1, %s18252_s18 }
  0x5a   : > { %s18544_s11 = scalar_select %p55_p8, %s18252_s18, %s22483_s1  }
  0x5b   : > { %p18537_p12 = pnand %p22481_p10, %p118_p2  ;;  %s22485_s3 = sld [smem:[#allocation105_spill]] }
  0x5c   : > { %22484 = sst [smem:[#allocation40_spill]] %s18544_s11  ;;  %s421_s10 = scalar_lea.vmem [#allocation9], %s18523_s13 }
  0x5d   : > { %s22482_s30 = scalar_select %p18537_p12, 1, 0 }
  0x5e   : > { %s428_s9 = sshll.u32 %s421_s10, 4  ;;  %p18560_p13 = pneg %p18537_p12  ;;  %s18553_s9 = int_to_ptr.vmem [resolvable:$true] %s428_s9 }
  0x61   : > { %s18550_s24 = scalar_lea.hbm %s22485_s3, %s18533_s19  ;;  %s17925_s11 = scalar_lea.hbm %s22485_s3, 4096 }
  0x62   : > { %s17920_s20 = scalar_lea.hbm %s18550_s24, 2048  ;;  %p17926_p7 = scmp.lt.u32.totalorder %s18550_s24, %s22485_s3 }
  0x63   : > { %p17921_p4 = scmp.ne.s32.totalorder %s18550_s24, %s17920_s20  ;;  %p17927_p3 = scmp.lt.u32.totalorder %s17925_s11, %s17920_s20 }
  0x64   : > { %p17929_p10 = scmp.lt.u32.totalorder %s17920_s20, %s18550_s24 }
  0x65   : > { %p17923_p2 = pnand %p18560_p13, %p17921_p4  ;;  %p17928_p8 = por %p17927_p3, %p17926_p7 }
  0x67   : > { %p17924_p5 = pneg %p17923_p2  ;;  %p17930_p0 = por %p17929_p10, %p17928_p8 }
  0x69   : > { %p17931_p1 = pnand %p17930_p0, %p17924_p5 }
  0x6b   : > { %17934 = shalt.err (!%p17931_p1)
}
  0x6c   : > { %s17935_s29 = scalar_lea.vmem %s18553_s9, 2048  ;;  %s18277_s14 = smov [#allocation9]  }
  0x6d   : > { %p17936_p4 = scmp.ne.s32.totalorder %s18553_s9, %s17935_s29  ;;  %s17940_s8 = sshll.u32 %s18277_s14, 4  ;;  %s17941_s8 = int_to_ptr.vmem [resolvable:$false] %s17940_s8 }
  0x6e   : > { %s17942_s15 = scalar_lea.vmem %s17941_s8, 4096  ;;  %p17943_p9 = scmp.lt.s32.totalorder %s18553_s9, %s17941_s8 }
  0x6f   : > { %p17938_p2 = pnand %p17936_p4, %p18560_p13  ;;  %p17944_p11 = scmp.lt.s32.totalorder %s17942_s15, %s17935_s29 }
  0x71   : > { %p17939_p6 = pneg %p17938_p2  ;;  %p17945_p7 = por %p17944_p11, %p17943_p9 }
  0x73   : > { %p17946_p3 = pnand %p17945_p7, %p17939_p6 }
  0x75   : > { %17949 = shalt.err (!%p17946_p3)
}
  0x76   : > { %s22487_s20 = smov 8   ;;  %s22488_s11 = smov 128  }
  0x77   : > { %s22489_s10 = scalar_lea.sflag [#allocation10], %s18447_s25  ;;  %s22490_s5 = sld [smem:[#allocation106_spill]] }
  0x78   : > { %17145 = dma.hbm_to_vmem [thread:$0]  (!%p18537_p12), %s18550_s24, 2048, %s18553_s9, %s22489_s10, %s22488_s11, %s22488_s11, %s22487_s20  }
  0x79   : > { %s463_s15 = scalar_lea.vmem [#allocation12], %s18523_s13  ;;  %s22361_s23 = scalar_lea.sflag [#allocation13], %s18447_s25 }
  0x7a   : > { %s470_s3 = sshll.u32 %s463_s15, 4  ;;  %s18595_s3 = int_to_ptr.vmem [resolvable:$true] %s470_s3 }
  0x7d   : > { %s18592_s29 = scalar_lea.hbm %s22490_s5, %s18533_s19  ;;  %s17955_s10 = scalar_lea.hbm %s22490_s5, 4096 }
  0x7e   : > { %s17950_s28 = scalar_lea.hbm %s18592_s29, 2048  ;;  %p17956_p9 = scmp.lt.u32.totalorder %s18592_s29, %s22490_s5 }
  0x7f   : > { %p17951_p6 = scmp.ne.s32.totalorder %s18592_s29, %s17950_s28  ;;  %p17957_p1 = scmp.lt.u32.totalorder %s17955_s10, %s17950_s28 }
  0x80   : > { %p17959_p8 = scmp.lt.u32.totalorder %s17950_s28, %s18592_s29 }
  0x81   : > { %p17953_p11 = pnand %p17951_p6, %p18560_p13  ;;  %p17958_p5 = por %p17957_p1, %p17956_p9 }
  0x83   : > { %p17954_p0 = pneg %p17953_p11  ;;  %p17960_p10 = por %p17959_p8, %p17958_p5 }
  0x85   : > { %p17961_p4 = pnand %p17960_p10, %p17954_p0 }
  0x87   : > { %17964 = shalt.err (!%p17961_p4)
}
  0x88   : > { %s17965_s15 = scalar_lea.vmem %s18595_s3, 2048  ;;  %s18278_s24 = smov [#allocation12]  }
  0x89   : > { %p17966_p2 = scmp.ne.s32.totalorder %s18595_s3, %s17965_s15  ;;  %s17970_s9 = sshll.u32 %s18278_s24, 4  ;;  %s17971_s9 = int_to_ptr.vmem [resolvable:$false] %s17970_s9 }
  0x8a   : > { %s17972_s14 = scalar_lea.vmem %s17971_s9, 4096  ;;  %p17973_p6 = scmp.lt.s32.totalorder %s18595_s3, %s17971_s9 }
  0x8b   : > { %p17968_p7 = pnand %p17966_p2, %p18560_p13  ;;  %p17974_p11 = scmp.lt.s32.totalorder %s17972_s14, %s17965_s15 }
  0x8d   : > { %p17969_p3 = pneg %p17968_p7  ;;  %p17975_p9 = por %p17974_p11, %p17973_p6 }
  0x8f   : > { %p17976_p1 = pnand %p17975_p9, %p17969_p3 }
  0x91   : > { %17979 = shalt.err (!%p17976_p1)
}
  0x92   : > { %17151 = dma.hbm_to_vmem [thread:$0]  (!%p18537_p12), %s18592_s29, 2048, %s18595_s3, %s22361_s23, %s22488_s11, %s22488_s11, %s22487_s20  }
  0x93   : > { %s22491_s28 = sshll.u32 %s18268_s22, 11  ;;  %s22492_s0 = sld [smem:[#allocation102_spill]] }
  0x94   : > { %s358_s24 = scalar_lea.vmem [#allocation3], %s18438_s27  ;;  %s22493_s2 = sld [smem:[#allocation104_spill]] }
  0x95   : > { %s365_s9 = sshll.u32 %s358_s24, 4  ;;  %s22494_s3 = sand.u32 1, %s18252_s18   ;;  %s18632_s9 = int_to_ptr.vmem [resolvable:$true] %s365_s9 }
  0x96   : > { %s18642_s29 = scalar_lea.sflag [#allocation4], %s22494_s3  ;;  %p22495_p5 = scmp.ne.s32.totalorder %s22469_s26, 0 }
  0x98   : > { %p22496_p8 = pneg %p22495_p5 }
  0x99   : > { %s18629_s15 = scalar_lea.hbm %s22492_s0, %s22491_s28  ;;  %s17985_s27 = scalar_lea.hbm %s22492_s0, 4096 }
  0x9a   : > { %s18638_s17 = scalar_lea.hbm %s22493_s2, %s18533_s19  ;;  %s17980_s23 = scalar_lea.hbm %s18629_s15, 2048 }
  0x9b   : > { %p17981_p0 = scmp.ne.s32.totalorder %s18629_s15, %s17980_s23  ;;  %p17986_p2 = scmp.lt.u32.totalorder %s18629_s15, %s22492_s0 }
  0x9c   : > { %p17987_p7 = scmp.lt.u32.totalorder %s17985_s27, %s17980_s23  ;;  %p17989_p6 = scmp.lt.u32.totalorder %s17980_s23, %s18629_s15 }
  0x9d   : > { %p17983_p10 = pnand %p17981_p0, %p22496_p8 }
  0x9e   : > { %p17988_p3 = por %p17987_p7, %p17986_p2 }
  0x9f   : > { %p17984_p4 = pneg %p17983_p10 }
  0xa0   : > { %p17990_p11 = por %p17989_p6, %p17988_p3 }
  0xa2   : > { %p17991_p9 = pnand %p17990_p11, %p17984_p4 }
  0xa4   : > { %17994 = shalt.err (!%p17991_p9)
}
  0xa5   : > { %s17995_s5 = scalar_lea.vmem %s18632_s9, 2048  ;;  %p22497_p0 = pmov %p22496_p8 }
  0xa6   : > { %p17996_p1 = scmp.ne.s32.totalorder %s18632_s9, %s17995_s5  ;;  %s18279_s14 = smov [#allocation3]  }
  0xa7   : > { %s18000_s3 = sshll.u32 %s18279_s14, 4  ;;  %s18001_s3 = int_to_ptr.vmem [resolvable:$false] %s18000_s3 }
  0xa8   : > { %p17998_p8 = pnand %p17996_p1, %p22497_p0  ;;  %s18002_s28 = scalar_lea.vmem %s18001_s3, 4096 }
  0xa9   : > { %p18003_p12 = scmp.lt.s32.totalorder %s18632_s9, %s18001_s3  ;;  %p18004_p2 = scmp.lt.s32.totalorder %s18002_s28, %s17995_s5 }
  0xaa   : > { %p17999_p10 = pneg %p17998_p8 }
  0xab   : > { %p18005_p7 = por %p18004_p2, %p18003_p12 }
  0xad   : > { %p18006_p3 = pnand %p18005_p7, %p17999_p10 }
  0xaf   : > { %18009 = shalt.err (!%p18006_p3)
}
  0xb0   : > { %17136 = dma.hbm_to_vmem [thread:$0]  (!%p22495_p5), %s18629_s15, 2048, %s18632_s9, %s18642_s29, %s22488_s11, %s22488_s11, %s22487_s20  }
  0xb1   : > { %s400_s23 = scalar_lea.vmem [#allocation8], %s18523_s13  ;;  %s18678_s8 = scalar_lea.hbm %s22320_s4, %s18533_s19 }
  0xb2   : > { %s407_s10 = sshll.u32 %s400_s23, 4  ;;  %s18010_s24 = scalar_lea.hbm %s18638_s17, 2048  ;;  %s18672_s10 = int_to_ptr.vmem [resolvable:$true] %s407_s10 }
  0xb3   : > { %p18011_p12 = scmp.ne.s32.totalorder %s18638_s17, %s18010_s24  ;;  %s18015_s3 = scalar_lea.hbm %s22493_s2, 4096 }
  0xb4   : > { %p18016_p5 = scmp.lt.u32.totalorder %s18638_s17, %s22493_s2  ;;  %p18017_p11 = scmp.lt.u32.totalorder %s18015_s3, %s18010_s24 }
  0xb5   : > { %p18013_p4 = pnand %p18011_p12, %p18560_p13  ;;  %p18019_p1 = scmp.lt.u32.totalorder %s18010_s24, %s18638_s17 }
  0xb6   : > { %p18018_p9 = por %p18017_p11, %p18016_p5 }
  0xb7   : > { %p18014_p6 = pneg %p18013_p4 }
  0xb8   : > { %p18020_p0 = por %p18019_p1, %p18018_p9 }
  0xba   : > { %p18021_p8 = pnand %p18020_p0, %p18014_p6 }
  0xbc   : > { %18024 = shalt.err (!%p18021_p8)
}
  0xbd   : > { %s18025_s19 = scalar_lea.vmem %s18672_s10, 2048  ;;  %s18280_s9 = smov [#allocation8]  }
  0xbe   : > { %p18026_p10 = scmp.ne.s32.totalorder %s18672_s10, %s18025_s19  ;;  %s18030_s29 = sshll.u32 %s18280_s9, 4  ;;  %s18031_s29 = int_to_ptr.vmem [resolvable:$false] %s18030_s29 }
  0xbf   : > { %s18032_s23 = scalar_lea.vmem %s18031_s29, 4096  ;;  %p18033_p3 = scmp.lt.s32.totalorder %s18672_s10, %s18031_s29 }
  0xc0   : > { %p18028_p2 = pnand %p18026_p10, %p18560_p13  ;;  %p18034_p12 = scmp.lt.s32.totalorder %s18032_s23, %s18025_s19 }
  0xc2   : > { %p18029_p7 = pneg %p18028_p2  ;;  %p18035_p4 = por %p18034_p12, %p18033_p3 }
  0xc4   : > { %p18036_p5 = pnand %p18035_p4, %p18029_p7 }
  0xc6   : > { %18039 = shalt.err (!%p18036_p5)
}
  0xc7   : > { %p22498_p6 = scmp.ne.s32.totalorder %s22482_s30, 0  ;;  %s22499_s27 = scalar_lea.sflag [#allocation7], %s18447_s25 }
  0xc8   : > { %s442_s26 = scalar_lea.vmem [#allocation11], %s18523_s13  ;;  %s14911_s5 = sshll.u32 %s18505_s16, 9 }
  0xc9   : > { %17142 = dma.hbm_to_vmem [thread:$0]  (!%p22498_p6), %s18638_s17, 2048, %s18672_s10, %s22499_s27, %s22488_s11, %s22488_s11, %s22487_s20  }
  0xca   : > { %s449_s24 = sshll.u32 %s442_s26, 4  ;;  %s18040_s14 = scalar_lea.hbm %s18678_s8, 2048  ;;  %s18708_s24 = int_to_ptr.vmem [resolvable:$true] %s449_s24 }
  0xcb   : > { %p18041_p11 = scmp.ne.s32.totalorder %s18678_s8, %s18040_s14  ;;  %s18045_s15 = scalar_lea.hbm %s22320_s4, 4096 }
  0xcc   : > { %p18046_p0 = scmp.lt.u32.totalorder %s18678_s8, %s22320_s4  ;;  %p18047_p8 = scmp.lt.u32.totalorder %s18045_s15, %s18040_s14 }
  0xcd   : > { %p18043_p9 = pnand %p18041_p11, %p18560_p13  ;;  %p18049_p2 = scmp.lt.u32.totalorder %s18040_s14, %s18678_s8 }
  0xce   : > { %p18048_p10 = por %p18047_p8, %p18046_p0 }
  0xcf   : > { %p18044_p1 = pneg %p18043_p9 }
  0xd0   : > { %p18050_p7 = por %p18049_p2, %p18048_p10 }
  0xd2   : > { %p18051_p3 = pnand %p18050_p7, %p18044_p1 }
  0xd4   : > { %18054 = shalt.err (!%p18051_p3)
}
  0xd5   : > { %s18055_s17 = scalar_lea.vmem %s18708_s24, 2048  ;;  %s18281_s13 = smov [#allocation11]  }
  0xd6   : > { %p18056_p12 = scmp.ne.s32.totalorder %s18708_s24, %s18055_s17  ;;  %s18060_s10 = sshll.u32 %s18281_s13, 4  ;;  %s18061_s10 = int_to_ptr.vmem [resolvable:$false] %s18060_s10 }
  0xd7   : > { %s18062_s29 = scalar_lea.vmem %s18061_s10, 4096  ;;  %p18063_p11 = scmp.lt.s32.totalorder %s18708_s24, %s18061_s10 }
  0xd8   : > { %p18058_p4 = pnand %p18056_p12, %p18560_p13  ;;  %p18064_p9 = scmp.lt.s32.totalorder %s18062_s29, %s18055_s17 }
  0xda   : > { %p18059_p5 = pneg %p18058_p4  ;;  %p18065_p0 = por %p18064_p9, %p18063_p11 }
  0xdc   : > { %p18066_p8 = pnand %p18065_p0, %p18059_p5 }
  0xde   : > { %18069 = shalt.err (!%p18066_p8)
}
  0xdf   : > { %s22500_s23 = scalar_lea.sflag [#allocation10], %s18447_s25  ;;  %s15263_s27 = sshll.u32 %s18264_s21, 13 }
  0xe0   : > { %17148 = dma.hbm_to_vmem [thread:$0]  (!%p22498_p6), %s18678_s8, 2048, %s18708_s24, %s22500_s23, %s22488_s11, %s22488_s11, %s22487_s20  }
  0xe1   : > { %s484_s26 = scalar_lea.vmem [#allocation14], %s14911_s5  ;;  %s18744_s15 = scalar_lea.hbm %s22322_s6, %s15263_s27 }
  0xe2   : > { %s491_s14 = sshll.u32 %s484_s26, 4  ;;  %s18070_s19 = scalar_lea.hbm %s18744_s15, 8192  ;;  %s18746_s14 = int_to_ptr.vmem [resolvable:$true] %s491_s14 }
  0xe3   : > { %p18071_p1 = scmp.ne.s32.totalorder %s18744_s15, %s18070_s19  ;;  %s18075_s9 = scalar_lea.hbm %s22322_s6, 16384 }
  0xe4   : > { %p18076_p7 = scmp.lt.u32.totalorder %s18744_s15, %s22322_s6  ;;  %p18077_p3 = scmp.lt.u32.totalorder %s18075_s9, %s18070_s19 }
  0xe5   : > { %p18073_p10 = pnand %p18071_p1, %p18560_p13  ;;  %p18079_p4 = scmp.lt.u32.totalorder %s18070_s19, %s18744_s15 }
  0xe6   : > { %p18078_p12 = por %p18077_p3, %p18076_p7 }
  0xe7   : > { %p18074_p2 = pneg %p18073_p10 }
  0xe8   : > { %p18080_p5 = por %p18079_p4, %p18078_p12 }
  0xea   : > { %p18081_p11 = pnand %p18080_p5, %p18074_p2 }
  0xec   : > { %18084 = shalt.err (!%p18081_p11)
}
  0xed   : > { %s18085_s10 = scalar_lea.vmem %s18746_s14, 8192  ;;  %s18282_s29 = smov [#allocation14]  }
  0xee   : > { %p18086_p9 = scmp.ne.s32.totalorder %s18746_s14, %s18085_s10  ;;  %s18090_s23 = sshll.u32 %s18282_s29, 4  ;;  %s18091_s23 = int_to_ptr.vmem [resolvable:$false] %s18090_s23 }
  0xef   : > { %s18092_s26 = scalar_lea.vmem %s18091_s23, 16384  ;;  %p18093_p1 = scmp.lt.s32.totalorder %s18746_s14, %s18091_s23 }
  0xf0   : > { %p18088_p0 = pnand %p18086_p9, %p18560_p13  ;;  %p18094_p10 = scmp.lt.s32.totalorder %s18092_s26, %s18085_s10 }
  0xf2   : > { %p18089_p8 = pneg %p18088_p0  ;;  %p18095_p7 = por %p18094_p10, %p18093_p1 }
  0xf4   : > { %p18096_p3 = pnand %p18095_p7, %p18089_p8 }
  0xf6   : > { %18099 = shalt.err (!%p18096_p3)
}
  0xf7   : > { %s18283_s3 = smov 512   ;;  %s18284_s28 = smov 32  }
  0xf8   : > { %s22501_s19 = scalar_lea.sflag [#allocation13], %s18447_s25  ;;  %s18776_s9 = scalar_lea.hbm %s22323_s7, %s15263_s27 }
  0xf9   : > { %17154 = dma.hbm_to_vmem [thread:$0]  (!%p22498_p6), %s18744_s15, 8192, %s18746_s14, %s22501_s19, %s18283_s3, %s18283_s3, %s18284_s28  }
  0xfa   : > { %s505_s17 = scalar_lea.vmem [#allocation15], %s14911_s5  ;;  %s502_s10 = scalar_lea.sflag [#allocation16], %s18505_s16 }
  0xfb   : > { %s512_s13 = sshll.u32 %s505_s17, 4  ;;  %s18100_s29 = scalar_lea.hbm %s18776_s9, 8192  ;;  %s18780_s13 = int_to_ptr.vmem [resolvable:$true] %s512_s13 }
  0xfc   : > { %p18101_p2 = scmp.ne.s32.totalorder %s18776_s9, %s18100_s29  ;;  %s18105_s27 = scalar_lea.hbm %s22323_s7, 16384 }
  0xfd   : > { %p18106_p5 = scmp.lt.u32.totalorder %s18776_s9, %s22323_s7  ;;  %p18107_p11 = scmp.lt.u32.totalorder %s18105_s27, %s18100_s29 }
  0xfe   : > { %p18103_p12 = pnand %p18101_p2, %p18560_p13  ;;  %p18109_p0 = scmp.lt.u32.totalorder %s18100_s29, %s18776_s9 }
  0xff   : > { %p18108_p9 = por %p18107_p11, %p18106_p5 }
 0x100   : > { %p18104_p4 = pneg %p18103_p12 }
 0x101   : > { %p18110_p8 = por %p18109_p0, %p18108_p9 }
 0x103   : > { %p18111_p1 = pnand %p18110_p8, %p18104_p4 }
 0x105   : > { %18114 = shalt.err (!%p18111_p1)
}
 0x106   : > { %s18115_s5 = scalar_lea.vmem %s18780_s13, 8192  ;;  %s18285_s26 = smov [#allocation15]  }
 0x107   : > { %p18116_p10 = scmp.ne.s32.totalorder %s18780_s13, %s18115_s5  ;;  %s18120_s3 = sshll.u32 %s18285_s26, 4  ;;  %s18121_s3 = int_to_ptr.vmem [resolvable:$false] %s18120_s3 }
 0x108   : > { %s18122_s28 = scalar_lea.vmem %s18121_s3, 16384  ;;  %p18123_p2 = scmp.lt.s32.totalorder %s18780_s13, %s18121_s3 }
 0x109   : > { %p18118_p7 = pnand %p18116_p10, %p18560_p13  ;;  %p18124_p12 = scmp.lt.s32.totalorder %s18122_s28, %s18115_s5 }
 0x10b   : > { %p18119_p3 = pneg %p18118_p7  ;;  %p18125_p5 = por %p18124_p12, %p18123_p2 }
 0x10d   : > { %p18126_p11 = pnand %p18125_p5, %p18119_p3 }
 0x10f   : > { %18129 = shalt.err (!%p18126_p11)
}
 0x110   : > { %17157 = dma.hbm_to_vmem [thread:$0]  (!%p22498_p6), %s18776_s9, 8192, %s18780_s13, %s502_s10, %s22488_s11, %s22488_s11, %s22487_s20  }
 0x111   : > { %p22502_p13 = scmp.ne.s32.totalorder %s22472_s12, 0 }
 0x113   : > { %539 = sbr.rel (%p22502_p13) target bundleno = 4987 (0x137b), region = 60 }
 0x11a   : > { %s22503_s1 = sld [smem:[#allocation28_spill]]  ;;  %s22504_s19 = sld [smem:[#allocation33_spill]] }
 0x120   : > { %s18812_s8 = sand.u32 1, %s22503_s1   ;;  %p22505_p4 = scmp.ne.s32.totalorder %s22504_s19, 0 }
 0x121   : > { %s18815_s24 = sshll.u32 %s18812_s8, 7  ;;  %s542_s30 = scalar_lea.sflag [#allocation4], %s18812_s8 }
 0x122   : > { %s18819_s17 = scalar_lea.vmem [#allocation3], %s18815_s24 }
 0x123   : > { %18203 = dma.done.wait (%p22505_p4), %s542_s30, 2048  }
 0x124   : > { %18205 = vsyncadd (%p22505_p4), %s542_s30, 4294965248  ;;  %s22506_s16 = sld [smem:[#allocation32_spill]]  ;;  %s18827_s11 = scalar_lea.vmem [#allocation6], %s18815_s24 }
 0x12a   : > { %s550_s12 = sand.u32 1, %s22506_s16  }
 0x12b   : > { %s551_s20 = scalar_lea.sflag [#allocation7], %s550_s12 }
 0x12c   : > { %18207 = dma.done.wait (%p22505_p4), %s551_s20, 2048  }
 0x12d   : > { %18209 = vsyncadd (%p22505_p4), %s551_s20, 4294965248  ;;  %s22507_s9 = sld [smem:[#allocation25_spill]]  ;;  %s22508_s13 = sld [smem:[#allocation37_spill]] }
 0x133   : > { %s561_s10 = sand.u32 1, %s22507_s9   ;;  %p22509_p6 = scmp.ne.s32.totalorder %s22508_s13, 0 }
 0x134   : > { %s14920_s29 = sshll.u32 %s561_s10, 7 }
 0x135   : > { %s18834_s25 = scalar_lea.vmem [#allocation8], %s14920_s29 }
 0x136   : > { %18211 = dma.done.wait (%p22509_p6), %s551_s20, 2048  }
 0x137   : > { %18213 = vsyncadd (%p22509_p6), %s551_s20, 4294965248  ;;  %s569_s14 = scalar_lea.sflag [#allocation10], %s550_s12  ;;  %s18840_s27 = scalar_lea.vmem [#allocation9], %s14920_s29 }
 0x138   : > { %18215 = dma.done.wait (%p22509_p6), %s569_s14, 4096  }
 0x139   : > { %18217 = vsyncadd (%p22509_p6), %s569_s14, 4294963200  ;;  %s18846_s15 = scalar_lea.vmem [#allocation11], %s14920_s29  ;;  %s587_s23 = scalar_lea.sflag [#allocation13], %s550_s12 }
 0x13a   : > { %s18848_s5 = scalar_lea.vmem [#allocation12], %s14920_s29 }
 0x13b   : > { %18219 = dma.done.wait (%p22509_p6), %s587_s23, 10240  }
 0x13c   : > { %18221 = vsyncadd (%p22509_p6), %s587_s23, 4294957056  ;;  %s14924_s26 = sshll.u32 %s561_s10, 9  ;;  %s605_s28 = scalar_lea.sflag [#allocation16], %s561_s10 }
 0x13d   : > { %s18854_s3 = scalar_lea.vmem [#allocation14], %s14924_s26  ;;  %s18856_s1 = scalar_lea.vmem [#allocation15], %s14924_s26 }
 0x13e   : > { %18223 = dma.done.wait (%p22509_p6), %s605_s28, 8192  }
 0x13f   : > { %18225 = vsyncadd (%p22509_p6), %s605_s28, 4294959104  ;;  %s22510_s19 = sld [smem:[#allocation29_spill]]  ;;  %s22511_s29 = sld [smem:[#allocation107_spill]] }
 0x140   : > { %s22512_s26 = sld [smem:[#allocation108_spill]]  ;;  %s18875_s2 = scalar_lea.vmem [#allocation17], %s18815_s24 }
 0x145   : > { %p691_p9 = scmp.lt.s32.totalorder %s22510_s19, 1  ;;  %p14930_p0 = scmp.ne.s32.totalorder %s22510_s19, 0 }
 0x146   : > { %v705_v0 = vld [vmem:[%s18827_s11] sm:$0xff] (!%p14930_p0)  ;;  %v706_v1 = vld [vmem:[%s18827_s11 + $0x8] sm:$0xff] (!%p14930_p0)  ;;  %v707_v2 = vld [vmem:[%s18827_s11 + $0x10] sm:$0xff] (!%p14930_p0) }
 0x147   : > { %s692_s30 = scalar_select %p691_p9, %s22510_s19, 1 }
 0x148   : > { %704 = sbr.rel (%p14930_p0) target bundleno = 336 (0x150), region = 96  ;;  %721 = vst [vmem:[#allocation2] sm:$0xff] (!%p14930_p0), %v705_v0  ;;  %722 = vst [vmem:[#allocation2 + $0x8] sm:$0xff] (!%p14930_p0), %v706_v1  ;;  %v708_v3 = vld [vmem:[%s18827_s11 + $0x18] sm:$0xff] (!%p14930_p0)  ;;  %v709_v4 = vld [vmem:[%s18827_s11 + $0x20] sm:$0xff] (!%p14930_p0) }
 0x149   : > { %s15265_s16 = sshll.u32 %s692_s30, 4  ;;  %s14929_s12 = sshll.u32 %s692_s30, 2  ;;  %723 = vst [vmem:[#allocation2 + $0x10] sm:$0xff] (!%p14930_p0), %v707_v2  ;;  %v710_v5 = vld [vmem:[%s18827_s11 + $0x28] sm:$0xff] (!%p14930_p0)  ;;  %724 = vst [vmem:[#allocation2 + $0x18] sm:$0xff] (!%p14930_p0), %v708_v3  ;;  %v711_v6 = vld [vmem:[%s18827_s11 + $0x30] sm:$0xff] (!%p14930_p0) }
 0x14a   : > { %s18867_s14 = scalar_lea.vmem %s22511_s29, %s15265_s16  ;;  %s18872_s0 = scalar_lea.vmem %s22512_s26, %s14929_s12  ;;  %725 = vst [vmem:[#allocation2 + $0x20] sm:$0xff] (!%p14930_p0), %v709_v4  ;;  %726 = vst [vmem:[#allocation2 + $0x28] sm:$0xff] (!%p14930_p0), %v710_v5  ;;  %v712_v7 = vld [vmem:[%s18827_s11 + $0x38] sm:$0xff] (!%p14930_p0)  ;;  %v713_v8 = vld [vmem:[%s18827_s11 + $0x40] sm:$0xff] (!%p14930_p0) }
 0x14b   : > { %727 = vst [vmem:[#allocation2 + $0x30] sm:$0xff] (!%p14930_p0), %v711_v6  ;;  %728 = vst [vmem:[#allocation2 + $0x38] sm:$0xff] (!%p14930_p0), %v712_v7  ;;  %v714_v9 = vld [vmem:[%s18827_s11 + $0x48] sm:$0xff] (!%p14930_p0)  ;;  %v715_v10 = vld [vmem:[%s18827_s11 + $0x50] sm:$0xff] (!%p14930_p0) }
 0x14c   : > { %729 = vst [vmem:[#allocation2 + $0x40] sm:$0xff] (!%p14930_p0), %v713_v8  ;;  %v716_v11 = vld [vmem:[%s18827_s11 + $0x58] sm:$0xff] (!%p14930_p0)  ;;  %730 = vst [vmem:[#allocation2 + $0x48] sm:$0xff] (!%p14930_p0), %v714_v9  ;;  %v717_v12 = vld [vmem:[%s18827_s11 + $0x60] sm:$0xff] (!%p14930_p0) }
 0x14d   : > { %731 = vst [vmem:[#allocation2 + $0x50] sm:$0xff] (!%p14930_p0), %v715_v10  ;;  %732 = vst [vmem:[#allocation2 + $0x58] sm:$0xff] (!%p14930_p0), %v716_v11  ;;  %v718_v13 = vld [vmem:[%s18827_s11 + $0x68] sm:$0xff] (!%p14930_p0)  ;;  %v719_v14 = vld [vmem:[%s18827_s11 + $0x70] sm:$0xff] (!%p14930_p0) }
 0x14e   : > { %733 = vst [vmem:[#allocation2 + $0x60] sm:$0xff] (!%p14930_p0), %v717_v12  ;;  %734 = vst [vmem:[#allocation2 + $0x68] sm:$0xff] (!%p14930_p0), %v718_v13  ;;  %v720_v15 = vld [vmem:[%s18827_s11 + $0x78] sm:$0xff] (!%p14930_p0) }
 0x14f   : > { %735 = vst [vmem:[#allocation2 + $0x70] sm:$0xff] %v719_v14  ;;  %736 = vst [vmem:[#allocation2 + $0x78] sm:$0xff] %v720_v15 }
 0x150 PF: > { %v18894_v16 = vld [vmem:[#allocation2] sm:$0xff]  ;;  %v18896_v17 = vld [vmem:[#allocation2 + $0x8] sm:$0xff]  ;;  %v18911_v21 = vld [vmem:[%s18819_s17 + $0x10] sm:$0xff]  ;;  %vm18287_vm0 = vmmov 0   ;;  %vm1715_vm1 = vcmask 261120   ;;  %s18288_s24 = smov 96  }
 0x151   : > { %988 = vadd.xlane.f32.xlu0 %v18894_v16  ;;  %990 = vadd.xlane.f32.xlu1 %v18896_v17  ;;  %v18901_v18 = vld [vmem:[%s18819_s17] sm:$0xff]  ;;  %v18904_v19 = vld [vmem:[%s18819_s17 + $0x8] sm:$0xff]  ;;  %v18908_v20 = vld [vmem:[#allocation2 + $0x10] sm:$0xff]  ;;  %vm2932_vm2 = vcmask 64512   ;;  %s18290_s11 = smov 32  }
 0x152   : > { %v18915_v22 = vld [vmem:[#allocation2 + $0x18] sm:$0xff]  ;;  %v18922_v24 = vld [vmem:[#allocation2 + $0x20] sm:$0xff]  ;;  %v18929_v26 = vld [vmem:[#allocation2 + $0x28] sm:$0xff] }
 0x153   : > { %v18918_v23 = vld [vmem:[%s18819_s17 + $0x18] sm:$0xff]  ;;  %v18925_v25 = vld [vmem:[%s18819_s17 + $0x20] sm:$0xff]  ;;  %v18932_v27 = vld [vmem:[%s18819_s17 + $0x28] sm:$0xff] }
 0x154   : > { %v18936_v28 = vld [vmem:[#allocation2 + $0x30] sm:$0xff]  ;;  %v18943_v30 = vld [vmem:[#allocation2 + $0x38] sm:$0xff]  ;;  %v18950_v32 = vld [vmem:[#allocation2 + $0x40] sm:$0xff] }
 0x155   : > { %771 = vadd.xlane.f32.xlu0 %v18901_v18  ;;  %773 = vadd.xlane.f32.xlu1 %v18904_v19  ;;  %v18939_v29 = vld [vmem:[%s18819_s17 + $0x30] sm:$0xff]  ;;  %v18946_v31 = vld [vmem:[%s18819_s17 + $0x38] sm:$0xff]  ;;  %v18953_v33 = vld [vmem:[%s18819_s17 + $0x40] sm:$0xff] }
 0x156   : > { %v18957_v34 = vld [vmem:[#allocation2 + $0x48] sm:$0xff]  ;;  %v18964_v36 = vld [vmem:[#allocation2 + $0x50] sm:$0xff]  ;;  %v18971_v38 = vld [vmem:[#allocation2 + $0x58] sm:$0xff] }
 0x157   : > { %v18960_v35 = vld [vmem:[%s18819_s17 + $0x48] sm:$0xff]  ;;  %v18967_v37 = vld [vmem:[%s18819_s17 + $0x50] sm:$0xff]  ;;  %v18974_v39 = vld [vmem:[%s18819_s17 + $0x58] sm:$0xff] }
 0x158   : > { %v18978_v40 = vld [vmem:[#allocation2 + $0x60] sm:$0xff]  ;;  %v18985_v42 = vld [vmem:[#allocation2 + $0x68] sm:$0xff]  ;;  %v18992_v44 = vld [vmem:[#allocation2 + $0x70] sm:$0xff] }
 0x159   : > { %992 = vadd.xlane.f32.xlu0 %v18908_v20  ;;  %775 = vadd.xlane.f32.xlu1 %v18911_v21  ;;  %v18981_v41 = vld [vmem:[%s18819_s17 + $0x60] sm:$0xff]  ;;  %v18988_v43 = vld [vmem:[%s18819_s17 + $0x68] sm:$0xff]  ;;  %v18995_v45 = vld [vmem:[%s18819_s17 + $0x70] sm:$0xff] }
 0x15a   : > { %v18999_v46 = vld [vmem:[#allocation2 + $0x78] sm:$0xff]  ;;  %v1385_v48 = vld [vmem:[%s18840_s27] sm:$0xff]  ;;  %v1386_v49 = vld [vmem:[%s18840_s27 + $0x8] sm:$0xff] }
 0x15b   : > { %v19002_v47 = vld [vmem:[%s18819_s17 + $0x78] sm:$0xff]  ;;  %v1204_v50 = vld [vmem:[%s18834_s25] sm:$0xff]  ;;  %v16827_v51 = vpack.c.bf16 %v1386_v49, %v1385_v48  ;;  %v1205_v52 = vld [vmem:[%s18834_s25 + $0x8] sm:$0xff]  ;;  %s18289_s17 = smov 64  }
 0x15c   : > { %v1387_v53 = vld [vmem:[%s18840_s27 + $0x10] sm:$0xff]  ;;  %v1388_v54 = vld [vmem:[%s18840_s27 + $0x18] sm:$0xff]  ;;  %v16795_v55 = vpack.c.bf16 %v1205_v52, %v1204_v50 }
 0x15d   : > { %994 = vadd.xlane.f32.xlu0 %v18915_v22  ;;  %777 = vadd.xlane.f32.xlu1 %v18918_v23  ;;  %v16831_v56 = vpack.c.bf16 %v1388_v54, %v1387_v53 }
 0x15e   : > { %16828 = vmatprep.subr.bf16.mxu1 %v16827_v51  ;;  %16796 = vmatprep.subr.bf16.mxu0 %v16795_v55 }
 0x15f   : > { %16830 = vmatpush3.bf16.msra.mxu1 %v16827_v51  ;;  %16798 = vmatpush3.bf16.msra.mxu0 %v16795_v55 }
 0x160   : > { %16832 = vmatprep.subr.bf16.mxu1 %v16831_v56 }
 0x161   : > { %996 = vadd.xlane.f32.xlu0 %v18922_v24  ;;  %779 = vadd.xlane.f32.xlu1 %v18925_v25 }
 0x163   : > { %16834 = vmatpush3.bf16.msra.mxu1 %v16831_v56  ;;  %v1207_v56 = vld [vmem:[%s18834_s25 + $0x18] sm:$0xff] }
 0x165   : > { %998 = vadd.xlane.f32.xlu0 %v18929_v26  ;;  %781 = vadd.xlane.f32.xlu1 %v18932_v27 }
 0x169   : > { %1000 = vadd.xlane.f32.xlu0 %v18936_v28  ;;  %783 = vadd.xlane.f32.xlu1 %v18939_v29 }
 0x16d   : > { %1002 = vadd.xlane.f32.xlu0 %v18943_v30  ;;  %785 = vadd.xlane.f32.xlu1 %v18946_v31 }
 0x171   : > { %1004 = vadd.xlane.f32.xlu0 %v18950_v32  ;;  %787 = vadd.xlane.f32.xlu1 %v18953_v33 }
 0x175   : > { %1006 = vadd.xlane.f32.xlu0 %v18957_v34  ;;  %789 = vadd.xlane.f32.xlu1 %v18960_v35 }
 0x179   : > { %1008 = vadd.xlane.f32.xlu0 %v18964_v36  ;;  %791 = vadd.xlane.f32.xlu1 %v18967_v37 }
 0x17d   : > { %1010 = vadd.xlane.f32.xlu0 %v18971_v38  ;;  %793 = vadd.xlane.f32.xlu1 %v18974_v39 }
 0x181   : > { %1012 = vadd.xlane.f32.xlu0 %v18978_v40  ;;  %795 = vadd.xlane.f32.xlu1 %v18981_v41 }
 0x185   : > { %1014 = vadd.xlane.f32.xlu0 %v18985_v42  ;;  %797 = vadd.xlane.f32.xlu1 %v18988_v43 }
 0x189   : > { %1016 = vadd.xlane.f32.xlu0 %v18992_v44  ;;  %799 = vadd.xlane.f32.xlu1 %v18995_v45 }
 0x18d   : > { %1018 = vadd.xlane.f32.xlu0 %v18999_v46  ;;  %801 = vadd.xlane.f32.xlu1 %v19002_v47 }
 0x1de   : > { %v989_v57 = vpop.xlane.xlu0 %988  ;;  %v991_v58 = vpop.xlane.xlu1 %990 }
 0x1df   : > { %v1020_v59 = vmul.f32 0.0078125, %v989_v57  ;;  %v1021_v60 = vmul.f32 0.0078125, %v991_v58  ;;  %v1389_v57 = vld [vmem:[%s18840_s27 + $0x20] sm:$0xff] }
 0x1e1   : > { %v19013_v61 = vsub.f32 %v18894_v16, %v1020_v59  ;;  %v19016_v62 = vsub.f32 %v18896_v17, %v1021_v60 }
 0x1e2   : > { %v772_v63 = vpop.xlane.xlu0 %771  ;;  %v774_v0 = vpop.xlane.xlu1 %773 }
 0x1e3   : > { %v804_v1 = vmul.f32 0.0078125, %v772_v63  ;;  %v1052_v2 = vmul.f32 %v19013_v61, %v19013_v61  ;;  %v805_v3 = vmul.f32 0.0078125, %v774_v0  ;;  %v1053_v4 = vmul.f32 %v19016_v62, %v19016_v62  ;;  %v1390_v63 = vld [vmem:[%s18840_s27 + $0x28] sm:$0xff] }
 0x1e5   : > { %1068 = vadd.xlane.f32.xlu0 %v1052_v2  ;;  %v19023_v5 = vsub.f32 %v18901_v18, %v804_v1  ;;  %v19026_v6 = vsub.f32 %v18904_v19, %v805_v3 }
 0x1e6   : > { %v993_v7 = vpop.xlane.xlu0 %992  ;;  %v776_v8 = vpop.xlane.xlu1 %775 }
 0x1e7   : > { %v1022_v9 = vmul.f32 0.0078125, %v993_v7  ;;  %v836_v10 = vmul.f32 %v19023_v5, %v19023_v5  ;;  %v806_v11 = vmul.f32 0.0078125, %v776_v8  ;;  %v837_v12 = vmul.f32 %v19026_v6, %v19026_v6 }
 0x1e9   : > { %1070 = vadd.xlane.f32.xlu0 %v1053_v4  ;;  %852 = vadd.xlane.f32.xlu1 %v836_v10  ;;  %v19033_v13 = vsub.f32 %v18908_v20, %v1022_v9  ;;  %v19036_v14 = vsub.f32 %v18911_v21, %v806_v11  ;;  %v1208_v9 = vld [vmem:[%s18834_s25 + $0x20] sm:$0xff]  ;;  %v1209_v10 = vld [vmem:[%s18834_s25 + $0x28] sm:$0xff]  ;;  %v1391_v11 = vld [vmem:[%s18840_s27 + $0x30] sm:$0xff] }
 0x1ea   : > { %v995_v15 = vpop.xlane.xlu0 %994  ;;  %v778_v16 = vpop.xlane.xlu1 %777 }
 0x1eb   : > { %v1023_v17 = vmul.f32 0.0078125, %v995_v15  ;;  %v1054_v18 = vmul.f32 %v19033_v13, %v19033_v13  ;;  %v807_v19 = vmul.f32 0.0078125, %v778_v16  ;;  %v838_v48 = vmul.f32 %v19036_v14, %v19036_v14 }
 0x1ed   : > { %854 = vadd.xlane.f32.xlu1 %v837_v12  ;;  %1072 = vadd.xlane.f32.xlu0 %v1054_v18  ;;  %v19043_v20 = vsub.f32 %v18915_v22, %v1023_v17  ;;  %v19046_v21 = vsub.f32 %v18918_v23, %v807_v19  ;;  %v1206_v23 = vld [vmem:[%s18834_s25 + $0x10] sm:$0xff]  ;;  %v16803_v17 = vpack.c.bf16 %v1209_v10, %v1208_v9 }
 0x1ee   : > { %v997_v49 = vpop.xlane.xlu0 %996  ;;  %v780_v50 = vpop.xlane.xlu1 %779  ;;  %v16799_v60 = vpack.c.bf16 %v1207_v56, %v1206_v23 }
 0x1ef   : > { %v1024_v51 = vmul.f32 0.0078125, %v997_v49  ;;  %v1055_v52 = vmul.f32 %v19043_v20, %v19043_v20  ;;  %v808_v53 = vmul.f32 0.0078125, %v780_v50  ;;  %v839_v54 = vmul.f32 %v19046_v21, %v19046_v21 }
 0x1f0   : > { %16800 = vmatprep.subr.bf16.mxu0 %v16799_v60 }
 0x1f1   : > { %856 = vadd.xlane.f32.xlu1 %v838_v48  ;;  %1074 = vadd.xlane.f32.xlu0 %v1055_v52  ;;  %v19053_v55 = vsub.f32 %v18922_v24, %v1024_v51  ;;  %v19056_v22 = vsub.f32 %v18925_v25, %v808_v53  ;;  %v16835_v24 = vpack.c.bf16 %v1390_v63, %v1389_v57  ;;  %v1210_v51 = vld [vmem:[%s18834_s25 + $0x30] sm:$0xff]  ;;  %v1211_v52 = vld [vmem:[%s18834_s25 + $0x38] sm:$0xff]  ;;  %v1393_v53 = vld [vmem:[%s18840_s27 + $0x40] sm:$0xff] }
 0x1f2   : > { %v999_v58 = vpop.xlane.xlu0 %998  ;;  %v782_v59 = vpop.xlane.xlu1 %781  ;;  %16802 = vmatpush3.bf16.msra.mxu0 %v16799_v60 }
 0x1f3   : > { %v1025_v0 = vmul.f32 0.0078125, %v999_v58  ;;  %v1056_v1 = vmul.f32 %v19053_v55, %v19053_v55  ;;  %v809_v2 = vmul.f32 0.0078125, %v782_v59  ;;  %v840_v25 = vmul.f32 %v19056_v22, %v19056_v22  ;;  %16836 = vmatprep.subr.bf16.mxu1 %v16835_v24  ;;  %16804 = vmatprep.subr.bf16.mxu0 %v16803_v17 }
 0x1f4   : > { %16838 = vmatpush3.bf16.msra.mxu1 %v16835_v24  ;;  %v1395_v24 = vld [vmem:[%s18840_s27 + $0x50] sm:$0xff] }
 0x1f5   : > { %858 = vadd.xlane.f32.xlu1 %v839_v54  ;;  %1076 = vadd.xlane.f32.xlu0 %v1056_v1  ;;  %v19067_v3 = vsub.f32 %v18929_v26, %v1025_v0  ;;  %v19070_v4 = vsub.f32 %v18932_v27, %v809_v2  ;;  %v1392_v26 = vld [vmem:[%s18840_s27 + $0x38] sm:$0xff]  ;;  %v1212_v1 = vld [vmem:[%s18834_s25 + $0x40] sm:$0xff]  ;;  %v1213_v2 = vld [vmem:[%s18834_s25 + $0x48] sm:$0xff] }
 0x1f6   : > { %v1001_v7 = vpop.xlane.xlu0 %1000  ;;  %v784_v8 = vpop.xlane.xlu1 %783  ;;  %v16839_v27 = vpack.c.bf16 %v1392_v26, %v1391_v11  ;;  %16806 = vmatpush3.bf16.msra.mxu0 %v16803_v17  ;;  %v1214_v26 = vld [vmem:[%s18834_s25 + $0x50] sm:$0xff]  ;;  %v1215_v17 = vld [vmem:[%s18834_s25 + $0x58] sm:$0xff] }
 0x1f7   : > { %v1026_v12 = vmul.f32 0.0078125, %v1001_v7  ;;  %v1057_v15 = vmul.f32 %v19067_v3, %v19067_v3  ;;  %v810_v16 = vmul.f32 0.0078125, %v784_v8  ;;  %v841_v18 = vmul.f32 %v19070_v4, %v19070_v4 }
 0x1f8   : > { %16840 = vmatprep.subr.bf16.mxu1 %v16839_v27 }
 0x1f9   : > { %860 = vadd.xlane.f32.xlu1 %v840_v25  ;;  %1078 = vadd.xlane.f32.xlu0 %v1057_v15  ;;  %v19081_v19 = vsub.f32 %v18936_v28, %v1026_v12  ;;  %v19084_v48 = vsub.f32 %v18939_v29, %v810_v16  ;;  %v1394_v28 = vld [vmem:[%s18840_s27 + $0x48] sm:$0xff]  ;;  %v16807_v29 = vpack.c.bf16 %v1211_v52, %v1210_v51 }
 0x1fa   : > { %v1003_v49 = vpop.xlane.xlu0 %1002  ;;  %v786_v50 = vpop.xlane.xlu1 %785  ;;  %16842 = vmatpush3.bf16.msra.mxu1 %v16839_v27  ;;  %v16843_v57 = vpack.c.bf16 %v1394_v28, %v1393_v53  ;;  %v1397_v27 = vld [vmem:[%s18840_s27 + $0x60] sm:$0xff] }
 0x1fb   : > { %v1027_v54 = vmul.f32 0.0078125, %v1003_v49  ;;  %v1058_v23 = vmul.f32 %v19081_v19, %v19081_v19  ;;  %v811_v56 = vmul.f32 0.0078125, %v786_v50  ;;  %v842_v58 = vmul.f32 %v19084_v48, %v19084_v48  ;;  %16808 = vmatprep.subr.bf16.mxu0 %v16807_v29  ;;  %v1216_v28 = vld [vmem:[%s18834_s25 + $0x60] sm:$0xff] }
 0x1fc   : > { %16844 = vmatprep.subr.bf16.mxu1 %v16843_v57  ;;  %16810 = vmatpush3.bf16.msra.mxu0 %v16807_v29  ;;  %v1217_v29 = vld [vmem:[%s18834_s25 + $0x68] sm:$0xff] }
 0x1fd   : > { %862 = vadd.xlane.f32.xlu1 %v841_v18  ;;  %1080 = vadd.xlane.f32.xlu0 %v1058_v23  ;;  %v19095_v59 = vsub.f32 %v18943_v30, %v1027_v54  ;;  %v19098_v60 = vsub.f32 %v18946_v31, %v811_v56  ;;  %v1396_v30 = vld [vmem:[%s18840_s27 + $0x58] sm:$0xff]  ;;  %v16811_v31 = vpack.c.bf16 %v1213_v2, %v1212_v1 }
 0x1fe   : > { %v1005_v63 = vpop.xlane.xlu0 %1004  ;;  %v788_v0 = vpop.xlane.xlu1 %787  ;;  %16846 = vmatpush3.bf16.msra.mxu1 %v16843_v57  ;;  %v16847_v9 = vpack.c.bf16 %v1396_v30, %v1395_v24  ;;  %v1399_v57 = vld [vmem:[%s18840_s27 + $0x70] sm:$0xff]  ;;  %v16819_v1 = vpack.c.bf16 %v1217_v29, %v1216_v28 }
 0x1ff   : > { %v1028_v25 = vmul.f32 0.0078125, %v1005_v63  ;;  %v1059_v7 = vmul.f32 %v19095_v59, %v19095_v59  ;;  %v812_v8 = vmul.f32 0.0078125, %v788_v0  ;;  %v843_v10 = vmul.f32 %v19098_v60, %v19098_v60  ;;  %16812 = vmatprep.subr.bf16.mxu0 %v16811_v31  ;;  %v1218_v30 = vld [vmem:[%s18834_s25 + $0x70] sm:$0xff] }
 0x200   : > { %16848 = vmatprep.subr.bf16.mxu1 %v16847_v9  ;;  %16814 = vmatpush3.bf16.msra.mxu0 %v16811_v31  ;;  %v1219_v31 = vld [vmem:[%s18834_s25 + $0x78] sm:$0xff] }
 0x201   : > { %864 = vadd.xlane.f32.xlu1 %v842_v58  ;;  %1082 = vadd.xlane.f32.xlu0 %v1059_v7  ;;  %v19109_v11 = vsub.f32 %v18950_v32, %v1028_v25  ;;  %v19112_v12 = vsub.f32 %v18953_v33, %v812_v8  ;;  %v1398_v32 = vld [vmem:[%s18840_s27 + $0x68] sm:$0xff]  ;;  %v16815_v33 = vpack.c.bf16 %v1215_v17, %v1214_v26 }
 0x202   : > { %v1007_v15 = vpop.xlane.xlu0 %1006  ;;  %v790_v16 = vpop.xlane.xlu1 %789  ;;  %16850 = vmatpush3.bf16.msra.mxu1 %v16847_v9  ;;  %v16851_v51 = vpack.c.bf16 %v1398_v32, %v1397_v27 }
 0x203   : > { %v1029_v18 = vmul.f32 0.0078125, %v1007_v15  ;;  %v1060_v49 = vmul.f32 %v19109_v11, %v19109_v11  ;;  %v813_v50 = vmul.f32 0.0078125, %v790_v16  ;;  %v844_v52 = vmul.f32 %v19112_v12, %v19112_v12  ;;  %16816 = vmatprep.subr.bf16.mxu0 %v16815_v33 }
 0x204   : > { %16852 = vmatprep.subr.bf16.mxu1 %v16851_v51  ;;  %16818 = vmatpush3.bf16.msra.mxu0 %v16815_v33  ;;  %v16823_v16 = vpack.c.bf16 %v1219_v31, %v1218_v30 }
 0x205   : > { %866 = vadd.xlane.f32.xlu1 %v843_v10  ;;  %1084 = vadd.xlane.f32.xlu0 %v1060_v49  ;;  %v19123_v53 = vsub.f32 %v18957_v34, %v1029_v18  ;;  %v19126_v54 = vsub.f32 %v18960_v35, %v813_v50  ;;  %v1400_v34 = vld [vmem:[%s18840_s27 + $0x78] sm:$0xff] }
 0x206   : > { %v1009_v23 = vpop.xlane.xlu0 %1008  ;;  %v792_v56 = vpop.xlane.xlu1 %791  ;;  %16854 = vmatpush3.bf16.msra.mxu1 %v16851_v51  ;;  %v16855_v35 = vpack.c.bf16 %v1400_v34, %v1399_v57  ;;  %16820 = vmatprep.subr.bf16.mxu0 %v16819_v1 }
 0x207   : > { %v1030_v58 = vmul.f32 0.0078125, %v1009_v23  ;;  %v1061_v63 = vmul.f32 %v19123_v53, %v19123_v53  ;;  %v814_v0 = vmul.f32 0.0078125, %v792_v56  ;;  %v845_v2 = vmul.f32 %v19126_v54, %v19126_v54 }
 0x208   : > { %16856 = vmatprep.subr.bf16.mxu1 %v16855_v35  ;;  %16822 = vmatpush3.bf16.msra.mxu0 %v16819_v1 }
 0x209   : > { %868 = vadd.xlane.f32.xlu1 %v844_v52  ;;  %1086 = vadd.xlane.f32.xlu0 %v1061_v63  ;;  %v19137_v24 = vsub.f32 %v18964_v36, %v1030_v58  ;;  %v19140_v25 = vsub.f32 %v18967_v37, %v814_v0 }
 0x20a   : > { %v1011_v7 = vpop.xlane.xlu0 %1010  ;;  %v794_v8 = vpop.xlane.xlu1 %793  ;;  %16858 = vmatpush3.bf16.msra.mxu1 %v16855_v35  ;;  %16824 = vmatprep.subr.bf16.mxu0 %v16823_v16 }
 0x20b   : > { %v1031_v9 = vmul.f32 0.0078125, %v1011_v7  ;;  %v1062_v10 = vmul.f32 %v19137_v24, %v19137_v24  ;;  %v815_v15 = vmul.f32 0.0078125, %v794_v8  ;;  %v846_v36 = vmul.f32 %v19140_v25, %v19140_v25 }
 0x20c   : > { %16826 = vmatpush3.bf16.msra.mxu0 %v16823_v16 }
 0x20d   : > { %870 = vadd.xlane.f32.xlu1 %v845_v2  ;;  %1088 = vadd.xlane.f32.xlu0 %v1062_v10  ;;  %v19149_v37 = vsub.f32 %v18971_v38, %v1031_v9  ;;  %v19152_v26 = vsub.f32 %v18974_v39, %v815_v15  ;;  %v1550_v10 = vld [vmem:[%s18846_s15] sm:$0xff]  ;;  %v1551_v15 = vld [vmem:[%s18846_s15 + $0x8] sm:$0xff] }
 0x20e   : > { %v1013_v17 = vpop.xlane.xlu0 %1012  ;;  %v796_v27 = vpop.xlane.xlu1 %795  ;;  %v19200_v16 = vpack.c.bf16 %v1551_v15, %v1550_v10 }
 0x20f   : > { %v1032_v18 = vmul.f32 0.0078125, %v1013_v17  ;;  %v1063_v49 = vmul.f32 %v19149_v37, %v19149_v37  ;;  %v816_v50 = vmul.f32 0.0078125, %v796_v27  ;;  %v847_v32 = vmul.f32 %v19152_v26, %v19152_v26 }
 0x210   : > { %17051 = vmatprep.subr.bf16.mxu1 %v19200_v16  ;;  %16860 = vmatprep.subr.bf16.mxu0 %v19200_v16 }
 0x211   : > { %872 = vadd.xlane.f32.xlu1 %v846_v36  ;;  %1090 = vadd.xlane.f32.xlu0 %v1063_v49  ;;  %v19159_v38 = vsub.f32 %v18978_v40, %v1032_v18  ;;  %v19162_v39 = vsub.f32 %v18981_v41, %v816_v50  ;;  %v948_v36 = vlaneseq }
 0x212   : > { %v1015_v33 = vpop.xlane.xlu0 %1014  ;;  %v798_v51 = vpop.xlane.xlu1 %797 }
 0x213   : > { %v1033_v52 = vmul.f32 0.0078125, %v1015_v33  ;;  %v1064_v23 = vmul.f32 %v19159_v38, %v19159_v38  ;;  %v817_v56 = vmul.f32 0.0078125, %v798_v51  ;;  %v848_v28 = vmul.f32 %v19162_v39, %v19162_v39 }
 0x215   : > { %874 = vadd.xlane.f32.xlu1 %v847_v32  ;;  %1092 = vadd.xlane.f32.xlu0 %v1064_v23  ;;  %v19169_v29 = vsub.f32 %v18985_v42, %v1033_v52  ;;  %v19172_v40 = vsub.f32 %v18988_v43, %v817_v56  ;;  %v19204_v32 = vshrl.u32 %v948_v36, 7 }
 0x216   : > { %v1017_v41 = vpop.xlane.xlu0 %1016  ;;  %v800_v57 = vpop.xlane.xlu1 %799 }
 0x217   : > { %v1034_v58 = vmul.f32 0.0078125, %v1017_v41  ;;  %v1065_v63 = vmul.f32 %v19169_v29, %v19169_v29  ;;  %v818_v0 = vmul.f32 0.0078125, %v800_v57  ;;  %v849_v34 = vmul.f32 %v19172_v40, %v19172_v40  ;;  %22513 = vst [vmem:[#allocation41_spill] sm:$0xff] %v19204_v32 }
 0x218   : > { %v19207_v41 = vsub.s32 2, %v19204_v32  ;;  %v19227_v36 = vsub.s32 1, %v19204_v32 }
 0x219   : > { %876 = vadd.xlane.f32.xlu1 %v848_v28  ;;  %1094 = vadd.xlane.f32.xlu0 %v1065_v63  ;;  %v19179_v1 = vsub.f32 %v18992_v44, %v1034_v58  ;;  %v19182_v42 = vsub.f32 %v18995_v45, %v818_v0  ;;  %v19210_v63 = vld [vmem:[%s18867_s14] sm:$0xff] }
 0x21a   : > { %v1019_v43 = vpop.xlane.xlu0 %1018  ;;  %v802_v35 = vpop.xlane.xlu1 %801  ;;  %22514 = vst [vmem:[#allocation42_spill] sm:$0xff] %v19207_v41  ;;  %22516 = vst [vmem:[#allocation44_spill] sm:$0xff] %v19227_v36 }
 0x21b   : > { %v1035_v2 = vmul.f32 0.0078125, %v1019_v43  ;;  %v1066_v7 = vmul.f32 %v19179_v1, %v19179_v1  ;;  %v819_v8 = vmul.f32 0.0078125, %v802_v35  ;;  %v850_v30 = vmul.f32 %v19182_v42, %v19182_v42 }
 0x21c   : > { %v22364_v43 = vsub.s32 3, %v19204_v32 }
 0x21d   : > { %878 = vadd.xlane.f32.xlu1 %v849_v34  ;;  %1096 = vadd.xlane.f32.xlu0 %v1066_v7  ;;  %v19189_v44 = vsub.f32 %v18999_v46, %v1035_v2  ;;  %v19192_v45 = vsub.f32 %v19002_v47, %v819_v8  ;;  %v19215_v7 = vrot.slane %v19210_v63, %v19207_v41  ;;  %v19218_v8 = vsub.s32 0, %v19204_v32 }
 0x21f   : > { %v1067_v31 = vmul.f32 %v19189_v44, %v19189_v44  ;;  %v851_v9 = vmul.f32 %v19192_v45, %v19192_v45  ;;  %22515 = vst [vmem:[#allocation43_spill] sm:$0xff] %v19218_v8 }
 0x221   : > { %880 = vadd.xlane.f32.xlu1 %v850_v30  ;;  %1098 = vadd.xlane.f32.xlu0 %v1067_v31 }
 0x225   : > { %882 = vadd.xlane.f32.xlu1 %v851_v9 }
 0x272   : > { %v1069_v46 = vpop.xlane.xlu0 %1068 }
 0x273   : > { %v1100_v47 = vmul.f32 0.0078125, %v1069_v46 }
 0x275   : > { %v1116_v17 = vadd.f32 1e-05, %v1100_v47  ;;  %v19224_v47 = vrot.slane %v19210_v63, %v22364_v43 }
 0x276   : > { %v853_v27 = vpop.xlane.xlu1 %852  ;;  %v1071_v18 = vpop.xlane.xlu0 %1070 }
 0x277   : > { %17263 = vrsqrt.f32 %v1116_v17  ;;  %v884_v49 = vmul.f32 0.0078125, %v853_v27  ;;  %v1101_v50 = vmul.f32 0.0078125, %v1071_v18 }
 0x279   : > { %v900_v33 = vadd.f32 1e-05, %v884_v49  ;;  %v1117_v51 = vadd.f32 1e-05, %v1101_v50  ;;  %v19232_v49 = vrot.slane %v19210_v63, %v19218_v8 }
 0x27a   : > { %v855_v52 = vpop.xlane.xlu1 %854  ;;  %v1073_v23 = vpop.xlane.xlu0 %1072 }
 0x27b   : > { %17265 = vrsqrt.f32 %v900_v33  ;;  %v885_v56 = vmul.f32 0.0078125, %v855_v52  ;;  %v1102_v28 = vmul.f32 0.0078125, %v1073_v23 }
 0x27c   : > { %17267 = vrsqrt.f32 %v1117_v51 }
 0x27d   : > { %v901_v57 = vadd.f32 1e-05, %v885_v56  ;;  %v1118_v58 = vadd.f32 1e-05, %v1102_v28 }
 0x27e   : > { %v857_v0 = vpop.xlane.xlu1 %856  ;;  %v1075_v34 = vpop.xlane.xlu0 %1074 }
 0x27f   : > { %17269 = vrsqrt.f32 %v901_v57  ;;  %v886_v35 = vmul.f32 0.0078125, %v857_v0  ;;  %v1103_v2 = vmul.f32 0.0078125, %v1075_v34  ;;  %v19240_v57 = vrot.slane %v19210_v63, %v19227_v36 }
 0x280   : > { %17271 = vrsqrt.f32 %v1118_v58 }
 0x281   : > { %v17264_v30 = vpop.eup %17263  ;;  %v902_v31 = vadd.f32 1e-05, %v886_v35  ;;  %v1119_v9 = vadd.f32 1e-05, %v1103_v2  ;;  %v1552_v35 = vld [vmem:[%s18846_s15 + $0x10] sm:$0xff]  ;;  %v1553_v2 = vld [vmem:[%s18846_s15 + $0x18] sm:$0xff] }
 0x282   : > { %v859_v10 = vpop.xlane.xlu1 %858  ;;  %v1077_v15 = vpop.xlane.xlu0 %1076  ;;  %v1148_v46 = vmul.f32 %v17264_v30, %v19013_v61 }
 0x283   : > { %17273 = vrsqrt.f32 %v902_v31  ;;  %v887_v17 = vmul.f32 0.0078125, %v859_v10  ;;  %v1104_v27 = vmul.f32 0.0078125, %v1077_v15 }
 0x284   : > { %17275 = vrsqrt.f32 %v1119_v9  ;;  %v1168_v18 = vmul.f32 %v19215_v7, %v1148_v46 }
 0x285   : > { %v17266_v61 = vpop.eup %17265  ;;  %v903_v50 = vadd.f32 1e-05, %v887_v17  ;;  %v1120_v33 = vadd.f32 1e-05, %v1104_v27 }
 0x286   : > { %v17268_v51 = vpop.eup %17267  ;;  %v861_v52 = vpop.xlane.xlu1 %860  ;;  %v19235_v56 = vadd.f32 %v19224_v47, %v1168_v18  ;;  %v932_v28 = vmul.f32 %v17266_v61, %v19023_v5  ;;  %v16863_v18 = vpack.c.bf16 %v1553_v2, %v1552_v35 }
 0x287   : > { %v1079_v23 = vpop.xlane.xlu0 %1078  ;;  %17277 = vrsqrt.f32 %v903_v50  ;;  %v888_v58 = vmul.f32 0.0078125, %v861_v52  ;;  %v1149_v34 = vmul.f32 %v17268_v51, %v19016_v62  ;;  %v1554_v51 = vld [vmem:[%s18846_s15 + $0x20] sm:$0xff]  ;;  %v1555_v52 = vld [vmem:[%s18846_s15 + $0x28] sm:$0xff] }
 0x288   : > { %v1105_v0 = vmul.f32 0.0078125, %v1079_v23  ;;  %17279 = vrsqrt.f32 %v1120_v33  ;;  %15947 = vmatprep.mubr.f32.mxu1 %v19235_v56  ;;  %v952_v30 = vmul.f32 %v19232_v49, %v932_v28 }
 0x289   : > { %v17270_v31 = vpop.eup %17269  ;;  %v904_v5 = vadd.f32 1e-05, %v888_v58  ;;  %v1169_v10 = vmul.f32 %v19215_v7, %v1149_v34 }
 0x28a   : > { %v1121_v9 = vadd.f32 1e-05, %v1105_v0  ;;  %v17272_v15 = vpop.eup %17271  ;;  %v863_v46 = vpop.xlane.xlu1 %862  ;;  %v972_v27 = vadd.f32 %v19240_v57, %v952_v30  ;;  %v933_v62 = vmul.f32 %v17270_v31, %v19026_v6 }
 0x28b   : > { %v1081_v17 = vpop.xlane.xlu0 %1080  ;;  %17281 = vrsqrt.f32 %v904_v5  ;;  %v889_v61 = vmul.f32 0.0078125, %v863_v46  ;;  %v19251_v33 = vadd.f32 %v19224_v47, %v1169_v10  ;;  %v1150_v28 = vmul.f32 %v17272_v15, %v19033_v13  ;;  %v1556_v46 = vld [vmem:[%s18846_s15 + $0x30] sm:$0xff] }
 0x28c   : > { %v1106_v50 = vmul.f32 0.0078125, %v1081_v17  ;;  %17283 = vrsqrt.f32 %v1121_v9  ;;  %15891 = vmatprep.mubr.f32.mxu0 %v972_v27  ;;  %v953_v23 = vmul.f32 %v19232_v49, %v933_v62  ;;  %v19262_v9 = vpack.c.bf16 %v1555_v52, %v1554_v51  ;;  %v1557_v17 = vld [vmem:[%s18846_s15 + $0x38] sm:$0xff] }
 0x28d   : > { %v17274_v58 = vpop.eup %17273  ;;  %v905_v0 = vadd.f32 1e-05, %v889_v61  ;;  %15948 = vmatmul.mubr.f32.vlgmr.msra.gmra.mrb[0].mxu1 %v19251_v33  ;;  %v1170_v31 = vmul.f32 %v19215_v7, %v1150_v28 }
 0x28e   : > { %v1122_v34 = vadd.f32 1e-05, %v1106_v50  ;;  %v17276_v6 = vpop.eup %17275  ;;  %v865_v35 = vpop.xlane.xlu1 %864  ;;  %v973_v30 = vadd.f32 %v19240_v57, %v953_v23  ;;  %v934_v5 = vmul.f32 %v17274_v58, %v19036_v14  ;;  %17059 = vmatpush3.bf16.msra.mxu1 %v19200_v16 }
 0x28f   : > { %v1083_v2 = vpop.xlane.xlu0 %1082  ;;  %17285 = vrsqrt.f32 %v905_v0  ;;  %v890_v13 = vmul.f32 0.0078125, %v865_v35  ;;  %v1151_v15 = vmul.f32 %v17276_v6, %v19043_v20  ;;  %17052 = vmatprep.subr.bf16.mxu1 %v16863_v18  ;;  %v19268_v27 = vadd.f32 %v19224_v47, %v1170_v31  ;;  %v1559_v6 = vld [vmem:[%s18846_s15 + $0x48] sm:$0xff] }
 0x290   : > { %v1107_v10 = vmul.f32 0.0078125, %v1083_v2  ;;  %17287 = vrsqrt.f32 %v1122_v34  ;;  %15892 = vmatmul.mubr.f32.vlgmr.msra.gmra.mrb[0].mxu0 %v973_v30  ;;  %v954_v14 = vmul.f32 %v19232_v49, %v934_v5  ;;  %v19276_v0 = vpack.c.bf16 %v1557_v17, %v1556_v46  ;;  %v1558_v34 = vld [vmem:[%s18846_s15 + $0x40] sm:$0xff] }
 0x291   : > { %v17278_v62 = vpop.eup %17277  ;;  %v906_v61 = vadd.f32 1e-05, %v890_v13  ;;  %v1171_v51 = vmul.f32 %v19215_v7, %v1151_v15  ;;  %16862 = vmatpush3.bf16.msra.mxu0 %v19200_v16  ;;  %15950 = vmatprep.mubr.f32.mxu1 %v19268_v27 }
 0x292   : > { %v1123_v50 = vadd.f32 1e-05, %v1107_v10  ;;  %v17280_v20 = vpop.eup %17279  ;;  %v867_v52 = vpop.xlane.xlu1 %866  ;;  %v974_v28 = vadd.f32 %v19240_v57, %v954_v14  ;;  %v935_v58 = vmul.f32 %v17278_v62, %v19046_v21  ;;  %17060 = vmatpush3.bf16.msra.mxu1 %v16863_v18  ;;  %16864 = vmatprep.subr.bf16.mxu0 %v16863_v18  ;;  %v19287_v10 = vpack.c.bf16 %v1559_v6, %v1558_v34 }
 0x293   : > { %v1085_v23 = vpop.xlane.xlu0 %1084  ;;  %17289 = vrsqrt.f32 %v906_v61  ;;  %v891_v35 = vmul.f32 0.0078125, %v867_v52  ;;  %v19281_v30 = vadd.f32 %v19224_v47, %v1171_v51  ;;  %17053 = vmatprep.subr.bf16.mxu1 %v19262_v9  ;;  %v1152_v21 = vmul.f32 %v17280_v20, %v19053_v55  ;;  %v1560_v51 = vld [vmem:[%s18846_s15 + $0x50] sm:$0xff]  ;;  %v1561_v20 = vld [vmem:[%s18846_s15 + $0x58] sm:$0xff] }
 0x294   : > { %v1108_v2 = vmul.f32 0.0078125, %v1085_v23  ;;  %17291 = vrsqrt.f32 %v1123_v50  ;;  %15894 = vmatprep.mubr.f32.mxu0 %v974_v28  ;;  %v955_v16 = vmul.f32 %v19232_v49, %v935_v58 }
 0x295   : > { %v17282_v31 = vpop.eup %17281  ;;  %v907_v5 = vadd.f32 1e-05, %v891_v35  ;;  %15951 = vmatmul.mubr.f32.gmra.mrb[2].mxu1 %v19281_v30  ;;  %16866 = vmatpush3.bf16.msra.mxu0 %v16863_v18  ;;  %v1172_v62 = vmul.f32 %v19215_v7, %v1152_v21  ;;  %v19308_v21 = vpack.c.bf16 %v1561_v20, %v1560_v51 }
 0x296   : > { %v1124_v13 = vadd.f32 1e-05, %v1108_v2  ;;  %v17284_v15 = vpop.eup %17283  ;;  %v869_v46 = vpop.xlane.xlu1 %868  ;;  %v975_v14 = vadd.f32 %v19240_v57, %v955_v16  ;;  %v936_v61 = vmul.f32 %v17282_v31, %v19056_v22  ;;  %17061 = vmatpush3.bf16.msra.mxu1 %v19262_v9  ;;  %16868 = vmatprep.subr.bf16.mxu0 %v19262_v9  ;;  %v1562_v31 = vld [vmem:[%s18846_s15 + $0x60] sm:$0xff] }
 0x297   : > { %v1087_v17 = vpop.xlane.xlu0 %1086  ;;  %17293 = vrsqrt.f32 %v907_v5  ;;  %v892_v55 = vmul.f32 0.0078125, %v869_v46  ;;  %v1153_v18 = vmul.f32 %v17284_v15, %v19067_v3  ;;  %17054 = vmatprep.subr.bf16.mxu1 %v19276_v0  ;;  %v19299_v52 = vadd.f32 %v19224_v47, %v1172_v62  ;;  %v1563_v5 = vld [vmem:[%s18846_s15 + $0x68] sm:$0xff] }
 0x298   : > { %v1109_v50 = vmul.f32 0.0078125, %v1087_v17  ;;  %17295 = vrsqrt.f32 %v1124_v13  ;;  %15895 = vmatmul.mubr.f32.gmra.mrb[2].mxu0 %v975_v14  ;;  %v956_v22 = vmul.f32 %v19232_v49, %v936_v61  ;;  %v19321_v61 = vpack.c.bf16 %v1563_v5, %v1562_v31 }
 0x299   : > { %v17286_v23 = vpop.eup %17285  ;;  %v908_v28 = vadd.f32 1e-05, %v892_v55  ;;  %v1173_v34 = vmul.f32 %v19215_v7, %v1153_v18  ;;  %16870 = vmatpush3.bf16.msra.mxu0 %v19262_v9  ;;  %15953 = vmatprep.mubr.f32.mxu1 %v19299_v52 }
 0x29a   : > { %v1125_v58 = vadd.f32 1e-05, %v1109_v50  ;;  %v17288_v3 = vpop.eup %17287  ;;  %v871_v6 = vpop.xlane.xlu1 %870  ;;  %v976_v2 = vadd.f32 %v19240_v57, %v956_v22  ;;  %v937_v16 = vmul.f32 %v17286_v23, %v19070_v4  ;;  %17062 = vmatpush3.bf16.msra.mxu1 %v19276_v0  ;;  %16872 = vmatprep.subr.bf16.mxu0 %v19276_v0 }
 0x29b   : > { %v1089_v35 = vpop.xlane.xlu0 %1088  ;;  %17297 = vrsqrt.f32 %v908_v28  ;;  %v893_v13 = vmul.f32 0.0078125, %v871_v6  ;;  %v19313_v9 = vadd.f32 %v19224_v47, %v1173_v34  ;;  %17055 = vmatprep.subr.bf16.mxu1 %v19287_v10  ;;  %v1154_v46 = vmul.f32 %v17288_v3, %v19081_v19  ;;  %v1564_v28 = vld [vmem:[%s18846_s15 + $0x70] sm:$0xff] }
 0x29c   : > { %v1110_v15 = vmul.f32 0.0078125, %v1089_v35  ;;  %17299 = vrsqrt.f32 %v1125_v58  ;;  %15897 = vmatprep.mubr.f32.mxu0 %v976_v2  ;;  %v957_v4 = vmul.f32 %v19232_v49, %v937_v16  ;;  %v1565_v58 = vld [vmem:[%s18846_s15 + $0x78] sm:$0xff] }
 0x29d   : > { %v17290_v17 = vpop.eup %17289  ;;  %v909_v14 = vadd.f32 1e-05, %v893_v13  ;;  %15954 = vmatmul.mubr.f32.gmra.mrb[4].mxu1 %v19313_v9  ;;  %16874 = vmatpush3.bf16.msra.mxu0 %v19276_v0  ;;  %v1174_v20 = vmul.f32 %v19215_v7, %v1154_v46 }
 0x29e   : > { %v1126_v62 = vadd.f32 1e-05, %v1110_v15  ;;  %v17292_v55 = vpop.eup %17291  ;;  %v873_v50 = vpop.xlane.xlu1 %872  ;;  %v977_v51 = vadd.f32 %v19240_v57, %v957_v4  ;;  %v938_v19 = vmul.f32 %v17290_v17, %v19084_v48  ;;  %17063 = vmatpush3.bf16.msra.mxu1 %v19287_v10  ;;  %16876 = vmatprep.subr.bf16.mxu0 %v19287_v10  ;;  %v16887_v15 = vpack.c.bf16 %v1565_v58, %v1564_v28 }
 0x29f   : > { %v1091_v18 = vpop.xlane.xlu0 %1090  ;;  %17301 = vrsqrt.f32 %v909_v14  ;;  %v894_v22 = vmul.f32 0.0078125, %v873_v50  ;;  %v1155_v0 = vmul.f32 %v17292_v55, %v19095_v59  ;;  %17056 = vmatprep.subr.bf16.mxu1 %v19308_v21  ;;  %v19333_v34 = vadd.f32 %v19224_v47, %v1174_v20 }
 0x2a0   : > { %v1111_v23 = vmul.f32 0.0078125, %v1091_v18  ;;  %17303 = vrsqrt.f32 %v1126_v62  ;;  %15898 = vmatmul.mubr.f32.gmra.mrb[4].mxu0 %v977_v51  ;;  %v958_v48 = vmul.f32 %v19232_v49, %v938_v19 }
 0x2a1   : > { %v17294_v3 = vpop.eup %17293  ;;  %v910_v6 = vadd.f32 1e-05, %v894_v22  ;;  %v1175_v2 = vmul.f32 %v19215_v7, %v1155_v0  ;;  %16878 = vmatpush3.bf16.msra.mxu0 %v19287_v10  ;;  %15956 = vmatprep.mubr.f32.mxu1 %v19333_v34 }
 0x2a2   : > { %v1127_v35 = vadd.f32 1e-05, %v1111_v23  ;;  %v17296_v16 = vpop.eup %17295  ;;  %v875_v59 = vpop.xlane.xlu1 %874  ;;  %v978_v5 = vadd.f32 %v19240_v57, %v958_v48  ;;  %v939_v13 = vmul.f32 %v17294_v3, %v19098_v60  ;;  %17064 = vmatpush3.bf16.msra.mxu1 %v19308_v21  ;;  %16880 = vmatprep.subr.bf16.mxu0 %v19308_v21 }
 0x2a3   : > { %v1093_v31 = vpop.xlane.xlu0 %1092  ;;  %17305 = vrsqrt.f32 %v910_v6  ;;  %v895_v4 = vmul.f32 0.0078125, %v875_v59  ;;  %v19343_v17 = vadd.f32 %v19224_v47, %v1175_v2  ;;  %17057 = vmatprep.subr.bf16.mxu1 %v19321_v61  ;;  %v1156_v14 = vmul.f32 %v17296_v16, %v19109_v11 }
 0x2a4   : > { %v1112_v46 = vmul.f32 0.0078125, %v1093_v31  ;;  %17307 = vrsqrt.f32 %v1127_v35  ;;  %15900 = vmatprep.mubr.f32.mxu0 %v978_v5  ;;  %v959_v10 = vmul.f32 %v19232_v49, %v939_v13 }
 0x2a5   : > { %v17298_v60 = vpop.eup %17297  ;;  %v911_v62 = vadd.f32 1e-05, %v895_v4  ;;  %15957 = vmatmul.mubr.f32.gmra.mrb[6].mxu1 %v19343_v17  ;;  %16882 = vmatpush3.bf16.msra.mxu0 %v19308_v21  ;;  %v1176_v19 = vmul.f32 %v19215_v7, %v1156_v14 }
 0x2a6   : > { %v1128_v55 = vadd.f32 1e-05, %v1112_v46  ;;  %v17300_v50 = vpop.eup %17299  ;;  %v877_v18 = vpop.xlane.xlu1 %876  ;;  %v979_v20 = vadd.f32 %v19240_v57, %v959_v10  ;;  %v940_v22 = vmul.f32 %v17298_v60, %v19112_v12  ;;  %17065 = vmatpush3.bf16.msra.mxu1 %v19321_v61  ;;  %16884 = vmatprep.subr.bf16.mxu0 %v19321_v61 }
 0x2a7   : > { %v1095_v51 = vpop.xlane.xlu0 %1094  ;;  %17309 = vrsqrt.f32 %v911_v62  ;;  %v896_v11 = vmul.f32 0.0078125, %v877_v18  ;;  %v1157_v0 = vmul.f32 %v17300_v50, %v19123_v53  ;;  %17058 = vmatprep.subr.bf16.mxu1 %v16887_v15  ;;  %v19358_v21 = vadd.f32 %v19224_v47, %v1176_v19 }
 0x2a8   : > { %v1113_v23 = vmul.f32 0.0078125, %v1095_v51  ;;  %17311 = vrsqrt.f32 %v1128_v55  ;;  %15901 = vmatmul.mubr.f32.gmra.mrb[6].mxu0 %v979_v20  ;;  %v960_v28 = vmul.f32 %v19232_v49, %v940_v22 }
 0x2a9   : > { %v17302_v58 = vpop.eup %17301  ;;  %v912_v48 = vadd.f32 1e-05, %v896_v11  ;;  %v1177_v3 = vmul.f32 %v19215_v7, %v1157_v0  ;;  %16886 = vmatpush3.bf16.msra.mxu0 %v19321_v61  ;;  %15959 = vmatprep.mubr.f32.mxu1 %v19358_v21 }
 0x2aa   : > { %v1129_v12 = vadd.f32 1e-05, %v1113_v23  ;;  %v17304_v6 = vpop.eup %17303  ;;  %v879_v35 = vpop.xlane.xlu1 %878  ;;  %v980_v2 = vadd.f32 %v19240_v57, %v960_v28  ;;  %v941_v16 = vmul.f32 %v17302_v58, %v19126_v54  ;;  %17066 = vmatpush3.bf16.msra.mxu1 %v16887_v15  ;;  %16888 = vmatprep.subr.bf16.mxu0 %v16887_v15 }
 0x2ab   : > { %v1097_v53 = vpop.xlane.xlu0 %1096  ;;  %17313 = vrsqrt.f32 %v912_v48  ;;  %v897_v59 = vmul.f32 0.0078125, %v879_v35  ;;  %v19367_v5 = vadd.f32 %v19224_v47, %v1177_v3  ;;  %v1158_v13 = vmul.f32 %v17304_v6, %v19137_v24 }
 0x2ac   : > { %v1114_v31 = vmul.f32 0.0078125, %v1097_v53  ;;  %17315 = vrsqrt.f32 %v1129_v12  ;;  %15903 = vmatprep.mubr.f32.mxu0 %v980_v2  ;;  %v961_v61 = vmul.f32 %v19232_v49, %v941_v16 }
 0x2ad   : > { %v17306_v4 = vpop.eup %17305  ;;  %v913_v46 = vadd.f32 1e-05, %v897_v59  ;;  %15960 = vmatmul.mubr.f32.gmra.mrb[8].mxu1 %v19367_v5  ;;  %16890 = vmatpush3.bf16.msra.mxu0 %v16887_v15  ;;  %v1178_v55 = vmul.f32 %v19215_v7, %v1158_v13 }
 0x2ae   : > { %v1130_v10 = vadd.f32 1e-05, %v1114_v31  ;;  %v17308_v54 = vpop.eup %17307  ;;  %v881_v14 = vpop.xlane.xlu1 %880  ;;  %v981_v62 = vadd.f32 %v19240_v57, %v961_v61  ;;  %v942_v50 = vmul.f32 %v17306_v4, %v19140_v25 }
 0x2af   : > { %v1099_v60 = vpop.xlane.xlu0 %1098  ;;  %17317 = vrsqrt.f32 %v913_v46  ;;  %v898_v18 = vmul.f32 0.0078125, %v881_v14  ;;  %v1159_v24 = vmul.f32 %v17308_v54, %v19149_v37  ;;  %v19377_v20 = vadd.f32 %v19224_v47, %v1178_v55 }
 0x2b0   : > { %v1115_v51 = vmul.f32 0.0078125, %v1099_v60  ;;  %17319 = vrsqrt.f32 %v1130_v10  ;;  %15904 = vmatmul.mubr.f32.gmra.mrb[8].mxu0 %v981_v62  ;;  %v962_v15 = vmul.f32 %v19232_v49, %v942_v50 }
 0x2b1   : > { %v17310_v19 = vpop.eup %17309  ;;  %v914_v22 = vadd.f32 1e-05, %v898_v18  ;;  %v1179_v23 = vmul.f32 %v19215_v7, %v1159_v24  ;;  %15962 = vmatprep.mubr.f32.mxu1 %v19377_v20 }
 0x2b2   : > { %v1131_v11 = vadd.f32 1e-05, %v1115_v51  ;;  %v17312_v0 = vpop.eup %17311  ;;  %v883_v25 = vpop.xlane.xlu1 %882  ;;  %v982_v28 = vadd.f32 %v19240_v57, %v962_v15  ;;  %v943_v37 = vmul.f32 %v17310_v19, %v19152_v26 }
 0x2b3   : > { %17321 = vrsqrt.f32 %v914_v22  ;;  %v899_v58 = vmul.f32 0.0078125, %v883_v25  ;;  %v1199_v48 = vadd.f32 %v19224_v47, %v1179_v23  ;;  %v1160_v12 = vmul.f32 %v17312_v0, %v19159_v38 }
 0x2b4   : > { %17323 = vrsqrt.f32 %v1131_v11  ;;  %15906 = vmatprep.mubr.f32.mxu0 %v982_v28  ;;  %v963_v3 = vmul.f32 %v19232_v49, %v943_v37 }
 0x2b5   : > { %v17314_v6 = vpop.eup %17313  ;;  %v915_v35 = vadd.f32 1e-05, %v899_v58  ;;  %15963 = vmatmul.mubr.f32.gmra.mrb[10].mxu1 %v1199_v48  ;;  %v1180_v53 = vmul.f32 %v19215_v7, %v1160_v12 }
 0x2b6   : > { %v17316_v2 = vpop.eup %17315  ;;  %v983_v16 = vadd.f32 %v19240_v57, %v963_v3  ;;  %v944_v26 = vmul.f32 %v17314_v6, %v19162_v39 }
 0x2b7   : > { %17325 = vrsqrt.f32 %v915_v35  ;;  %v1200_v59 = vadd.f32 %v19224_v47, %v1180_v53  ;;  %v1161_v31 = vmul.f32 %v17316_v2, %v19169_v29 }
 0x2b8   : > { %15907 = vmatmul.mubr.f32.gmra.mrb[10].mxu0 %v983_v16  ;;  %v964_v38 = vmul.f32 %v19232_v49, %v944_v26 }
 0x2b9   : > { %v17318_v61 = vpop.eup %17317  ;;  %15965 = vmatprep.mubr.f32.mxu1 %v1200_v59  ;;  %v1181_v13 = vmul.f32 %v19215_v7, %v1161_v31 }
 0x2ba   : > { %v17320_v4 = vpop.eup %17319  ;;  %v984_v46 = vadd.f32 %v19240_v57, %v964_v38  ;;  %v945_v10 = vmul.f32 %v17318_v61, %v19172_v40 }
 0x2bb   : > { %v1201_v54 = vadd.f32 %v19224_v47, %v1181_v13  ;;  %v1162_v39 = vmul.f32 %v17320_v4, %v19179_v1 }
 0x2bc   : > { %15909 = vmatprep.mubr.f32.mxu0 %v984_v46  ;;  %v965_v14 = vmul.f32 %v19232_v49, %v945_v10 }
 0x2bd   : > { %v17322_v29 = vpop.eup %17321  ;;  %15966 = vmatmul.mubr.f32.gmra.mrb[12].mxu1 %v1201_v54  ;;  %v1182_v60 = vmul.f32 %v19215_v7, %v1162_v39 }
 0x2be   : > { %v17324_v62 = vpop.eup %17323  ;;  %v985_v55 = vadd.f32 %v19240_v57, %v965_v14  ;;  %v946_v50 = vmul.f32 %v17322_v29, %v19182_v42 }
 0x2bf   : > { %v1202_v18 = vadd.f32 %v19224_v47, %v1182_v60  ;;  %v1163_v40 = vmul.f32 %v17324_v62, %v19189_v44 }
 0x2c0   : > { %15910 = vmatmul.mubr.f32.gmra.mrb[12].mxu0 %v985_v55  ;;  %v966_v51 = vmul.f32 %v19232_v49, %v946_v50 }
 0x2c1   : > { %v17326_v1 = vpop.eup %17325  ;;  %15968 = vmatprep.mubr.f32.mxu1 %v1202_v18  ;;  %v1183_v24 = vmul.f32 %v19215_v7, %v1163_v40  ;;  %v1403_v7 = vsub.s32 7, %v19204_v32 }
 0x2c2   : > { %v986_v15 = vadd.f32 %v19240_v57, %v966_v51  ;;  %v947_v19 = vmul.f32 %v17326_v1, %v19192_v45  ;;  %v22365_v45 = vmov 0.0  }
 0x2c3   : > { %v1203_v22 = vadd.f32 %v19224_v47, %v1183_v24  ;;  %16027 = vmatprep.subr.mxu1 %v22365_v45  ;;  %16067 = vmatprep.subr.mxu0 %v22365_v45  ;;  %v1222_v47 = vsub.s32 6, %v19204_v32 }
 0x2c4   : > { %15912 = vmatprep.mubr.f32.mxu0 %v986_v15  ;;  %v967_v42 = vmul.f32 %v19232_v49, %v947_v19  ;;  %v19431_v49 = vrot.slane %v19210_v63, %v1403_v7 }
 0x2c5   : > { %15969 = vmatmul.mubr.f32.gmra.mrb[14].mxu1 %v1203_v22 }
 0x2c6   : > { %16024 = vmatprep.mubr.f32.mxu1 %v1202_v18  ;;  %v987_v44 = vadd.f32 %v19240_v57, %v967_v42  ;;  %v19434_v57 = vrot.slane %v19210_v63, %v1222_v47 }
 0x2c8   : > { %15913 = vmatmul.mubr.f32.gmra.mrb[14].mxu0 %v987_v44 }
 0x2c9   : > { %16025 = vmatmul.mubr.f32.vlgmr.msra.gmra.mrb[16].mxu1 %v1203_v22  ;;  %16003 = vmatprep.mubr.f32.mxu0 %v19235_v56 }
 0x2ca   : > { %16029 = vmatprep.mubr.msk.f32.mxu1 %vm18287_vm0, %v22365_v45 }
 0x2cc   : > { %16004 = vmatmul.mubr.f32.vlgmr.msra.gmra.mrb[16].mxu0 %v19251_v33 }
 0x2cd   : > { %16006 = vmatprep.mubr.f32.mxu0 %v19268_v27 }
 0x2d0   : > { %16007 = vmatmul.mubr.f32.gmra.mrb[18].mxu0 %v19281_v30 }
 0x2d1   : > { %16009 = vmatprep.mubr.f32.mxu0 %v19299_v52 }
 0x2d4   : > { %16010 = vmatmul.mubr.f32.gmra.mrb[20].mxu0 %v19313_v9 }
 0x2d5   : > { %16012 = vmatprep.mubr.f32.mxu0 %v19333_v34 }
 0x2d8   : > { %16013 = vmatmul.mubr.f32.gmra.mrb[22].mxu0 %v19343_v17 }
 0x2d9   : > { %16015 = vmatprep.mubr.f32.mxu0 %v19358_v21 }
 0x2dc   : > { %16016 = vmatmul.mubr.f32.gmra.mrb[24].mxu0 %v19367_v5 }
 0x2dd   : > { %16018 = vmatprep.mubr.f32.mxu0 %v19377_v20 }
 0x2e0   : > { %16019 = vmatmul.mubr.f32.gmra.mrb[26].mxu0 %v1199_v48 }
 0x2e1   : > { %16021 = vmatprep.mubr.f32.mxu0 %v1200_v59 }
 0x2e4   : > { %16022 = vmatmul.mubr.f32.gmra.mrb[28].mxu0 %v1201_v54 }
 0x2e5   : > { %16069 = vmatprep.mubr.msk.f32.mxu0 %vm18287_vm0, %v22365_v45 }
 0x360   : > { %v15949_v56 = vpop.f32.mrb[0].mxu1 }
 0x361   : > { %v19437_v33 = vadd.f32 %v15949_v56, %v19431_v49  ;;  %v1471_v27 = vpop.f32.mrb[1].mxu1 }
 0x362   : > { %v19440_v30 = vadd.f32 %v1471_v27, %v19431_v49 }
 0x363   : > { %22517 = vst [vmem:[#allocation45_spill] sm:$0xff] %v19437_v33  ;;  %4361 = vrot.lane.b32.xlu0 %v19437_v33, %s18288_s24  ;;  %v15893_v52 = vpop.f32.mrb[0].mxu0 }
 0x364   : > { %22518 = vst [vmem:[#allocation46_spill] sm:$0xff] %v19440_v30  ;;  %v1296_v9 = vadd.f32 %v15893_v52, %v19434_v57  ;;  %16028 = vmatpush3.xpose.msk.msra.mxu1 %vm1715_vm1, %v19440_v30  ;;  %v1290_v63 = vpop.f32.mrb[1].mxu0 }
 0x365   : > { %v1291_v34 = vadd.f32 %v1290_v63, %v19434_v57  ;;  %16032 = vmatprep.subr.mxu1 %v22365_v45 }
 0x366   : > { %v19449_v17 = vmul.f32 0.17677669, %v1296_v9 }
 0x367   : > { %v19451_v21 = vmul.f32 0.17677669, %v1291_v34 }
 0x368   : > { %22519 = vst [vmem:[#allocation47_spill] sm:$0xff] %v19449_v17  ;;  %v15952_v5 = vpop.f32.mrb[2].mxu1  ;;  %4359 = vrot.lane.b32.xlu1 %v19449_v17, %s18288_s24 }
 0x369   : > { %22520 = vst [vmem:[#allocation48_spill] sm:$0xff] %v19451_v21  ;;  %v1481_v20 = vpop.f32.mrb[3].mxu1  ;;  %16030 = vmatmul.mubr.msk.f32.vlgmr.msra.gmra.mrb[18].mxu1 %vm1715_vm1, %v19451_v21  ;;  %v19458_v11 = vadd.f32 %v15952_v5, %v19431_v49 }
 0x36a   : > { %16033 = vmatpush3.xpose.msk.msra.mxu1 %vm1715_vm1, %v19437_v33  ;;  %16034 = vmatprep.mubr.msk.f32.mxu1 %vm18287_vm0, %v22365_v45  ;;  %v19466_v0 = vadd.f32 %v1481_v20, %v19431_v49 }
 0x36b   : > { %22521 = vst [vmem:[#allocation49_spill] sm:$0xff] %v19458_v11  ;;  %v15896_v23 = vpop.f32.mrb[2].mxu0  ;;  %16037 = vmatprep.subr.mxu1 %v22365_v45 }
 0x36c   : > { %22522 = vst [vmem:[#allocation50_spill] sm:$0xff] %v19466_v0  ;;  %v1306_v25 = vadd.f32 %v15896_v23, %v19434_v57  ;;  %4517 = vrot.lane.b32.xlu1 %v19458_v11, %s18288_s24  ;;  %v1300_v28 = vpop.f32.mrb[3].mxu0 }
 0x36d   : > { %v1301_v37 = vadd.f32 %v1300_v28, %v19434_v57  ;;  %16035 = vmatmul.mubr.msk.f32.vlgmr.msra.gmra.mrb[20].mxu1 %vm1715_vm1, %v19449_v17 }
 0x36e   : > { %v19474_v58 = vmul.f32 0.17677669, %v1306_v25  ;;  %16038 = vmatpush3.xpose.msk.msra.mxu1 %vm1715_vm1, %v19466_v0  ;;  %16039 = vmatprep.mubr.msk.f32.mxu1 %vm18287_vm0, %v22365_v45 }
 0x36f   : > { %v19480_v48 = vmul.f32 0.17677669, %v1301_v37  ;;  %16042 = vmatprep.subr.mxu1 %v22365_v45 }
 0x370   : > { %22523 = vst [vmem:[#allocation51_spill] sm:$0xff] %v19474_v58  ;;  %v15955_v12 = vpop.f32.mrb[4].mxu1  ;;  %4515 = vrot.lane.b32.xlu1 %v19474_v58, %s18288_s24 }
 0x371   : > { %22524 = vst [vmem:[#allocation52_spill] sm:$0xff] %v19480_v48  ;;  %v19486_v3 = vadd.f32 %v15955_v12, %v19431_v49  ;;  %v1491_v6 = vpop.f32.mrb[5].mxu1  ;;  %16040 = vmatmul.mubr.msk.f32.vlgmr.msra.gmra.mrb[22].mxu1 %vm1715_vm1, %v19480_v48 }
 0x372   : > { %16043 = vmatpush3.xpose.msk.msra.mxu1 %vm1715_vm1, %v19458_v11  ;;  %16044 = vmatprep.mubr.msk.f32.mxu1 %vm18287_vm0, %v22365_v45  ;;  %v19498_v53 = vadd.f32 %v1491_v6, %v19431_v49  ;;  %v738_v6 = vld [vmem:[%s18867_s14 + $0x8] sm:$0x7] }
 0x373   : > { %22525 = vst [vmem:[#allocation53_spill] sm:$0xff] %v19486_v3  ;;  %4673 = vrot.lane.b32.xlu0 %v19486_v3, %s18288_s24  ;;  %v15899_v35 = vpop.f32.mrb[4].mxu0  ;;  %16047 = vmatprep.subr.mxu1 %v22365_v45 }
 0x374   : > { %22526 = vst [vmem:[#allocation54_spill] sm:$0xff] %v19498_v53  ;;  %v1316_v2 = vadd.f32 %v15899_v35, %v19434_v57  ;;  %v1310_v16 = vpop.f32.mrb[5].mxu0 }
 0x375   : > { %v1311_v26 = vadd.f32 %v1310_v16, %v19434_v57  ;;  %16045 = vmatmul.mubr.msk.f32.vlgmr.msra.gmra.mrb[24].mxu1 %vm1715_vm1, %v19474_v58 }
 0x376   : > { %v19504_v59 = vmul.f32 0.17677669, %v1316_v2  ;;  %16048 = vmatpush3.xpose.msk.msra.mxu1 %vm1715_vm1, %v19498_v53  ;;  %16049 = vmatprep.mubr.msk.f32.mxu1 %vm18287_vm0, %v22365_v45 }
 0x377   : > { %v19510_v31 = vmul.f32 0.17677669, %v1311_v26  ;;  %16052 = vmatprep.subr.mxu1 %v22365_v45 }
 0x378   : > { %22527 = vst [vmem:[#allocation55_spill] sm:$0xff] %v19504_v59  ;;  %v15958_v38 = vpop.f32.mrb[6].mxu1  ;;  %4671 = vrot.lane.b32.xlu1 %v19504_v59, %s18288_s24 }
 0x379   : > { %22528 = vst [vmem:[#allocation56_spill] sm:$0xff] %v19510_v31  ;;  %v19516_v61 = vadd.f32 %v15958_v38, %v19431_v49  ;;  %v1501_v13 = vpop.f32.mrb[7].mxu1  ;;  %16050 = vmatmul.mubr.msk.f32.vlgmr.msra.gmra.mrb[26].mxu1 %vm1715_vm1, %v19510_v31  ;;  %v1569_v38 = vrot.slane %v738_v6, %v19218_v8 }
 0x37a   : > { %16053 = vmatpush3.xpose.msk.msra.mxu1 %vm1715_vm1, %v19486_v3  ;;  %16054 = vmatprep.mubr.msk.f32.mxu1 %vm18287_vm0, %v22365_v45  ;;  %v19528_v46 = vadd.f32 %v1501_v13, %v19431_v49 }
 0x37b   : > { %22529 = vst [vmem:[#allocation57_spill] sm:$0xff] %v19516_v61  ;;  %4829 = vrot.lane.b32.xlu0 %v19516_v61, %s18288_s24  ;;  %v15902_v4 = vpop.f32.mrb[6].mxu0  ;;  %16057 = vmatprep.subr.mxu1 %v22365_v45 }
 0x37c   : > { %22530 = vst [vmem:[#allocation58_spill] sm:$0xff] %v19528_v46  ;;  %v1320_v10 = vpop.f32.mrb[7].mxu0  ;;  %v1326_v39 = vadd.f32 %v15902_v4, %v19434_v57 }
 0x37d   : > { %v1321_v54 = vadd.f32 %v1320_v10, %v19434_v57  ;;  %16055 = vmatmul.mubr.msk.f32.vlgmr.msra.gmra.mrb[28].mxu1 %vm1715_vm1, %v19504_v59 }
 0x37e   : > { %16058 = vmatpush3.xpose.msk.msra.mxu1 %vm1715_vm1, %v19528_v46  ;;  %16059 = vmatprep.mubr.msk.f32.mxu1 %vm18287_vm0, %v22365_v45  ;;  %v19550_v55 = vmul.f32 0.17677669, %v1326_v39 }
 0x37f   : > { %v19538_v14 = vmul.f32 0.17677669, %v1321_v54  ;;  %16062 = vmatprep.subr.mxu1 %v22365_v45 }
 0x380   : > { %v15961_v29 = vpop.f32.mrb[8].mxu1  ;;  %22533 = vst [vmem:[#allocation61_spill] sm:$0xff] %v19550_v55 }
 0x381   : > { %22531 = vst [vmem:[#allocation59_spill] sm:$0xff] %v19538_v14  ;;  %v1511_v60 = vpop.f32.mrb[9].mxu1  ;;  %16060 = vmatmul.mubr.msk.f32.vlgmr.msra.gmra.mrb[30].mxu1 %vm1715_vm1, %v19538_v14  ;;  %v19554_v18 = vadd.f32 %v15961_v29, %v19431_v49 }
 0x382   : > { %v19544_v62 = vadd.f32 %v1511_v60, %v19431_v49  ;;  %16063 = vmatpush3.xpose.msk.msra.mxu1 %vm1715_vm1, %v19516_v61  ;;  %16064 = vmatprep.mubr.msk.f32.mxu1 %vm18287_vm0, %v22365_v45 }
 0x383   : > { %v15905_v50 = vpop.f32.mrb[8].mxu0  ;;  %16072 = vmatprep.subr.mxu1 %v22365_v45  ;;  %22534 = vst [vmem:[#allocation62_spill] sm:$0xff] %v19554_v18 }
 0x384   : > { %22532 = vst [vmem:[#allocation60_spill] sm:$0xff] %v19544_v62  ;;  %v1336_v40 = vadd.f32 %v15905_v50, %v19434_v57  ;;  %16068 = vmatpush3.xpose.msk.msra.mxu0 %vm1715_vm1, %v19544_v62  ;;  %v1330_v51 = vpop.f32.mrb[9].mxu0 }
 0x385   : > { %v1331_v1 = vadd.f32 %v1330_v51, %v19434_v57  ;;  %16065 = vmatmul.mubr.msk.f32.vlgmr.msra.gmra.mrb[32].mxu1 %vm1715_vm1, %v19550_v55  ;;  %16077 = vmatprep.subr.mxu0 %v22365_v45 }
 0x386   : > { %v19563_v24 = vmul.f32 0.17677669, %v1336_v40  ;;  %16073 = vmatpush3.xpose.msk.msra.mxu1 %vm1715_vm1, %v19554_v18  ;;  %16074 = vmatprep.mubr.msk.f32.mxu1 %vm18287_vm0, %v22365_v45 }
 0x387   : > { %v19569_v15 = vmul.f32 0.17677669, %v1331_v1  ;;  %16082 = vmatprep.subr.mxu1 %v22365_v45 }
 0x388   : > { %22535 = vst [vmem:[#allocation63_spill] sm:$0xff] %v19563_v24  ;;  %v15964_v19 = vpop.f32.mrb[10].mxu1 }
 0x389   : > { %22536 = vst [vmem:[#allocation64_spill] sm:$0xff] %v19569_v15  ;;  %v19573_v22 = vadd.f32 %v15964_v19, %v19431_v49  ;;  %v1521_v42 = vpop.f32.mrb[11].mxu1  ;;  %16070 = vmatmul.mubr.msk.f32.vlgmr.msra.gmra.mrb[30].mxu0 %vm1715_vm1, %v19569_v15  ;;  %16075 = vmatmul.mubr.msk.f32.vlgmr.msra.gmra.mrb[34].mxu1 %vm1715_vm1, %v19563_v24 }
 0x38a   : > { %v19580_v44 = vadd.f32 %v1521_v42, %v19431_v49  ;;  %16084 = vmatprep.mubr.msk.f32.mxu1 %vm18287_vm0, %v22365_v45  ;;  %16079 = vmatprep.mubr.msk.f32.mxu0 %vm18287_vm0, %v22365_v45 }
 0x38b   : > { %22537 = vst [vmem:[#allocation65_spill] sm:$0xff] %v19573_v22  ;;  %16083 = vmatpush3.xpose.msk.msra.mxu1 %vm1715_vm1, %v19573_v22  ;;  %v15908_v7 = vpop.f32.mrb[10].mxu0 }
 0x38c   : > { %22538 = vst [vmem:[#allocation66_spill] sm:$0xff] %v19580_v44  ;;  %v1346_v47 = vadd.f32 %v15908_v7, %v19434_v57  ;;  %16078 = vmatpush3.xpose.msk.msra.mxu0 %vm1715_vm1, %v19580_v44  ;;  %v1340_v56 = vpop.f32.mrb[11].mxu0  ;;  %16092 = vmatprep.subr.mxu1 %v22365_v45 }
 0x38d   : > { %v1341_v27 = vadd.f32 %v1340_v56, %v19434_v57  ;;  %16087 = vmatprep.subr.mxu0 %v22365_v45 }
 0x38e   : > { %v19594_v52 = vmul.f32 0.17677669, %v1346_v47 }
 0x38f   : > { %v19596_v9 = vmul.f32 0.17677669, %v1341_v27 }
 0x390   : > { %v15967_v63 = vpop.f32.mrb[12].mxu1  ;;  %16085 = vmatmul.mubr.msk.f32.vlgmr.msra.gmra.mrb[36].mxu1 %vm1715_vm1, %v19594_v52 }
 0x391   : > { %22539 = vst [vmem:[#allocation67_spill] sm:$0xff] %v19596_v9  ;;  %v19601_v34 = vadd.f32 %v15967_v63, %v19431_v49  ;;  %v1531_v5 = vpop.f32.mrb[13].mxu1  ;;  %16080 = vmatmul.mubr.msk.f32.vlgmr.msra.gmra.mrb[32].mxu0 %vm1715_vm1, %v19596_v9  ;;  %16094 = vmatprep.mubr.msk.f32.mxu1 %vm18287_vm0, %v22365_v45 }
 0x392   : > { %v19608_v20 = vadd.f32 %v1531_v5, %v19431_v49  ;;  %16089 = vmatprep.mubr.msk.f32.mxu0 %vm18287_vm0, %v22365_v45 }
 0x393   : > { %16093 = vmatpush3.xpose.msk.msra.mxu1 %vm1715_vm1, %v19601_v34  ;;  %v15911_v23 = vpop.f32.mrb[12].mxu0 }
 0x394   : > { %v1356_v25 = vadd.f32 %v15911_v23, %v19434_v57  ;;  %16088 = vmatpush3.xpose.msk.msra.mxu0 %vm1715_vm1, %v19608_v20  ;;  %v1350_v28 = vpop.f32.mrb[13].mxu0  ;;  %16102 = vmatprep.subr.mxu1 %v22365_v45 }
 0x395   : > { %v1351_v37 = vadd.f32 %v1350_v28, %v19434_v57  ;;  %16097 = vmatprep.subr.mxu0 %v22365_v45 }
 0x396   : > { %v19620_v12 = vmul.f32 0.17677669, %v1356_v25 }
 0x397   : > { %v19623_v35 = vmul.f32 0.17677669, %v1351_v37 }
 0x398   : > { %v15970_v2 = vpop.f32.mrb[14].mxu1  ;;  %16095 = vmatmul.mubr.msk.f32.vlgmr.msra.gmra.mrb[38].mxu1 %vm1715_vm1, %v19620_v12 }
 0x399   : > { %v19628_v16 = vadd.f32 %v15970_v2, %v19431_v49  ;;  %v1541_v26 = vpop.f32.mrb[15].mxu1  ;;  %16090 = vmatmul.mubr.msk.f32.vlgmr.msra.gmra.mrb[34].mxu0 %vm1715_vm1, %v19623_v35  ;;  %16104 = vmatprep.mubr.msk.f32.mxu1 %vm18287_vm0, %v22365_v45 }
 0x39a   : > { %v19636_v13 = vadd.f32 %v1541_v26, %v19431_v49  ;;  %16099 = vmatprep.mubr.msk.f32.mxu0 %vm18287_vm0, %v22365_v45 }
 0x39b   : > { %16103 = vmatpush3.xpose.msk.msra.mxu1 %vm1715_vm1, %v19628_v16  ;;  %v15914_v4 = vpop.f32.mrb[14].mxu0 }
 0x39c   : > { %22540 = vst [vmem:[#allocation68_spill] sm:$0xff] %v19636_v13  ;;  %v1366_v10 = vadd.f32 %v15914_v4, %v19434_v57  ;;  %v16026_v54 = vpop.f32.mrb[16].mxu1  ;;  %16098 = vmatpush3.xpose.msk.msra.mxu0 %vm1715_vm1, %v19636_v13  ;;  %v1360_v39 = vpop.f32.mrb[15].mxu0  ;;  %16112 = vmatprep.subr.mxu1 %v22365_v45 }
 0x39d   : > { %v19646_v29 = vadd.f32 %v16026_v54, %v1569_v38  ;;  %v1361_v49 = vadd.f32 %v1360_v39, %v19434_v57  ;;  %v1706_v60 = vpop.f32.mrb[17].mxu1  ;;  %16107 = vmatprep.subr.mxu0 %v22365_v45 }
 0x39e   : > { %v19650_v50 = vmul.f32 0.17677669, %v1366_v10  ;;  %v19652_v40 = vadd.f32 %v1706_v60, %v1569_v38 }
 0x39f   : > { %22541 = vst [vmem:[#allocation69_spill] sm:$0xff] %v19646_v29  ;;  %v19654_v51 = vmul.f32 0.17677669, %v1361_v49  ;;  %v16005_v1 = vpop.f32.mrb[16].mxu0 }
 0x3a0   : > { %22542 = vst [vmem:[#allocation70_spill] sm:$0xff] %v19652_v40  ;;  %v19656_v19 = vadd.f32 %v16005_v1, %v1569_v38  ;;  %v1636_v42 = vpop.f32.mrb[17].mxu0  ;;  %16105 = vmatmul.mubr.msk.f32.vlgmr.msra.gmra.mrb[40].mxu1 %vm1715_vm1, %v19650_v50 }
 0x3a1   : > { %v19660_v7 = vadd.f32 %v1636_v42, %v1569_v38  ;;  %16100 = vmatmul.mubr.msk.f32.vlgmr.msra.gmra.mrb[36].mxu0 %vm1715_vm1, %v19654_v51  ;;  %16114 = vmatprep.mubr.msk.f32.mxu1 %vm18287_vm0, %v22365_v45 }
 0x3a2   : > { %22543 = vst [vmem:[#allocation71_spill] sm:$0xff] %v19656_v19  ;;  %16113 = vmatpush3.msra.mxu1 %v19656_v19  ;;  %16109 = vmatprep.mubr.msk.f32.mxu0 %vm18287_vm0, %v22365_v45 }
 0x3a3   : > { %22544 = vst [vmem:[#allocation72_spill] sm:$0xff] %v19660_v7  ;;  %v16008_v57 = vpop.f32.mrb[18].mxu0  ;;  %16108 = vmatpush3.msra.mxu0 %v19660_v7  ;;  %16122 = vmatprep.subr.mxu1 %v22365_v45 }
 0x3a4   : > { %v19671_v47 = vadd.f32 %v16008_v57, %v1569_v38  ;;  %v1646_v56 = vpop.f32.mrb[19].mxu0  ;;  %16117 = vmatprep.subr.mxu0 %v22365_v45 }
 0x3a5   : > { %v19674_v27 = vadd.f32 %v1646_v56, %v1569_v38 }
 0x3a6   : > { %22545 = vst [vmem:[#allocation73_spill] sm:$0xff] %v19671_v47 }
 0x3a7   : > { %22546 = vst [vmem:[#allocation74_spill] sm:$0xff] %v19674_v27  ;;  %v16011_v63 = vpop.f32.mrb[20].mxu0 }
 0x3a8   : > { %v19676_v5 = vadd.f32 %v16011_v63, %v1569_v38  ;;  %v1656_v23 = vpop.f32.mrb[21].mxu0 }
 0x3a9   : > { %v19678_v25 = vadd.f32 %v1656_v23, %v1569_v38 }
 0x3aa   : > { %22547 = vst [vmem:[#allocation75_spill] sm:$0xff] %v19676_v5 }
 0x3ab   : > { %22548 = vst [vmem:[#allocation76_spill] sm:$0xff] %v19678_v25  ;;  %v16014_v28 = vpop.f32.mrb[22].mxu0 }
 0x3ac   : > { %v19680_v37 = vadd.f32 %v16014_v28, %v1569_v38  ;;  %v1666_v6 = vpop.f32.mrb[23].mxu0 }
 0x3ad   : > { %v19682_v2 = vadd.f32 %v1666_v6, %v1569_v38 }
 0x3ae   : > { %22549 = vst [vmem:[#allocation77_spill] sm:$0xff] %v19680_v37 }
 0x3af   : > { %22550 = vst [vmem:[#allocation78_spill] sm:$0xff] %v19682_v2  ;;  %v16017_v26 = vpop.f32.mrb[24].mxu0 }
 0x3b0   : > { %v19684_v4 = vadd.f32 %v16017_v26, %v1569_v38  ;;  %v1676_v10 = vpop.f32.mrb[25].mxu0 }
 0x3b1   : > { %v19686_v54 = vadd.f32 %v1676_v10, %v1569_v38 }
 0x3b2   : > { %22551 = vst [vmem:[#allocation79_spill] sm:$0xff] %v19684_v4 }
 0x3b3   : > { %22552 = vst [vmem:[#allocation80_spill] sm:$0xff] %v19686_v54  ;;  %v16020_v39 = vpop.f32.mrb[26].mxu0 }
 0x3b4   : > { %v19688_v49 = vadd.f32 %v16020_v39, %v1569_v38  ;;  %v1686_v60 = vpop.f32.mrb[27].mxu0 }
 0x3b5   : > { %v19690_v1 = vadd.f32 %v1686_v60, %v1569_v38 }
 0x3b6   : > { %22553 = vst [vmem:[#allocation81_spill] sm:$0xff] %v19688_v49 }
 0x3b7   : > { %22554 = vst [vmem:[#allocation82_spill] sm:$0xff] %v19690_v1  ;;  %v16023_v42 = vpop.f32.mrb[28].mxu0 }
 0x3b8   : > { %v19692_v57 = vadd.f32 %v16023_v42, %v1569_v38  ;;  %v1696_v56 = vpop.f32.mrb[29].mxu0 }
 0x3b9   : > { %v19694_v63 = vadd.f32 %v1696_v56, %v1569_v38 }
 0x3ba   : > { %22555 = vst [vmem:[#allocation83_spill] sm:$0xff] %v19692_v57 }
 0x3bb   : > { %22556 = vst [vmem:[#allocation84_spill] sm:$0xff] %v19694_v63 }
 0x43c   : > { %v19696_v23 = vpop.f32.mrb[18].mxu1 }
 0x43d   : > { %v16031_v28 = vpop.f32.mrb[19].mxu1 }
 0x440   : > { %v1864_v6 = vpop.f32.mrb[20].mxu1 }
 0x441   : > { %v16036_v26 = vpop.f32.mrb[21].mxu1  ;;  %v2936_v10 = vsel %vm2932_vm2, %v1864_v6, -inf }
 0x442   : > { %2937 = vmax.xlane.f32.xlu0 %v2936_v10 }
 0x444   : > { %v19699_v39 = vpop.f32.mrb[22].mxu1 }
 0x445   : > { %v16041_v43 = vpop.f32.mrb[23].mxu1 }
 0x448   : > { %v2016_v60 = vpop.f32.mrb[24].mxu1 }
 0x449   : > { %v16046_v45 = vpop.f32.mrb[25].mxu1  ;;  %v2942_v42 = vsel %vm2932_vm2, %v2016_v60, -inf }
 0x44a   : > { %2943 = vmax.xlane.f32.xlu1 %v2942_v42 }
 0x44c   : > { %v19702_v41 = vpop.f32.mrb[26].mxu1 }
 0x44d   : > { %v16051_v38 = vpop.f32.mrb[27].mxu1 }
 0x450   : > { %v2168_v56 = vpop.f32.mrb[28].mxu1 }
 0x451   : > { %v16056_v8 = vpop.f32.mrb[29].mxu1  ;;  %v2948_v28 = vsel %vm2932_vm2, %v2168_v56, -inf }
 0x452   : > { %2949 = vmax.xlane.f32.xlu0 %v2948_v28 }
 0x454   : > { %v19705_v26 = vpop.f32.mrb[30].mxu1 }
 0x455   : > { %v16061_v32 = vpop.f32.mrb[31].mxu1 }
 0x458   : > { %v2320_v10 = vpop.f32.mrb[32].mxu1 }
 0x459   : > { %v16066_v36 = vpop.f32.mrb[33].mxu1  ;;  %v2954_v43 = vsel %vm2932_vm2, %v2320_v10, -inf }
 0x45a   : > { %2955 = vmax.xlane.f32.xlu1 %v2954_v43 }
 0x45c   : > { %v19708_v45 = vpop.f32.mrb[30].mxu0  ;;  %v2472_v7 = vpop.f32.mrb[34].mxu1 }
 0x45d   : > { %v16071_v42 = vpop.f32.mrb[31].mxu0  ;;  %v16076_v40 = vpop.f32.mrb[35].mxu1  ;;  %v2960_v38 = vsel %vm2932_vm2, %v2472_v7, -inf }
 0x45e   : > { %2961 = vmax.xlane.f32.xlu0 %v2960_v38 }
 0x463   : > { %v2624_v8 = vpop.f32.mrb[36].mxu1 }
 0x464   : > { %v19711_v63 = vpop.f32.mrb[32].mxu0  ;;  %v16086_v28 = vpop.f32.mrb[37].mxu1  ;;  %v2966_v1 = vsel %vm2932_vm2, %v2624_v8, -inf }
 0x465   : > { %v16081_v32 = vpop.f32.mrb[33].mxu0  ;;  %2967 = vmax.xlane.f32.xlu1 %v2966_v1  ;;  %v19730_v1 = vpop.permute.xlu0 %4361 }
 0x46b   : > { %v19714_v36 = vpop.f32.mrb[38].mxu1 }
 0x46c   : > { %v19716_v54 = vpop.f32.mrb[34].mxu0  ;;  %v16096_v43 = vpop.f32.mrb[39].mxu1  ;;  %v2972_v42 = vsel %vm2932_vm2, %v19714_v36, -inf }
 0x46d   : > { %v16091_v40 = vpop.f32.mrb[35].mxu0  ;;  %2973 = vmax.xlane.f32.xlu0 %v2972_v42  ;;  %v19732_v43 = vpop.permute.xlu1 %4359 }
 0x46e   : > { %v19734_v42 = vpop.permute.xlu0 %4673 }
 0x471   : > { %v19736_v40 = vpop.permute.xlu1 %4517 }
 0x473   : > { %v19720_v2 = vpop.f32.mrb[40].mxu1 }
 0x474   : > { %v19722_v38 = vpop.f32.mrb[36].mxu0  ;;  %v16106_v25 = vpop.f32.mrb[41].mxu1  ;;  %v2978_v28 = vsel %vm2932_vm2, %v19720_v2, -inf }
 0x475   : > { %v16101_v32 = vpop.f32.mrb[37].mxu0  ;;  %2979 = vmax.xlane.f32.xlu1 %v2978_v28  ;;  %v19738_v25 = vpop.permute.xlu0 %4829 }
 0x476   : > { %v19740_v27 = vpop.permute.xlu1 %4515 }
 0x47a   : > { %v19742_v3 = vpop.permute.xlu1 %4671 }
 0x483   : > { %4985 = vrot.lane.b32.xlu0 %v19554_v18, %s18288_s24 }
 0x486   : > { %4827 = vrot.lane.b32.xlu1 %v19550_v55, %s18288_s24 }
 0x4cf   : > { %v2938_v32 = vpop.xlane.xlu0 %2937 }
 0x4d0   : > { %v2982_v28 = vsub.f32 %v1864_v6, %v2938_v32 }
 0x4d2   : > { %v2999_v61 = vmul.f32 1.442695, %v2982_v28 }
 0x4d4   : > { %17327 = vpow2.f32 %v2999_v61 }
 0x4d7   : > { %v2944_v18 = vpop.xlane.xlu1 %2943 }
 0x4d8   : > { %v2984_v55 = vsub.f32 %v2016_v60, %v2944_v18 }
 0x4da   : > { %v3003_v11 = vmul.f32 1.442695, %v2984_v55 }
 0x4dc   : > { %17329 = vpow2.f32 %v3003_v11 }
 0x4de   : > { %v19744_v33 = vpop.eup %17327 }
 0x4df   : > { %v2950_v59 = vpop.xlane.xlu0 %2949  ;;  %v3032_v58 = vsel %vm2932_vm2, %v19744_v33, 0.0 }
 0x4e0   : > { %v2986_v19 = vsub.f32 %v2168_v56, %v2950_v59  ;;  %3033 = vadd.xlane.f32.xlu0 %v3032_v58 }
 0x4e2   : > { %v3007_v13 = vmul.f32 1.442695, %v2986_v19 }
 0x4e4   : > { %17331 = vpow2.f32 %v3007_v13 }
 0x4e6   : > { %v19748_v17 = vpop.eup %17329 }
 0x4e7   : > { %v2956_v6 = vpop.xlane.xlu1 %2955  ;;  %v3038_v61 = vsel %vm2932_vm2, %v19748_v17, 0.0 }
 0x4e8   : > { %v2988_v32 = vsub.f32 %v2320_v10, %v2956_v6  ;;  %3039 = vadd.xlane.f32.xlu1 %v3038_v61 }
 0x4ea   : > { %v3011_v55 = vmul.f32 1.442695, %v2988_v32 }
 0x4eb   : > { %v2962_v11 = vpop.xlane.xlu0 %2961 }
 0x4ec   : > { %17333 = vpow2.f32 %v3011_v55  ;;  %v2990_v18 = vsub.f32 %v2472_v7, %v2962_v11 }
 0x4ee   : > { %v19752_v60 = vpop.eup %17331  ;;  %v3015_v28 = vmul.f32 1.442695, %v2990_v18 }
 0x4ef   : > { %v3044_v58 = vsel %vm2932_vm2, %v19752_v60, 0.0 }
 0x4f0   : > { %17335 = vpow2.f32 %v3015_v28  ;;  %3045 = vadd.xlane.f32.xlu0 %v3044_v58 }
 0x4f2   : > { %v2968_v59 = vpop.xlane.xlu1 %2967 }
 0x4f3   : > { %v2992_v13 = vsub.f32 %v2624_v8, %v2968_v59 }
 0x4f5   : > { %v3019_v19 = vmul.f32 1.442695, %v2992_v13 }
 0x4f6   : > { %v19756_v56 = vpop.eup %17333 }
 0x4f7   : > { %17337 = vpow2.f32 %v3019_v19  ;;  %v3050_v10 = vsel %vm2932_vm2, %v19756_v56, 0.0 }
 0x4f8   : > { %3051 = vadd.xlane.f32.xlu1 %v3050_v10 }
 0x4fa   : > { %v19760_v6 = vpop.eup %17335  ;;  %v2974_v8 = vpop.xlane.xlu0 %2973 }
 0x4fb   : > { %v3056_v7 = vsel %vm2932_vm2, %v19760_v6, 0.0  ;;  %v2994_v55 = vsub.f32 %v19714_v36, %v2974_v8  ;;  %v2939_v8 = vsel %vm2932_vm2, %v19699_v39, -inf }
 0x4fc   : > { %3057 = vadd.xlane.f32.xlu0 %v3056_v7 }
 0x4fd   : > { %v3023_v11 = vmul.f32 1.442695, %v2994_v55 }
 0x4fe   : > { %v19792_v36 = vpop.permute.xlu0 %4985 }
 0x4ff   : > { %17339 = vpow2.f32 %v3023_v11 }
 0x501   : > { %v19764_v61 = vpop.eup %17337 }
 0x502   : > { %v3062_v32 = vsel %vm2932_vm2, %v19764_v61, 0.0  ;;  %v2980_v18 = vpop.xlane.xlu1 %2979 }
 0x503   : > { %3063 = vadd.xlane.f32.xlu1 %v3062_v32  ;;  %v2996_v28 = vsub.f32 %v19720_v2, %v2980_v18  ;;  %v2933_v2 = vsel %vm2932_vm2, %v19696_v23, -inf  ;;  %v2945_v18 = vsel %vm2932_vm2, %v19702_v41, -inf }
 0x505   : > { %v3027_v58 = vmul.f32 1.442695, %v2996_v28 }
 0x506   : > { %v19794_v32 = vpop.permute.xlu1 %4827 }
 0x507   : > { %17341 = vpow2.f32 %v3027_v58  ;;  %v2951_v58 = vsel %vm2932_vm2, %v19705_v26, -inf }
 0x509   : > { %v19774_v59 = vpop.eup %17339 }
 0x50a   : > { %v3068_v13 = vsel %vm2932_vm2, %v19774_v59, 0.0 }
 0x511   : > { %v19778_v19 = vpop.eup %17341 }
 0x512   : > { %5141 = vrot.lane.b32.xlu0 %v19573_v22, %s18288_s24  ;;  %v3074_v10 = vsel %vm2932_vm2, %v19778_v19, 0.0 }
 0x514   : > { %4983 = vrot.lane.b32.xlu1 %v19563_v24, %s18288_s24 }
 0x531   : > { %3069 = vadd.xlane.f32.xlu0 %v3068_v13 }
 0x538   : > { %3075 = vadd.xlane.f32.xlu1 %v3074_v10  ;;  %v22557_v10 = vmov 0.0  }
 0x547   : > { %5297 = vrot.lane.b32.xlu0 %v19601_v34, %s18288_s24 }
 0x549   : > { %5139 = vrot.lane.b32.xlu1 %v19594_v52, %s18288_s24 }
 0x54d   : > { %5295 = vrot.lane.b32.xlu1 %v19620_v12, %s18288_s24 }
 0x551   : > { %5453 = vrot.lane.b32.xlu1 %v19628_v16, %s18288_s24 }
 0x566   : > { %2934 = vmax.xlane.f32.xlu0 %v2933_v2 }
 0x56d   : > { %v3034_v7 = vpop.xlane.xlu0 %3033 }
 0x56e   : > { %17343 = vrcp.f32 %v3034_v7 }
 0x575   : > { %2940 = vmax.xlane.f32.xlu1 %v2939_v8  ;;  %v3040_v55 = vpop.xlane.xlu1 %3039  ;;  %v2969_v8 = vsel %vm2932_vm2, %v19716_v54, -inf }
 0x576   : > { %17345 = vrcp.f32 %v3040_v55 }
 0x578   : > { %v17344_v11 = vpop.eup %17343 }
 0x579   : > { %2946 = vmax.xlane.f32.xlu1 %v2945_v18  ;;  %v3080_v28 = vmul.f32 %v17344_v11, %v19744_v33  ;;  %v2957_v33 = vsel %vm2932_vm2, %v19708_v45, -inf  ;;  %v2975_v18 = vsel %vm2932_vm2, %v19722_v38, -inf }
 0x57b   : > { %16115 = vmatmul.mubr.msk.f32.vlgmr.msra.gmra.mrb[42].mxu1 %vm2932_vm2, %v3080_v28 }
 0x57c   : > { %16123 = vmatpush3.msra.mxu1 %v19671_v47  ;;  %5451 = vrot.lane.b32.xlu0 %v19650_v50, %s18288_s24 }
 0x57d   : > { %v3046_v13 = vpop.xlane.xlu0 %3045  ;;  %2952 = vmax.xlane.f32.xlu1 %v2951_v58  ;;  %16124 = vmatprep.mubr.msk.f32.mxu1 %vm18287_vm0, %v22557_v10 }
 0x57e   : > { %17347 = vrcp.f32 %v3046_v13  ;;  %16132 = vmatprep.subr.mxu1 %v22557_v10 }
 0x580   : > { %v17346_v2 = vpop.eup %17345 }
 0x581   : > { %2958 = vmax.xlane.f32.xlu1 %v2957_v33  ;;  %v3084_v7 = vmul.f32 %v17346_v2, %v19748_v17 }
 0x583   : > { %16125 = vmatmul.mubr.msk.f32.vlgmr.msra.gmra.mrb[44].mxu1 %vm2932_vm2, %v3084_v7 }
 0x584   : > { %16133 = vmatpush3.msra.mxu1 %v19676_v5  ;;  %16134 = vmatprep.mubr.msk.f32.mxu1 %vm18287_vm0, %v22557_v10 }
 0x585   : > { %2970 = vmax.xlane.f32.xlu1 %v2969_v8  ;;  %v3052_v55 = vpop.xlane.xlu1 %3051  ;;  %16142 = vmatprep.subr.mxu1 %v22557_v10 }
 0x586   : > { %17349 = vrcp.f32 %v3052_v55 }
 0x588   : > { %v17348_v11 = vpop.eup %17347 }
 0x589   : > { %v3058_v17 = vpop.xlane.xlu0 %3057  ;;  %2976 = vmax.xlane.f32.xlu1 %v2975_v18  ;;  %v3088_v28 = vmul.f32 %v17348_v11, %v19752_v60 }
 0x58a   : > { %17351 = vrcp.f32 %v3058_v17 }
 0x58b   : > { %16135 = vmatmul.mubr.msk.f32.vlgmr.msra.gmra.mrb[46].mxu1 %vm2932_vm2, %v3088_v28 }
 0x58c   : > { %16143 = vmatpush3.msra.mxu1 %v19680_v37  ;;  %16144 = vmatprep.mubr.msk.f32.mxu1 %vm18287_vm0, %v22557_v10 }
 0x58d   : > { %16152 = vmatprep.subr.mxu1 %v22557_v10 }
 0x590   : > { %v17350_v58 = vpop.eup %17349  ;;  %v3064_v13 = vpop.xlane.xlu1 %3063 }
 0x591   : > { %17353 = vrcp.f32 %v3064_v13  ;;  %v3092_v2 = vmul.f32 %v17350_v58, %v19756_v56  ;;  %v2963_v56 = vsel %vm2932_vm2, %v19711_v63, -inf }
 0x593   : > { %16145 = vmatmul.mubr.msk.f32.vlgmr.msra.gmra.mrb[48].mxu1 %vm2932_vm2, %v3092_v2 }
 0x594   : > { %v17352_v33 = vpop.eup %17351  ;;  %16153 = vmatpush3.msra.mxu1 %v19684_v4  ;;  %16154 = vmatprep.mubr.msk.f32.mxu1 %vm18287_vm0, %v22557_v10  ;;  %v4984_v11 = vpop.permute.xlu1 %4983 }
 0x595   : > { %16162 = vmatprep.subr.mxu1 %v22557_v10  ;;  %v3096_v60 = vmul.f32 %v17352_v33, %v19760_v6  ;;  %v5142_v6 = vpop.permute.xlu0 %5141 }
 0x597   : > { %16155 = vmatmul.mubr.msk.f32.vlgmr.msra.gmra.mrb[50].mxu1 %vm2932_vm2, %v3096_v60 }
 0x598   : > { %16163 = vmatpush3.msra.mxu1 %v19688_v49  ;;  %16164 = vmatprep.mubr.msk.f32.mxu1 %vm18287_vm0, %v22557_v10 }
 0x599   : > { %16172 = vmatprep.subr.mxu1 %v22557_v10 }
 0x59b   : > { %v17354_v7 = vpop.eup %17353  ;;  %2964 = vmax.xlane.f32.xlu0 %v2963_v56 }
 0x59c   : > { %v3100_v8 = vmul.f32 %v17354_v7, %v19764_v61 }
 0x59e   : > { %16165 = vmatmul.mubr.msk.f32.vlgmr.msra.gmra.mrb[52].mxu1 %vm2932_vm2, %v3100_v8 }
 0x59f   : > { %16173 = vmatpush3.msra.mxu1 %v19692_v57  ;;  %16174 = vmatprep.mubr.msk.f32.mxu1 %vm18287_vm0, %v22557_v10 }
 0x5a0   : > { %16182 = vmatprep.subr.mxu1 %v22557_v10 }
 0x5be   : > { %v3070_v55 = vpop.xlane.xlu0 %3069 }
 0x5bf   : > { %17355 = vrcp.f32 %v3070_v55 }
 0x5c5   : > { %v3076_v18 = vpop.xlane.xlu1 %3075 }
 0x5c6   : > { %17357 = vrcp.f32 %v3076_v18 }
 0x5c9   : > { %v17356_v17 = vpop.eup %17355 }
 0x5ca   : > { %v3104_v28 = vmul.f32 %v17356_v17, %v19774_v59 }
 0x5cc   : > { %16175 = vmatmul.mubr.msk.f32.vlgmr.msra.gmra.mrb[54].mxu1 %vm2932_vm2, %v3104_v28 }
 0x5cd   : > { %16183 = vmatpush3.msra.mxu1 %v19646_v29  ;;  %16184 = vmatprep.mubr.msk.f32.mxu1 %vm18287_vm0, %v22557_v10 }
 0x5ce   : > { %16192 = vmatprep.subr.mxu1 %v22557_v10 }
 0x5d0   : > { %v17358_v61 = vpop.eup %17357 }
 0x5d1   : > { %v3108_v58 = vmul.f32 %v17358_v61, %v19778_v19 }
 0x5d3   : > { %16185 = vmatmul.mubr.msk.f32.vlgmr.msra.gmra.mrb[56].mxu1 %vm2932_vm2, %v3108_v58 }
 0x5d4   : > { %16193 = vmatpush3.xpose.msk.msra.mxu1 %vm1715_vm1, %v19730_v1  ;;  %16194 = vmatprep.mubr.msk.f32.mxu1 %vm18287_vm0, %v22557_v10  ;;  %v5298_v1 = vpop.permute.xlu0 %5297 }
 0x5d5   : > { %16202 = vmatprep.subr.mxu1 %v22557_v10 }
 0x5d7   : > { %16195 = vmatmul.mubr.msk.f32.vlgmr.msra.gmra.mrb[58].mxu1 %vm1715_vm1, %v19732_v43 }
 0x5d8   : > { %16203 = vmatpush3.xpose.msk.msra.mxu1 %vm1715_vm1, %v19736_v40  ;;  %16204 = vmatprep.mubr.msk.f32.mxu1 %vm18287_vm0, %v22557_v10 }
 0x5d9   : > { %16212 = vmatprep.subr.mxu1 %v22557_v10 }
 0x5db   : > { %16205 = vmatmul.mubr.msk.f32.vlgmr.msra.gmra.mrb[60].mxu1 %vm1715_vm1, %v19740_v27  ;;  %v5140_v27 = vpop.permute.xlu1 %5139 }
 0x5dc   : > { %16213 = vmatpush3.xpose.msk.msra.mxu1 %vm1715_vm1, %v19734_v42  ;;  %16214 = vmatprep.mubr.msk.f32.mxu1 %vm18287_vm0, %v22557_v10 }
 0x5dd   : > { %16222 = vmatprep.subr.mxu1 %v22557_v10 }
 0x5df   : > { %16215 = vmatmul.mubr.msk.f32.vlgmr.msra.gmra.mrb[62].mxu1 %vm1715_vm1, %v19742_v3  ;;  %v5296_v3 = vpop.permute.xlu1 %5295 }
 0x5e0   : > { %16223 = vmatpush3.xpose.msk.msra.mxu1 %vm1715_vm1, %v19738_v25  ;;  %16224 = vmatprep.mubr.msk.f32.mxu1 %vm18287_vm0, %v22557_v10 }
 0x5e1   : > { %16232 = vmatprep.subr.mxu1 %v22557_v10 }
 0x5e3   : > { %16225 = vmatmul.mubr.msk.f32.vlgmr.msra.gmra.mrb[64].mxu1 %vm1715_vm1, %v19794_v32  ;;  %v5454_v43 = vpop.permute.xlu1 %5453 }
 0x5e4   : > { %16233 = vmatpush3.xpose.msk.msra.mxu1 %vm1715_vm1, %v19792_v36  ;;  %16234 = vmatprep.mubr.msk.f32.mxu1 %vm18287_vm0, %v22557_v10 }
 0x5e5   : > { %16242 = vmatprep.subr.mxu1 %v22557_v10 }
 0x5e7   : > { %16235 = vmatmul.mubr.msk.f32.vlgmr.msra.gmra.mrb[66].mxu1 %vm1715_vm1, %v4984_v11 }
 0x5e8   : > { %16243 = vmatpush3.xpose.msk.msra.mxu1 %vm1715_vm1, %v5142_v6  ;;  %16244 = vmatprep.mubr.msk.f32.mxu1 %vm18287_vm0, %v22557_v10 }
 0x5e9   : > { %16252 = vmatprep.subr.mxu1 %v22557_v10 }
 0x5eb   : > { %16245 = vmatmul.mubr.msk.f32.vlgmr.msra.gmra.mrb[68].mxu1 %vm1715_vm1, %v5140_v27 }
 0x5ec   : > { %16253 = vmatpush3.xpose.msk.msra.mxu1 %vm1715_vm1, %v5298_v1  ;;  %16254 = vmatprep.mubr.msk.f32.mxu1 %vm18287_vm0, %v22557_v10 }
 0x5ed   : > { %16262 = vmatprep.subr.mxu1 %v22557_v10 }
 0x5ef   : > { %16255 = vmatmul.mubr.msk.f32.vlgmr.msra.gmra.mrb[70].mxu1 %vm1715_vm1, %v5296_v3 }
 0x5f0   : > { %16263 = vmatpush3.xpose.msk.msra.mxu1 %vm1715_vm1, %v5454_v43  ;;  %16264 = vmatprep.mubr.msk.f32.mxu1 %vm18287_vm0, %v22557_v10 }
 0x5f1   : > { %16272 = vmatprep.subr.mxu1 %v22557_v10 }
 0x5f3   : > { %v2935_v42 = vpop.xlane.xlu0 %2934 }
 0x5f4   : > { %v2981_v40 = vsub.f32 %v19696_v23, %v2935_v42 }
 0x5f6   : > { %v2997_v25 = vmul.f32 1.442695, %v2981_v40 }
 0x5f7   : > { %v5452_v59 = vpop.permute.xlu0 %5451 }
 0x5f8   : > { %17359 = vpow2.f32 %v2997_v25  ;;  %16265 = vmatmul.mubr.msk.f32.vlgmr.msra.gmra.mrb[72].mxu1 %vm1715_vm1, %v5452_v59 }
 0x5f9   : > { %16274 = vmatprep.mubr.msk.f32.mxu1 %vm18287_vm0, %v22557_v10 }
 0x602   : > { %v19908_v19 = vpop.eup %17359  ;;  %v2941_v36 = vpop.xlane.xlu1 %2940 }
 0x603   : > { %v2983_v32 = vsub.f32 %v19699_v39, %v2941_v36  ;;  %v3029_v13 = vsel %vm2932_vm2, %v19908_v19, 0.0 }
 0x604   : > { %3030 = vadd.xlane.f32.xlu1 %v3029_v13 }
 0x605   : > { %v3001_v2 = vmul.f32 1.442695, %v2983_v32 }
 0x606   : > { %v2947_v33 = vpop.xlane.xlu1 %2946 }
 0x607   : > { %17361 = vpow2.f32 %v3001_v2  ;;  %v2985_v23 = vsub.f32 %v19702_v41, %v2947_v33 }
 0x609   : > { %v3005_v60 = vmul.f32 1.442695, %v2985_v23 }
 0x60a   : > { %v2953_v56 = vpop.xlane.xlu1 %2952 }
 0x60b   : > { %17363 = vpow2.f32 %v3005_v60  ;;  %v2987_v7 = vsub.f32 %v19705_v26, %v2953_v56 }
 0x60d   : > { %v3009_v8 = vmul.f32 1.442695, %v2987_v7 }
 0x60e   : > { %v2959_v6 = vpop.xlane.xlu1 %2958 }
 0x60f   : > { %17365 = vpow2.f32 %v3009_v8  ;;  %v2989_v55 = vsub.f32 %v19708_v45, %v2959_v6 }
 0x611   : > { %v19916_v39 = vpop.eup %17361  ;;  %v3013_v11 = vmul.f32 1.442695, %v2989_v55  ;;  %v22562_v55 = vld [vmem:[#allocation47_spill] sm:$0xff] }
 0x612   : > { %v2971_v18 = vpop.xlane.xlu1 %2970  ;;  %v3035_v17 = vsel %vm2932_vm2, %v19916_v39, 0.0 }
 0x613   : > { %17367 = vpow2.f32 %v3013_v11  ;;  %v2993_v41 = vsub.f32 %v19716_v54, %v2971_v18  ;;  %3036 = vadd.xlane.f32.xlu1 %v3035_v17  ;;  %v22563_v11 = vld [vmem:[#allocation68_spill] sm:$0xff] }
 0x615   : > { %v19921_v28 = vpop.eup %17363  ;;  %v3021_v61 = vmul.f32 1.442695, %v2993_v41  ;;  %v22565_v41 = vld [vmem:[#allocation71_spill] sm:$0xff] }
 0x616   : > { %v3041_v26 = vsel %vm2932_vm2, %v19921_v28, 0.0  ;;  %v2977_v43 = vpop.xlane.xlu1 %2976 }
 0x617   : > { %17369 = vpow2.f32 %v3021_v61  ;;  %3042 = vadd.xlane.f32.xlu1 %v3041_v26  ;;  %v2995_v42 = vsub.f32 %v19722_v38, %v2977_v43  ;;  %v22566_v61 = vld [vmem:[#allocation51_spill] sm:$0xff]  ;;  %v22570_v43 = vld [vmem:[#allocation49_spill] sm:$0xff] }
 0x619   : > { %v19925_v45 = vpop.eup %17365  ;;  %v3025_v59 = vmul.f32 1.442695, %v2995_v42 }
 0x61a   : > { %v3047_v58 = vsel %vm2932_vm2, %v19925_v45, 0.0 }
 0x61b   : > { %3048 = vadd.xlane.f32.xlu1 %v3047_v58 }
 0x61d   : > { %v19929_v27 = vpop.eup %17367 }
 0x61e   : > { %v3053_v54 = vsel %vm2932_vm2, %v19929_v27, 0.0 }
 0x61f   : > { %3054 = vadd.xlane.f32.xlu1 %v3053_v54  ;;  %v22568_v54 = vld [vmem:[#allocation55_spill] sm:$0xff] }
 0x621   : > { %v19933_v3 = vpop.eup %17369 }
 0x622   : > { %v3065_v1 = vsel %vm2932_vm2, %v19933_v3, 0.0 }
 0x623   : > { %3066 = vadd.xlane.f32.xlu0 %v3065_v1  ;;  %v22569_v1 = vld [vmem:[#allocation45_spill] sm:$0xff] }
 0x628   : > { %v2965_v40 = vpop.xlane.xlu0 %2964 }
 0x629   : > { %v2991_v25 = vsub.f32 %v19711_v63, %v2965_v40  ;;  %v22571_v40 = vld [vmem:[#allocation53_spill] sm:$0xff] }
 0x62b   : > { %v3017_v36 = vmul.f32 1.442695, %v2991_v25 }
 0x62d   : > { %17371 = vpow2.f32 %v3017_v36  ;;  %v22572_v36 = vld [vmem:[#allocation57_spill] sm:$0xff] }
 0x62e   : > { %17373 = vpow2.f32 %v3025_v59 }
 0x637   : > { %v19939_v32 = vpop.eup %17371 }
 0x638   : > { %v3059_v13 = vsel %vm2932_vm2, %v19939_v32, 0.0  ;;  %v19943_v2 = vpop.eup %17373 }
 0x639   : > { %3060 = vadd.xlane.f32.xlu1 %v3059_v13  ;;  %4283 = vrot.lane.b32.xlu0 %v19440_v30, %s18288_s24  ;;  %v3071_v38 = vsel %vm2932_vm2, %v19943_v2, 0.0 }
 0x63d   : > { %4437 = vrot.lane.b32.xlu0 %v19480_v48, %s18288_s24  ;;  %3072 = vadd.xlane.f32.xlu1 %v3071_v38  ;;  %v22574_v38 = vld [vmem:[#allocation74_spill] sm:$0xff] }
 0x641   : > { %4593 = vrot.lane.b32.xlu0 %v19510_v31, %s18288_s24 }
 0x645   : > { %4749 = vrot.lane.b32.xlu0 %v19538_v14, %s18288_s24 }
 0x649   : > { %4905 = vrot.lane.b32.xlu0 %v19569_v15, %s18288_s24 }
 0x64d   : > { %5061 = vrot.lane.b32.xlu0 %v19596_v9, %s18288_s24 }
 0x64e   : > { %4281 = vrot.lane.b32.xlu1 %v19451_v21, %s18288_s24  ;;  %v19961_v63 = vpop.f32.mrb[42].mxu1 }
 0x64f   : > { %22558 = vst [vmem:[#allocation85_spill] sm:$0xff] %v19961_v63  ;;  %v16116_v33 = vpop.f32.mrb[43].mxu1 }
 0x651   : > { %5217 = vrot.lane.b32.xlu0 %v19623_v35, %s18288_s24 }
 0x652   : > { %4439 = vrot.lane.b32.xlu1 %v19466_v0, %s18288_s24 }
 0x655   : > { %5373 = vrot.lane.b32.xlu0 %v19654_v51, %s18288_s24 }
 0x656   : > { %4595 = vrot.lane.b32.xlu1 %v19498_v53, %s18288_s24  ;;  %v19971_v23 = vpop.f32.mrb[44].mxu1 }
 0x657   : > { %22559 = vst [vmem:[#allocation86_spill] sm:$0xff] %v19971_v23  ;;  %v16126_v60 = vpop.f32.mrb[45].mxu1 }
 0x659   : > { %5937 = vrot.lane.b32.xlu0 %v19671_v47, %s18288_s24 }
 0x65a   : > { %4751 = vrot.lane.b32.xlu1 %v19528_v46, %s18288_s24 }
 0x65d   : > { %6553 = vrot.lane.b32.xlu0 %v19688_v49, %s18288_s24 }
 0x65e   : > { %4907 = vrot.lane.b32.xlu1 %v19544_v62, %s18288_s24  ;;  %v19981_v56 = vpop.f32.mrb[46].mxu1 }
 0x65f   : > { %22560 = vst [vmem:[#allocation87_spill] sm:$0xff] %v19981_v56  ;;  %v16136_v7 = vpop.f32.mrb[47].mxu1 }
 0x660   : > { %v22575_v7 = vld [vmem:[#allocation61_spill] sm:$0xff] }
 0x661   : > { %6861 = vrot.lane.b32.xlu0 %v19646_v29, %s18288_s24 }
 0x662   : > { %5063 = vrot.lane.b32.xlu1 %v19580_v44, %s18288_s24 }
 0x665   : > { %7327 = vrot.lane.b32.xlu0 %v19451_v21, %s18289_s17 }
 0x666   : > { %5219 = vrot.lane.b32.xlu1 %v19608_v20, %s18288_s24  ;;  %v19991_v8 = vpop.f32.mrb[48].mxu1 }
 0x667   : > { %22561 = vst [vmem:[#allocation88_spill] sm:$0xff] %v19991_v8  ;;  %v16146_v6 = vpop.f32.mrb[49].mxu1 }
 0x669   : > { %7405 = vrot.lane.b32.xlu0 %v22562_v55, %s18289_s17 }
 0x66a   : > { %5375 = vrot.lane.b32.xlu1 %v22563_v11, %s18288_s24  ;;  %v19997_v18 = vpop.f32.mrb[50].mxu1 }
 0x66b   : > { %22564 = vst [vmem:[#allocation68_spill] sm:$0xff] %v19997_v18  ;;  %v16156_v17 = vpop.f32.mrb[51].mxu1  ;;  %v22577_v18 = vld [vmem:[#allocation76_spill] sm:$0xff] }
 0x66d   : > { %7483 = vrot.lane.b32.xlu0 %v19480_v48, %s18289_s17 }
 0x66e   : > { %5783 = vrot.lane.b32.xlu1 %v22565_v41, %s18288_s24 }
 0x671   : > { %7561 = vrot.lane.b32.xlu0 %v22566_v61, %s18289_s17  ;;  %v20005_v26 = vpop.f32.mrb[52].mxu1 }
 0x672   : > { %22567 = vst [vmem:[#allocation89_spill] sm:$0xff] %v20005_v26  ;;  %6091 = vrot.lane.b32.xlu1 %v19676_v5, %s18288_s24  ;;  %v16166_v58 = vpop.f32.mrb[53].mxu1 }
 0x675   : > { %7639 = vrot.lane.b32.xlu0 %v19510_v31, %s18289_s17 }
 0x676   : > { %6245 = vrot.lane.b32.xlu1 %v19680_v37, %s18288_s24 }
 0x679   : > { %7717 = vrot.lane.b32.xlu0 %v22568_v54, %s18289_s17 }
 0x67a   : > { %6399 = vrot.lane.b32.xlu1 %v19684_v4, %s18288_s24 }
 0x67d   : > { %7795 = vrot.lane.b32.xlu0 %v19538_v14, %s18289_s17 }
 0x67e   : > { %6707 = vrot.lane.b32.xlu1 %v19692_v57, %s18288_s24 }
 0x682   : > { %7329 = vrot.lane.b32.xlu1 %v19440_v30, %s18289_s17 }
 0x686   : > { %7407 = vrot.lane.b32.xlu1 %v22569_v1, %s18289_s17 }
 0x68a   : > { %7485 = vrot.lane.b32.xlu1 %v19466_v0, %s18289_s17 }
 0x68e   : > { %7563 = vrot.lane.b32.xlu1 %v22570_v43, %s18289_s17 }
 0x691   : > { %v3031_v42 = vpop.xlane.xlu1 %3030 }
 0x692   : > { %17375 = vrcp.f32 %v3031_v42  ;;  %7641 = vrot.lane.b32.xlu1 %v19498_v53, %s18289_s17 }
 0x696   : > { %7719 = vrot.lane.b32.xlu1 %v22571_v40, %s18289_s17 }
 0x69a   : > { %7797 = vrot.lane.b32.xlu1 %v19528_v46, %s18289_s17 }
 0x69c   : > { %v17376_v25 = vpop.eup %17375 }
 0x69d   : > { %v3078_v59 = vmul.f32 %v17376_v25, %v19908_v19 }
 0x69e   : > { %7875 = vrot.lane.b32.xlu1 %v22572_v36, %s18289_s17 }
 0x69f   : > { %16110 = vmatmul.mubr.msk.f32.vlgmr.msra.gmra.mrb[38].mxu0 %vm2932_vm2, %v3078_v59  ;;  %v20039_v13 = vpop.f32.mrb[54].mxu1 }
 0x6a0   : > { %22573 = vst [vmem:[#allocation90_spill] sm:$0xff] %v20039_v13  ;;  %16118 = vmatpush3.msra.mxu0 %v22574_v38  ;;  %v3037_v33 = vpop.xlane.xlu1 %3036  ;;  %v16176_v60 = vpop.f32.mrb[55].mxu1  ;;  %16119 = vmatprep.mubr.msk.f32.mxu0 %vm18287_vm0, %v22557_v10 }
 0x6a1   : > { %17377 = vrcp.f32 %v3037_v33  ;;  %16127 = vmatprep.subr.mxu0 %v22557_v10 }
 0x6a2   : > { %7873 = vrot.lane.b32.xlu1 %v22575_v7, %s18289_s17 }
 0x6a4   : > { %v3043_v19 = vpop.xlane.xlu1 %3042 }
 0x6a5   : > { %17379 = vrcp.f32 %v3043_v19 }
 0x6a6   : > { %v20047_v6 = vpop.f32.mrb[56].mxu1 }
 0x6a7   : > { %22576 = vst [vmem:[#allocation91_spill] sm:$0xff] %v20047_v6  ;;  %v16186_v17 = vpop.f32.mrb[57].mxu1 }
 0x6a8   : > { %v3049_v58 = vpop.xlane.xlu1 %3048 }
 0x6a9   : > { %17381 = vrcp.f32 %v3049_v58 }
 0x6aa   : > { %v20049_v42 = vpop.f32.mrb[58].mxu1 }
 0x6ab   : > { %v17378_v25 = vpop.eup %17377  ;;  %v16196_v59 = vpop.f32.mrb[59].mxu1 }
 0x6ac   : > { %v3055_v60 = vpop.xlane.xlu1 %3054  ;;  %v3082_v13 = vmul.f32 %v17378_v25, %v19916_v39  ;;  %v22578_v25 = vld [vmem:[#allocation78_spill] sm:$0xff] }
 0x6ad   : > { %17383 = vrcp.f32 %v3055_v60 }
 0x6ae   : > { %16120 = vmatmul.mubr.msk.f32.vlgmr.msra.gmra.mrb[40].mxu0 %vm2932_vm2, %v3082_v13  ;;  %v20053_v33 = vpop.f32.mrb[60].mxu1 }
 0x6af   : > { %v17380_v26 = vpop.eup %17379  ;;  %16128 = vmatpush3.msra.mxu0 %v22577_v18  ;;  %v16206_v19 = vpop.f32.mrb[61].mxu1  ;;  %16129 = vmatprep.mubr.msk.f32.mxu0 %vm18287_vm0, %v22557_v10 }
 0x6b0   : > { %16137 = vmatprep.subr.mxu0 %v22557_v10  ;;  %v3086_v17 = vmul.f32 %v17380_v26, %v19921_v28  ;;  %v22579_v26 = vld [vmem:[#allocation80_spill] sm:$0xff] }
 0x6b2   : > { %16130 = vmatmul.mubr.msk.f32.vlgmr.msra.gmra.mrb[42].mxu0 %vm2932_vm2, %v3086_v17  ;;  %v20061_v58 = vpop.f32.mrb[62].mxu1 }
 0x6b3   : > { %v17382_v39 = vpop.eup %17381  ;;  %16138 = vmatpush3.msra.mxu0 %v22578_v25  ;;  %v16216_v13 = vpop.f32.mrb[63].mxu1  ;;  %16139 = vmatprep.mubr.msk.f32.mxu0 %vm18287_vm0, %v22557_v10 }
 0x6b4   : > { %16147 = vmatprep.subr.mxu0 %v22557_v10  ;;  %v3090_v59 = vmul.f32 %v17382_v39, %v19925_v45  ;;  %v22580_v45 = vld [vmem:[#allocation82_spill] sm:$0xff] }
 0x6b6   : > { %16140 = vmatmul.mubr.msk.f32.vlgmr.msra.gmra.mrb[44].mxu0 %vm2932_vm2, %v3090_v59  ;;  %v20069_v60 = vpop.f32.mrb[64].mxu1 }
 0x6b7   : > { %v17384_v28 = vpop.eup %17383  ;;  %16148 = vmatpush3.msra.mxu0 %v22579_v26  ;;  %v16226_v19 = vpop.f32.mrb[65].mxu1  ;;  %16149 = vmatprep.mubr.msk.f32.mxu0 %vm18287_vm0, %v22557_v10 }
 0x6b8   : > { %16157 = vmatprep.subr.mxu0 %v22557_v10  ;;  %v3094_v17 = vmul.f32 %v17384_v28, %v19929_v27  ;;  %v5532_v27 = vsel %vm2932_vm2, %v20049_v42, -inf  ;;  %v3067_v28 = vpop.xlane.xlu0 %3066 }
 0x6ba   : > { %16150 = vmatmul.mubr.msk.f32.vlgmr.msra.gmra.mrb[46].mxu0 %vm2932_vm2, %v3094_v17  ;;  %v20077_v13 = vpop.f32.mrb[66].mxu1 }
 0x6bb   : > { %16158 = vmatpush3.msra.mxu0 %v22580_v45  ;;  %v16236_v39 = vpop.f32.mrb[67].mxu1  ;;  %16159 = vmatprep.mubr.msk.f32.mxu0 %vm18287_vm0, %v22557_v10 }
 0x6bc   : > { %16167 = vmatprep.subr.mxu0 %v22557_v10  ;;  %v5550_v39 = vsel %vm2932_vm2, %v20069_v60, -inf  ;;  %v4284_v36 = vpop.permute.xlu0 %4283 }
 0x6be   : > { %v20083_v59 = vpop.f32.mrb[68].mxu1 }
 0x6bf   : > { %v16246_v19 = vpop.f32.mrb[69].mxu1 }
 0x6c2   : > { %v20085_v6 = vpop.f32.mrb[70].mxu1 }
 0x6c3   : > { %v16256_v8 = vpop.f32.mrb[71].mxu1 }
 0x6c6   : > { %v3061_v17 = vpop.xlane.xlu1 %3060  ;;  %5533 = vmax.xlane.f32.xlu1 %v5532_v27  ;;  %v22581_v27 = vld [vmem:[#allocation84_spill] sm:$0xff] }
 0x6c7   : > { %17385 = vrcp.f32 %v3061_v17  ;;  %v22582_v17 = vld [vmem:[#allocation70_spill] sm:$0xff] }
 0x6c8   : > { %17387 = vrcp.f32 %v3067_v28 }
 0x6ca   : > { %v3073_v56 = vpop.xlane.xlu1 %3072  ;;  %5551 = vmax.xlane.f32.xlu1 %v5550_v39 }
 0x6cb   : > { %v20091_v23 = vpop.f32.mrb[72].mxu1  ;;  %17389 = vrcp.f32 %v3073_v56 }
 0x6cc   : > { %v16266_v63 = vpop.f32.mrb[73].mxu1 }
 0x6ce   : > { %v4282_v19 = vpop.permute.xlu1 %4281 }
 0x6d1   : > { %v17386_v7 = vpop.eup %17385 }
 0x6d2   : > { %v4440_v8 = vpop.permute.xlu1 %4439  ;;  %v3098_v14 = vmul.f32 %v17386_v7, %v19939_v32  ;;  %v17388_v54 = vpop.eup %17387 }
 0x6d3   : > { %v3102_v63 = vmul.f32 %v17388_v54, %v19933_v3  ;;  %v4438_v32 = vpop.permute.xlu0 %4437 }
 0x6d4   : > { %16160 = vmatmul.mubr.msk.f32.vlgmr.msra.gmra.mrb[48].mxu0 %vm2932_vm2, %v3098_v14 }
 0x6d5   : > { %16168 = vmatpush3.msra.mxu0 %v22581_v27  ;;  %16169 = vmatprep.mubr.msk.f32.mxu0 %vm18287_vm0, %v22557_v10  ;;  %v17390_v56 = vpop.eup %17389 }
 0x6d6   : > { %v4596_v28 = vpop.permute.xlu1 %4595  ;;  %16177 = vmatprep.subr.mxu0 %v22557_v10  ;;  %v3106_v7 = vmul.f32 %v17390_v56, %v19943_v2 }
 0x6d7   : > { %v4594_v54 = vpop.permute.xlu0 %4593 }
 0x6d8   : > { %16170 = vmatmul.mubr.msk.f32.vlgmr.msra.gmra.mrb[50].mxu0 %vm2932_vm2, %v3102_v63 }
 0x6d9   : > { %16178 = vmatpush3.msra.mxu0 %v22582_v17  ;;  %16179 = vmatprep.mubr.msk.f32.mxu0 %vm18287_vm0, %v22557_v10 }
 0x6da   : > { %v4752_v14 = vpop.permute.xlu1 %4751  ;;  %16187 = vmatprep.subr.mxu0 %v22557_v10 }
 0x6db   : > { %7953 = vrot.lane.b32.xlu1 %v19544_v62, %s18289_s17  ;;  %v4750_v2 = vpop.permute.xlu0 %4749 }
 0x6dc   : > { %16180 = vmatmul.mubr.msk.f32.vlgmr.msra.gmra.mrb[52].mxu0 %vm2932_vm2, %v3106_v7 }
 0x6dd   : > { %16189 = vmatprep.mubr.msk.f32.mxu0 %vm18287_vm0, %v22557_v10 }
 0x6de   : > { %v4908_v3 = vpop.permute.xlu1 %4907 }
 0x6e0   : > { %16188 = vmatpush3.xpose.msk.msra.mxu0 %vm1715_vm1, %v4284_v36 }
 0x6e1   : > { %16197 = vmatprep.subr.mxu0 %v22557_v10 }
 0x6e2   : > { %v5064_v39 = vpop.permute.xlu1 %5063 }
 0x6e3   : > { %16190 = vmatmul.mubr.msk.f32.vlgmr.msra.gmra.mrb[54].mxu0 %vm1715_vm1, %v4282_v19  ;;  %v4906_v19 = vpop.permute.xlu0 %4905 }
 0x6e4   : > { %16198 = vmatpush3.xpose.msk.msra.mxu0 %vm1715_vm1, %v4440_v8  ;;  %16199 = vmatprep.mubr.msk.f32.mxu0 %vm18287_vm0, %v22557_v10 }
 0x6e5   : > { %16207 = vmatprep.subr.mxu0 %v22557_v10 }
 0x6e6   : > { %v5220_v63 = vpop.permute.xlu1 %5219 }
 0x6e7   : > { %16200 = vmatmul.mubr.msk.f32.vlgmr.msra.gmra.mrb[56].mxu0 %vm1715_vm1, %v4438_v32 }
 0x6e8   : > { %16208 = vmatpush3.xpose.msk.msra.mxu0 %vm1715_vm1, %v4596_v28  ;;  %16209 = vmatprep.mubr.msk.f32.mxu0 %vm18287_vm0, %v22557_v10  ;;  %v5062_v28 = vpop.permute.xlu0 %5061 }
 0x6e9   : > { %16217 = vmatprep.subr.mxu0 %v22557_v10 }
 0x6ea   : > { %v5376_v36 = vpop.permute.xlu1 %5375 }
 0x6eb   : > { %16210 = vmatmul.mubr.msk.f32.vlgmr.msra.gmra.mrb[58].mxu0 %vm1715_vm1, %v4594_v54 }
 0x6ec   : > { %16218 = vmatpush3.xpose.msk.msra.mxu0 %vm1715_vm1, %v4752_v14  ;;  %16219 = vmatprep.mubr.msk.f32.mxu0 %vm18287_vm0, %v22557_v10  ;;  %v5218_v56 = vpop.permute.xlu0 %5217  ;;  %v5562_v14 = vsel %vm2932_vm2, %v20083_v59, -inf }
 0x6ed   : > { %16227 = vmatprep.subr.mxu0 %v22557_v10 }
 0x6ee   : > { %v5784_v8 = vpop.permute.xlu1 %5783 }
 0x6ef   : > { %16220 = vmatmul.mubr.msk.f32.vlgmr.msra.gmra.mrb[60].mxu0 %vm1715_vm1, %v4750_v2  ;;  %16273 = vmatpush3.msra.mxu1 %v5784_v8 }
 0x6f0   : > { %16228 = vmatpush3.xpose.msk.msra.mxu0 %vm1715_vm1, %v4908_v3  ;;  %16229 = vmatprep.mubr.msk.f32.mxu0 %vm18287_vm0, %v22557_v10  ;;  %v5374_v32 = vpop.permute.xlu0 %5373 }
 0x6f1   : > { %16237 = vmatprep.subr.mxu0 %v22557_v10  ;;  %16282 = vmatprep.subr.mxu1 %v22557_v10 }
 0x6f2   : > { %v20196_v31 = vpop.permute.xlu1 %6091 }
 0x6f3   : > { %16230 = vmatmul.mubr.msk.f32.vlgmr.msra.gmra.mrb[62].mxu0 %vm1715_vm1, %v4906_v19 }
 0x6f4   : > { %16238 = vmatpush3.xpose.msk.msra.mxu0 %vm1715_vm1, %v5064_v39  ;;  %16239 = vmatprep.mubr.msk.f32.mxu0 %vm18287_vm0, %v22557_v10  ;;  %v20232_v48 = vpop.permute.xlu0 %5937 }
 0x6f5   : > { %16247 = vmatprep.subr.mxu0 %v22557_v10 }
 0x6f7   : > { %16240 = vmatmul.mubr.msk.f32.vlgmr.msra.gmra.mrb[64].mxu0 %vm1715_vm1, %v5062_v28 }
 0x6f8   : > { %16248 = vmatpush3.xpose.msk.msra.mxu0 %vm1715_vm1, %v5220_v63  ;;  %16249 = vmatprep.mubr.msk.f32.mxu0 %vm18287_vm0, %v22557_v10  ;;  %v20236_v55 = vpop.permute.xlu0 %6553 }
 0x6f9   : > { %16257 = vmatprep.subr.mxu0 %v22557_v10 }
 0x6fb   : > { %16250 = vmatmul.mubr.msk.f32.vlgmr.msra.gmra.mrb[66].mxu0 %vm1715_vm1, %v5218_v56 }
 0x6fc   : > { %16258 = vmatpush3.xpose.msk.msra.mxu0 %vm1715_vm1, %v5376_v36  ;;  %16259 = vmatprep.mubr.msk.f32.mxu0 %vm18287_vm0, %v22557_v10  ;;  %v20242_v43 = vpop.permute.xlu0 %6861 }
 0x6fd   : > { %16267 = vmatprep.subr.mxu0 %v22557_v10 }
 0x6ff   : > { %16260 = vmatmul.mubr.msk.f32.vlgmr.msra.gmra.mrb[68].mxu0 %vm1715_vm1, %v5374_v32  ;;  %5563 = vmax.xlane.f32.xlu1 %v5562_v14 }
 0x700   : > { %16269 = vmatprep.mubr.msk.f32.mxu0 %vm18287_vm0, %v22557_v10 }
 0x772   : > { %v20154_v7 = vpop.f32.mrb[38].mxu0 }
 0x773   : > { %22583 = vst [vmem:[#allocation92_spill] sm:$0xff] %v20154_v7  ;;  %v16111_v3 = vpop.f32.mrb[39].mxu0 }
 0x781   : > { %v20156_v54 = vpop.f32.mrb[40].mxu0 }
 0x782   : > { %22584 = vst [vmem:[#allocation93_spill] sm:$0xff] %v20156_v54  ;;  %v16121_v39 = vpop.f32.mrb[41].mxu0 }
 0x785   : > { %v20158_v2 = vpop.f32.mrb[42].mxu0 }
 0x786   : > { %22585 = vst [vmem:[#allocation94_spill] sm:$0xff] %v20158_v2  ;;  %v16131_v63 = vpop.f32.mrb[43].mxu0 }
 0x789   : > { %v20160_v36 = vpop.f32.mrb[44].mxu0 }
 0x78a   : > { %22586 = vst [vmem:[#allocation95_spill] sm:$0xff] %v20160_v36  ;;  %v16141_v19 = vpop.f32.mrb[45].mxu0 }
 0x78d   : > { %v20162_v8 = vpop.f32.mrb[46].mxu0 }
 0x78e   : > { %22587 = vst [vmem:[#allocation96_spill] sm:$0xff] %v20162_v8  ;;  %v16151_v28 = vpop.f32.mrb[47].mxu0 }
 0x78f   : > { %v5538_v28 = vsel %vm2932_vm2, %v20053_v33, -inf }
 0x7a7   : > { %v20164_v56 = vpop.f32.mrb[48].mxu0 }
 0x7a8   : > { %22588 = vst [vmem:[#allocation97_spill] sm:$0xff] %v20164_v56  ;;  %v16161_v32 = vpop.f32.mrb[49].mxu0 }
 0x7ab   : > { %v20166_v14 = vpop.f32.mrb[50].mxu0 }
 0x7ac   : > { %22589 = vst [vmem:[#allocation98_spill] sm:$0xff] %v20166_v14  ;;  %v16171_v62 = vpop.f32.mrb[51].mxu0  ;;  %v5556_v14 = vsel %vm2932_vm2, %v20077_v13, -inf }
 0x7af   : > { %v20168_v7 = vpop.f32.mrb[52].mxu0 }
 0x7b0   : > { %22590 = vst [vmem:[#allocation99_spill] sm:$0xff] %v20168_v7  ;;  %v16181_v3 = vpop.f32.mrb[53].mxu0 }
 0x7b6   : > { %v20170_v54 = vpop.f32.mrb[54].mxu0 }
 0x7b7   : > { %v16191_v39 = vpop.f32.mrb[55].mxu0  ;;  %v5529_v63 = vsel %vm2932_vm2, %v20170_v54, -inf }
 0x7b8   : > { %5530 = vmax.xlane.f32.xlu0 %v5529_v63  ;;  %v5544_v39 = vsel %vm2932_vm2, %v20061_v58, -inf  ;;  %v5574_v63 = vsel %vm2932_vm2, %v20091_v23, -inf }
 0x7ba   : > { %v20174_v19 = vpop.f32.mrb[56].mxu0 }
 0x7bb   : > { %v16201_v8 = vpop.f32.mrb[57].mxu0  ;;  %v5535_v32 = vsel %vm2932_vm2, %v20174_v19, -inf }
 0x7bc   : > { %5539 = vmax.xlane.f32.xlu0 %v5538_v28  ;;  %5536 = vmax.xlane.f32.xlu1 %v5535_v32 }
 0x7be   : > { %v20180_v62 = vpop.f32.mrb[58].mxu0 }
 0x7bf   : > { %v16211_v3 = vpop.f32.mrb[59].mxu0 }
 0x7c0   : > { %5545 = vmax.xlane.f32.xlu0 %v5544_v39  ;;  %5575 = vmax.xlane.f32.xlu1 %v5574_v63  ;;  %v22591_v39 = vld [vmem:[#allocation62_spill] sm:$0xff] }
 0x7c2   : > { %v20186_v8 = vpop.f32.mrb[60].mxu0 }
 0x7c3   : > { %v16221_v7 = vpop.f32.mrb[61].mxu0 }
 0x7c4   : > { %5557 = vmax.xlane.f32.xlu0 %v5556_v14  ;;  %v20204_v14 = vpop.permute.xlu1 %6245 }
 0x7c6   : > { %v20190_v28 = vpop.f32.mrb[62].mxu0 }
 0x7c7   : > { %v16231_v32 = vpop.f32.mrb[63].mxu0 }
 0x7ca   : > { %v20192_v56 = vpop.f32.mrb[64].mxu0 }
 0x7cb   : > { %v16241_v3 = vpop.f32.mrb[65].mxu0 }
 0x7ce   : > { %v20194_v36 = vpop.f32.mrb[66].mxu0 }
 0x7cf   : > { %v16251_v2 = vpop.f32.mrb[67].mxu0 }
 0x7d0   : > { %v20210_v2 = vpop.permute.xlu1 %6399 }
 0x7d1   : > { %8031 = vrot.lane.b32.xlu1 %v22591_v39, %s18289_s17 }
 0x7d2   : > { %v20200_v63 = vpop.f32.mrb[68].mxu0 }
 0x7d3   : > { %v16261_v7 = vpop.f32.mrb[69].mxu0 }
 0x7d4   : > { %v20212_v32 = vpop.permute.xlu1 %6707 }
 0x7d5   : > { %8029 = vrot.lane.b32.xlu1 %v19563_v24, %s18289_s17  ;;  %v5568_v24 = vsel %vm2932_vm2, %v20085_v6, -inf }
 0x7d8   : > { %v20214_v3 = vpop.permute.xlu1 %7329 }
 0x7d9   : > { %8109 = vrot.lane.b32.xlu1 %v19580_v44, %s18289_s17  ;;  %v5541_v44 = vsel %vm2932_vm2, %v20180_v62, -inf }
 0x7da   : > { %7951 = vrot.lane.b32.xlu0 %v19569_v15, %s18289_s17  ;;  %v5547_v15 = vsel %vm2932_vm2, %v20186_v8, -inf }
 0x7dc   : > { %v20216_v39 = vpop.permute.xlu1 %7407 }
 0x7e0   : > { %v20218_v7 = vpop.permute.xlu1 %7485 }
 0x7e4   : > { %v20222_v46 = vpop.permute.xlu1 %7563 }
 0x7e8   : > { %v20228_v61 = vpop.permute.xlu1 %7641 }
 0x7ec   : > { %v20230_v40 = vpop.permute.xlu1 %7719 }
 0x7f0   : > { %v20234_v53 = vpop.permute.xlu1 %7797 }
 0x7f9   : > { %5569 = vmax.xlane.f32.xlu0 %v5568_v24  ;;  %v20238_v24 = vpop.permute.xlu1 %7875 }
 0x7fd   : > { %5542 = vmax.xlane.f32.xlu0 %v5541_v44  ;;  %5548 = vmax.xlane.f32.xlu1 %v5547_v15  ;;  %v20246_v15 = vpop.permute.xlu1 %7873  ;;  %v20248_v44 = vpop.permute.xlu0 %7327 }
 0x7fe   : > { %22592 = vst [vmem:[#allocation100_spill] sm:$0xff] %v20246_v15 }
 0x801   : > { %v5534_v21 = vpop.xlane.xlu1 %5533  ;;  %v20251_v29 = vpop.permute.xlu0 %7405 }
 0x802   : > { %v5578_v0 = vsub.f32 %v20049_v42, %v5534_v21 }
 0x804   : > { %v5595_v1 = vmul.f32 1.442695, %v5578_v0 }
 0x805   : > { %v20253_v30 = vpop.permute.xlu0 %7483  ;;  %v5552_v21 = vpop.xlane.xlu1 %5551 }
 0x806   : > { %17391 = vpow2.f32 %v5595_v1  ;;  %v5584_v26 = vsub.f32 %v20069_v60, %v5552_v21 }
 0x808   : > { %v5607_v38 = vmul.f32 1.442695, %v5584_v26 }
 0x809   : > { %v20255_v57 = vpop.permute.xlu0 %7561  ;;  %v20269_v0 = vpop.permute.xlu1 %7953 }
 0x80a   : > { %22593 = vst [vmem:[#allocation101_spill] sm:$0xff] %v20269_v0 }
 0x80d   : > { %v20259_v49 = vpop.permute.xlu0 %7639  ;;  %v5564_v37 = vpop.xlane.xlu1 %5563 }
 0x80e   : > { %v5588_v17 = vsub.f32 %v20083_v59, %v5564_v37 }
 0x810   : > { %v5615_v0 = vmul.f32 1.442695, %v5588_v17 }
 0x811   : > { %v20263_v47 = vpop.permute.xlu0 %7717 }
 0x813   : > { %8107 = vrot.lane.b32.xlu0 %v19596_v9, %s18289_s17  ;;  %v20257_v9 = vpop.eup %17391 }
 0x815   : > { %v20265_v41 = vpop.permute.xlu0 %7795 }
 0x817   : > { %8187 = vrot.lane.b32.xlu0 %v19573_v22, %s18289_s17  ;;  %v5628_v22 = vsel %vm2932_vm2, %v20257_v9, 0.0 }
 0x836   : > { %5629 = vadd.xlane.f32.xlu0 %v5628_v22 }
 0x845   : > { %v20267_v42 = vpop.xlane.xlu0 %5530 }
 0x849   : > { %v5540_v1 = vpop.xlane.xlu0 %5539 }
 0x84a   : > { %v5580_v27 = vsub.f32 %v20053_v33, %v5540_v1 }
 0x84c   : > { %v5599_v4 = vmul.f32 1.442695, %v5580_v27 }
 0x84d   : > { %v5546_v5 = vpop.xlane.xlu0 %5545 }
 0x84e   : > { %17393 = vpow2.f32 %v5599_v4  ;;  %v5582_v22 = vsub.f32 %v20061_v58, %v5546_v5  ;;  %v5553_v58 = vsel %vm2932_vm2, %v20190_v28, -inf }
 0x850   : > { %v5603_v45 = vmul.f32 1.442695, %v5582_v22 }
 0x851   : > { %v5558_v25 = vpop.xlane.xlu0 %5557 }
 0x852   : > { %17395 = vpow2.f32 %v5603_v45  ;;  %v5586_v18 = vsub.f32 %v20077_v13, %v5558_v25  ;;  %v20302_v45 = vpop.xlane.xlu1 %5536 }
 0x853   : > { %17397 = vpow2.f32 %v5607_v38 }
 0x854   : > { %v5611_v15 = vmul.f32 1.442695, %v5586_v18 }
 0x855   : > { %v20306_v27 = vpop.permute.xlu0 %7951 }
 0x856   : > { %17399 = vpow2.f32 %v5611_v15  ;;  %v5576_v59 = vpop.xlane.xlu1 %5575 }
 0x857   : > { %17401 = vpow2.f32 %v5615_v0  ;;  %v5592_v17 = vsub.f32 %v20091_v23, %v5576_v59  ;;  %v5565_v23 = vsel %vm2932_vm2, %v20194_v36, -inf  ;;  %v5577_v59 = vsub.f32 %v20170_v54, %v20267_v42 }
 0x858   : > { %v20276_v33 = vpop.eup %17393 }
 0x859   : > { %v5634_v4 = vsel %vm2932_vm2, %v20276_v33, 0.0  ;;  %v5623_v0 = vmul.f32 1.442695, %v5592_v17 }
 0x85a   : > { %5635 = vadd.xlane.f32.xlu1 %v5634_v4 }
 0x85c   : > { %v20280_v5 = vpop.eup %17395 }
 0x85d   : > { %v5640_v37 = vsel %vm2932_vm2, %v20280_v5, 0.0  ;;  %v20286_v25 = vpop.eup %17397 }
 0x85e   : > { %5641 = vadd.xlane.f32.xlu0 %v5640_v37  ;;  %5554 = vmax.xlane.f32.xlu1 %v5553_v58  ;;  %v5646_v60 = vsel %vm2932_vm2, %v20286_v25, 0.0 }
 0x860   : > { %v20288_v18 = vpop.eup %17399 }
 0x861   : > { %v5652_v38 = vsel %vm2932_vm2, %v20288_v18, 0.0  ;;  %v20294_v26 = vpop.eup %17401 }
 0x862   : > { %5653 = vadd.xlane.f32.xlu0 %v5652_v38  ;;  %5647 = vadd.xlane.f32.xlu1 %v5646_v60  ;;  %v5658_v13 = vsel %vm2932_vm2, %v20294_v26, 0.0 }
 0x866   : > { %5659 = vadd.xlane.f32.xlu1 %v5658_v13 }
 0x877   : > { %8265 = vrot.lane.b32.xlu1 %v19608_v20, %s18289_s17 }
 0x87b   : > { %8263 = vrot.lane.b32.xlu1 %v19623_v35, %s18289_s17 }
 0x87f   : > { %8343 = vrot.lane.b32.xlu1 %v19601_v34, %s18289_s17 }
 0x886   : > { %v5570_v15 = vpop.xlane.xlu0 %5569 }
 0x887   : > { %v5590_v21 = vsub.f32 %v20085_v6, %v5570_v15  ;;  %v5593_v15 = vmul.f32 1.442695, %v5577_v59 }
 0x889   : > { %v5619_v1 = vmul.f32 1.442695, %v5590_v21  ;;  %v5559_v21 = vsel %vm2932_vm2, %v20192_v56, -inf }
 0x88a   : > { %v5543_v6 = vpop.xlane.xlu0 %5542 }
 0x88b   : > { %17403 = vpow2.f32 %v5619_v1  ;;  %v20341_v1 = vpop.permute.xlu1 %8031 }
 0x88c   : > { %17405 = vpow2.f32 %v5623_v0 }
 0x88e   : > { %v20326_v38 = vpop.permute.xlu0 %8107 }
 0x88f   : > { %v20344_v54 = vpop.permute.xlu1 %8029 }
 0x892   : > { %v20330_v60 = vpop.permute.xlu0 %8187 }
 0x895   : > { %v20310_v22 = vpop.eup %17403 }
 0x896   : > { %v5664_v4 = vsel %vm2932_vm2, %v20310_v22, 0.0  ;;  %v20314_v37 = vpop.eup %17405 }
 0x897   : > { %5665 = vadd.xlane.f32.xlu0 %v5664_v4  ;;  %v5670_v58 = vsel %vm2932_vm2, %v20314_v37, 0.0  ;;  %v20348_v4 = vpop.permute.xlu1 %8109 }
 0x89b   : > { %5671 = vadd.xlane.f32.xlu0 %v5670_v58  ;;  %v5549_v58 = vpop.xlane.xlu1 %5548 }
 0x8a3   : > { %5566 = vmax.xlane.f32.xlu1 %v5565_v23 }
 0x8b1   : > { %8185 = vrot.lane.b32.xlu0 %v19594_v52, %s18289_s17 }
 0x8b4   : > { %8419 = vrot.lane.b32.xlu1 %v19654_v51, %s18289_s17 }
 0x8b8   : > { %8499 = vrot.lane.b32.xlu1 %v19628_v16, %s18289_s17 }
 0x8bc   : > { %8497 = vrot.lane.b32.xlu1 %v19650_v50, %s18289_s17 }
 0x8c3   : > { %v5630_v13 = vpop.xlane.xlu0 %5629 }
 0x8c4   : > { %17407 = vrcp.f32 %v5630_v13 }
 0x8c5   : > { %17409 = vpow2.f32 %v5593_v15 }
 0x8ce   : > { %v17408_v17 = vpop.eup %17407 }
 0x8cf   : > { %v5676_v0 = vmul.f32 %v17408_v17, %v20257_v9  ;;  %v20346_v42 = vpop.eup %17409 }
 0x8d0   : > { %5560 = vmax.xlane.f32.xlu0 %v5559_v21  ;;  %v5625_v9 = vsel %vm2932_vm2, %v20346_v42, 0.0 }
 0x8d1   : > { %16275 = vmatmul.mubr.msk.f32.vlgmr.msra.gmra.mrb[74].mxu1 %vm2932_vm2, %v5676_v0 }
 0x8d2   : > { %16283 = vmatpush3.msra.mxu1 %v20232_v48  ;;  %16284 = vmatprep.mubr.msk.f32.mxu1 %vm18287_vm0, %v22557_v10 }
 0x8d3   : > { %16292 = vmatprep.subr.mxu1 %v22557_v10 }
 0x8e0   : > { %5626 = vadd.xlane.f32.xlu1 %v5625_v9 }
 0x8e6   : > { %8341 = vrot.lane.b32.xlu0 %v19620_v12, %s18289_s17 }
 0x8e7   : > { %v5636_v48 = vpop.xlane.xlu1 %5635 }
 0x8e8   : > { %17411 = vrcp.f32 %v5636_v48  ;;  %v5579_v48 = vsub.f32 %v20174_v19, %v20302_v45 }
 0x8ea   : > { %8421 = vrot.lane.b32.xlu0 %v22563_v11, %s18289_s17 }
 0x8eb   : > { %v5642_v23 = vpop.xlane.xlu0 %5641  ;;  %v5555_v13 = vpop.xlane.xlu1 %5554 }
 0x8ec   : > { %17413 = vrcp.f32 %v5642_v23 }
 0x8ef   : > { %v5648_v59 = vpop.xlane.xlu1 %5647  ;;  %v5654_v17 = vpop.xlane.xlu0 %5653 }
 0x8f0   : > { %17415 = vrcp.f32 %v5648_v59 }
 0x8f1   : > { %17417 = vrcp.f32 %v5654_v17 }
 0x8f2   : > { %v17412_v15 = vpop.eup %17411 }
 0x8f3   : > { %v5680_v21 = vmul.f32 %v17412_v15, %v20276_v33  ;;  %v5660_v0 = vpop.xlane.xlu1 %5659  ;;  %v5597_v33 = vmul.f32 1.442695, %v5579_v48 }
 0x8f4   : > { %17419 = vrcp.f32 %v5660_v0 }
 0x8f5   : > { %16285 = vmatmul.mubr.msk.f32.vlgmr.msra.gmra.mrb[76].mxu1 %vm2932_vm2, %v5680_v21  ;;  %17421 = vpow2.f32 %v5597_v33 }
 0x8f6   : > { %v17414_v9 = vpop.eup %17413  ;;  %16293 = vmatpush3.msra.mxu1 %v20196_v31  ;;  %16294 = vmatprep.mubr.msk.f32.mxu1 %vm18287_vm0, %v22557_v10  ;;  %v5581_v31 = vsub.f32 %v20180_v62, %v5543_v6 }
 0x8f7   : > { %16302 = vmatprep.subr.mxu1 %v22557_v10  ;;  %v5684_v23 = vmul.f32 %v17414_v9, %v20280_v5  ;;  %v5583_v5 = vsub.f32 %v20186_v8, %v5549_v58 }
 0x8f8   : > { %v5601_v17 = vmul.f32 1.442695, %v5581_v31 }
 0x8f9   : > { %16295 = vmatmul.mubr.msk.f32.vlgmr.msra.gmra.mrb[78].mxu1 %vm2932_vm2, %v5684_v23  ;;  %v5605_v6 = vmul.f32 1.442695, %v5583_v5  ;;  %v22602_v5 = vld [vmem:[#allocation75_spill] sm:$0xff] }
 0x8fa   : > { %16303 = vmatpush3.msra.mxu1 %v20204_v14  ;;  %16304 = vmatprep.mubr.msk.f32.mxu1 %vm18287_vm0, %v22557_v10  ;;  %v17416_v59 = vpop.eup %17415  ;;  %17423 = vpow2.f32 %v5601_v17  ;;  %v22601_v17 = vld [vmem:[#allocation74_spill] sm:$0xff] }
 0x8fb   : > { %16312 = vmatprep.subr.mxu1 %v22557_v10  ;;  %v5688_v19 = vmul.f32 %v17416_v59, %v20286_v25  ;;  %v17418_v45 = vpop.eup %17417  ;;  %v5585_v25 = vsub.f32 %v20190_v28, %v5555_v13  ;;  %17425 = vpow2.f32 %v5605_v6  ;;  %v5571_v28 = vsel %vm2932_vm2, %v20200_v63, -inf }
 0x8fc   : > { %v5692_v62 = vmul.f32 %v17418_v45, %v20288_v18 }
 0x8fd   : > { %16305 = vmatmul.mubr.msk.f32.vlgmr.msra.gmra.mrb[80].mxu1 %vm2932_vm2, %v5688_v19  ;;  %v22600_v19 = vld [vmem:[#allocation70_spill] sm:$0xff] }
 0x8fe   : > { %16313 = vmatpush3.msra.mxu1 %v20210_v2  ;;  %16314 = vmatprep.mubr.msk.f32.mxu1 %vm18287_vm0, %v22557_v10  ;;  %v17420_v14 = vpop.eup %17419  ;;  %v5609_v2 = vmul.f32 1.442695, %v5585_v25  ;;  %v22603_v25 = vld [vmem:[#allocation77_spill] sm:$0xff] }
 0x8ff   : > { %16322 = vmatprep.subr.mxu1 %v22557_v10  ;;  %v5696_v8 = vmul.f32 %v17420_v14, %v20294_v26 }
 0x900   : > { %17427 = vpow2.f32 %v5609_v2  ;;  %v22605_v2 = vld [vmem:[#allocation80_spill] sm:$0xff] }
 0x901   : > { %16315 = vmatmul.mubr.msk.f32.vlgmr.msra.gmra.mrb[82].mxu1 %vm2932_vm2, %v5692_v62 }
 0x902   : > { %16323 = vmatpush3.msra.mxu1 %v20236_v55  ;;  %16324 = vmatprep.mubr.msk.f32.mxu1 %vm18287_vm0, %v22557_v10  ;;  %v20392_v55 = vpop.eup %17421 }
 0x903   : > { %16332 = vmatprep.subr.mxu1 %v22557_v10  ;;  %v5631_v18 = vsel %vm2932_vm2, %v20392_v55, 0.0 }
 0x904   : > { %v20397_v26 = vpop.eup %17423 }
 0x905   : > { %16325 = vmatmul.mubr.msk.f32.vlgmr.msra.gmra.mrb[84].mxu1 %vm2932_vm2, %v5696_v8  ;;  %v20401_v58 = vpop.eup %17425  ;;  %v22604_v8 = vld [vmem:[#allocation79_spill] sm:$0xff] }
 0x906   : > { %16333 = vmatpush3.msra.mxu1 %v20212_v32  ;;  %16334 = vmatprep.mubr.msk.f32.mxu1 %vm18287_vm0, %v22557_v10  ;;  %v5637_v32 = vsel %vm2932_vm2, %v20397_v26, 0.0  ;;  %v5643_v13 = vsel %vm2932_vm2, %v20401_v58, 0.0 }
 0x907   : > { %16342 = vmatprep.subr.mxu1 %v22557_v10 }
 0x909   : > { %5572 = vmax.xlane.f32.xlu0 %v5571_v28  ;;  %v22606_v28 = vld [vmem:[#allocation84_spill] sm:$0xff] }
 0x90a   : > { %v20405_v15 = vpop.eup %17427 }
 0x90b   : > { %v5649_v21 = vsel %vm2932_vm2, %v20405_v15, 0.0 }
 0x90d   : > { %5632 = vadd.xlane.f32.xlu0 %v5631_v18  ;;  %v22607_v18 = vld [vmem:[#allocation71_spill] sm:$0xff] }
 0x911   : > { %5638 = vadd.xlane.f32.xlu0 %v5637_v32  ;;  %v22608_v32 = vld [vmem:[#allocation73_spill] sm:$0xff] }
 0x915   : > { %5644 = vadd.xlane.f32.xlu0 %v5643_v13 }
 0x919   : > { %5650 = vadd.xlane.f32.xlu0 %v5649_v21 }
 0x924   : > { %v5666_v0 = vpop.xlane.xlu0 %5665 }
 0x925   : > { %17429 = vrcp.f32 %v5666_v0 }
 0x928   : > { %v5672_v9 = vpop.xlane.xlu0 %5671 }
 0x929   : > { %17431 = vrcp.f32 %v5672_v9 }
 0x92f   : > { %v17430_v48 = vpop.eup %17429 }
 0x930   : > { %v5700_v23 = vmul.f32 %v17430_v48, %v20310_v22 }
 0x932   : > { %16335 = vmatmul.mubr.msk.f32.vlgmr.msra.gmra.mrb[86].mxu1 %vm2932_vm2, %v5700_v23 }
 0x933   : > { %v17432_v33 = vpop.eup %17431  ;;  %16343 = vmatpush3.msra.mxu1 %v20242_v43  ;;  %16344 = vmatprep.mubr.msk.f32.mxu1 %vm18287_vm0, %v22557_v10 }
 0x934   : > { %v5704_v31 = vmul.f32 %v17432_v33, %v20314_v37  ;;  %16411 = vmatprep.subr.mxu1 %v22557_v10 }
 0x936   : > { %16345 = vmatmul.mubr.msk.f32.vlgmr.msra.gmra.mrb[88].mxu1 %vm2932_vm2, %v5704_v31 }
 0x937   : > { %16413 = vmatprep.mubr.msk.f32.mxu1 %vm18287_vm0, %v22557_v10 }
 0x93a   : > { %16412 = vmatpush3.xpose.msk.msra.mxu1 %vm1715_vm1, %v20214_v3 }
 0x93b   : > { %16416 = vmatprep.subr.mxu1 %v22557_v10 }
 0x93d   : > { %16414 = vmatmul.mubr.msk.f32.vlgmr.msra.gmra.mrb[90].mxu1 %vm1715_vm1, %v20248_v44 }
 0x93e   : > { %16417 = vmatpush3.xpose.msk.msra.mxu1 %vm1715_vm1, %v20216_v39  ;;  %16418 = vmatprep.mubr.msk.f32.mxu1 %vm18287_vm0, %v22557_v10 }
 0x93f   : > { %16421 = vmatprep.subr.mxu1 %v22557_v10 }
 0x941   : > { %16419 = vmatmul.mubr.msk.f32.vlgmr.msra.gmra.mrb[92].mxu1 %vm1715_vm1, %v20251_v29  ;;  %v8266_v29 = vpop.permute.xlu1 %8265 }
 0x942   : > { %16422 = vmatpush3.xpose.msk.msra.mxu1 %vm1715_vm1, %v20218_v7  ;;  %16423 = vmatprep.mubr.msk.f32.mxu1 %vm18287_vm0, %v22557_v10 }
 0x943   : > { %16426 = vmatprep.subr.mxu1 %v22557_v10 }
 0x945   : > { %16424 = vmatmul.mubr.msk.f32.vlgmr.msra.gmra.mrb[94].mxu1 %vm1715_vm1, %v20253_v30  ;;  %v8264_v30 = vpop.permute.xlu1 %8263 }
 0x946   : > { %16427 = vmatpush3.xpose.msk.msra.mxu1 %vm1715_vm1, %v20222_v46  ;;  %16428 = vmatprep.mubr.msk.f32.mxu1 %vm18287_vm0, %v22557_v10 }
 0x947   : > { %16431 = vmatprep.subr.mxu1 %v22557_v10 }
 0x949   : > { %16429 = vmatmul.mubr.msk.f32.vlgmr.msra.gmra.mrb[96].mxu1 %vm1715_vm1, %v20255_v57  ;;  %v8344_v46 = vpop.permute.xlu1 %8343  ;;  %v22595_v57 = vld [vmem:[#allocation101_spill] sm:$0xff] }
 0x94a   : > { %16432 = vmatpush3.xpose.msk.msra.mxu1 %vm1715_vm1, %v20228_v61  ;;  %16433 = vmatprep.mubr.msk.f32.mxu1 %vm18287_vm0, %v22557_v10 }
 0x94b   : > { %16436 = vmatprep.subr.mxu1 %v22557_v10 }
 0x94d   : > { %16434 = vmatmul.mubr.msk.f32.vlgmr.msra.gmra.mrb[98].mxu1 %vm1715_vm1, %v20259_v49  ;;  %v5567_v49 = vpop.xlane.xlu1 %5566 }
 0x94e   : > { %16437 = vmatpush3.xpose.msk.msra.mxu1 %vm1715_vm1, %v20230_v40  ;;  %16438 = vmatprep.mubr.msk.f32.mxu1 %vm18287_vm0, %v22557_v10 }
 0x94f   : > { %16441 = vmatprep.subr.mxu1 %v22557_v10 }
 0x951   : > { %16439 = vmatmul.mubr.msk.f32.vlgmr.msra.gmra.mrb[100].mxu1 %vm1715_vm1, %v20263_v47  ;;  %v8186_v47 = vpop.permute.xlu0 %8185  ;;  %v8420_v3 = vpop.permute.xlu1 %8419 }
 0x952   : > { %16442 = vmatpush3.xpose.msk.msra.mxu1 %vm1715_vm1, %v20234_v53  ;;  %16443 = vmatprep.mubr.msk.f32.mxu1 %vm18287_vm0, %v22557_v10  ;;  %v22594_v53 = vld [vmem:[#allocation100_spill] sm:$0xff] }
 0x953   : > { %16446 = vmatprep.subr.mxu1 %v22557_v10 }
 0x955   : > { %16444 = vmatmul.mubr.msk.f32.vlgmr.msra.gmra.mrb[102].mxu1 %vm1715_vm1, %v20265_v41  ;;  %v5589_v41 = vsub.f32 %v20194_v36, %v5567_v49  ;;  %v8500_v22 = vpop.permute.xlu1 %8499 }
 0x956   : > { %16447 = vmatpush3.xpose.msk.msra.mxu1 %vm1715_vm1, %v20238_v24  ;;  %16448 = vmatprep.mubr.msk.f32.mxu1 %vm18287_vm0, %v22557_v10 }
 0x957   : > { %16451 = vmatprep.subr.mxu1 %v22557_v10  ;;  %v5617_v40 = vmul.f32 1.442695, %v5589_v41 }
 0x959   : > { %16449 = vmatmul.mubr.msk.f32.vlgmr.msra.gmra.mrb[104].mxu1 %vm1715_vm1, %v22594_v53  ;;  %v8498_v37 = vpop.permute.xlu1 %8497 }
 0x95a   : > { %16452 = vmatpush3.xpose.msk.msra.mxu1 %vm1715_vm1, %v22595_v57  ;;  %16453 = vmatprep.mubr.msk.f32.mxu1 %vm18287_vm0, %v22557_v10 }
 0x95b   : > { %16456 = vmatprep.subr.mxu1 %v22557_v10 }
 0x95d   : > { %16454 = vmatmul.mubr.msk.f32.vlgmr.msra.gmra.mrb[106].mxu1 %vm1715_vm1, %v20306_v27  ;;  %v5561_v61 = vpop.xlane.xlu0 %5560 }
 0x95e   : > { %v5587_v43 = vsub.f32 %v20192_v56, %v5561_v61  ;;  %16457 = vmatpush3.xpose.msk.msra.mxu1 %vm1715_vm1, %v20341_v1  ;;  %16458 = vmatprep.mubr.msk.f32.mxu1 %vm18287_vm0, %v22557_v10  ;;  %v22598_v1 = vld [vmem:[#allocation78_spill] sm:$0xff] }
 0x95f   : > { %16461 = vmatprep.subr.mxu1 %v22557_v10 }
 0x960   : > { %v5613_v39 = vmul.f32 1.442695, %v5587_v43 }
 0x961   : > { %16459 = vmatmul.mubr.msk.f32.vlgmr.msra.gmra.mrb[108].mxu1 %vm1715_vm1, %v20344_v54  ;;  %v8342_v36 = vpop.permute.xlu0 %8341  ;;  %v22599_v54 = vld [vmem:[#allocation82_spill] sm:$0xff] }
 0x962   : > { %17433 = vpow2.f32 %v5613_v39  ;;  %16462 = vmatpush3.xpose.msk.msra.mxu1 %vm1715_vm1, %v20348_v4  ;;  %16463 = vmatprep.mubr.msk.f32.mxu1 %vm18287_vm0, %v22557_v10 }
 0x963   : > { %16466 = vmatprep.subr.mxu1 %v22557_v10  ;;  %17435 = vpow2.f32 %v5617_v40 }
 0x965   : > { %16464 = vmatmul.mubr.msk.f32.vlgmr.msra.gmra.mrb[110].mxu1 %vm1715_vm1, %v20326_v38  ;;  %v8422_v44 = vpop.permute.xlu0 %8421  ;;  %v22596_v38 = vld [vmem:[#allocation72_spill] sm:$0xff] }
 0x966   : > { %16467 = vmatpush3.xpose.msk.msra.mxu1 %vm1715_vm1, %v20330_v60  ;;  %16468 = vmatprep.mubr.msk.f32.mxu1 %vm18287_vm0, %v22557_v10  ;;  %v22597_v60 = vld [vmem:[#allocation76_spill] sm:$0xff] }
 0x967   : > { %16471 = vmatprep.subr.mxu1 %v22557_v10 }
 0x969   : > { %16469 = vmatmul.mubr.msk.f32.vlgmr.msra.gmra.mrb[112].mxu1 %vm1715_vm1, %v8186_v47 }
 0x96a   : > { %16472 = vmatpush3.xpose.msk.msra.mxu1 %vm1715_vm1, %v8266_v29  ;;  %16473 = vmatprep.mubr.msk.f32.mxu1 %vm18287_vm0, %v22557_v10 }
 0x96b   : > { %16476 = vmatprep.subr.mxu1 %v22557_v10 }
 0x96c   : > { %v20506_v56 = vpop.eup %17433 }
 0x96d   : > { %16474 = vmatmul.mubr.msk.f32.vlgmr.msra.gmra.mrb[114].mxu1 %vm1715_vm1, %v8264_v30  ;;  %v5655_v7 = vsel %vm2932_vm2, %v20506_v56, 0.0  ;;  %v20511_v24 = vpop.eup %17435  ;;  %v5627_v53 = vpop.xlane.xlu1 %5626 }
 0x96e   : > { %16477 = vmatpush3.xpose.msk.msra.mxu1 %vm1715_vm1, %v8344_v46  ;;  %5656 = vadd.xlane.f32.xlu0 %v5655_v7  ;;  %v5661_v27 = vsel %vm2932_vm2, %v20511_v24, 0.0 }
 0x96f   : > { %16478 = vmatprep.mubr.msk.f32.mxu1 %vm18287_vm0, %v22557_v10  ;;  %16481 = vmatprep.subr.mxu1 %v22557_v10 }
 0x971   : > { %16479 = vmatmul.mubr.msk.f32.vlgmr.msra.gmra.mrb[116].mxu1 %vm1715_vm1, %v8342_v36 }
 0x972   : > { %16482 = vmatpush3.xpose.msk.msra.mxu1 %vm1715_vm1, %v8422_v44  ;;  %5662 = vadd.xlane.f32.xlu0 %v5661_v27 }
 0x973   : > { %16483 = vmatprep.mubr.msk.f32.mxu1 %vm18287_vm0, %v22557_v10  ;;  %16486 = vmatprep.subr.mxu1 %v22557_v10 }
 0x975   : > { %16484 = vmatmul.mubr.msk.f32.vlgmr.msra.gmra.mrb[118].mxu1 %vm1715_vm1, %v8420_v3 }
 0x976   : > { %16487 = vmatpush3.xpose.msk.msra.mxu1 %vm1715_vm1, %v8500_v22  ;;  %16488 = vmatprep.mubr.msk.f32.mxu1 %vm18287_vm0, %v22557_v10 }
 0x977   : > { %16491 = vmatprep.subr.mxu1 %v22557_v10 }
 0x979   : > { %16489 = vmatmul.mubr.msk.f32.vlgmr.msra.gmra.mrb[120].mxu1 %vm1715_vm1, %v8498_v37 }
 0x97a   : > { %16493 = vmatprep.mubr.msk.f32.mxu1 %vm18287_vm0, %v22557_v10 }
 0x988   : > { %5706 = vrot.lane.b32.xlu0 %v22596_v38, %s18288_s24 }
 0x98c   : > { %6014 = vrot.lane.b32.xlu0 %v22597_v60, %s18288_s24 }
 0x990   : > { %6168 = vrot.lane.b32.xlu0 %v22598_v1, %s18288_s24 }
 0x994   : > { %6476 = vrot.lane.b32.xlu0 %v22599_v54, %s18288_s24 }
 0x996   : > { %v5573_v4 = vpop.xlane.xlu0 %5572 }
 0x997   : > { %v5591_v59 = vsub.f32 %v20200_v63, %v5573_v4 }
 0x998   : > { %6784 = vrot.lane.b32.xlu0 %v22600_v19, %s18288_s24 }
 0x999   : > { %v5621_v45 = vmul.f32 1.442695, %v5591_v59 }
 0x99a   : > { %v5633_v46 = vpop.xlane.xlu0 %5632 }
 0x99b   : > { %17437 = vpow2.f32 %v5621_v45 }
 0x99c   : > { %8751 = vrot.lane.b32.xlu0 %v22596_v38, %s18289_s17  ;;  %17439 = vrcp.f32 %v5627_v53 }
 0x99d   : > { %17441 = vrcp.f32 %v5633_v46 }
 0x99e   : > { %v5639_v47 = vpop.xlane.xlu0 %5638 }
 0x99f   : > { %17443 = vrcp.f32 %v5639_v47 }
 0x9a0   : > { %8903 = vrot.lane.b32.xlu0 %v22601_v17, %s18289_s17 }
 0x9a2   : > { %v5645_v49 = vpop.xlane.xlu0 %5644 }
 0x9a3   : > { %17445 = vrcp.f32 %v5645_v49 }
 0x9a4   : > { %9131 = vrot.lane.b32.xlu0 %v22602_v5, %s18289_s17  ;;  %v20549_v62 = vpop.f32.mrb[74].mxu1 }
 0x9a5   : > { %v20551_v14 = vpop.eup %17437  ;;  %v16276_v6 = vpop.f32.mrb[75].mxu1 }
 0x9a6   : > { %v5667_v63 = vsel %vm2932_vm2, %v20551_v14, 0.0  ;;  %v20587_v57 = vpop.xlane.xlu0 %5650  ;;  %v17440_v43 = vpop.eup %17439 }
 0x9a7   : > { %5668 = vadd.xlane.f32.xlu1 %v5667_v63  ;;  %v5674_v39 = vmul.f32 %v17440_v43, %v20346_v42  ;;  %v17442_v46 = vpop.eup %17441  ;;  %17447 = vrcp.f32 %v20587_v57 }
 0x9a8   : > { %9283 = vrot.lane.b32.xlu0 %v22603_v25, %s18289_s17 }
 0x9ac   : > { %9435 = vrot.lane.b32.xlu0 %v22604_v8, %s18289_s17 }
 0x9b8   : > { %5860 = vrot.lane.b32.xlu1 %v22601_v17, %s18288_s24 }
 0x9bc   : > { %6322 = vrot.lane.b32.xlu1 %v22605_v2, %s18288_s24 }
 0x9c0   : > { %6630 = vrot.lane.b32.xlu1 %v22606_v28, %s18288_s24 }
 0x9c4   : > { %8827 = vrot.lane.b32.xlu1 %v22607_v18, %s18289_s17 }
 0x9c8   : > { %8979 = vrot.lane.b32.xlu1 %v22608_v32, %s18289_s17  ;;  %v20569_v13 = vpop.f32.mrb[76].mxu1 }
 0x9c9   : > { %v16286_v21 = vpop.f32.mrb[77].mxu1 }
 0x9cc   : > { %9055 = vrot.lane.b32.xlu1 %v22597_v60, %s18289_s17  ;;  %v20573_v0 = vpop.f32.mrb[78].mxu1 }
 0x9cd   : > { %v16296_v9 = vpop.f32.mrb[79].mxu1 }
 0x9d0   : > { %9207 = vrot.lane.b32.xlu1 %v22598_v1, %s18289_s17  ;;  %v20577_v48 = vpop.f32.mrb[80].mxu1 }
 0x9d1   : > { %v16306_v23 = vpop.f32.mrb[81].mxu1 }
 0x9d4   : > { %9359 = vrot.lane.b32.xlu1 %v22605_v2, %s18289_s17  ;;  %v20581_v33 = vpop.f32.mrb[82].mxu1  ;;  %v17444_v2 = vpop.eup %17443 }
 0x9d5   : > { %v16316_v31 = vpop.f32.mrb[83].mxu1 }
 0x9d8   : > { %9511 = vrot.lane.b32.xlu1 %v22599_v54, %s18289_s17  ;;  %v20585_v29 = vpop.f32.mrb[84].mxu1 }
 0x9d9   : > { %v16326_v30 = vpop.f32.mrb[85].mxu1 }
 0x9fb   : > { %v20589_v41 = vpop.xlane.xlu0 %5656 }
 0x9fc   : > { %17449 = vrcp.f32 %v20589_v41 }
 0x9ff   : > { %v20591_v61 = vpop.xlane.xlu0 %5662 }
 0xa00   : > { %17451 = vrcp.f32 %v20591_v61 }
 0xa03   : > { %v5707_v40 = vpop.permute.xlu0 %5706 }
 0xa04   : > { %16268 = vmatpush3.msra.mxu0 %v5707_v40 }
 0xa05   : > { %16270 = vmatmul.mubr.msk.f32.vlgmr.msra.gmra.mrb[70].mxu0 %vm2932_vm2, %v5674_v39  ;;  %v20595_v36 = vpop.f32.mrb[86].mxu1  ;;  %16277 = vmatprep.subr.mxu0 %v22557_v10 }
 0xa06   : > { %v16336_v3 = vpop.f32.mrb[87].mxu1  ;;  %16279 = vmatprep.mubr.msk.f32.mxu0 %vm18287_vm0, %v22557_v10 }
 0xa07   : > { %v20600_v7 = vpop.permute.xlu0 %6014 }
 0xa09   : > { %v20602_v44 = vpop.f32.mrb[88].mxu1 }
 0xa0a   : > { %v16346_v27 = vpop.f32.mrb[89].mxu1 }
 0xa0b   : > { %v20604_v22 = vpop.permute.xlu0 %6168 }
 0xa0f   : > { %v20606_v37 = vpop.permute.xlu0 %6476 }
 0xa10   : > { %v20608_v42 = vpop.f32.mrb[90].mxu1 }
 0xa11   : > { %v16415_v4 = vpop.f32.mrb[91].mxu1  ;;  %v8575_v59 = vsel %vm2932_vm2, %v20608_v42, -inf }
 0xa12   : > { %8576 = vmax.xlane.f32.xlu1 %v8575_v59 }
 0xa13   : > { %v20612_v45 = vpop.permute.xlu0 %6784 }
 0xa14   : > { %v20614_v6 = vpop.f32.mrb[92].mxu1 }
 0xa15   : > { %v16420_v63 = vpop.f32.mrb[93].mxu1  ;;  %v8578_v21 = vsel %vm2932_vm2, %v20614_v6, -inf }
 0xa16   : > { %8579 = vmax.xlane.f32.xlu0 %v8578_v21 }
 0xa17   : > { %v8752_v9 = vpop.permute.xlu0 %8751 }
 0xa18   : > { %v20618_v23 = vpop.f32.mrb[94].mxu1  ;;  %16492 = vmatpush3.msra.mxu1 %v8752_v9 }
 0xa19   : > { %v16425_v31 = vpop.f32.mrb[95].mxu1  ;;  %v8581_v30 = vsel %vm2932_vm2, %v20618_v23, -inf  ;;  %16501 = vmatprep.subr.mxu1 %v22557_v10 }
 0xa1a   : > { %8582 = vmax.xlane.f32.xlu0 %v8581_v30 }
 0xa1c   : > { %v20623_v53 = vpop.f32.mrb[96].mxu1 }
 0xa1d   : > { %v16430_v43 = vpop.f32.mrb[97].mxu1  ;;  %v8584_v40 = vsel %vm2932_vm2, %v20623_v53, -inf }
 0xa1e   : > { %8585 = vmax.xlane.f32.xlu1 %v8584_v40 }
 0xa20   : > { %v20627_v39 = vpop.f32.mrb[98].mxu1 }
 0xa21   : > { %v16435_v3 = vpop.f32.mrb[99].mxu1  ;;  %v8587_v27 = vsel %vm2932_vm2, %v20627_v39, -inf }
 0xa22   : > { %8588 = vmax.xlane.f32.xlu0 %v8587_v27 }
 0xa24   : > { %v20631_v4 = vpop.f32.mrb[100].mxu1 }
 0xa25   : > { %v16440_v59 = vpop.f32.mrb[101].mxu1  ;;  %v8590_v63 = vsel %vm2932_vm2, %v20631_v4, -inf }
 0xa26   : > { %8591 = vmax.xlane.f32.xlu1 %v8590_v63 }
 0xa28   : > { %v20635_v21 = vpop.f32.mrb[102].mxu1 }
 0xa29   : > { %v16445_v9 = vpop.f32.mrb[103].mxu1  ;;  %v8593_v31 = vsel %vm2932_vm2, %v20635_v21, -inf }
 0xa2a   : > { %8594 = vmax.xlane.f32.xlu0 %v8593_v31 }
 0xa2c   : > { %v20639_v30 = vpop.f32.mrb[104].mxu1 }
 0xa2d   : > { %v16450_v43 = vpop.f32.mrb[105].mxu1  ;;  %v8596_v40 = vsel %vm2932_vm2, %v20639_v30, -inf }
 0xa2e   : > { %8597 = vmax.xlane.f32.xlu1 %v8596_v40 }
 0xa30   : > { %v20643_v3 = vpop.f32.mrb[106].mxu1 }
 0xa31   : > { %v16455_v27 = vpop.f32.mrb[107].mxu1  ;;  %v8599_v59 = vsel %vm2932_vm2, %v20643_v3, -inf }
 0xa32   : > { %8600 = vmax.xlane.f32.xlu0 %v8599_v59  ;;  %v5678_v27 = vmul.f32 %v17442_v46, %v20392_v55  ;;  %v5682_v55 = vmul.f32 %v17444_v2, %v20397_v26 }
 0xa34   : > { %v20647_v63 = vpop.f32.mrb[108].mxu1  ;;  %v5669_v9 = vpop.xlane.xlu1 %5668 }
 0xa35   : > { %v16460_v31 = vpop.f32.mrb[109].mxu1  ;;  %v8602_v43 = vsel %vm2932_vm2, %v20647_v63, -inf  ;;  %17453 = vrcp.f32 %v5669_v9 }
 0xa36   : > { %8603 = vmax.xlane.f32.xlu1 %v8602_v43 }
 0xa38   : > { %v20652_v47 = vpop.f32.mrb[110].mxu1  ;;  %v5861_v40 = vpop.permute.xlu1 %5860 }
 0xa39   : > { %v16465_v1 = vpop.f32.mrb[111].mxu1  ;;  %16278 = vmatpush3.msra.mxu0 %v5861_v40  ;;  %v8605_v49 = vsel %vm2932_vm2, %v20652_v47, -inf }
 0xa3a   : > { %8606 = vmax.xlane.f32.xlu0 %v8605_v49  ;;  %16280 = vmatmul.mubr.msk.f32.vlgmr.msra.gmra.mrb[72].mxu0 %vm2932_vm2, %v5678_v27  ;;  %v17446_v1 = vpop.eup %17445 }
 0xa3b   : > { %16287 = vmatprep.subr.mxu0 %v22557_v10  ;;  %16289 = vmatprep.mubr.msk.f32.mxu0 %vm18287_vm0, %v22557_v10  ;;  %v5686_v26 = vmul.f32 %v17446_v1, %v20401_v58  ;;  %v17448_v2 = vpop.eup %17447 }
 0xa3c   : > { %16288 = vmatpush3.msra.mxu0 %v20600_v7  ;;  %v20663_v57 = vpop.f32.mrb[112].mxu1  ;;  %v6323_v43 = vpop.permute.xlu1 %6322  ;;  %v5690_v58 = vmul.f32 %v17448_v2, %v20405_v15 }
 0xa3d   : > { %v16470_v59 = vpop.f32.mrb[113].mxu1  ;;  %16297 = vmatprep.subr.mxu0 %v22557_v10  ;;  %v8608_v46 = vsel %vm2932_vm2, %v20663_v57, -inf }
 0xa3e   : > { %8609 = vmax.xlane.f32.xlu1 %v8608_v46  ;;  %16290 = vmatmul.mubr.msk.f32.vlgmr.msra.gmra.mrb[74].mxu0 %vm2932_vm2, %v5682_v55 }
 0xa3f   : > { %16298 = vmatpush3.msra.mxu0 %v20604_v22  ;;  %16299 = vmatprep.mubr.msk.f32.mxu0 %vm18287_vm0, %v22557_v10  ;;  %v17450_v22 = vpop.eup %17449 }
 0xa40   : > { %v20674_v41 = vpop.f32.mrb[114].mxu1  ;;  %16307 = vmatprep.subr.mxu0 %v22557_v10  ;;  %v5694_v49 = vmul.f32 %v17450_v22, %v20506_v56  ;;  %v17452_v15 = vpop.eup %17451  ;;  %v6940_v22 = vld [vmem:[%s18848_s5 + $0x38] sm:$0xff] }
 0xa41   : > { %v16475_v7 = vpop.f32.mrb[115].mxu1  ;;  %v8611_v31 = vsel %vm2932_vm2, %v20674_v41, -inf  ;;  %v6631_v59 = vpop.permute.xlu1 %6630  ;;  %v5698_v56 = vmul.f32 %v17452_v15, %v20511_v24  ;;  %v6938_v24 = vld [vmem:[%s18848_s5 + $0x28] sm:$0xff] }
 0xa42   : > { %8612 = vmax.xlane.f32.xlu0 %v8611_v31  ;;  %16300 = vmatmul.mubr.msk.f32.vlgmr.msra.gmra.mrb[76].mxu0 %vm2932_vm2, %v5686_v26  ;;  %v17454_v46 = vpop.eup %17453  ;;  %v6937_v31 = vld [vmem:[%s18848_s5 + $0x20] sm:$0xff] }
 0xa43   : > { %16308 = vmatpush3.msra.mxu0 %v6323_v43  ;;  %16309 = vmatprep.mubr.msk.f32.mxu0 %vm18287_vm0, %v22557_v10  ;;  %v5702_v7 = vmul.f32 %v17454_v46, %v20551_v14  ;;  %v16891_v43 = vpack.c.bf16 %v6938_v24, %v6937_v31  ;;  %v22610_v14 = vld [vmem:[#allocation83_spill] sm:$0xff] }
 0xa44   : > { %v20683_v61 = vpop.f32.mrb[116].mxu1  ;;  %16317 = vmatprep.subr.mxu0 %v22557_v10 }
 0xa45   : > { %v16480_v40 = vpop.f32.mrb[117].mxu1  ;;  %v8614_v27 = vsel %vm2932_vm2, %v20683_v61, -inf }
 0xa46   : > { %8615 = vmax.xlane.f32.xlu1 %v8614_v27  ;;  %16310 = vmatmul.mubr.msk.f32.vlgmr.msra.gmra.mrb[78].mxu0 %vm2932_vm2, %v5690_v58  ;;  %v6939_v58 = vld [vmem:[%s18848_s5 + $0x30] sm:$0xff]  ;;  %v20724_v27 = vpop.permute.xlu1 %8827 }
 0xa47   : > { %16318 = vmatpush3.msra.mxu0 %v20606_v37  ;;  %16319 = vmatprep.mubr.msk.f32.mxu0 %vm18287_vm0, %v22557_v10  ;;  %v16895_v40 = vpack.c.bf16 %v6940_v22, %v6939_v58  ;;  %v4278_v58 = vld [vmem:[%s18848_s5 + $0x8] sm:$0xff] }
 0xa48   : > { %v20693_v9 = vpop.f32.mrb[118].mxu1  ;;  %16327 = vmatprep.subr.mxu0 %v22557_v10 }
 0xa49   : > { %v16485_v55 = vpop.f32.mrb[119].mxu1  ;;  %v8617_v1 = vsel %vm2932_vm2, %v20693_v9, -inf }
 0xa4a   : > { %8618 = vmax.xlane.f32.xlu0 %v8617_v1  ;;  %16320 = vmatmul.mubr.msk.f32.vlgmr.msra.gmra.mrb[80].mxu0 %vm2932_vm2, %v5694_v49  ;;  %v20726_v49 = vpop.permute.xlu1 %8979  ;;  %v20730_v55 = vpop.permute.xlu0 %8903 }
 0xa4b   : > { %16328 = vmatpush3.msra.mxu0 %v6631_v59  ;;  %16329 = vmatprep.mubr.msk.f32.mxu0 %vm18287_vm0, %v22557_v10 }
 0xa4c   : > { %v20702_v37 = vpop.f32.mrb[120].mxu1  ;;  %16337 = vmatprep.subr.mxu0 %v22557_v10 }
 0xa4d   : > { %v16490_v26 = vpop.f32.mrb[121].mxu1  ;;  %v8620_v2 = vsel %vm2932_vm2, %v20702_v37, -inf }
 0xa4e   : > { %8621 = vmax.xlane.f32.xlu1 %v8620_v2  ;;  %16330 = vmatmul.mubr.msk.f32.vlgmr.msra.gmra.mrb[82].mxu0 %vm2932_vm2, %v5698_v56  ;;  %v20728_v15 = vpop.permute.xlu1 %9055  ;;  %v20734_v59 = vpop.permute.xlu0 %9131 }
 0xa4f   : > { %16338 = vmatpush3.msra.mxu0 %v20612_v45  ;;  %16339 = vmatprep.mubr.msk.f32.mxu0 %vm18287_vm0, %v22557_v10  ;;  %v22609_v45 = vld [vmem:[#allocation81_spill] sm:$0xff] }
 0xa50   : > { %16892 = vmatprep.subr.bf16.mxu0 %v16891_v43 }
 0xa52   : > { %16340 = vmatmul.mubr.msk.f32.vlgmr.msra.gmra.mrb[84].mxu0 %vm2932_vm2, %v5702_v7  ;;  %v20732_v1 = vpop.permute.xlu1 %9207  ;;  %v20738_v46 = vpop.permute.xlu0 %9283 }
 0xa53   : > { %16894 = vmatpush3.bf16.msra.mxu0 %v16891_v43  ;;  %v4277_v43 = vld [vmem:[%s18848_s5] sm:$0xff] }
 0xa54   : > { %16896 = vmatprep.subr.bf16.mxu0 %v16895_v40 }
 0xa56   : > { %v20736_v56 = vpop.permute.xlu1 %9359  ;;  %v20742_v2 = vpop.permute.xlu0 %9435 }
 0xa57   : > { %16898 = vmatpush3.bf16.msra.mxu0 %v16895_v40  ;;  %v20747_v40 = vpack.c.bf16 %v4278_v58, %v4277_v43 }
 0xa59   : > { %16900 = vmatprep.subr.bf16.mxu0 %v20747_v40 }
 0xa5a   : > { %v20740_v26 = vpop.permute.xlu1 %9511 }
 0xa5f   : > { %9663 = vrot.lane.b32.xlu1 %v22606_v28, %s18289_s17 }
 0xa60   : > { %9587 = vrot.lane.b32.xlu0 %v22609_v45, %s18289_s17 }
 0xa64   : > { %9739 = vrot.lane.b32.xlu0 %v22610_v14, %s18289_s17 }
 0xa9f   : > { %v8577_v7 = vpop.xlane.xlu1 %8576 }
 0xaa0   : > { %v8623_v31 = vsub.f32 %v20608_v42, %v8577_v7 }
 0xaa2   : > { %v8639_v24 = vmul.f32 1.442695, %v8623_v31 }
 0xaa3   : > { %v8580_v22 = vpop.xlane.xlu0 %8579 }
 0xaa4   : > { %17455 = vpow2.f32 %v8639_v24  ;;  %v8624_v14 = vsub.f32 %v20614_v6, %v8580_v22 }
 0xaa6   : > { %v8641_v45 = vmul.f32 1.442695, %v8624_v14 }
 0xaa7   : > { %v8583_v60 = vpop.xlane.xlu0 %8582 }
 0xaa8   : > { %17457 = vpow2.f32 %v8641_v45  ;;  %v8625_v28 = vsub.f32 %v20618_v23, %v8583_v60 }
 0xaaa   : > { %v8643_v54 = vmul.f32 1.442695, %v8625_v28 }
 0xaab   : > { %v8586_v8 = vpop.xlane.xlu1 %8585 }
 0xaac   : > { %17459 = vpow2.f32 %v8643_v54  ;;  %v8626_v42 = vsub.f32 %v20623_v53, %v8586_v8 }
 0xaae   : > { %v20753_v7 = vpop.eup %17455  ;;  %v8645_v31 = vmul.f32 1.442695, %v8626_v42 }
 0xaaf   : > { %v8589_v43 = vpop.xlane.xlu0 %8588  ;;  %v8671_v24 = vsel %vm2932_vm2, %v20753_v7, 0.0 }
 0xab0   : > { %17461 = vpow2.f32 %v8645_v31  ;;  %v8627_v6 = vsub.f32 %v20627_v39, %v8589_v43  ;;  %8672 = vadd.xlane.f32.xlu0 %v8671_v24 }
 0xab2   : > { %v20758_v14 = vpop.eup %17457  ;;  %v8647_v45 = vmul.f32 1.442695, %v8627_v6 }
 0xab3   : > { %v8592_v60 = vpop.xlane.xlu1 %8591  ;;  %v8674_v54 = vsel %vm2932_vm2, %v20758_v14, 0.0 }
 0xab4   : > { %17463 = vpow2.f32 %v8647_v45  ;;  %v8628_v8 = vsub.f32 %v20631_v4, %v8592_v60  ;;  %8675 = vadd.xlane.f32.xlu1 %v8674_v54 }
 0xab6   : > { %v20763_v28 = vpop.eup %17459  ;;  %v8649_v23 = vmul.f32 1.442695, %v8628_v8 }
 0xab7   : > { %v8595_v53 = vpop.xlane.xlu0 %8594  ;;  %v8677_v58 = vsel %vm2932_vm2, %v20763_v28, 0.0 }
 0xab8   : > { %17465 = vpow2.f32 %v8649_v23  ;;  %v8629_v39 = vsub.f32 %v20635_v21, %v8595_v53  ;;  %8678 = vadd.xlane.f32.xlu0 %v8677_v58 }
 0xaba   : > { %v20768_v22 = vpop.eup %17461  ;;  %v8651_v42 = vmul.f32 1.442695, %v8629_v39 }
 0xabb   : > { %v8598_v31 = vpop.xlane.xlu1 %8597  ;;  %v8680_v43 = vsel %vm2932_vm2, %v20768_v22, 0.0 }
 0xabc   : > { %17467 = vpow2.f32 %v8651_v42  ;;  %v8630_v4 = vsub.f32 %v20639_v30, %v8598_v31  ;;  %8681 = vadd.xlane.f32.xlu1 %v8680_v43 }
 0xabe   : > { %v20773_v24 = vpop.eup %17463  ;;  %v8653_v6 = vmul.f32 1.442695, %v8630_v4 }
 0xabf   : > { %v8601_v45 = vpop.xlane.xlu0 %8600  ;;  %v8683_v60 = vsel %vm2932_vm2, %v20773_v24, 0.0 }
 0xac0   : > { %17469 = vpow2.f32 %v8653_v6  ;;  %v8631_v21 = vsub.f32 %v20643_v3, %v8601_v45  ;;  %8684 = vadd.xlane.f32.xlu0 %v8683_v60 }
 0xac2   : > { %v20778_v54 = vpop.eup %17465  ;;  %v8655_v8 = vmul.f32 1.442695, %v8631_v21 }
 0xac3   : > { %v8604_v23 = vpop.xlane.xlu1 %8603  ;;  %v8686_v53 = vsel %vm2932_vm2, %v20778_v54, 0.0 }
 0xac4   : > { %17471 = vpow2.f32 %v8655_v8  ;;  %v8632_v30 = vsub.f32 %v20647_v63, %v8604_v23  ;;  %8687 = vadd.xlane.f32.xlu1 %v8686_v53 }
 0xac6   : > { %v20783_v58 = vpop.eup %17467  ;;  %v8657_v39 = vmul.f32 1.442695, %v8632_v30 }
 0xac7   : > { %v8607_v42 = vpop.xlane.xlu0 %8606  ;;  %v8689_v31 = vsel %vm2932_vm2, %v20783_v58, 0.0 }
 0xac8   : > { %17473 = vpow2.f32 %v8657_v39  ;;  %v8633_v3 = vsub.f32 %v20652_v47, %v8607_v42  ;;  %8690 = vadd.xlane.f32.xlu0 %v8689_v31  ;;  %v4279_v31 = vld [vmem:[%s18848_s5 + $0x10] sm:$0xff] }
 0xaca   : > { %v20788_v43 = vpop.eup %17469  ;;  %v8659_v4 = vmul.f32 1.442695, %v8633_v3  ;;  %v4280_v3 = vld [vmem:[%s18848_s5 + $0x18] sm:$0xff] }
 0xacb   : > { %v8610_v6 = vpop.xlane.xlu1 %8609  ;;  %v8692_v45 = vsel %vm2932_vm2, %v20788_v43, 0.0 }
 0xacc   : > { %17475 = vpow2.f32 %v8659_v4  ;;  %v8634_v63 = vsub.f32 %v20663_v57, %v8610_v6  ;;  %8693 = vadd.xlane.f32.xlu1 %v8692_v45 }
 0xace   : > { %v20793_v60 = vpop.eup %17471  ;;  %v8661_v21 = vmul.f32 1.442695, %v8634_v63 }
 0xacf   : > { %v8613_v8 = vpop.xlane.xlu0 %8612  ;;  %v8695_v47 = vsel %vm2932_vm2, %v20793_v60, 0.0 }
 0xad0   : > { %17477 = vpow2.f32 %v8661_v21  ;;  %v8635_v23 = vsub.f32 %v20674_v41, %v8613_v8  ;;  %8696 = vadd.xlane.f32.xlu0 %v8695_v47  ;;  %v16903_v8 = vpack.c.bf16 %v4280_v3, %v4279_v31 }
 0xad2   : > { %v20798_v53 = vpop.eup %17473  ;;  %v8663_v30 = vmul.f32 1.442695, %v8635_v23 }
 0xad3   : > { %v8616_v39 = vpop.xlane.xlu1 %8615  ;;  %v8698_v57 = vsel %vm2932_vm2, %v20798_v53, 0.0 }
 0xad4   : > { %17479 = vpow2.f32 %v8663_v30  ;;  %v8636_v42 = vsub.f32 %v20683_v61, %v8616_v39  ;;  %8699 = vadd.xlane.f32.xlu1 %v8698_v57 }
 0xad6   : > { %v20805_v4 = vpop.eup %17475  ;;  %v8665_v6 = vmul.f32 1.442695, %v8636_v42 }
 0xad7   : > { %v8619_v45 = vpop.xlane.xlu0 %8618  ;;  %v8701_v41 = vsel %vm2932_vm2, %v20805_v4, 0.0 }
 0xad8   : > { %17481 = vpow2.f32 %v8665_v6  ;;  %v8637_v63 = vsub.f32 %v20693_v9, %v8619_v45  ;;  %8702 = vadd.xlane.f32.xlu0 %v8701_v41  ;;  %v5778_v21 = vpop.f32.mrb[70].mxu0  ;;  %v22611_v41 = vld [vmem:[#allocation46_spill] sm:$0xff] }
 0xad9   : > { %v16271_v47 = vpop.f32.mrb[71].mxu0  ;;  %16355 = vmatprep.mubr.msk.f32.mxu0 %vm1715_vm1, %v5778_v21  ;;  %v22613_v21 = vld [vmem:[#allocation69_spill] sm:$0xff] }
 0xada   : > { %v20811_v61 = vpop.eup %17477  ;;  %v8667_v23 = vmul.f32 1.442695, %v8637_v63  ;;  %16356 = vmatmul.mubr.msk.f32.vlgmr.msra.gmra.mrb[86].mxu0 %vm1715_vm1, %v20549_v62  ;;  %v22612_v63 = vld [vmem:[#allocation45_spill] sm:$0xff]  ;;  %v22615_v47 = vld [vmem:[#allocation48_spill] sm:$0xff] }
 0xadb   : > { %v8622_v30 = vpop.xlane.xlu1 %8621  ;;  %v8704_v39 = vsel %vm2932_vm2, %v20811_v61, 0.0  ;;  %16902 = vmatpush3.bf16.msra.mxu0 %v20747_v40 }
 0xadc   : > { %17483 = vpow2.f32 %v8667_v23  ;;  %v8638_v9 = vsub.f32 %v20702_v37, %v8622_v30  ;;  %8705 = vadd.xlane.f32.xlu1 %v8704_v39  ;;  %16904 = vmatprep.subr.bf16.mxu0 %v16903_v8  ;;  %v22616_v23 = vld [vmem:[#allocation49_spill] sm:$0xff]  ;;  %v22617_v30 = vld [vmem:[#allocation47_spill] sm:$0xff]  ;;  %v22618_v39 = vld [vmem:[#allocation54_spill] sm:$0xff] }
 0xade   : > { %v20819_v57 = vpop.eup %17479  ;;  %v8669_v42 = vmul.f32 1.442695, %v8638_v9 }
 0xadf   : > { %v8707_v31 = vsel %vm2932_vm2, %v20819_v57, 0.0  ;;  %16906 = vmatpush3.bf16.msra.mxu0 %v16903_v8  ;;  %v22614_v8 = vld [vmem:[#allocation50_spill] sm:$0xff] }
 0xae0   : > { %17485 = vpow2.f32 %v8669_v42  ;;  %8708 = vadd.xlane.f32.xlu0 %v8707_v31  ;;  %16496 = vmatprep.subr.mxu0 %v22557_v10  ;;  %v22619_v42 = vld [vmem:[#allocation52_spill] sm:$0xff] }
 0xae2   : > { %v20824_v62 = vpop.eup %17481 }
 0xae3   : > { %v8710_v40 = vsel %vm2932_vm2, %v20824_v62, 0.0 }
 0xae4   : > { %8711 = vadd.xlane.f32.xlu1 %v8710_v40  ;;  %v22620_v40 = vld [vmem:[#allocation53_spill] sm:$0xff] }
 0xae6   : > { %v20828_v37 = vpop.eup %17483 }
 0xae7   : > { %v8713_v3 = vsel %vm2932_vm2, %v20828_v37, 0.0 }
 0xae8   : > { %8714 = vadd.xlane.f32.xlu1 %v8713_v3 }
 0xaea   : > { %v20832_v6 = vpop.eup %17485 }
 0xaeb   : > { %v8716_v45 = vsel %vm2932_vm2, %v20832_v6, 0.0 }
 0xaec   : > { %8717 = vadd.xlane.f32.xlu0 %v8716_v45  ;;  %v22621_v45 = vld [vmem:[#allocation51_spill] sm:$0xff] }
 0xaf9   : > { %9815 = vrot.lane.b32.xlu1 %v22600_v19, %s18289_s17 }
 0xafd   : > { %10182 = vrot.lane.b32.xlu1 %v22611_v41, %s18290_s11 }
 0xb01   : > { %10260 = vrot.lane.b32.xlu1 %v22612_v63, %s18290_s11  ;;  %v22622_v63 = vld [vmem:[#allocation58_spill] sm:$0xff] }
 0xb02   : > { %9891 = vrot.lane.b32.xlu0 %v22613_v21, %s18289_s17 }
 0xb05   : > { %10338 = vrot.lane.b32.xlu1 %v22614_v8, %s18290_s11 }
 0xb06   : > { %10180 = vrot.lane.b32.xlu0 %v22615_v47, %s18290_s11  ;;  %v22623_v47 = vld [vmem:[#allocation56_spill] sm:$0xff] }
 0xb09   : > { %10416 = vrot.lane.b32.xlu1 %v22616_v23, %s18290_s11  ;;  %v22624_v23 = vld [vmem:[#allocation57_spill] sm:$0xff] }
 0xb0a   : > { %10258 = vrot.lane.b32.xlu0 %v22617_v30, %s18290_s11 }
 0xb0d   : > { %10494 = vrot.lane.b32.xlu1 %v22618_v39, %s18290_s11  ;;  %v5932_v9 = vpop.f32.mrb[72].mxu0  ;;  %v22625_v39 = vld [vmem:[#allocation55_spill] sm:$0xff] }
 0xb0e   : > { %10336 = vrot.lane.b32.xlu0 %v22619_v42, %s18290_s11  ;;  %v16281_v31 = vpop.f32.mrb[73].mxu0  ;;  %16358 = vmatprep.mubr.msk.f32.mxu0 %vm1715_vm1, %v5932_v9  ;;  %v22626_v9 = vld [vmem:[#allocation60_spill] sm:$0xff] }
 0xb0f   : > { %16359 = vmatmul.mubr.msk.f32.gmra.mrb[88].mxu0 %vm1715_vm1, %v20569_v13  ;;  %v22627_v31 = vld [vmem:[#allocation59_spill] sm:$0xff] }
 0xb11   : > { %10572 = vrot.lane.b32.xlu1 %v22620_v40, %s18290_s11  ;;  %v6086_v3 = vpop.f32.mrb[74].mxu0  ;;  %v22628_v40 = vld [vmem:[#allocation62_spill] sm:$0xff] }
 0xb12   : > { %10414 = vrot.lane.b32.xlu0 %v22621_v45, %s18290_s11  ;;  %v16291_v41 = vpop.f32.mrb[75].mxu0  ;;  %16361 = vmatprep.mubr.msk.f32.mxu0 %vm1715_vm1, %v6086_v3  ;;  %v22629_v45 = vld [vmem:[#allocation61_spill] sm:$0xff] }
 0xb13   : > { %16362 = vmatmul.mubr.msk.f32.gmra.mrb[90].mxu0 %vm1715_vm1, %v20573_v0  ;;  %v22630_v41 = vld [vmem:[#allocation66_spill] sm:$0xff] }
 0xb15   : > { %10650 = vrot.lane.b32.xlu1 %v22622_v63, %s18290_s11  ;;  %v6240_v8 = vpop.f32.mrb[76].mxu0 }
 0xb16   : > { %10492 = vrot.lane.b32.xlu0 %v22623_v47, %s18290_s11  ;;  %v16301_v13 = vpop.f32.mrb[77].mxu0  ;;  %16364 = vmatprep.mubr.msk.f32.mxu0 %vm1715_vm1, %v6240_v8  ;;  %v22631_v8 = vld [vmem:[#allocation64_spill] sm:$0xff] }
 0xb17   : > { %16365 = vmatmul.mubr.msk.f32.gmra.mrb[92].mxu0 %vm1715_vm1, %v20577_v48  ;;  %v22632_v47 = vld [vmem:[#allocation92_spill] sm:$0xff]  ;;  %v22633_v13 = vld [vmem:[#allocation67_spill] sm:$0xff] }
 0xb19   : > { %10728 = vrot.lane.b32.xlu1 %v22624_v23, %s18290_s11  ;;  %v6394_v30 = vpop.f32.mrb[78].mxu0  ;;  %v22635_v23 = vld [vmem:[#allocation85_spill] sm:$0xff] }
 0xb1a   : > { %10570 = vrot.lane.b32.xlu0 %v22625_v39, %s18290_s11  ;;  %v16311_v0 = vpop.f32.mrb[79].mxu0  ;;  %16367 = vmatprep.mubr.msk.f32.mxu0 %vm1715_vm1, %v6394_v30  ;;  %v22636_v30 = vld [vmem:[#allocation93_spill] sm:$0xff]  ;;  %v22638_v39 = vld [vmem:[#allocation86_spill] sm:$0xff] }
 0xb1b   : > { %16368 = vmatmul.mubr.msk.f32.gmra.mrb[94].mxu0 %vm1715_vm1, %v20581_v33  ;;  %v22639_v0 = vld [vmem:[#allocation94_spill] sm:$0xff] }
 0xb1d   : > { %10806 = vrot.lane.b32.xlu1 %v22626_v9, %s18290_s11  ;;  %v6548_v42 = vpop.f32.mrb[80].mxu0  ;;  %v22641_v9 = vld [vmem:[#allocation95_spill] sm:$0xff] }
 0xb1e   : > { %10648 = vrot.lane.b32.xlu0 %v22627_v31, %s18290_s11  ;;  %v16321_v48 = vpop.f32.mrb[81].mxu0  ;;  %16370 = vmatprep.mubr.msk.f32.mxu0 %vm1715_vm1, %v6548_v42  ;;  %v22642_v42 = vld [vmem:[#allocation88_spill] sm:$0xff] }
 0xb1f   : > { %16371 = vmatmul.mubr.msk.f32.gmra.mrb[96].mxu0 %vm1715_vm1, %v20585_v29  ;;  %v22644_v31 = vld [vmem:[#allocation68_spill] sm:$0xff] }
 0xb21   : > { %10884 = vrot.lane.b32.xlu1 %v22628_v40, %s18290_s11  ;;  %v6702_v3 = vpop.f32.mrb[82].mxu0 }
 0xb22   : > { %10726 = vrot.lane.b32.xlu0 %v22629_v45, %s18290_s11  ;;  %v16331_v33 = vpop.f32.mrb[83].mxu0  ;;  %16373 = vmatprep.mubr.msk.f32.mxu0 %vm1715_vm1, %v6702_v3  ;;  %v22648_v3 = vld [vmem:[#allocation90_spill] sm:$0xff]  ;;  %v22649_v45 = vld [vmem:[#allocation99_spill] sm:$0xff] }
 0xb23   : > { %16374 = vmatmul.mubr.msk.f32.gmra.mrb[98].mxu0 %vm1715_vm1, %v20595_v36  ;;  %v22634_v36 = vld [vmem:[#allocation63_spill] sm:$0xff] }
 0xb25   : > { %10962 = vrot.lane.b32.xlu1 %v22630_v41, %s18290_s11  ;;  %v6856_v63 = vpop.f32.mrb[84].mxu0 }
 0xb26   : > { %10804 = vrot.lane.b32.xlu0 %v22631_v8, %s18290_s11  ;;  %v16341_v29 = vpop.f32.mrb[85].mxu0  ;;  %16376 = vmatprep.mubr.msk.f32.mxu0 %vm1715_vm1, %v6856_v63 }
 0xb27   : > { %16377 = vmatmul.mubr.msk.f32.gmra.mrb[100].mxu0 %vm1715_vm1, %v20602_v44  ;;  %v22637_v44 = vld [vmem:[#allocation65_spill] sm:$0xff] }
 0xb28   : > { %16387 = vmatprep.mubr.msk.f32.mxu0 %vm1715_vm1, %v22632_v47 }
 0xb29   : > { %10960 = vrot.lane.b32.xlu1 %v22633_v13, %s18290_s11 }
 0xb2a   : > { %10882 = vrot.lane.b32.xlu0 %v22634_v36, %s18290_s11 }
 0xb2b   : > { %16388 = vmatmul.mubr.msk.f32.vlgmr.msra.gmra.mrb[86].mxu0 %vm1715_vm1, %v22635_v23 }
 0xb2c   : > { %16497 = vmatpush3.msra.mxu0 %v20724_v27  ;;  %16390 = vmatprep.mubr.msk.f32.mxu0 %vm1715_vm1, %v22636_v30  ;;  %v20925_v27 = vpop.permute.xlu0 %9587 }
 0xb2d   : > { %11118 = vrot.lane.b32.xlu1 %v19608_v20, %s18290_s11  ;;  %16506 = vmatprep.subr.mxu0 %v22557_v10  ;;  %v22640_v20 = vld [vmem:[#allocation87_spill] sm:$0xff] }
 0xb2e   : > { %11040 = vrot.lane.b32.xlu0 %v22637_v44, %s18290_s11 }
 0xb2f   : > { %16391 = vmatmul.mubr.msk.f32.gmra.mrb[88].mxu0 %vm1715_vm1, %v22638_v39 }
 0xb30   : > { %16393 = vmatprep.mubr.msk.f32.mxu0 %vm1715_vm1, %v22639_v0 }
 0xb31   : > { %11116 = vrot.lane.b32.xlu1 %v19623_v35, %s18290_s11  ;;  %v22643_v35 = vld [vmem:[#allocation96_spill] sm:$0xff] }
 0xb32   : > { %11038 = vrot.lane.b32.xlu0 %v19594_v52, %s18290_s11  ;;  %v20939_v52 = vpop.permute.xlu0 %9739 }
 0xb33   : > { %16394 = vmatmul.mubr.msk.f32.gmra.mrb[90].mxu0 %vm1715_vm1, %v22640_v20 }
 0xb34   : > { %16396 = vmatprep.mubr.msk.f32.mxu0 %vm1715_vm1, %v22641_v9 }
 0xb35   : > { %11274 = vrot.lane.b32.xlu1 %v22563_v11, %s18290_s11  ;;  %v22645_v11 = vld [vmem:[#allocation97_spill] sm:$0xff] }
 0xb36   : > { %11196 = vrot.lane.b32.xlu0 %v19601_v34, %s18290_s11  ;;  %v20949_v34 = vpop.permute.xlu1 %9663 }
 0xb37   : > { %16397 = vmatmul.mubr.msk.f32.gmra.mrb[92].mxu0 %vm1715_vm1, %v22642_v42 }
 0xb38   : > { %16399 = vmatprep.mubr.msk.f32.mxu0 %vm1715_vm1, %v22643_v35  ;;  %v9967_v35 = vld [vmem:[%s18848_s5 + $0x40] sm:$0xff] }
 0xb39   : > { %11272 = vrot.lane.b32.xlu1 %v19654_v51, %s18290_s11  ;;  %v22646_v51 = vld [vmem:[#allocation89_spill] sm:$0xff] }
 0xb3a   : > { %11194 = vrot.lane.b32.xlu0 %v19620_v12, %s18290_s11  ;;  %v22647_v12 = vld [vmem:[#allocation98_spill] sm:$0xff] }
 0xb3b   : > { %16400 = vmatmul.mubr.msk.f32.gmra.mrb[94].mxu0 %vm1715_vm1, %v22644_v31 }
 0xb3c   : > { %16402 = vmatprep.mubr.msk.f32.mxu0 %vm1715_vm1, %v22645_v11 }
 0xb3d   : > { %v8673_v48 = vpop.xlane.xlu0 %8672  ;;  %11680 = vrot.lane.b32.xlu1 %v22607_v18, %s18290_s11 }
 0xb3e   : > { %17487 = vrcp.f32 %v8673_v48  ;;  %11352 = vrot.lane.b32.xlu0 %v19628_v16, %s18290_s11  ;;  %v22650_v16 = vld [vmem:[#allocation91_spill] sm:$0xff] }
 0xb3f   : > { %16403 = vmatmul.mubr.msk.f32.gmra.mrb[96].mxu0 %vm1715_vm1, %v22646_v51 }
 0xb40   : > { %16405 = vmatprep.mubr.msk.f32.mxu0 %vm1715_vm1, %v22647_v12 }
 0xb41   : > { %v8676_v40 = vpop.xlane.xlu1 %8675 }
 0xb42   : > { %17489 = vrcp.f32 %v8676_v40  ;;  %11350 = vrot.lane.b32.xlu0 %v19650_v50, %s18290_s11 }
 0xb43   : > { %16406 = vmatmul.mubr.msk.f32.gmra.mrb[98].mxu0 %vm1715_vm1, %v22648_v3  ;;  %v9969_v3 = vld [vmem:[%s18848_s5 + $0x50] sm:$0xff] }
 0xb44   : > { %16408 = vmatprep.mubr.msk.f32.mxu0 %vm1715_vm1, %v22649_v45  ;;  %v9970_v45 = vld [vmem:[%s18848_s5 + $0x58] sm:$0xff] }
 0xb45   : > { %v8679_v18 = vpop.xlane.xlu0 %8678 }
 0xb46   : > { %17491 = vrcp.f32 %v8679_v18  ;;  %11604 = vrot.lane.b32.xlu0 %v22596_v38, %s18290_s11 }
 0xb47   : > { %16409 = vmatmul.mubr.msk.f32.gmra.mrb[100].mxu0 %vm1715_vm1, %v22650_v16 }
 0xb48   : > { %v17488_v33 = vpop.eup %17487  ;;  %16498 = vmatprep.mubr.msk.f32.mxu0 %vm18287_vm0, %v22557_v10 }
 0xb49   : > { %v8682_v41 = vpop.xlane.xlu1 %8681  ;;  %v8720_v50 = vmul.f32 %v17488_v33, %v20753_v7 }
 0xb4a   : > { %17493 = vrcp.f32 %v8682_v41  ;;  %11756 = vrot.lane.b32.xlu0 %v22601_v17, %s18290_s11  ;;  %v16911_v41 = vpack.c.bf16 %v9970_v45, %v9969_v3 }
 0xb4b   : > { %16494 = vmatmul.mubr.msk.f32.vlgmr.msra.gmra.mrb[122].mxu1 %vm2932_vm2, %v8720_v50 }
 0xb4c   : > { %v17490_v63 = vpop.eup %17489  ;;  %16502 = vmatpush3.msra.mxu1 %v20730_v55  ;;  %16503 = vmatprep.mubr.msk.f32.mxu1 %vm18287_vm0, %v22557_v10 }
 0xb4d   : > { %v8722_v38 = vmul.f32 %v17490_v63, %v20758_v14  ;;  %v8685_v8 = vpop.xlane.xlu0 %8684  ;;  %16511 = vmatprep.subr.mxu1 %v22557_v10 }
 0xb4e   : > { %17495 = vrcp.f32 %v8685_v8 }
 0xb4f   : > { %16499 = vmatmul.mubr.msk.f32.vlgmr.msra.gmra.mrb[102].mxu0 %vm2932_vm2, %v8722_v38 }
 0xb50   : > { %v17492_v7 = vpop.eup %17491  ;;  %16507 = vmatpush3.msra.mxu0 %v20726_v49  ;;  %16508 = vmatprep.mubr.msk.f32.mxu0 %vm18287_vm0, %v22557_v10 }
 0xb51   : > { %v8688_v17 = vpop.xlane.xlu1 %8687  ;;  %v8724_v55 = vmul.f32 %v17492_v7, %v20763_v28  ;;  %16516 = vmatprep.subr.mxu0 %v22557_v10 }
 0xb52   : > { %17497 = vrcp.f32 %v8688_v17 }
 0xb53   : > { %16504 = vmatmul.mubr.msk.f32.vlgmr.msra.gmra.mrb[124].mxu1 %vm2932_vm2, %v8724_v55 }
 0xb54   : > { %v17494_v14 = vpop.eup %17493  ;;  %16512 = vmatpush3.msra.mxu1 %v20728_v15  ;;  %16513 = vmatprep.mubr.msk.f32.mxu1 %vm18287_vm0, %v22557_v10 }
 0xb55   : > { %v8691_v29 = vpop.xlane.xlu0 %8690  ;;  %v8726_v49 = vmul.f32 %v17494_v14, %v20768_v22  ;;  %16521 = vmatprep.subr.mxu1 %v22557_v10 }
 0xb56   : > { %17499 = vrcp.f32 %v8691_v29 }
 0xb57   : > { %16509 = vmatmul.mubr.msk.f32.vlgmr.msra.gmra.mrb[104].mxu0 %vm2932_vm2, %v8726_v49 }
 0xb58   : > { %v17496_v28 = vpop.eup %17495  ;;  %16517 = vmatpush3.msra.mxu0 %v20734_v59  ;;  %16518 = vmatprep.mubr.msk.f32.mxu0 %vm18287_vm0, %v22557_v10 }
 0xb59   : > { %v8694_v47 = vpop.xlane.xlu1 %8693  ;;  %v8728_v15 = vmul.f32 %v17496_v28, %v20773_v24  ;;  %16526 = vmatprep.subr.mxu0 %v22557_v10 }
 0xb5a   : > { %17501 = vrcp.f32 %v8694_v47 }
 0xb5b   : > { %16514 = vmatmul.mubr.msk.f32.vlgmr.msra.gmra.mrb[126].mxu1 %vm2932_vm2, %v8728_v15 }
 0xb5c   : > { %v17498_v22 = vpop.eup %17497  ;;  %16522 = vmatpush3.msra.mxu1 %v20732_v1  ;;  %16523 = vmatprep.mubr.msk.f32.mxu1 %vm18287_vm0, %v22557_v10 }
 0xb5d   : > { %v8697_v13 = vpop.xlane.xlu0 %8696  ;;  %v8730_v59 = vmul.f32 %v17498_v22, %v20778_v54  ;;  %16531 = vmatprep.subr.mxu1 %v22557_v10 }
 0xb5e   : > { %17503 = vrcp.f32 %v8697_v13 }
 0xb5f   : > { %16519 = vmatmul.mubr.msk.f32.vlgmr.msra.gmra.mrb[106].mxu0 %vm2932_vm2, %v8730_v59 }
 0xb60   : > { %v17500_v24 = vpop.eup %17499  ;;  %16527 = vmatpush3.msra.mxu0 %v20738_v46  ;;  %16528 = vmatprep.mubr.msk.f32.mxu0 %vm18287_vm0, %v22557_v10 }
 0xb61   : > { %v8700_v36 = vpop.xlane.xlu1 %8699  ;;  %v8732_v1 = vmul.f32 %v17500_v24, %v20783_v58  ;;  %16536 = vmatprep.subr.mxu0 %v22557_v10 }
 0xb62   : > { %17505 = vrcp.f32 %v8700_v36 }
 0xb63   : > { %16524 = vmatmul.mubr.msk.f32.vlgmr.msra.gmra.mrb[128].mxu1 %vm2932_vm2, %v8732_v1 }
 0xb64   : > { %v17502_v54 = vpop.eup %17501  ;;  %16532 = vmatpush3.msra.mxu1 %v20736_v56  ;;  %16533 = vmatprep.mubr.msk.f32.mxu1 %vm18287_vm0, %v22557_v10 }
 0xb65   : > { %v8703_v23 = vpop.xlane.xlu0 %8702  ;;  %v8734_v46 = vmul.f32 %v17502_v54, %v20788_v43  ;;  %16541 = vmatprep.subr.mxu1 %v22557_v10 }
 0xb66   : > { %17507 = vrcp.f32 %v8703_v23 }
 0xb67   : > { %16529 = vmatmul.mubr.msk.f32.vlgmr.msra.gmra.mrb[108].mxu0 %vm2932_vm2, %v8734_v46 }
 0xb68   : > { %v17504_v58 = vpop.eup %17503  ;;  %16537 = vmatpush3.msra.mxu0 %v20742_v2  ;;  %16538 = vmatprep.mubr.msk.f32.mxu0 %vm18287_vm0, %v22557_v10 }
 0xb69   : > { %v8706_v30 = vpop.xlane.xlu1 %8705  ;;  %v8736_v56 = vmul.f32 %v17504_v58, %v20793_v60  ;;  %16546 = vmatprep.subr.mxu0 %v22557_v10 }
 0xb6a   : > { %17509 = vrcp.f32 %v8706_v30 }
 0xb6b   : > { %16534 = vmatmul.mubr.msk.f32.vlgmr.msra.gmra.mrb[130].mxu1 %vm2932_vm2, %v8736_v56 }
 0xb6c   : > { %v17506_v43 = vpop.eup %17505  ;;  %16542 = vmatpush3.msra.mxu1 %v20740_v26  ;;  %16543 = vmatprep.mubr.msk.f32.mxu1 %vm18287_vm0, %v22557_v10 }
 0xb6d   : > { %v8709_v44 = vpop.xlane.xlu0 %8708  ;;  %v8738_v2 = vmul.f32 %v17506_v43, %v20798_v53  ;;  %16551 = vmatprep.subr.mxu1 %v22557_v10 }
 0xb6e   : > { %17511 = vrcp.f32 %v8709_v44 }
 0xb6f   : > { %16539 = vmatmul.mubr.msk.f32.vlgmr.msra.gmra.mrb[110].mxu0 %vm2932_vm2, %v8738_v2 }
 0xb70   : > { %v17508_v60 = vpop.eup %17507  ;;  %16547 = vmatpush3.msra.mxu0 %v20925_v27  ;;  %16548 = vmatprep.mubr.msk.f32.mxu0 %vm18287_vm0, %v22557_v10 }
 0xb71   : > { %v8712_v39 = vpop.xlane.xlu1 %8711  ;;  %v8740_v26 = vmul.f32 %v17508_v60, %v20805_v4  ;;  %16556 = vmatprep.subr.mxu0 %v22557_v10 }
 0xb72   : > { %17513 = vrcp.f32 %v8712_v39 }
 0xb73   : > { %16544 = vmatmul.mubr.msk.f32.vlgmr.msra.gmra.mrb[132].mxu1 %vm2932_vm2, %v8740_v26 }
 0xb74   : > { %v17510_v53 = vpop.eup %17509  ;;  %16552 = vmatpush3.msra.mxu1 %v20949_v34  ;;  %16553 = vmatprep.mubr.msk.f32.mxu1 %vm18287_vm0, %v22557_v10 }
 0xb75   : > { %v8715_v0 = vpop.xlane.xlu1 %8714  ;;  %v8742_v27 = vmul.f32 %v17510_v53, %v20811_v61  ;;  %16561 = vmatprep.subr.mxu1 %v22557_v10  ;;  %v9968_v61 = vld [vmem:[%s18848_s5 + $0x48] sm:$0xff] }
 0xb76   : > { %17515 = vrcp.f32 %v8715_v0 }
 0xb77   : > { %16549 = vmatmul.mubr.msk.f32.vlgmr.msra.gmra.mrb[112].mxu0 %vm2932_vm2, %v8742_v27 }
 0xb78   : > { %v17512_v4 = vpop.eup %17511  ;;  %16557 = vmatpush3.msra.mxu0 %v20939_v52  ;;  %16558 = vmatprep.mubr.msk.f32.mxu0 %vm18287_vm0, %v22557_v10 }
 0xb79   : > { %v8718_v20 = vpop.xlane.xlu0 %8717  ;;  %v9816_v9 = vpop.permute.xlu1 %9815  ;;  %v8744_v42 = vmul.f32 %v17512_v4, %v20819_v57  ;;  %16566 = vmatprep.subr.mxu0 %v22557_v10  ;;  %v16907_v57 = vpack.c.bf16 %v9968_v61, %v9967_v35 }
 0xb7a   : > { %17517 = vrcp.f32 %v8718_v20 }
 0xb7b   : > { %16554 = vmatmul.mubr.msk.f32.vlgmr.msra.gmra.mrb[134].mxu1 %vm2932_vm2, %v8744_v42 }
 0xb7c   : > { %v17514_v31 = vpop.eup %17513  ;;  %16562 = vmatpush3.msra.mxu1 %v9816_v9  ;;  %16563 = vmatprep.mubr.msk.f32.mxu1 %vm18287_vm0, %v22557_v10 }
 0xb7d   : > { %v9892_v52 = vpop.permute.xlu0 %9891  ;;  %v10183_v11 = vpop.permute.xlu1 %10182  ;;  %v8746_v34 = vmul.f32 %v17514_v31, %v20824_v62  ;;  %16603 = vmatprep.subr.mxu1 %v22557_v10 }
 0xb7f   : > { %16559 = vmatmul.mubr.msk.f32.vlgmr.msra.gmra.mrb[114].mxu0 %vm2932_vm2, %v8746_v34 }
 0xb80   : > { %v17516_v48 = vpop.eup %17515  ;;  %16567 = vmatpush3.msra.mxu0 %v9892_v52  ;;  %16568 = vmatprep.mubr.msk.f32.mxu0 %vm18287_vm0, %v22557_v10 }
 0xb81   : > { %v10181_v51 = vpop.permute.xlu0 %10180  ;;  %v10261_v12 = vpop.permute.xlu1 %10260  ;;  %v8748_v40 = vmul.f32 %v17516_v48, %v20828_v37  ;;  %16908 = vmatprep.subr.bf16.mxu0 %v16907_v57 }
 0xb83   : > { %16564 = vmatmul.mubr.msk.f32.vlgmr.msra.gmra.mrb[136].mxu1 %vm2932_vm2, %v8748_v40 }
 0xb84   : > { %v17518_v62 = vpop.eup %17517  ;;  %16604 = vmatpush3.xpose.msk.msra.mxu1 %vm1715_vm1, %v10183_v11  ;;  %16605 = vmatprep.mubr.msk.f32.mxu1 %vm18287_vm0, %v22557_v10 }
 0xb85   : > { %v10259_v18 = vpop.permute.xlu0 %10258  ;;  %v10339_v16 = vpop.permute.xlu1 %10338  ;;  %16608 = vmatprep.subr.mxu1 %v22557_v10  ;;  %v8750_v33 = vmul.f32 %v17518_v62, %v20832_v6 }
 0xb87   : > { %16569 = vmatmul.mubr.msk.f32.vlgmr.msra.gmra.mrb[116].mxu0 %vm2932_vm2, %v8750_v33  ;;  %16606 = vmatmul.mubr.msk.f32.vlgmr.msra.gmra.mrb[138].mxu1 %vm1715_vm1, %v10181_v51 }
 0xb88   : > { %16609 = vmatpush3.xpose.msk.msra.mxu1 %vm1715_vm1, %v10261_v12  ;;  %16610 = vmatprep.mubr.msk.f32.mxu1 %vm18287_vm0, %v22557_v10 }
 0xb89   : > { %v10337_v37 = vpop.permute.xlu0 %10336  ;;  %v10417_v50 = vpop.permute.xlu1 %10416  ;;  %16613 = vmatprep.subr.mxu1 %v22557_v10  ;;  %16910 = vmatpush3.bf16.msra.mxu0 %v16907_v57 }
 0xb8a   : > { %16912 = vmatprep.subr.bf16.mxu0 %v16911_v41 }
 0xb8b   : > { %16611 = vmatmul.mubr.msk.f32.vlgmr.msra.gmra.mrb[140].mxu1 %vm1715_vm1, %v10259_v18 }
 0xb8c   : > { %16614 = vmatpush3.xpose.msk.msra.mxu1 %vm1715_vm1, %v10339_v16  ;;  %16615 = vmatprep.mubr.msk.f32.mxu1 %vm18287_vm0, %v22557_v10 }
 0xb8d   : > { %v10415_v6 = vpop.permute.xlu0 %10414  ;;  %v10495_v63 = vpop.permute.xlu1 %10494  ;;  %16618 = vmatprep.subr.mxu1 %v22557_v10  ;;  %16914 = vmatpush3.bf16.msra.mxu0 %v16911_v41 }
 0xb8e   : > { %16653 = vmatprep.subr.mxu0 %v22557_v10 }
 0xb8f   : > { %16616 = vmatmul.mubr.msk.f32.vlgmr.msra.gmra.mrb[142].mxu1 %vm1715_vm1, %v10337_v37 }
 0xb90   : > { %16619 = vmatpush3.xpose.msk.msra.mxu1 %vm1715_vm1, %v10417_v50  ;;  %16620 = vmatprep.mubr.msk.f32.mxu1 %vm18287_vm0, %v22557_v10 }
 0xb91   : > { %v10493_v38 = vpop.permute.xlu0 %10492  ;;  %v10573_v8 = vpop.permute.xlu1 %10572  ;;  %16623 = vmatprep.subr.mxu1 %v22557_v10 }
 0xb93   : > { %16621 = vmatmul.mubr.msk.f32.vlgmr.msra.gmra.mrb[144].mxu1 %vm1715_vm1, %v10415_v6 }
 0xb94   : > { %16624 = vmatpush3.xpose.msk.msra.mxu1 %vm1715_vm1, %v10495_v63  ;;  %16625 = vmatprep.mubr.msk.f32.mxu1 %vm18287_vm0, %v22557_v10 }
 0xb95   : > { %v10571_v7 = vpop.permute.xlu0 %10570  ;;  %v10651_v17 = vpop.permute.xlu1 %10650  ;;  %16628 = vmatprep.subr.mxu1 %v22557_v10 }
 0xb97   : > { %16626 = vmatmul.mubr.msk.f32.vlgmr.msra.gmra.mrb[146].mxu1 %vm1715_vm1, %v10493_v38 }
 0xb98   : > { %16629 = vmatpush3.xpose.msk.msra.mxu1 %vm1715_vm1, %v10573_v8  ;;  %16630 = vmatprep.mubr.msk.f32.mxu1 %vm18287_vm0, %v22557_v10 }
 0xb99   : > { %v10649_v55 = vpop.permute.xlu0 %10648  ;;  %v10729_v14 = vpop.permute.xlu1 %10728  ;;  %16633 = vmatprep.subr.mxu1 %v22557_v10 }
 0xb9b   : > { %16631 = vmatmul.mubr.msk.f32.vlgmr.msra.gmra.mrb[148].mxu1 %vm1715_vm1, %v10571_v7 }
 0xb9c   : > { %16634 = vmatpush3.xpose.msk.msra.mxu1 %vm1715_vm1, %v10651_v17  ;;  %16635 = vmatprep.mubr.msk.f32.mxu1 %vm18287_vm0, %v22557_v10 }
 0xb9d   : > { %v10727_v29 = vpop.permute.xlu0 %10726  ;;  %v10807_v49 = vpop.permute.xlu1 %10806  ;;  %16638 = vmatprep.subr.mxu1 %v22557_v10 }
 0xb9f   : > { %16636 = vmatmul.mubr.msk.f32.vlgmr.msra.gmra.mrb[150].mxu1 %vm1715_vm1, %v10649_v55 }
 0xba0   : > { %16639 = vmatpush3.xpose.msk.msra.mxu1 %vm1715_vm1, %v10729_v14  ;;  %16640 = vmatprep.mubr.msk.f32.mxu1 %vm18287_vm0, %v22557_v10 }
 0xba1   : > { %v10805_v28 = vpop.permute.xlu0 %10804  ;;  %v10885_v47 = vpop.permute.xlu1 %10884  ;;  %16643 = vmatprep.subr.mxu1 %v22557_v10 }
 0xba3   : > { %16641 = vmatmul.mubr.msk.f32.vlgmr.msra.gmra.mrb[152].mxu1 %vm1715_vm1, %v10727_v29 }
 0xba4   : > { %16644 = vmatpush3.xpose.msk.msra.mxu1 %vm1715_vm1, %v10807_v49  ;;  %16645 = vmatprep.mubr.msk.f32.mxu1 %vm18287_vm0, %v22557_v10 }
 0xba5   : > { %v10883_v15 = vpop.permute.xlu0 %10882  ;;  %v10963_v22 = vpop.permute.xlu1 %10962  ;;  %16648 = vmatprep.subr.mxu1 %v22557_v10 }
 0xba7   : > { %16646 = vmatmul.mubr.msk.f32.vlgmr.msra.gmra.mrb[154].mxu1 %vm1715_vm1, %v10805_v28 }
 0xba8   : > { %16649 = vmatpush3.xpose.msk.msra.mxu1 %vm1715_vm1, %v10885_v47  ;;  %16650 = vmatprep.mubr.msk.f32.mxu1 %vm18287_vm0, %v22557_v10 }
 0xba9   : > { %v11041_v13 = vpop.permute.xlu0 %11040  ;;  %v21111_v59 = vpop.permute.xlu1 %10960  ;;  %16658 = vmatprep.subr.mxu1 %v22557_v10 }
 0xbab   : > { %16651 = vmatmul.mubr.msk.f32.vlgmr.msra.gmra.mrb[156].mxu1 %vm1715_vm1, %v10883_v15 }
 0xbac   : > { %16659 = vmatpush3.xpose.msk.msra.mxu1 %vm1715_vm1, %v11041_v13  ;;  %16660 = vmatprep.mubr.msk.f32.mxu1 %vm18287_vm0, %v22557_v10 }
 0xbad   : > { %v11039_v24 = vpop.permute.xlu0 %11038  ;;  %v21118_v36 = vpop.permute.xlu1 %11118  ;;  %16668 = vmatprep.subr.mxu1 %v22557_v10 }
 0xbaf   : > { %16661 = vmatmul.mubr.msk.f32.vlgmr.msra.gmra.mrb[158].mxu1 %vm1715_vm1, %v11039_v24 }
 0xbb0   : > { %16670 = vmatprep.mubr.msk.f32.mxu1 %vm18287_vm0, %v22557_v10 }
 0xbb1   : > { %v11197_v1 = vpop.permute.xlu0 %11196  ;;  %v21124_v54 = vpop.permute.xlu1 %11116 }
 0xbb2   : > { %16669 = vmatpush3.xpose.msk.msra.mxu1 %vm1715_vm1, %v11197_v1 }
 0xbb3   : > { %16678 = vmatprep.subr.mxu1 %v22557_v10 }
 0xbb5   : > { %v11195_v23 = vpop.permute.xlu0 %11194  ;;  %v21128_v46 = vpop.permute.xlu1 %11274 }
 0xbb6   : > { %16671 = vmatmul.mubr.msk.f32.vlgmr.msra.gmra.mrb[160].mxu1 %vm1715_vm1, %v11195_v23 }
 0xbb7   : > { %16680 = vmatprep.mubr.msk.f32.mxu1 %vm18287_vm0, %v22557_v10 }
 0xbb9   : > { %v11353_v58 = vpop.permute.xlu0 %11352  ;;  %v21133_v30 = vpop.permute.xlu1 %11272 }
 0xbba   : > { %16679 = vmatpush3.xpose.msk.msra.mxu1 %vm1715_vm1, %v11353_v58 }
 0xbbb   : > { %16688 = vmatprep.subr.mxu1 %v22557_v10 }
 0xbbd   : > { %v11351_v56 = vpop.permute.xlu0 %11350  ;;  %v11681_v43 = vpop.permute.xlu1 %11680 }
 0xbbe   : > { %16681 = vmatmul.mubr.msk.f32.vlgmr.msra.gmra.mrb[162].mxu1 %vm1715_vm1, %v11351_v56 }
 0xbbf   : > { %16689 = vmatpush3.msra.mxu1 %v11681_v43  ;;  %16690 = vmatprep.mubr.msk.f32.mxu1 %vm18287_vm0, %v22557_v10 }
 0xbc0   : > { %16698 = vmatprep.subr.mxu1 %v22557_v10 }
 0xbc1   : > { %v11605_v28 = vpop.permute.xlu0 %11604 }
 0xc1e   : > { %v8823_v44 = vpop.f32.mrb[122].mxu1 }
 0xc1f   : > { %v16495_v2 = vpop.f32.mrb[123].mxu1  ;;  %16579 = vmatprep.mubr.msk.f32.mxu0 %vm1715_vm1, %v8823_v44 }
 0xc22   : > { %v8899_v60 = vpop.f32.mrb[102].mxu0 }
 0xc23   : > { %v16500_v39 = vpop.f32.mrb[103].mxu0  ;;  %16580 = vmatmul.mubr.msk.f32.vlgmr.msra.gmra.mrb[86].mxu0 %vm1715_vm1, %v8899_v60 }
 0xc24   : > { %16654 = vmatpush3.xpose.msk.msra.mxu0 %vm1715_vm1, %v10963_v22 }
 0xc25   : > { %16663 = vmatprep.subr.mxu0 %v22557_v10 }
 0xc26   : > { %v8975_v26 = vpop.f32.mrb[124].mxu1 }
 0xc27   : > { %v16505_v53 = vpop.f32.mrb[125].mxu1  ;;  %16582 = vmatprep.mubr.msk.f32.mxu0 %vm1715_vm1, %v8975_v26 }
 0xc2a   : > { %v9051_v0 = vpop.f32.mrb[104].mxu0 }
 0xc2b   : > { %v16510_v27 = vpop.f32.mrb[105].mxu0  ;;  %16583 = vmatmul.mubr.msk.f32.gmra.mrb[88].mxu0 %vm1715_vm1, %v9051_v0 }
 0xc2e   : > { %v9127_v4 = vpop.f32.mrb[126].mxu1 }
 0xc2f   : > { %v16515_v20 = vpop.f32.mrb[127].mxu1  ;;  %16585 = vmatprep.mubr.msk.f32.mxu0 %vm1715_vm1, %v9127_v4 }
 0xc32   : > { %v9203_v9 = vpop.f32.mrb[106].mxu0 }
 0xc33   : > { %v16520_v42 = vpop.f32.mrb[107].mxu0  ;;  %16586 = vmatmul.mubr.msk.f32.gmra.mrb[90].mxu0 %vm1715_vm1, %v9203_v9 }
 0xc36   : > { %v9279_v35 = vpop.f32.mrb[128].mxu1 }
 0xc37   : > { %v16525_v61 = vpop.f32.mrb[129].mxu1  ;;  %16588 = vmatprep.mubr.msk.f32.mxu0 %vm1715_vm1, %v9279_v35 }
 0xc38   : > { %v21228_v61 = vpop.permute.xlu0 %11756 }
 0xc3a   : > { %v9355_v31 = vpop.f32.mrb[108].mxu0 }
 0xc3b   : > { %v16530_v52 = vpop.f32.mrb[109].mxu0  ;;  %16589 = vmatmul.mubr.msk.f32.gmra.mrb[92].mxu0 %vm1715_vm1, %v9355_v31 }
 0xc3e   : > { %v9431_v11 = vpop.f32.mrb[130].mxu1 }
 0xc3f   : > { %v16535_v34 = vpop.f32.mrb[131].mxu1  ;;  %16591 = vmatprep.mubr.msk.f32.mxu0 %vm1715_vm1, %v9431_v11 }
 0xc42   : > { %v9507_v57 = vpop.f32.mrb[110].mxu0 }
 0xc43   : > { %v16540_v48 = vpop.f32.mrb[111].mxu0  ;;  %16592 = vmatmul.mubr.msk.f32.gmra.mrb[94].mxu0 %vm1715_vm1, %v9507_v57 }
 0xc46   : > { %v9583_v51 = vpop.f32.mrb[132].mxu1 }
 0xc47   : > { %v16545_v12 = vpop.f32.mrb[133].mxu1  ;;  %16594 = vmatprep.mubr.msk.f32.mxu0 %vm1715_vm1, %v9583_v51 }
 0xc4a   : > { %v9659_v40 = vpop.f32.mrb[112].mxu0 }
 0xc4b   : > { %v16550_v3 = vpop.f32.mrb[113].mxu0  ;;  %16595 = vmatmul.mubr.msk.f32.gmra.mrb[96].mxu0 %vm1715_vm1, %v9659_v40 }
 0xc4e   : > { %v9735_v45 = vpop.f32.mrb[134].mxu1 }
 0xc4f   : > { %v16555_v62 = vpop.f32.mrb[135].mxu1  ;;  %16597 = vmatprep.mubr.msk.f32.mxu0 %vm1715_vm1, %v9735_v45 }
 0xc52   : > { %v9811_v18 = vpop.f32.mrb[114].mxu0 }
 0xc53   : > { %v16560_v16 = vpop.f32.mrb[115].mxu0  ;;  %16598 = vmatmul.mubr.msk.f32.gmra.mrb[98].mxu0 %vm1715_vm1, %v9811_v18 }
 0xc56   : > { %v9887_v33 = vpop.f32.mrb[136].mxu1 }
 0xc57   : > { %v16565_v41 = vpop.f32.mrb[137].mxu1  ;;  %16600 = vmatprep.mubr.msk.f32.mxu0 %vm1715_vm1, %v9887_v33 }
 0xc5a   : > { %v9963_v37 = vpop.f32.mrb[116].mxu0  ;;  %v21158_v50 = vpop.f32.mrb[138].mxu1 }
 0xc5b   : > { %v16570_v6 = vpop.f32.mrb[117].mxu0  ;;  %16601 = vmatmul.mubr.msk.f32.gmra.mrb[100].mxu0 %vm1715_vm1, %v9963_v37  ;;  %v16607_v63 = vpop.f32.mrb[139].mxu1  ;;  %v11428_v38 = vsel %vm2932_vm2, %v21158_v50, -inf }
 0xc5c   : > { %11429 = vmax.xlane.f32.xlu1 %v11428_v38  ;;  %16655 = vmatprep.mubr.msk.f32.mxu0 %vm18287_vm0, %v22557_v10 }
 0xc5e   : > { %v21165_v8 = vpop.f32.mrb[140].mxu1 }
 0xc5f   : > { %v16612_v7 = vpop.f32.mrb[141].mxu1  ;;  %16656 = vmatmul.mubr.msk.f32.vlgmr.msra.gmra.mrb[118].mxu0 %vm1715_vm1, %v21111_v59  ;;  %v11431_v17 = vsel %vm2932_vm2, %v21165_v8, -inf }
 0xc60   : > { %16664 = vmatpush3.xpose.msk.msra.mxu0 %vm1715_vm1, %v21118_v36  ;;  %11432 = vmax.xlane.f32.xlu0 %v11431_v17 }
 0xc61   : > { %16665 = vmatprep.mubr.msk.f32.mxu0 %vm18287_vm0, %v22557_v10  ;;  %16673 = vmatprep.subr.mxu0 %v22557_v10 }
 0xc62   : > { %v21176_v55 = vpop.f32.mrb[142].mxu1 }
 0xc63   : > { %v16617_v14 = vpop.f32.mrb[143].mxu1  ;;  %16666 = vmatmul.mubr.msk.f32.vlgmr.msra.gmra.mrb[120].mxu0 %vm1715_vm1, %v21124_v54  ;;  %v11434_v29 = vsel %vm2932_vm2, %v21176_v55, -inf }
 0xc64   : > { %16674 = vmatpush3.xpose.msk.msra.mxu0 %vm1715_vm1, %v21128_v46  ;;  %11435 = vmax.xlane.f32.xlu0 %v11434_v29 }
 0xc65   : > { %16675 = vmatprep.mubr.msk.f32.mxu0 %vm18287_vm0, %v22557_v10  ;;  %16683 = vmatprep.subr.mxu0 %v22557_v10 }
 0xc66   : > { %v10488_v49 = vpop.f32.mrb[144].mxu1 }
 0xc67   : > { %v16622_v47 = vpop.f32.mrb[145].mxu1  ;;  %16676 = vmatmul.mubr.msk.f32.vlgmr.msra.gmra.mrb[122].mxu0 %vm1715_vm1, %v21133_v30  ;;  %v11437_v15 = vsel %vm2932_vm2, %v10488_v49, -inf }
 0xc68   : > { %16684 = vmatpush3.msra.mxu0 %v11605_v28  ;;  %11438 = vmax.xlane.f32.xlu1 %v11437_v15 }
 0xc69   : > { %16685 = vmatprep.mubr.msk.f32.mxu0 %vm18287_vm0, %v22557_v10  ;;  %16693 = vmatprep.subr.mxu0 %v22557_v10 }
 0xc6a   : > { %v10566_v22 = vpop.f32.mrb[146].mxu1 }
 0xc6b   : > { %v16627_v13 = vpop.f32.mrb[147].mxu1  ;;  %v11440_v59 = vsel %vm2932_vm2, %v10566_v22, -inf }
 0xc6c   : > { %11441 = vmax.xlane.f32.xlu0 %v11440_v59 }
 0xc6e   : > { %v21194_v24 = vpop.f32.mrb[148].mxu1 }
 0xc6f   : > { %v16632_v36 = vpop.f32.mrb[149].mxu1 }
 0xc72   : > { %v21196_v1 = vpop.f32.mrb[150].mxu1 }
 0xc73   : > { %v16637_v54 = vpop.f32.mrb[151].mxu1  ;;  %v11446_v23 = vsel %vm2932_vm2, %v21196_v1, -inf }
 0xc74   : > { %11447 = vmax.xlane.f32.xlu0 %v11446_v23 }
 0xc76   : > { %v21200_v46 = vpop.f32.mrb[152].mxu1 }
 0xc77   : > { %v16642_v58 = vpop.f32.mrb[153].mxu1  ;;  %v11449_v4 = vsel %vm2932_vm2, %v21200_v46, -inf }
 0xc79   : > { %11832 = vrot.lane.b32.xlu1 %v22608_v32, %s18290_s11  ;;  %v11443_v32 = vsel %vm2932_vm2, %v21194_v24, -inf }
 0xc7a   : > { %v21204_v30 = vpop.f32.mrb[154].mxu1 }
 0xc7b   : > { %v16647_v56 = vpop.f32.mrb[155].mxu1  ;;  %v11452_v43 = vsel %vm2932_vm2, %v21204_v30, -inf }
 0xc7c   : > { %11453 = vmax.xlane.f32.xlu0 %v11452_v43 }
 0xc7e   : > { %v21208_v44 = vpop.f32.mrb[156].mxu1 }
 0xc7f   : > { %v16652_v2 = vpop.f32.mrb[157].mxu1  ;;  %v11455_v20 = vsel %vm2932_vm2, %v21208_v44, -inf }
 0xc82   : > { %v21210_v60 = vpop.f32.mrb[158].mxu1 }
 0xc83   : > { %v16662_v39 = vpop.f32.mrb[159].mxu1  ;;  %v11461_v9 = vsel %vm2932_vm2, %v21210_v60, -inf }
 0xc89   : > { %v21212_v26 = vpop.f32.mrb[160].mxu1 }
 0xc8a   : > { %v16672_v53 = vpop.f32.mrb[161].mxu1  ;;  %v11467_v42 = vsel %vm2932_vm2, %v21212_v26, -inf }
 0xc91   : > { %v21214_v0 = vpop.f32.mrb[162].mxu1 }
 0xc92   : > { %v16682_v27 = vpop.f32.mrb[163].mxu1  ;;  %v11473_v35 = vsel %vm2932_vm2, %v21214_v0, -inf }
 0xc9d   : > { %11444 = vmax.xlane.f32.xlu1 %v11443_v32 }
 0xca1   : > { %11450 = vmax.xlane.f32.xlu1 %v11449_v4 }
 0xca5   : > { %11456 = vmax.xlane.f32.xlu1 %v11455_v20 }
 0xca9   : > { %11462 = vmax.xlane.f32.xlu1 %v11461_v9 }
 0xcad   : > { %11468 = vmax.xlane.f32.xlu1 %v11467_v42 }
 0xcb1   : > { %11474 = vmax.xlane.f32.xlu1 %v11473_v35 }
 0xce9   : > { %v11430_v31 = vpop.xlane.xlu1 %11429 }
 0xcea   : > { %v11476_v52 = vsub.f32 %v21158_v50, %v11430_v31 }
 0xcec   : > { %v11492_v11 = vmul.f32 1.442695, %v11476_v52 }
 0xced   : > { %v11433_v34 = vpop.xlane.xlu0 %11432 }
 0xcee   : > { %17519 = vpow2.f32 %v11492_v11  ;;  %v11477_v57 = vsub.f32 %v21165_v8, %v11433_v34 }
 0xcf0   : > { %v11494_v48 = vmul.f32 1.442695, %v11477_v57 }
 0xcf1   : > { %v11436_v51 = vpop.xlane.xlu0 %11435 }
 0xcf2   : > { %17521 = vpow2.f32 %v11494_v48  ;;  %v11478_v12 = vsub.f32 %v21176_v55, %v11436_v51 }
 0xcf4   : > { %v11496_v40 = vmul.f32 1.442695, %v11478_v12 }
 0xcf5   : > { %v11439_v3 = vpop.xlane.xlu1 %11438 }
 0xcf6   : > { %17523 = vpow2.f32 %v11496_v40  ;;  %v11479_v45 = vsub.f32 %v10488_v49, %v11439_v3  ;;  %v22651_v3 = vld [vmem:[#allocation79_spill] sm:$0xff] }
 0xcf8   : > { %v21233_v62 = vpop.eup %17519  ;;  %v11498_v18 = vmul.f32 1.442695, %v11479_v45  ;;  %v22652_v45 = vld [vmem:[#allocation82_spill] sm:$0xff] }
 0xcf9   : > { %v11442_v16 = vpop.xlane.xlu0 %11441  ;;  %v11524_v33 = vsel %vm2932_vm2, %v21233_v62, 0.0  ;;  %v21258_v15 = vpop.permute.xlu1 %11832 }
 0xcfa   : > { %17525 = vpow2.f32 %v11498_v18  ;;  %v11480_v41 = vsub.f32 %v10566_v22, %v11442_v16  ;;  %11525 = vadd.xlane.f32.xlu0 %v11524_v33  ;;  %v22653_v18 = vld [vmem:[#allocation84_spill] sm:$0xff] }
 0xcfb   : > { %v22654_v16 = vld [vmem:[#allocation76_spill] sm:$0xff] }
 0xcfc   : > { %v21237_v37 = vpop.eup %17521  ;;  %v11500_v50 = vmul.f32 1.442695, %v11480_v41 }
 0xcfd   : > { %v11527_v6 = vsel %vm2932_vm2, %v21237_v37, 0.0 }
 0xcfe   : > { %17527 = vpow2.f32 %v11500_v50  ;;  %11528 = vadd.xlane.f32.xlu1 %v11527_v6 }
 0xd00   : > { %v21241_v63 = vpop.eup %17523 }
 0xd01   : > { %v11448_v38 = vpop.xlane.xlu0 %11447  ;;  %v11530_v8 = vsel %vm2932_vm2, %v21241_v63, 0.0 }
 0xd02   : > { %v11482_v7 = vsub.f32 %v21196_v1, %v11448_v38  ;;  %11531 = vadd.xlane.f32.xlu0 %v11530_v8 }
 0xd04   : > { %v21246_v17 = vpop.eup %17525  ;;  %v11504_v55 = vmul.f32 1.442695, %v11482_v7 }
 0xd05   : > { %v11533_v14 = vsel %vm2932_vm2, %v21246_v17, 0.0 }
 0xd06   : > { %17529 = vpow2.f32 %v11504_v55  ;;  %11534 = vadd.xlane.f32.xlu1 %v11533_v14 }
 0xd08   : > { %v21250_v29 = vpop.eup %17527 }
 0xd09   : > { %v11536_v49 = vsel %vm2932_vm2, %v21250_v29, 0.0  ;;  %v11454_v22 = vpop.xlane.xlu0 %11453 }
 0xd0a   : > { %11537 = vadd.xlane.f32.xlu0 %v11536_v49  ;;  %v11484_v36 = vsub.f32 %v21204_v30, %v11454_v22 }
 0xd0c   : > { %v11508_v58 = vmul.f32 1.442695, %v11484_v36 }
 0xd10   : > { %v21254_v28 = vpop.eup %17529 }
 0xd11   : > { %v11542_v47 = vsel %vm2932_vm2, %v21254_v28, 0.0 }
 0xd12   : > { %11543 = vadd.xlane.f32.xlu0 %v11542_v47 }
 0xd2a   : > { %v11445_v13 = vpop.xlane.xlu1 %11444 }
 0xd2b   : > { %v11481_v59 = vsub.f32 %v21194_v24, %v11445_v13  ;;  %v22655_v13 = vld [vmem:[#allocation78_spill] sm:$0xff] }
 0xd2d   : > { %v11502_v1 = vmul.f32 1.442695, %v11481_v59 }
 0xd2e   : > { %v11451_v54 = vpop.xlane.xlu1 %11450 }
 0xd2f   : > { %17531 = vpow2.f32 %v11502_v1  ;;  %v11483_v23 = vsub.f32 %v21200_v46, %v11451_v54 }
 0xd31   : > { %v11506_v56 = vmul.f32 1.442695, %v11483_v23 }
 0xd32   : > { %v21263_v43 = vpop.f32.mrb[118].mxu0  ;;  %v11457_v2 = vpop.xlane.xlu1 %11456 }
 0xd33   : > { %17533 = vpow2.f32 %v11506_v56  ;;  %v11485_v39 = vsub.f32 %v21208_v44, %v11457_v2  ;;  %v16657_v53 = vpop.f32.mrb[119].mxu0  ;;  %v11458_v51 = vsel %vm2932_vm2, %v21263_v43, -inf }
 0xd34   : > { %17535 = vpow2.f32 %v11508_v58 }
 0xd35   : > { %v11510_v27 = vmul.f32 1.442695, %v11485_v39 }
 0xd36   : > { %v21266_v32 = vpop.f32.mrb[120].mxu0  ;;  %v11463_v24 = vpop.xlane.xlu1 %11462 }
 0xd37   : > { %17537 = vpow2.f32 %v11510_v27  ;;  %v11487_v30 = vsub.f32 %v21210_v60, %v11463_v24  ;;  %v16667_v4 = vpop.f32.mrb[121].mxu0  ;;  %v11464_v12 = vsel %vm2932_vm2, %v21266_v32, -inf }
 0xd39   : > { %v21269_v20 = vpop.eup %17531  ;;  %v11514_v46 = vmul.f32 1.442695, %v11487_v30  ;;  %v22657_v30 = vld [vmem:[#allocation81_spill] sm:$0xff] }
 0xd3a   : > { %v21271_v9 = vpop.f32.mrb[122].mxu0  ;;  %v11539_v42 = vsel %vm2932_vm2, %v21269_v20, 0.0  ;;  %v11469_v33 = vpop.xlane.xlu1 %11468 }
 0xd3b   : > { %17539 = vpow2.f32 %v11514_v46  ;;  %v16677_v44 = vpop.f32.mrb[123].mxu0  ;;  %11540 = vadd.xlane.f32.xlu1 %v11539_v42  ;;  %v11470_v40 = vsel %vm2932_vm2, %v21271_v9, -inf  ;;  %v11489_v41 = vsub.f32 %v21212_v26, %v11469_v33 }
 0xd3d   : > { %v21275_v35 = vpop.eup %17533  ;;  %v11518_v50 = vmul.f32 1.442695, %v11489_v41 }
 0xd3e   : > { %v11545_v31 = vsel %vm2932_vm2, %v21275_v35, 0.0  ;;  %v21279_v52 = vpop.eup %17535 }
 0xd3f   : > { %11546 = vadd.xlane.f32.xlu1 %v11545_v31  ;;  %v11548_v34 = vsel %vm2932_vm2, %v21279_v52, 0.0  ;;  %17541 = vpow2.f32 %v11518_v50 }
 0xd41   : > { %v21281_v60 = vpop.eup %17537 }
 0xd42   : > { %v11551_v11 = vsel %vm2932_vm2, %v21281_v60, 0.0 }
 0xd43   : > { %11552 = vadd.xlane.f32.xlu0 %v11551_v11  ;;  %11549 = vadd.xlane.f32.xlu1 %v11548_v34  ;;  %v22658_v11 = vld [vmem:[#allocation83_spill] sm:$0xff] }
 0xd45   : > { %v21287_v57 = vpop.eup %17539 }
 0xd46   : > { %v11557_v48 = vsel %vm2932_vm2, %v21287_v57, 0.0 }
 0xd47   : > { %11558 = vadd.xlane.f32.xlu0 %v11557_v48 }
 0xd4b   : > { %11459 = vmax.xlane.f32.xlu0 %v11458_v51 }
 0xd4f   : > { %11465 = vmax.xlane.f32.xlu0 %v11464_v12 }
 0xd53   : > { %11471 = vmax.xlane.f32.xlu0 %v11470_v40 }
 0xd54   : > { %11984 = vrot.lane.b32.xlu1 %v22602_v5, %s18290_s11  ;;  %v21310_v5 = vpop.eup %17541 }
 0xd55   : > { %v11563_v38 = vsel %vm2932_vm2, %v21310_v5, 0.0 }
 0xd58   : > { %12136 = vrot.lane.b32.xlu1 %v22603_v25, %s18290_s11  ;;  %v11475_v25 = vpop.xlane.xlu1 %11474 }
 0xd5c   : > { %12288 = vrot.lane.b32.xlu1 %v22651_v3, %s18290_s11 }
 0xd60   : > { %12364 = vrot.lane.b32.xlu1 %v22652_v45, %s18290_s11 }
 0xd64   : > { %12516 = vrot.lane.b32.xlu1 %v22653_v18, %s18290_s11 }
 0xd69   : > { %11908 = vrot.lane.b32.xlu0 %v22654_v16, %s18290_s11 }
 0xd87   : > { %v11526_v6 = vpop.xlane.xlu0 %11525 }
 0xd88   : > { %17543 = vrcp.f32 %v11526_v6  ;;  %11564 = vadd.xlane.f32.xlu0 %v11563_v38 }
 0xd8b   : > { %v11529_v8 = vpop.xlane.xlu1 %11528 }
 0xd8c   : > { %17545 = vrcp.f32 %v11529_v8 }
 0xd8f   : > { %v11532_v7 = vpop.xlane.xlu0 %11531 }
 0xd90   : > { %17547 = vrcp.f32 %v11532_v7 }
 0xd92   : > { %v17544_v55 = vpop.eup %17543 }
 0xd93   : > { %v11573_v14 = vmul.f32 %v17544_v55, %v21233_v62  ;;  %v11535_v49 = vpop.xlane.xlu1 %11534 }
 0xd94   : > { %17549 = vrcp.f32 %v11535_v49 }
 0xd95   : > { %16686 = vmatmul.mubr.msk.f32.vlgmr.msra.gmra.mrb[124].mxu0 %vm2932_vm2, %v11573_v14 }
 0xd96   : > { %v17546_v26 = vpop.eup %17545  ;;  %16694 = vmatpush3.msra.mxu0 %v21228_v61  ;;  %16695 = vmatprep.mubr.msk.f32.mxu0 %vm18287_vm0, %v22557_v10 }
 0xd97   : > { %v11575_v47 = vmul.f32 %v17546_v26, %v21237_v37  ;;  %16703 = vmatprep.subr.mxu0 %v22557_v10  ;;  %v11538_v1 = vpop.xlane.xlu0 %11537 }
 0xd99   : > { %16691 = vmatmul.mubr.msk.f32.vlgmr.msra.gmra.mrb[164].mxu1 %vm2932_vm2, %v11575_v47 }
 0xd9a   : > { %v17548_v22 = vpop.eup %17547  ;;  %16699 = vmatpush3.msra.mxu1 %v21258_v15  ;;  %16700 = vmatprep.mubr.msk.f32.mxu1 %vm18287_vm0, %v22557_v10 }
 0xd9b   : > { %v11577_v62 = vmul.f32 %v17548_v22, %v21241_v63  ;;  %16708 = vmatprep.subr.mxu1 %v22557_v10  ;;  %v11491_v63 = vsub.f32 %v21214_v0, %v11475_v25  ;;  %v22656_v0 = vld [vmem:[#allocation80_spill] sm:$0xff] }
 0xd9d   : > { %16696 = vmatmul.mubr.msk.f32.vlgmr.msra.gmra.mrb[126].mxu0 %vm2932_vm2, %v11577_v62  ;;  %v11522_v15 = vmul.f32 1.442695, %v11491_v63 }
 0xd9e   : > { %v17550_v61 = vpop.eup %17549  ;;  %12060 = vrot.lane.b32.xlu0 %v22655_v13, %s18290_s11  ;;  %16705 = vmatprep.mubr.msk.f32.mxu0 %vm18287_vm0, %v22557_v10 }
 0xd9f   : > { %v11579_v37 = vmul.f32 %v17550_v61, %v21246_v17  ;;  %17551 = vpow2.f32 %v11522_v15  ;;  %v11544_v23 = vpop.xlane.xlu0 %11543 }
 0xda1   : > { %16701 = vmatmul.mubr.msk.f32.vlgmr.msra.gmra.mrb[166].mxu1 %vm2932_vm2, %v11579_v37 }
 0xda2   : > { %16710 = vmatprep.mubr.msk.f32.mxu1 %vm18287_vm0, %v22557_v10 }
 0xda9   : > { %v21337_v59 = vpop.eup %17551 }
 0xdaa   : > { %v11569_v36 = vsel %vm2932_vm2, %v21337_v59, 0.0 }
 0xdbd   : > { %11570 = vadd.xlane.f32.xlu0 %v11569_v36 }
 0xdc8   : > { %v11541_v54 = vpop.xlane.xlu1 %11540 }
 0xdc9   : > { %17553 = vrcp.f32 %v11541_v54 }
 0xdcc   : > { %v11547_v17 = vpop.xlane.xlu1 %11546 }
 0xdcd   : > { %17555 = vrcp.f32 %v11547_v17 }
 0xdd0   : > { %v11553_v58 = vpop.xlane.xlu0 %11552  ;;  %v21341_v56 = vpop.xlane.xlu1 %11549 }
 0xdd1   : > { %17557 = vrcp.f32 %v11553_v58 }
 0xdd2   : > { %17559 = vrcp.f32 %v11538_v1 }
 0xdd3   : > { %v17554_v2 = vpop.eup %17553  ;;  %12212 = vrot.lane.b32.xlu0 %v22656_v0, %s18290_s11  ;;  %v12821_v0 = vld [vmem:[%s18848_s5 + $0x68] sm:$0xff] }
 0xdd4   : > { %v11583_v39 = vmul.f32 %v17554_v2, %v21269_v20  ;;  %v11559_v53 = vpop.xlane.xlu0 %11558  ;;  %v11985_v27 = vpop.permute.xlu1 %11984  ;;  %v12820_v2 = vld [vmem:[%s18848_s5 + $0x60] sm:$0xff] }
 0xdd5   : > { %16709 = vmatpush3.msra.mxu1 %v11985_v27  ;;  %v16915_v27 = vpack.c.bf16 %v12821_v0, %v12820_v2 }
 0xdd6   : > { %16711 = vmatmul.mubr.msk.f32.vlgmr.msra.gmra.mrb[168].mxu1 %vm2932_vm2, %v11583_v39  ;;  %16718 = vmatprep.subr.mxu1 %v22557_v10 }
 0xdd7   : > { %v17556_v24 = vpop.eup %17555  ;;  %12440 = vrot.lane.b32.xlu0 %v22657_v30, %s18290_s11  ;;  %16720 = vmatprep.mubr.msk.f32.mxu1 %vm18287_vm0, %v22557_v10  ;;  %v12823_v30 = vld [vmem:[%s18848_s5 + $0x78] sm:$0xff] }
 0xdd8   : > { %v11587_v4 = vmul.f32 %v17556_v24, %v21275_v35  ;;  %v11460_v46 = vpop.xlane.xlu0 %11459  ;;  %v12137_v42 = vpop.permute.xlu1 %12136  ;;  %v12822_v24 = vld [vmem:[%s18848_s5 + $0x70] sm:$0xff] }
 0xdd9   : > { %v11486_v20 = vsub.f32 %v21263_v43, %v11460_v46  ;;  %16719 = vmatpush3.msra.mxu1 %v12137_v42 }
 0xdda   : > { %16721 = vmatmul.mubr.msk.f32.vlgmr.msra.gmra.mrb[170].mxu1 %vm2932_vm2, %v11587_v4  ;;  %16728 = vmatprep.subr.mxu1 %v22557_v10 }
 0xddb   : > { %v17558_v44 = vpop.eup %17557  ;;  %v11512_v31 = vmul.f32 1.442695, %v11486_v20  ;;  %12592 = vrot.lane.b32.xlu0 %v22658_v11, %s18290_s11  ;;  %16730 = vmatprep.mubr.msk.f32.mxu1 %vm18287_vm0, %v22557_v10  ;;  %v16919_v20 = vpack.c.bf16 %v12823_v30, %v12822_v24  ;;  %v17879_v24 = vld [vmem:[#allocation2 + $0x30] sm:$0xff] }
 0xddc   : > { %v11591_v34 = vmul.f32 %v17558_v44, %v21281_v60  ;;  %v11466_v35 = vpop.xlane.xlu0 %11465  ;;  %v12289_v48 = vpop.permute.xlu1 %12288 }
 0xddd   : > { %17561 = vpow2.f32 %v11512_v31  ;;  %v11488_v43 = vsub.f32 %v21266_v32, %v11466_v35  ;;  %16729 = vmatpush3.msra.mxu1 %v12289_v48  ;;  %v17560_v40 = vpop.eup %17559 }
 0xdde   : > { %16731 = vmatmul.mubr.msk.f32.vlgmr.msra.gmra.mrb[172].mxu1 %vm2932_vm2, %v11591_v34  ;;  %16738 = vmatprep.subr.mxu1 %v22557_v10  ;;  %v11581_v32 = vmul.f32 %v17560_v40, %v21250_v29 }
 0xddf   : > { %v11516_v51 = vmul.f32 1.442695, %v11488_v43  ;;  %12744 = vrot.lane.b32.xlu0 %v22613_v21, %s18290_s11  ;;  %16740 = vmatprep.mubr.msk.f32.mxu1 %vm18287_vm0, %v22557_v10 }
 0xde0   : > { %v11472_v12 = vpop.xlane.xlu0 %11471  ;;  %v12365_v55 = vpop.permute.xlu1 %12364 }
 0xde1   : > { %17563 = vpow2.f32 %v11516_v51  ;;  %v11490_v60 = vsub.f32 %v21271_v9, %v11472_v12 }
 0xde3   : > { %v11520_v3 = vmul.f32 1.442695, %v11490_v60 }
 0xde4   : > { %v11909_v45 = vpop.permute.xlu0 %11908  ;;  %v12517_v36 = vpop.permute.xlu1 %12516 }
 0xde5   : > { %17565 = vpow2.f32 %v11520_v3  ;;  %16704 = vmatpush3.msra.mxu0 %v11909_v45 }
 0xde6   : > { %16706 = vmatmul.mubr.msk.f32.vlgmr.msra.gmra.mrb[128].mxu0 %vm2932_vm2, %v11581_v32  ;;  %16713 = vmatprep.subr.mxu0 %v22557_v10  ;;  %17567 = vrcp.f32 %v11544_v23 }
 0xde7   : > { %v21372_v18 = vpop.eup %17561  ;;  %16715 = vmatprep.mubr.msk.f32.mxu0 %vm18287_vm0, %v22557_v10  ;;  %17569 = vrcp.f32 %v21341_v56 }
 0xde8   : > { %v11554_v21 = vsel %vm2932_vm2, %v21372_v18, 0.0  ;;  %17571 = vrcp.f32 %v11559_v53 }
 0xde9   : > { %11555 = vadd.xlane.f32.xlu1 %v11554_v21 }
 0xdeb   : > { %v21378_v9 = vpop.eup %17563 }
 0xdec   : > { %v11560_v29 = vsel %vm2932_vm2, %v21378_v9, 0.0 }
 0xded   : > { %11561 = vadd.xlane.f32.xlu1 %v11560_v29 }
 0xdef   : > { %v21382_v16 = vpop.eup %17565 }
 0xdf0   : > { %v11566_v33 = vsel %vm2932_vm2, %v21382_v16, 0.0  ;;  %v17568_v50 = vpop.eup %17567 }
 0xdf1   : > { %11567 = vadd.xlane.f32.xlu1 %v11566_v33  ;;  %v11585_v25 = vmul.f32 %v17568_v50, %v21254_v28 }
 0xe02   : > { %12668 = vrot.lane.b32.xlu1 %v22600_v19, %s18290_s11  ;;  %v17570_v19 = vpop.eup %17569 }
 0xe03   : > { %v11589_v8 = vmul.f32 %v17570_v19, %v21279_v52  ;;  %v17572_v28 = vpop.eup %17571  ;;  %v22659_v19 = vld [vmem:[#allocation44_spill] sm:$0xff] }
 0xe04   : > { %v11595_v14 = vmul.f32 %v17572_v28, %v21287_v57 }
 0xe15   : > { %v11565_v41 = vpop.xlane.xlu0 %11564 }
 0xe16   : > { %17573 = vrcp.f32 %v11565_v41 }
 0xe19   : > { %v12061_v6 = vpop.permute.xlu0 %12060 }
 0xe1a   : > { %16714 = vmatpush3.msra.mxu0 %v12061_v6 }
 0xe1b   : > { %16716 = vmatmul.mubr.msk.f32.vlgmr.msra.gmra.mrb[130].mxu0 %vm2932_vm2, %v11585_v25  ;;  %16723 = vmatprep.subr.mxu0 %v22557_v10 }
 0xe1c   : > { %16725 = vmatprep.mubr.msk.f32.mxu0 %vm18287_vm0, %v22557_v10 }
 0xe20   : > { %v17574_v26 = vpop.eup %17573 }
 0xe21   : > { %v11599_v52 = vmul.f32 %v17574_v26, %v21310_v5 }
 0xe4a   : > { %v11571_v38 = vpop.xlane.xlu0 %11570 }
 0xe4b   : > { %17575 = vrcp.f32 %v11571_v38  ;;  %v17871_v38 = vld [vmem:[%s18867_s14 + $0x8] sm:$0x7] }
 0xe4e   : > { %v12213_v7 = vpop.permute.xlu0 %12212 }
 0xe4f   : > { %16724 = vmatpush3.msra.mxu0 %v12213_v7 }
 0xe50   : > { %16726 = vmatmul.mubr.msk.f32.vlgmr.msra.gmra.mrb[132].mxu0 %vm2932_vm2, %v11589_v8  ;;  %16733 = vmatprep.subr.mxu0 %v22557_v10  ;;  %v21447_v8 = vrot.slane %v17871_v38, %v22659_v19 }
 0xe51   : > { %16734 = vmatpush3.msra.mxu0 %v12365_v55  ;;  %16735 = vmatprep.mubr.msk.f32.mxu0 %vm18287_vm0, %v22557_v10 }
 0xe52   : > { %v12441_v49 = vpop.permute.xlu0 %12440  ;;  %16743 = vmatprep.subr.mxu0 %v22557_v10 }
 0xe53   : > { %16739 = vmatpush3.msra.mxu1 %v12441_v49  ;;  %v17872_v49 = vld [vmem:[#allocation2 + $0x8] sm:$0xff] }
 0xe54   : > { %16741 = vmatmul.mubr.msk.f32.vlgmr.msra.gmra.mrb[174].mxu1 %vm2932_vm2, %v11595_v14  ;;  %16748 = vmatprep.subr.mxu1 %v22557_v10 }
 0xe55   : > { %16750 = vmatprep.mubr.msk.f32.mxu1 %vm18287_vm0, %v22557_v10  ;;  %v17576_v22 = vpop.eup %17575 }
 0xe56   : > { %v12593_v47 = vpop.permute.xlu0 %12592  ;;  %v11603_v57 = vmul.f32 %v17576_v22, %v21337_v59 }
 0xe57   : > { %16749 = vmatpush3.msra.mxu1 %v12593_v47 }
 0xe58   : > { %16751 = vmatmul.mubr.msk.f32.vlgmr.msra.gmra.mrb[176].mxu1 %vm2932_vm2, %v11599_v52  ;;  %16758 = vmatprep.subr.mxu1 %v22557_v10  ;;  %v17873_v52 = vld [vmem:[#allocation2] sm:$0xff] }
 0xe59   : > { %16760 = vmatprep.mubr.msk.f32.mxu1 %vm18287_vm0, %v22557_v10 }
 0xe5a   : > { %v12745_v62 = vpop.permute.xlu0 %12744 }
 0xe5b   : > { %16759 = vmatpush3.msra.mxu1 %v12745_v62 }
 0xe5c   : > { %16761 = vmatmul.mubr.msk.f32.vlgmr.msra.gmra.mrb[178].mxu1 %vm2932_vm2, %v11603_v57 }
 0xe5d   : > { %13435 = vmatprep.mubr.f32.mxu1 %v22557_v10 }
 0xe68   : > { %v11676_v61 = vpop.f32.mrb[124].mxu0 }
 0xe69   : > { %v16687_v5 = vpop.f32.mrb[125].mxu0 }
 0xe6a   : > { %v17874_v5 = vld [vmem:[#allocation2 + $0x18] sm:$0xff] }
 0xe6c   : > { %v11752_v13 = vpop.f32.mrb[164].mxu1 }
 0xe6d   : > { %v16692_v37 = vpop.f32.mrb[165].mxu1 }
 0xe6e   : > { %v17875_v37 = vld [vmem:[#allocation2 + $0x10] sm:$0xff] }
 0xe70   : > { %v11828_v63 = vpop.f32.mrb[126].mxu0 }
 0xe71   : > { %v16697_v15 = vpop.f32.mrb[127].mxu0 }
 0xe74   : > { %v11904_v1 = vpop.f32.mrb[166].mxu1 }
 0xe75   : > { %v16702_v54 = vpop.f32.mrb[167].mxu1 }
 0xe76   : > { %v11556_v23 = vpop.xlane.xlu1 %11555 }
 0xe77   : > { %17577 = vrcp.f32 %v11556_v23  ;;  %v17876_v23 = vld [vmem:[#allocation2 + $0x28] sm:$0xff] }
 0xe7a   : > { %v11562_v59 = vpop.xlane.xlu1 %11561 }
 0xe7b   : > { %17579 = vrcp.f32 %v11562_v59 }
 0xe7e   : > { %v11568_v17 = vpop.xlane.xlu1 %11567 }
 0xe7f   : > { %17581 = vrcp.f32 %v11568_v17  ;;  %v17877_v17 = vld [vmem:[#allocation2 + $0x20] sm:$0xff] }
 0xe81   : > { %v17578_v58 = vpop.eup %17577 }
 0xe82   : > { %v11593_v56 = vmul.f32 %v17578_v58, %v21372_v18  ;;  %v12669_v4 = vpop.permute.xlu1 %12668 }
 0xe84   : > { %16736 = vmatmul.mubr.msk.f32.vlgmr.msra.gmra.mrb[134].mxu0 %vm2932_vm2, %v11593_v56 }
 0xe85   : > { %v17580_v39 = vpop.eup %17579  ;;  %16744 = vmatpush3.msra.mxu0 %v12517_v36  ;;  %16745 = vmatprep.mubr.msk.f32.mxu0 %vm18287_vm0, %v22557_v10 }
 0xe86   : > { %v11597_v53 = vmul.f32 %v17580_v39, %v21378_v9  ;;  %16753 = vmatprep.subr.mxu0 %v22557_v10 }
 0xe88   : > { %16746 = vmatmul.mubr.msk.f32.vlgmr.msra.gmra.mrb[136].mxu0 %vm2932_vm2, %v11597_v53  ;;  %v17878_v53 = vld [vmem:[#allocation2 + $0x38] sm:$0xff] }
 0xe89   : > { %v17582_v46 = vpop.eup %17581  ;;  %16754 = vmatpush3.msra.mxu0 %v12669_v4  ;;  %16755 = vmatprep.mubr.msk.f32.mxu0 %vm18287_vm0, %v22557_v10 }
 0xe8a   : > { %v11601_v42 = vmul.f32 %v17582_v46, %v21382_v16  ;;  %16916 = vmatprep.subr.bf16.mxu0 %v16915_v27 }
 0xe8c   : > { %16756 = vmatmul.mubr.msk.f32.vlgmr.msra.gmra.mrb[138].mxu0 %vm2932_vm2, %v11601_v42 }
 0xe8d   : > { %16918 = vmatpush3.bf16.msra.mxu0 %v16915_v27  ;;  %16771 = vmatprep.mubr.msk.f32.mxu0 %vm1715_vm1, %v11676_v61 }
 0xe8e   : > { %16920 = vmatprep.subr.bf16.mxu0 %v16919_v20 }
 0xe91   : > { %16922 = vmatpush3.bf16.msra.mxu0 %v16919_v20 }
 0xe94   : > { %16772 = vmatmul.mubr.msk.f32.vlgmr.msra.gmra.mrb[86].mxu0 %vm1715_vm1, %v11752_v13 }
 0xe95   : > { %16774 = vmatprep.mubr.msk.f32.mxu0 %vm1715_vm1, %v11828_v63 }
 0xe98   : > { %16775 = vmatmul.mubr.msk.f32.gmra.mrb[88].mxu0 %vm1715_vm1, %v11904_v1 }
 0xea9   : > { %v12056_v44 = vpop.f32.mrb[168].mxu1 }
 0xeaa   : > { %v16712_v31 = vpop.f32.mrb[169].mxu1 }
 0xead   : > { %v12208_v11 = vpop.f32.mrb[170].mxu1 }
 0xeae   : > { %v16722_v34 = vpop.f32.mrb[171].mxu1 }
 0xeb1   : > { %v12360_v35 = vpop.f32.mrb[172].mxu1 }
 0xeb2   : > { %v16732_v48 = vpop.f32.mrb[173].mxu1 }
 0xeb9   : > { %v11980_v43 = vpop.f32.mrb[128].mxu0 }
 0xeba   : > { %v16707_v51 = vpop.f32.mrb[129].mxu0  ;;  %16777 = vmatprep.mubr.msk.f32.mxu0 %vm1715_vm1, %v11980_v43 }
 0xebb   : > { %16778 = vmatmul.mubr.msk.f32.gmra.mrb[90].mxu0 %vm1715_vm1, %v12056_v44  ;;  %v17880_v44 = vld [vmem:[#allocation2 + $0x48] sm:$0xff] }
 0xeee   : > { %v12132_v12 = vpop.f32.mrb[130].mxu0 }
 0xeef   : > { %v16717_v40 = vpop.f32.mrb[131].mxu0  ;;  %16780 = vmatprep.mubr.msk.f32.mxu0 %vm1715_vm1, %v12132_v12 }
 0xef0   : > { %16781 = vmatmul.mubr.msk.f32.gmra.mrb[92].mxu0 %vm1715_vm1, %v12208_v11  ;;  %v17881_v11 = vld [vmem:[#allocation2 + $0x40] sm:$0xff] }
 0xf23   : > { %v12284_v60 = vpop.f32.mrb[132].mxu0 }
 0xf24   : > { %v16727_v3 = vpop.f32.mrb[133].mxu0  ;;  %16783 = vmatprep.mubr.msk.f32.mxu0 %vm1715_vm1, %v12284_v60  ;;  %v17882_v60 = vld [vmem:[#allocation2 + $0x58] sm:$0xff] }
 0xf25   : > { %16784 = vmatmul.mubr.msk.f32.gmra.mrb[94].mxu0 %vm1715_vm1, %v12360_v35 }
 0xf27   : > { %v12512_v32 = vpop.f32.mrb[174].mxu1 }
 0xf28   : > { %v16742_v45 = vpop.f32.mrb[175].mxu1 }
 0xf2b   : > { %v12664_v18 = vpop.f32.mrb[176].mxu1 }
 0xf2c   : > { %v16752_v21 = vpop.f32.mrb[177].mxu1 }
 0xf2f   : > { %v12816_v9 = vpop.f32.mrb[178].mxu1 }
 0xf30   : > { %v16762_v29 = vpop.f32.mrb[179].mxu1 }
 0xf57   : > { %v12436_v16 = vpop.f32.mrb[134].mxu0 }
 0xf58   : > { %v16737_v33 = vpop.f32.mrb[135].mxu0  ;;  %16786 = vmatprep.mubr.msk.f32.mxu0 %vm1715_vm1, %v12436_v16 }
 0xf59   : > { %16787 = vmatmul.mubr.msk.f32.gmra.mrb[96].mxu0 %vm1715_vm1, %v12512_v32  ;;  %v17883_v32 = vld [vmem:[#allocation2 + $0x50] sm:$0xff]  ;;  %v17884_v33 = vld [vmem:[#allocation2 + $0x68] sm:$0xff] }
 0xf5b   : > { %v12588_v41 = vpop.f32.mrb[136].mxu0 }
 0xf5c   : > { %v16747_v50 = vpop.f32.mrb[137].mxu0  ;;  %16789 = vmatprep.mubr.msk.f32.mxu0 %vm1715_vm1, %v12588_v41 }
 0xf5d   : > { %16790 = vmatmul.mubr.msk.f32.gmra.mrb[98].mxu0 %vm1715_vm1, %v12664_v18 }
 0xf5f   : > { %v12740_v25 = vpop.f32.mrb[138].mxu0 }
 0xf60   : > { %v16757_v6 = vpop.f32.mrb[139].mxu0  ;;  %16792 = vmatprep.mubr.msk.f32.mxu0 %vm1715_vm1, %v12740_v25 }
 0xf61   : > { %16793 = vmatmul.mubr.msk.f32.gmra.mrb[100].mxu0 %vm1715_vm1, %v12816_v9  ;;  %v17885_v6 = vld [vmem:[#allocation2 + $0x60] sm:$0xff] }
 0xf62   : > { %13596 = vmatprep.mubr.f32.mxu0 %v22557_v10 }
 0xf67   : > { %v16773_v7 = vpop.f32.mrb[86].mxu0 }
 0xf68   : > { %v13038_v28 = vadd.f32 %v16773_v7, %v21447_v8  ;;  %v12938_v55 = vpop.f32.mrb[87].mxu0 }
 0xf69   : > { %v13037_v14 = vadd.f32 %v21447_v8, %v12938_v55 }
 0xf6a   : > { %v21451_v26 = vadd.f32 %v17872_v49, %v13038_v28 }
 0xf6b   : > { %v21453_v47 = vadd.f32 %v17873_v52, %v13037_v14  ;;  %v16776_v22 = vpop.f32.mrb[88].mxu0 }
 0xf6c   : > { %v13040_v57 = vadd.f32 %v16776_v22, %v21447_v8  ;;  %13071 = vadd.xlane.f32.xlu0 %v21451_v26  ;;  %v12948_v62 = vpop.f32.mrb[89].mxu0 }
 0xf6d   : > { %v13039_v61 = vadd.f32 %v21447_v8, %v12948_v62  ;;  %13069 = vadd.xlane.f32.xlu1 %v21453_v47 }
 0xf6e   : > { %v21459_v13 = vadd.f32 %v17874_v5, %v13040_v57  ;;  %v17886_v57 = vld [vmem:[#allocation2 + $0x78] sm:$0xff] }
 0xf6f   : > { %v21461_v63 = vadd.f32 %v17875_v37, %v13039_v61 }
 0xf71   : > { %13075 = vadd.xlane.f32.xlu1 %v21459_v13  ;;  %13073 = vadd.xlane.f32.xlu0 %v21461_v63 }
 0xf8e   : > { %v16779_v15 = vpop.f32.mrb[90].mxu0 }
 0xf8f   : > { %v13042_v36 = vadd.f32 %v16779_v15, %v21447_v8  ;;  %v12958_v1 = vpop.f32.mrb[91].mxu0  ;;  %v17887_v15 = vld [vmem:[#allocation2 + $0x70] sm:$0xff] }
 0xf90   : > { %v13041_v54 = vadd.f32 %v21447_v8, %v12958_v1 }
 0xf91   : > { %v21467_v59 = vadd.f32 %v17876_v23, %v13042_v36 }
 0xf92   : > { %v21469_v58 = vadd.f32 %v17877_v17, %v13041_v54 }
 0xf93   : > { %13079 = vadd.xlane.f32.xlu1 %v21467_v59 }
 0xf94   : > { %13077 = vadd.xlane.f32.xlu0 %v21469_v58 }
 0xfc3   : > { %v16782_v56 = vpop.f32.mrb[92].mxu0 }
 0xfc4   : > { %v13044_v2 = vadd.f32 %v16782_v56, %v21447_v8  ;;  %v12968_v0 = vpop.f32.mrb[93].mxu0 }
 0xfc5   : > { %v13043_v39 = vadd.f32 %v21447_v8, %v12968_v0 }
 0xfc6   : > { %v21475_v27 = vadd.f32 %v17878_v53, %v13044_v2 }
 0xfc7   : > { %v21477_v30 = vadd.f32 %v17879_v24, %v13043_v39 }
 0xfc8   : > { %22660 = vst [vmem:[#allocation100_spill] sm:$0xff] %v21475_v27  ;;  %13083 = vadd.xlane.f32.xlu1 %v21475_v27 }
 0xfc9   : > { %13081 = vadd.xlane.f32.xlu0 %v21477_v30 }
 0xff8   : > { %v16785_v4 = vpop.f32.mrb[94].mxu0 }
 0xff9   : > { %v13046_v46 = vadd.f32 %v16785_v4, %v21447_v8  ;;  %v12978_v42 = vpop.f32.mrb[95].mxu0  ;;  %v13072_v40 = vpop.xlane.xlu0 %13071  ;;  %v13286_v4 = vld [vmem:[%s18854_s3 + $0x8] sm:$0xff] }
 0xffa   : > { %v13045_v20 = vadd.f32 %v21447_v8, %v12978_v42  ;;  %v13070_v51 = vpop.xlane.xlu1 %13069  ;;  %v13102_v16 = vmul.f32 0.0078125, %v13072_v40  ;;  %v13288_v42 = vld [vmem:[%s18854_s3 + $0x18] sm:$0xff] }
 0xffb   : > { %v21483_v31 = vadd.f32 %v17880_v44, %v13046_v46  ;;  %v13101_v50 = vmul.f32 0.0078125, %v13070_v51  ;;  %v13290_v46 = vld [vmem:[%s18854_s3 + $0x28] sm:$0xff]  ;;  %v13292_v44 = vld [vmem:[%s18854_s3 + $0x38] sm:$0xff]  ;;  %v13287_v51 = vld [vmem:[%s18854_s3 + $0x10] sm:$0xff] }
 0xffc   : > { %v21485_v34 = vadd.f32 %v17881_v11, %v13045_v20  ;;  %v21508_v52 = vsub.f32 %v21451_v26, %v13102_v16  ;;  %v16923_v20 = vpack.c.bf16 %v13290_v46, %v13286_v4  ;;  %v13285_v11 = vld [vmem:[%s18854_s3] sm:$0xff]  ;;  %v13300_v16 = vld [vmem:[%s18854_s3 + $0x78] sm:$0xff] }
 0xffd   : > { %22661 = vst [vmem:[#allocation101_spill] sm:$0xff] %v21483_v31  ;;  %13087 = vadd.xlane.f32.xlu1 %v21483_v31  ;;  %v21513_v61 = vsub.f32 %v21453_v47, %v13101_v50  ;;  %v13297_v50 = vld [vmem:[%s18854_s3 + $0x60] sm:$0xff]  ;;  %v13312_v4 = vld [vmem:[%s18854_s3 + $0xd8] sm:$0xff] }
 0xffe   : > { %22662 = vst [vmem:[#allocation72_spill] sm:$0xff] %v21485_v34  ;;  %13085 = vadd.xlane.f32.xlu0 %v21485_v34  ;;  %v13076_v25 = vpop.xlane.xlu1 %13075  ;;  %v13074_v28 = vpop.xlane.xlu0 %13073  ;;  %v13134_v23 = vmul.f32 %v21508_v52, %v21508_v52  ;;  %16924 = vmatprep.subr.bf16.mxu1 %v16923_v20  ;;  %v13309_v20 = vld [vmem:[%s18854_s3 + $0xc0] sm:$0xff] }
 0xfff   : > { %v13104_v22 = vmul.f32 0.0078125, %v13076_v25  ;;  %v13103_v5 = vmul.f32 0.0078125, %v13074_v28  ;;  %v13133_v2 = vmul.f32 %v21513_v61, %v21513_v61  ;;  %v13299_v28 = vld [vmem:[%s18854_s3 + $0x70] sm:$0xff] }
0x1001   : > { %v21525_v17 = vsub.f32 %v21461_v63, %v13103_v5  ;;  %v13308_v5 = vld [vmem:[%s18854_s3 + $0xb8] sm:$0xff] }
0x1003   : > { %v13135_v24 = vmul.f32 %v21525_v17, %v21525_v17 }
0x1020   : > { %v13080_v37 = vpop.xlane.xlu1 %13079 }
0x1021   : > { %v13078_v1 = vpop.xlane.xlu0 %13077  ;;  %v13106_v54 = vmul.f32 0.0078125, %v13080_v37  ;;  %v13301_v37 = vld [vmem:[%s18854_s3 + $0x80] sm:$0xff] }
0x1022   : > { %v13105_v56 = vmul.f32 0.0078125, %v13078_v1 }
0x1023   : > { %v21530_v0 = vsub.f32 %v21467_v59, %v13106_v54 }
0x1024   : > { %v21535_v53 = vsub.f32 %v21469_v58, %v13105_v56  ;;  %v13307_v56 = vld [vmem:[%s18854_s3 + $0xb0] sm:$0xff] }
0x1025   : > { %v13138_v40 = vmul.f32 %v21530_v0, %v21530_v0 }
0x102c   : > { %v16788_v35 = vpop.f32.mrb[96].mxu0 }
0x102d   : > { %v13048_v48 = vadd.f32 %v16788_v35, %v21447_v8  ;;  %v12988_v43 = vpop.f32.mrb[97].mxu0  ;;  %v13289_v35 = vld [vmem:[%s18854_s3 + $0x20] sm:$0xff] }
0x102e   : > { %v13047_v12 = vadd.f32 %v21447_v8, %v12988_v43  ;;  %v16925_v43 = vpack.c.bf16 %v13289_v35, %v13285_v11 }
0x102f   : > { %v21491_v3 = vadd.f32 %v17882_v60, %v13048_v48  ;;  %v16955_v48 = vpack.c.bf16 %v13292_v44, %v13288_v42  ;;  %v13316_v42 = vld [vmem:[%s18854_s3 + $0xf8] sm:$0xff]  ;;  %v13313_v44 = vld [vmem:[%s18854_s3 + $0xe0] sm:$0xff] }
0x1030   : > { %v21493_v45 = vadd.f32 %v17883_v32, %v13047_v12  ;;  %v16791_v18 = vpop.f32.mrb[98].mxu0  ;;  %v13291_v12 = vld [vmem:[%s18854_s3 + $0x30] sm:$0xff]  ;;  %v13137_v32 = vmul.f32 %v21535_v53, %v21535_v53  ;;  %16926 = vmatpush1.bf16.msra.mxu1 %v16925_v43  ;;  %v16967_v11 = vpack.c.bf16 %v13316_v42, %v13312_v4  ;;  %v16937_v35 = vpack.c.bf16 %v13313_v44, %v13309_v20  ;;  %v13338_v4 = vld [vmem:[%s18854_s3 + $0x1a8] sm:$0xff]  ;;  %v13340_v44 = vld [vmem:[%s18854_s3 + $0x1b8] sm:$0xff] }
0x1031   : > { %22663 = vst [vmem:[#allocation70_spill] sm:$0xff] %v21491_v3  ;;  %v13050_v21 = vadd.f32 %v16791_v18, %v21447_v8  ;;  %13091 = vadd.xlane.f32.xlu1 %v21491_v3  ;;  %v12998_v9 = vpop.f32.mrb[99].mxu0  ;;  %v16957_v60 = vpack.c.bf16 %v13291_v12, %v13287_v51  ;;  %16956 = vmatprep.subr.bf16.mxu0 %v16955_v48  ;;  %v13294_v18 = vld [vmem:[%s18854_s3 + $0x48] sm:$0xff]  ;;  %v13311_v48 = vld [vmem:[%s18854_s3 + $0xd0] sm:$0xff] }
0x1032   : > { %22664 = vst [vmem:[#allocation74_spill] sm:$0xff] %v21493_v45  ;;  %v13049_v29 = vadd.f32 %v21447_v8, %v12998_v9  ;;  %13089 = vadd.xlane.f32.xlu0 %v21493_v45  ;;  %v13296_v9 = vld [vmem:[%s18854_s3 + $0x58] sm:$0xff]  ;;  %v13315_v43 = vld [vmem:[%s18854_s3 + $0xf0] sm:$0xff]  ;;  %v13318_v12 = vld [vmem:[%s18854_s3 + $0x108] sm:$0xff] }
0x1033   : > { %v21499_v41 = vadd.f32 %v17884_v33, %v13050_v21  ;;  %v13298_v21 = vld [vmem:[%s18854_s3 + $0x68] sm:$0xff]  ;;  %16958 = vmatpush1.bf16.msra.mxu0 %v16957_v60  ;;  %v13293_v33 = vld [vmem:[%s18854_s3 + $0x40] sm:$0xff]  ;;  %v16959_v25 = vpack.c.bf16 %v13300_v16, %v13296_v9  ;;  %v16969_v51 = vpack.c.bf16 %v13315_v43, %v13311_v48  ;;  %v13320_v60 = vld [vmem:[%s18854_s3 + $0x118] sm:$0xff] }
0x1034   : > { %v21501_v38 = vadd.f32 %v17885_v6, %v13049_v29  ;;  %v16794_v7 = vpop.f32.mrb[100].mxu0  ;;  %v16927_v29 = vpack.c.bf16 %v13298_v21, %v13294_v18  ;;  %v16929_v6 = vpack.c.bf16 %v13297_v50, %v13293_v33  ;;  %v13324_v18 = vld [vmem:[%s18854_s3 + $0x138] sm:$0xff]  ;;  %v13317_v21 = vld [vmem:[%s18854_s3 + $0x100] sm:$0xff]  ;;  %v13319_v33 = vld [vmem:[%s18854_s3 + $0x110] sm:$0xff] }
0x1035   : > { %22665 = vst [vmem:[#allocation75_spill] sm:$0xff] %v21499_v41  ;;  %v13052_v55 = vadd.f32 %v16794_v7, %v21447_v8  ;;  %13095 = vadd.xlane.f32.xlu1 %v21499_v41  ;;  %v13008_v14 = vpop.f32.mrb[101].mxu0  ;;  %v13295_v7 = vld [vmem:[%s18854_s3 + $0x50] sm:$0xff]  ;;  %16960 = vmatprep.subr.bf16.mxu0 %v16959_v25  ;;  %v13321_v9 = vld [vmem:[%s18854_s3 + $0x120] sm:$0xff] }
0x1036   : > { %22666 = vst [vmem:[#allocation77_spill] sm:$0xff] %v21501_v38  ;;  %v13051_v49 = vadd.f32 %v21447_v8, %v13008_v14  ;;  %13093 = vadd.xlane.f32.xlu0 %v21501_v38  ;;  %v21520_v8 = vsub.f32 %v21459_v13, %v13104_v22  ;;  %16928 = vmatprep.subr.bf16.mxu1 %v16927_v29  ;;  %v13302_v14 = vld [vmem:[%s18854_s3 + $0x88] sm:$0xff]  ;;  %v13304_v22 = vld [vmem:[%s18854_s3 + $0x98] sm:$0xff]  ;;  %v13323_v50 = vld [vmem:[%s18854_s3 + $0x130] sm:$0xff] }
0x1037   : > { %v21510_v62 = vadd.f32 %v17886_v57, %v13052_v55  ;;  %v16961_v55 = vpack.c.bf16 %v13299_v28, %v13295_v7  ;;  %16930 = vmatpush1.bf16.msra.mxu1 %v16929_v6  ;;  %v16963_v1 = vpack.c.bf16 %v13308_v5, %v13304_v22  ;;  %v16971_v29 = vpack.c.bf16 %v13324_v18, %v13320_v60  ;;  %v13326_v6 = vld [vmem:[%s18854_s3 + $0x148] sm:$0xff]  ;;  %v13328_v28 = vld [vmem:[%s18854_s3 + $0x158] sm:$0xff]  ;;  %v13325_v22 = vld [vmem:[%s18854_s3 + $0x140] sm:$0xff] }
0x1038   : > { %v21515_v36 = vadd.f32 %v17887_v15, %v13051_v49  ;;  %v13136_v39 = vmul.f32 %v21520_v8, %v21520_v8  ;;  %v13306_v49 = vld [vmem:[%s18854_s3 + $0xa8] sm:$0xff]  ;;  %v13305_v15 = vld [vmem:[%s18854_s3 + $0xa0] sm:$0xff]  ;;  %v16941_v16 = vpack.c.bf16 %v13321_v9, %v13317_v21  ;;  %v16973_v25 = vpack.c.bf16 %v13323_v50, %v13319_v33  ;;  %v13344_v9 = vld [vmem:[%s18854_s3 + $0x1d8] sm:$0xff] }
0x1039   : > { %22667 = vst [vmem:[#allocation71_spill] sm:$0xff] %v21510_v62  ;;  %13099 = vadd.xlane.f32.xlu1 %v21510_v62  ;;  %16962 = vmatpush1.bf16.msra.mxu0 %v16961_v55  ;;  %v16931_v57 = vpack.c.bf16 %v13306_v49, %v13302_v14  ;;  %v16933_v54 = vpack.c.bf16 %v13305_v15, %v13301_v37  ;;  %v13330_v7 = vld [vmem:[%s18854_s3 + $0x168] sm:$0xff]  ;;  %v13332_v49 = vld [vmem:[%s18854_s3 + $0x178] sm:$0xff]  ;;  %v13341_v50 = vld [vmem:[%s18854_s3 + $0x1c0] sm:$0xff] }
0x103a   : > { %22668 = vst [vmem:[#allocation73_spill] sm:$0xff] %v21515_v36  ;;  %13097 = vadd.xlane.f32.xlu0 %v21515_v36  ;;  %16964 = vmatprep.subr.bf16.mxu0 %v16963_v1  ;;  %v16943_v14 = vpack.c.bf16 %v13330_v7, %v13326_v6  ;;  %v16975_v15 = vpack.c.bf16 %v13332_v49, %v13328_v28  ;;  %v13342_v60 = vld [vmem:[%s18854_s3 + $0x1c8] sm:$0xff]  ;;  %v13343_v6 = vld [vmem:[%s18854_s3 + $0x1d0] sm:$0xff] }
0x103b   : > { %16932 = vmatprep.subr.bf16.mxu1 %v16931_v57  ;;  %v13329_v57 = vld [vmem:[%s18854_s3 + $0x160] sm:$0xff]  ;;  %v13346_v21 = vld [vmem:[%s18854_s3 + $0x1e8] sm:$0xff]  ;;  %v13347_v28 = vld [vmem:[%s18854_s3 + $0x1f0] sm:$0xff] }
0x103c   : > { %16934 = vmatpush1.bf16.msra.mxu1 %v16933_v54  ;;  %v16945_v1 = vpack.c.bf16 %v13329_v57, %v13325_v22  ;;  %v13327_v54 = vld [vmem:[%s18854_s3 + $0x150] sm:$0xff] }
0x103d   : > { %13151 = vadd.xlane.f32.xlu1 %v13134_v23  ;;  %v13303_v23 = vld [vmem:[%s18854_s3 + $0x90] sm:$0xff] }
0x103e   : > { %13149 = vadd.xlane.f32.xlu0 %v13133_v2  ;;  %v16965_v2 = vpack.c.bf16 %v13307_v56, %v13303_v23  ;;  %v13331_v23 = vld [vmem:[%s18854_s3 + $0x170] sm:$0xff] }
0x1040   : > { %16966 = vmatpush1.bf16.msra.mxu0 %v16965_v2  ;;  %v16977_v2 = vpack.c.bf16 %v13331_v23, %v13327_v54 }
0x1041   : > { %13155 = vadd.xlane.f32.xlu1 %v13136_v39  ;;  %v13310_v39 = vld [vmem:[%s18854_s3 + $0xc8] sm:$0xff]  ;;  %16968 = vmatprep.subr.bf16.mxu0 %v16967_v11  ;;  %v13333_v11 = vld [vmem:[%s18854_s3 + $0x180] sm:$0xff] }
0x1042   : > { %13153 = vadd.xlane.f32.xlu0 %v13135_v24  ;;  %v13314_v24 = vld [vmem:[%s18854_s3 + $0xe8] sm:$0xff] }
0x1043   : > { %v16935_v46 = vpack.c.bf16 %v13314_v24, %v13310_v39  ;;  %v13334_v24 = vld [vmem:[%s18854_s3 + $0x188] sm:$0xff] }
0x1044   : > { %16970 = vmatpush1.bf16.msra.mxu0 %v16969_v51  ;;  %v16947_v20 = vpack.c.bf16 %v13338_v4, %v13334_v24 }
0x1045   : > { %13159 = vadd.xlane.f32.xlu1 %v13138_v40  ;;  %16936 = vmatprep.subr.bf16.mxu1 %v16935_v46  ;;  %v13322_v40 = vld [vmem:[%s18854_s3 + $0x128] sm:$0xff]  ;;  %v13336_v46 = vld [vmem:[%s18854_s3 + $0x198] sm:$0xff] }
0x1046   : > { %13157 = vadd.xlane.f32.xlu0 %v13137_v32  ;;  %16938 = vmatpush1.bf16.msra.mxu1 %v16937_v35  ;;  %v16939_v32 = vpack.c.bf16 %v13322_v40, %v13318_v12  ;;  %v13337_v35 = vld [vmem:[%s18854_s3 + $0x1a0] sm:$0xff]  ;;  %v16979_v43 = vpack.c.bf16 %v13340_v44, %v13336_v46  ;;  %v13335_v12 = vld [vmem:[%s18854_s3 + $0x190] sm:$0xff] }
0x1047   : > { %16972 = vmatprep.subr.bf16.mxu0 %v16971_v29  ;;  %v16949_v51 = vpack.c.bf16 %v13337_v35, %v13333_v11  ;;  %v13339_v40 = vld [vmem:[%s18854_s3 + $0x1b0] sm:$0xff]  ;;  %v13348_v29 = vld [vmem:[%s18854_s3 + $0x1f8] sm:$0xff] }
0x1048   : > { %16940 = vmatprep.subr.bf16.mxu1 %v16939_v32  ;;  %16974 = vmatpush1.bf16.msra.mxu0 %v16973_v25  ;;  %v16981_v18 = vpack.c.bf16 %v13339_v40, %v13335_v12  ;;  %v16983_v33 = vpack.c.bf16 %v13348_v29, %v13344_v9  ;;  %v13345_v25 = vld [vmem:[%s18854_s3 + $0x1e0] sm:$0xff] }
0x1049   : > { %16976 = vmatprep.subr.bf16.mxu0 %v16975_v15  ;;  %v16953_v7 = vpack.c.bf16 %v13345_v25, %v13341_v50 }
0x104a   : > { %16942 = vmatpush1.bf16.msra.mxu1 %v16941_v16  ;;  %v16951_v16 = vpack.c.bf16 %v13346_v21, %v13342_v60 }
0x104b   : > { %16944 = vmatprep.subr.bf16.mxu1 %v16943_v14 }
0x104c   : > { %16978 = vmatpush1.bf16.msra.mxu0 %v16977_v2 }
0x104d   : > { %16980 = vmatprep.subr.bf16.mxu0 %v16979_v43 }
0x104e   : > { %16946 = vmatpush1.bf16.msra.mxu1 %v16945_v1 }
0x104f   : > { %16948 = vmatprep.subr.bf16.mxu1 %v16947_v20 }
0x1050   : > { %16982 = vmatpush1.bf16.msra.mxu0 %v16981_v18 }
0x1051   : > { %16984 = vmatprep.subr.bf16.mxu0 %v16983_v33 }
0x1052   : > { %16950 = vmatpush1.bf16.msra.mxu1 %v16949_v51 }
0x1053   : > { %16952 = vmatprep.subr.bf16.mxu1 %v16951_v16 }
0x1055   : > { %v13084_v55 = vpop.xlane.xlu1 %13083 }
0x1056   : > { %v13108_v5 = vmul.f32 0.0078125, %v13084_v55  ;;  %v13082_v37 = vpop.xlane.xlu0 %13081  ;;  %v16985_v55 = vpack.c.bf16 %v13347_v28, %v13343_v6  ;;  %16954 = vmatpush1.bf16.msra.mxu1 %v16953_v7 }
0x1057   : > { %v13107_v56 = vmul.f32 0.0078125, %v13082_v37 }
0x1058   : > { %v21592_v39 = vsub.f32 %v21475_v27, %v13108_v5  ;;  %16986 = vmatpush1.bf16.msra.mxu0 %v16985_v55 }
0x1059   : > { %v21598_v42 = vsub.f32 %v21477_v30, %v13107_v56 }
0x105a   : > { %v13140_v48 = vmul.f32 %v21592_v39, %v21592_v39 }
0x105b   : > { %v13139_v32 = vmul.f32 %v21598_v42, %v21598_v42 }
0x105c   : > { %13163 = vadd.xlane.f32.xlu1 %v13140_v48 }
0x105d   : > { %13161 = vadd.xlane.f32.xlu0 %v13139_v32 }
0x108a   : > { %v13088_v14 = vpop.xlane.xlu1 %13087 }
0x108b   : > { %v13110_v49 = vmul.f32 0.0078125, %v13088_v14  ;;  %v13086_v22 = vpop.xlane.xlu0 %13085 }
0x108c   : > { %v13109_v57 = vmul.f32 0.0078125, %v13086_v22 }
0x108d   : > { %v21618_v5 = vsub.f32 %v21483_v31, %v13110_v49 }
0x108e   : > { %v21621_v37 = vsub.f32 %v21485_v34, %v13109_v57 }
0x108f   : > { %v13142_v15 = vmul.f32 %v21618_v5, %v21618_v5 }
0x1090   : > { %v13141_v1 = vmul.f32 %v21621_v37, %v21621_v37 }
0x1091   : > { %13167 = vadd.xlane.f32.xlu1 %v13142_v15 }
0x1092   : > { %13165 = vadd.xlane.f32.xlu0 %v13141_v1 }
0x10be   : > { %v13092_v54 = vpop.xlane.xlu1 %13091 }
0x10bf   : > { %v13112_v23 = vmul.f32 0.0078125, %v13092_v54  ;;  %v13090_v56 = vpop.xlane.xlu0 %13089 }
0x10c0   : > { %v13111_v2 = vmul.f32 0.0078125, %v13090_v56 }
0x10c1   : > { %v21628_v24 = vsub.f32 %v21491_v3, %v13112_v23 }
0x10c2   : > { %v21631_v4 = vsub.f32 %v21493_v45, %v13111_v2  ;;  %v13096_v46 = vpop.xlane.xlu1 %13095  ;;  %v22669_v2 = vld [vmem:[#allocation41_spill] sm:$0xff] }
0x10c3   : > { %v13114_v20 = vmul.f32 0.0078125, %v13096_v46  ;;  %v13094_v44 = vpop.xlane.xlu0 %13093  ;;  %v13144_v11 = vmul.f32 %v21628_v24, %v21628_v24  ;;  %v13247_v46 = vsub.s32 4, %v22669_v2 }
0x10c4   : > { %v13113_v35 = vmul.f32 0.0078125, %v13094_v44  ;;  %v13143_v48 = vmul.f32 %v21631_v4, %v21631_v4 }
0x10c5   : > { %v21638_v43 = vsub.f32 %v21499_v41, %v13114_v20  ;;  %13171 = vadd.xlane.f32.xlu1 %v13144_v11  ;;  %v13267_v11 = vsub.s32 5, %v22669_v2 }
0x10c6   : > { %v21641_v51 = vsub.f32 %v21501_v38, %v13113_v35  ;;  %v13100_v12 = vpop.xlane.xlu1 %13099  ;;  %13169 = vadd.xlane.f32.xlu0 %v13143_v48  ;;  %v17888_v48 = vld [vmem:[%s18867_s14] sm:$0xff] }
0x10c7   : > { %v13116_v40 = vmul.f32 0.0078125, %v13100_v12  ;;  %v13098_v60 = vpop.xlane.xlu0 %13097  ;;  %v13146_v32 = vmul.f32 %v21638_v43, %v21638_v43  ;;  %v21660_v12 = vrot.slane %v17888_v48, %v13247_v46 }
0x10c8   : > { %v13115_v18 = vmul.f32 0.0078125, %v13098_v60  ;;  %v13145_v21 = vmul.f32 %v21641_v51, %v21641_v51 }
0x10c9   : > { %v21648_v9 = vsub.f32 %v21510_v62, %v13116_v40  ;;  %13175 = vadd.xlane.f32.xlu1 %v13146_v32 }
0x10ca   : > { %v21651_v29 = vsub.f32 %v21515_v36, %v13115_v18  ;;  %v13152_v16 = vpop.xlane.xlu1 %13151  ;;  %13173 = vadd.xlane.f32.xlu0 %v13145_v21  ;;  %v21663_v18 = vrot.slane %v17888_v48, %v13267_v11 }
0x10cb   : > { %v13182_v33 = vmul.f32 0.0078125, %v13152_v16  ;;  %v13150_v50 = vpop.xlane.xlu0 %13149  ;;  %v13148_v25 = vmul.f32 %v21648_v9, %v21648_v9 }
0x10cc   : > { %v13181_v6 = vmul.f32 0.0078125, %v13150_v50  ;;  %v13147_v7 = vmul.f32 %v21651_v29, %v21651_v29 }
0x10cd   : > { %v13198_v28 = vadd.f32 1e-05, %v13182_v33  ;;  %13179 = vadd.xlane.f32.xlu1 %v13148_v25 }
0x10ce   : > { %v13197_v55 = vadd.f32 1e-05, %v13181_v6  ;;  %v13156_v14 = vpop.xlane.xlu1 %13155  ;;  %13177 = vadd.xlane.f32.xlu0 %v13147_v7 }
0x10cf   : > { %17583 = vrsqrt.f32 %v13198_v28  ;;  %v13184_v49 = vmul.f32 0.0078125, %v13156_v14  ;;  %v13154_v22 = vpop.xlane.xlu0 %13153 }
0x10d0   : > { %17585 = vrsqrt.f32 %v13197_v55  ;;  %v13183_v57 = vmul.f32 0.0078125, %v13154_v22 }
0x10d1   : > { %v13200_v15 = vadd.f32 1e-05, %v13184_v49 }
0x10d2   : > { %v13199_v1 = vadd.f32 1e-05, %v13183_v57  ;;  %v13160_v54 = vpop.xlane.xlu1 %13159 }
0x10d3   : > { %v13158_v23 = vpop.xlane.xlu0 %13157  ;;  %v13186_v20 = vmul.f32 0.0078125, %v13160_v54 }
0x10d4   : > { %17587 = vrsqrt.f32 %v13199_v1  ;;  %v13185_v56 = vmul.f32 0.0078125, %v13158_v23 }
0x10d5   : > { %17589 = vrsqrt.f32 %v13200_v15  ;;  %v13202_v60 = vadd.f32 1e-05, %v13186_v20 }
0x10d6   : > { %v13201_v44 = vadd.f32 1e-05, %v13185_v56 }
0x10d8   : > { %17591 = vrsqrt.f32 %v13201_v44 }
0x10d9   : > { %v17584_v35 = vpop.eup %17583  ;;  %17593 = vrsqrt.f32 %v13202_v60 }
0x10da   : > { %v17586_v40 = vpop.eup %17585  ;;  %v13230_v21 = vmul.f32 %v17584_v35, %v21508_v52 }
0x10db   : > { %v13229_v32 = vmul.f32 %v17586_v40, %v21513_v61 }
0x10dc   : > { %v13250_v25 = vmul.f32 %v21660_v12, %v13230_v21 }
0x10dd   : > { %v13249_v16 = vmul.f32 %v21660_v12, %v13229_v32 }
0x10de   : > { %v17588_v33 = vpop.eup %17587  ;;  %v13270_v61 = vadd.f32 %v21663_v18, %v13250_v25 }
0x10df   : > { %v13269_v50 = vadd.f32 %v21663_v18, %v13249_v16  ;;  %v13231_v6 = vmul.f32 %v17588_v33, %v21525_v17  ;;  %v17590_v7 = vpop.eup %17589 }
0x10e0   : > { %v13232_v28 = vmul.f32 %v17590_v7, %v21520_v8 }
0x10e1   : > { %13436 = vmatmul.mubr.f32.vlgmr.msra.gmra.mrb[180].mxu1 %v13269_v50  ;;  %13597 = vmatmul.mubr.f32.vlgmr.msra.gmra.mrb[140].mxu0 %v13269_v50  ;;  %v13251_v52 = vmul.f32 %v21660_v12, %v13231_v6 }
0x10e2   : > { %13441 = vmatprep.mubr.f32.mxu1 %v22557_v10  ;;  %13602 = vmatprep.mubr.f32.mxu0 %v22557_v10  ;;  %v17592_v55 = vpop.eup %17591  ;;  %v13252_v14 = vmul.f32 %v21660_v12, %v13232_v28 }
0x10e3   : > { %v13271_v17 = vadd.f32 %v21663_v18, %v13251_v52  ;;  %v13233_v49 = vmul.f32 %v17592_v55, %v21535_v53  ;;  %v17594_v22 = vpop.eup %17593 }
0x10e4   : > { %v13272_v54 = vadd.f32 %v21663_v18, %v13252_v14  ;;  %v13234_v56 = vmul.f32 %v17594_v22, %v21530_v0  ;;  %v14222_v22 = vld [vmem:[%s18856_s1 + $0x88] sm:$0xff] }
0x10e5   : > { %13442 = vmatmul.mubr.f32.gmra.mrb[182].mxu1 %v13270_v61  ;;  %13603 = vmatmul.mubr.f32.gmra.mrb[142].mxu0 %v13270_v61  ;;  %v13253_v23 = vmul.f32 %v21660_v12, %v13233_v49  ;;  %v14221_v49 = vld [vmem:[%s18856_s1 + $0x80] sm:$0xff] }
0x10e6   : > { %13447 = vmatprep.mubr.f32.mxu1 %v22557_v10  ;;  %13608 = vmatprep.mubr.f32.mxu0 %v22557_v10  ;;  %v13254_v44 = vmul.f32 %v21660_v12, %v13234_v56  ;;  %v14237_v56 = vld [vmem:[%s18856_s1 + $0x100] sm:$0xff] }
0x10e7   : > { %v13273_v53 = vadd.f32 %v21663_v18, %v13253_v23 }
0x10e8   : > { %v13274_v0 = vadd.f32 %v21663_v18, %v13254_v44  ;;  %v14224_v44 = vld [vmem:[%s18856_s1 + $0x98] sm:$0xff] }
0x10e9   : > { %v13164_v57 = vpop.xlane.xlu1 %13163  ;;  %13448 = vmatmul.mubr.f32.gmra.mrb[184].mxu1 %v13271_v17  ;;  %13609 = vmatmul.mubr.f32.gmra.mrb[144].mxu0 %v13271_v17 }
0x10ea   : > { %v13188_v15 = vmul.f32 0.0078125, %v13164_v57  ;;  %v13162_v1 = vpop.xlane.xlu0 %13161  ;;  %13453 = vmatprep.mubr.f32.mxu1 %v22557_v10  ;;  %13614 = vmatprep.mubr.f32.mxu0 %v22557_v10  ;;  %v16987_v57 = vpack.c.bf16 %v14222_v22, %v14221_v49  ;;  %v14227_v49 = vld [vmem:[%s18856_s1 + $0xb0] sm:$0xff]  ;;  %v14228_v22 = vld [vmem:[%s18856_s1 + $0xb8] sm:$0xff] }
0x10eb   : > { %v13187_v8 = vmul.f32 0.0078125, %v13162_v1  ;;  %v14205_v1 = vld [vmem:[%s18856_s1] sm:$0xff] }
0x10ec   : > { %v13204_v46 = vadd.f32 1e-05, %v13188_v15  ;;  %v14254_v15 = vld [vmem:[%s18856_s1 + $0x188] sm:$0xff]  ;;  %16988 = vmatprep.subr.bf16.mxu1 %v16987_v57  ;;  %v14260_v57 = vld [vmem:[%s18856_s1 + $0x1b8] sm:$0xff] }
0x10ed   : > { %v13203_v20 = vadd.f32 1e-05, %v13187_v8  ;;  %13454 = vmatmul.mubr.f32.gmra.mrb[186].mxu1 %v13272_v54  ;;  %13615 = vmatmul.mubr.f32.gmra.mrb[146].mxu0 %v13272_v54  ;;  %v14206_v8 = vld [vmem:[%s18856_s1 + $0x8] sm:$0xff] }
0x10ee   : > { %17595 = vrsqrt.f32 %v13204_v46  ;;  %13459 = vmatprep.mubr.f32.mxu1 %v22557_v10  ;;  %13620 = vmatprep.mubr.f32.mxu0 %v22557_v10  ;;  %v16989_v23 = vpack.c.bf16 %v14206_v8, %v14205_v1  ;;  %v14238_v46 = vld [vmem:[%s18856_s1 + $0x108] sm:$0xff]  ;;  %v14212_v1 = vld [vmem:[%s18856_s1 + $0x38] sm:$0xff] }
0x10ef   : > { %17597 = vrsqrt.f32 %v13203_v20  ;;  %v17021_v20 = vpack.c.bf16 %v14238_v46, %v14237_v56  ;;  %v14244_v56 = vld [vmem:[%s18856_s1 + $0x138] sm:$0xff] }
0x10f0   : > { %16990 = vmatpush3.bf16.msra.mxu1 %v16989_v23  ;;  %v14243_v23 = vld [vmem:[%s18856_s1 + $0x130] sm:$0xff] }
0x10f1   : > { %13460 = vmatmul.mubr.f32.gmra.mrb[188].mxu1 %v13273_v53  ;;  %13621 = vmatmul.mubr.f32.gmra.mrb[148].mxu0 %v13273_v53  ;;  %v14223_v53 = vld [vmem:[%s18856_s1 + $0x90] sm:$0xff] }
0x10f2   : > { %13465 = vmatprep.mubr.f32.mxu1 %v22557_v10  ;;  %13626 = vmatprep.mubr.f32.mxu0 %v22557_v10 }
0x10f5   : > { %13466 = vmatmul.mubr.f32.gmra.mrb[190].mxu1 %v13274_v0  ;;  %13627 = vmatmul.mubr.f32.gmra.mrb[150].mxu0 %v13274_v0  ;;  %v14255_v0 = vld [vmem:[%s18856_s1 + $0x190] sm:$0xff] }
0x10f6   : > { %13471 = vmatprep.mubr.f32.mxu1 %v22557_v10  ;;  %13632 = vmatprep.mubr.f32.mxu0 %v22557_v10 }
0x10f8   : > { %v17596_v11 = vpop.eup %17595 }
0x10f9   : > { %v17598_v35 = vpop.eup %17597  ;;  %v13236_v40 = vmul.f32 %v17596_v11, %v21592_v39  ;;  %v16991_v11 = vpack.c.bf16 %v14224_v44, %v14223_v53 }
0x10fa   : > { %v13235_v48 = vmul.f32 %v17598_v35, %v21598_v42  ;;  %v14256_v35 = vld [vmem:[%s18856_s1 + $0x198] sm:$0xff] }
0x10fb   : > { %v13256_v21 = vmul.f32 %v21660_v12, %v13236_v40  ;;  %v14208_v40 = vld [vmem:[%s18856_s1 + $0x18] sm:$0xff]  ;;  %16992 = vmatprep.subr.bf16.mxu1 %v16991_v11  ;;  %v14230_v11 = vld [vmem:[%s18856_s1 + $0xc8] sm:$0xff] }
0x10fc   : > { %v13255_v60 = vmul.f32 %v21660_v12, %v13235_v48  ;;  %v14207_v48 = vld [vmem:[%s18856_s1 + $0x10] sm:$0xff] }
0x10fd   : > { %v13276_v16 = vadd.f32 %v21663_v18, %v13256_v21  ;;  %v14239_v21 = vld [vmem:[%s18856_s1 + $0x110] sm:$0xff] }
0x10fe   : > { %v13275_v32 = vadd.f32 %v21663_v18, %v13255_v60  ;;  %v17023_v60 = vpack.c.bf16 %v14256_v35, %v14255_v0  ;;  %v14229_v0 = vld [vmem:[%s18856_s1 + $0xc0] sm:$0xff] }
0x10ff   : > { %v14261_v35 = vld [vmem:[%s18856_s1 + $0x1c0] sm:$0xff] }
0x1100   : > { %13472 = vmatmul.mubr.f32.gmra.mrb[192].mxu1 %v13275_v32  ;;  %13633 = vmatmul.mubr.f32.gmra.mrb[152].mxu0 %v13275_v32  ;;  %v16993_v32 = vpack.c.bf16 %v14208_v40, %v14207_v48  ;;  %v17003_v40 = vpack.c.bf16 %v14230_v11, %v14229_v0  ;;  %v14265_v0 = vld [vmem:[%s18856_s1 + $0x1e0] sm:$0xff] }
0x1101   : > { %13477 = vmatprep.mubr.f32.mxu1 %v22557_v10  ;;  %13638 = vmatprep.mubr.f32.mxu0 %v22557_v10 }
0x1102   : > { %16994 = vmatpush3.bf16.msra.mxu1 %v16993_v32  ;;  %v14213_v32 = vld [vmem:[%s18856_s1 + $0x40] sm:$0xff] }
0x1104   : > { %13478 = vmatmul.mubr.f32.gmra.mrb[194].mxu1 %v13276_v16  ;;  %13639 = vmatmul.mubr.f32.gmra.mrb[154].mxu0 %v13276_v16  ;;  %v14240_v16 = vld [vmem:[%s18856_s1 + $0x118] sm:$0xff] }
0x1105   : > { %13483 = vmatprep.mubr.f32.mxu1 %v22557_v10  ;;  %13644 = vmatprep.mubr.f32.mxu0 %v22557_v10 }
0x111e   : > { %v13168_v39 = vpop.xlane.xlu1 %13167 }
0x111f   : > { %v13190_v42 = vmul.f32 0.0078125, %v13168_v39  ;;  %v13166_v33 = vpop.xlane.xlu0 %13165  ;;  %v17025_v39 = vpack.c.bf16 %v14240_v16, %v14239_v21  ;;  %v14214_v21 = vld [vmem:[%s18856_s1 + $0x48] sm:$0xff] }
0x1120   : > { %v13189_v50 = vmul.f32 0.0078125, %v13166_v33  ;;  %v14226_v33 = vld [vmem:[%s18856_s1 + $0xa8] sm:$0xff] }
0x1121   : > { %v13206_v25 = vadd.f32 1e-05, %v13190_v42  ;;  %v14225_v42 = vld [vmem:[%s18856_s1 + $0xa0] sm:$0xff] }
0x1122   : > { %v13205_v6 = vadd.f32 1e-05, %v13189_v50  ;;  %v14257_v50 = vld [vmem:[%s18856_s1 + $0x1a0] sm:$0xff] }
0x1123   : > { %17599 = vrsqrt.f32 %v13206_v25  ;;  %v16995_v25 = vpack.c.bf16 %v14226_v33, %v14225_v42  ;;  %v17005_v42 = vpack.c.bf16 %v14214_v21, %v14213_v32  ;;  %v14245_v33 = vld [vmem:[%s18856_s1 + $0x140] sm:$0xff] }
0x1124   : > { %17601 = vrsqrt.f32 %v13205_v6  ;;  %v14258_v6 = vld [vmem:[%s18856_s1 + $0x1a8] sm:$0xff] }
0x1125   : > { %16996 = vmatprep.subr.bf16.mxu1 %v16995_v25 }
0x112d   : > { %v17600_v7 = vpop.eup %17599 }
0x112e   : > { %v17602_v61 = vpop.eup %17601  ;;  %v13238_v28 = vmul.f32 %v17600_v7, %v21618_v5  ;;  %v17027_v7 = vpack.c.bf16 %v14258_v6, %v14257_v50  ;;  %v14246_v50 = vld [vmem:[%s18856_s1 + $0x148] sm:$0xff] }
0x112f   : > { %v13237_v52 = vmul.f32 %v17602_v61, %v21621_v37  ;;  %v14253_v37 = vld [vmem:[%s18856_s1 + $0x180] sm:$0xff] }
0x1130   : > { %v13258_v14 = vmul.f32 %v21660_v12, %v13238_v28  ;;  %v17019_v54 = vpack.c.bf16 %v14254_v15, %v14253_v37  ;;  %v14209_v61 = vld [vmem:[%s18856_s1 + $0x20] sm:$0xff]  ;;  %v14259_v37 = vld [vmem:[%s18856_s1 + $0x1b0] sm:$0xff] }
0x1131   : > { %v13257_v55 = vmul.f32 %v21660_v12, %v13237_v52  ;;  %v14210_v52 = vld [vmem:[%s18856_s1 + $0x28] sm:$0xff]  ;;  %v14241_v28 = vld [vmem:[%s18856_s1 + $0x120] sm:$0xff]  ;;  %v14211_v15 = vld [vmem:[%s18856_s1 + $0x30] sm:$0xff]  ;;  %v17031_v8 = vpack.c.bf16 %v14260_v57, %v14259_v37 }
0x1132   : > { %v13278_v5 = vadd.f32 %v21663_v18, %v13258_v14  ;;  %17020 = vmatprep.subr.bf16.mxu0 %v17019_v54  ;;  %v17001_v54 = vpack.c.bf16 %v14212_v1, %v14211_v15  ;;  %v14215_v37 = vld [vmem:[%s18856_s1 + $0x50] sm:$0xff] }
0x1133   : > { %v13277_v17 = vadd.f32 %v21663_v18, %v13257_v55  ;;  %17022 = vmatpush3.bf16.msra.mxu0 %v17021_v20  ;;  %v16997_v55 = vpack.c.bf16 %v14210_v52, %v14209_v61  ;;  %v17033_v20 = vpack.c.bf16 %v14244_v56, %v14243_v23  ;;  %v14247_v1 = vld [vmem:[%s18856_s1 + $0x150] sm:$0xff] }
0x1134   : > { %17024 = vmatprep.subr.bf16.mxu0 %v17023_v60  ;;  %v14262_v60 = vld [vmem:[%s18856_s1 + $0x1c8] sm:$0xff] }
0x1135   : > { %13484 = vmatmul.mubr.f32.gmra.mrb[196].mxu1 %v13277_v17  ;;  %13645 = vmatmul.mubr.f32.gmra.mrb[156].mxu0 %v13277_v17  ;;  %v14242_v17 = vld [vmem:[%s18856_s1 + $0x128] sm:$0xff] }
0x1136   : > { %13489 = vmatprep.mubr.f32.mxu1 %v22557_v10  ;;  %13650 = vmatprep.mubr.f32.mxu0 %v22557_v10  ;;  %v17029_v14 = vpack.c.bf16 %v14242_v17, %v14241_v28  ;;  %v14231_v28 = vld [vmem:[%s18856_s1 + $0xd0] sm:$0xff] }
0x1137   : > { %17026 = vmatpush3.bf16.msra.mxu0 %v17025_v39  ;;  %16998 = vmatpush3.bf16.msra.mxu1 %v16997_v55  ;;  %v17035_v39 = vpack.c.bf16 %v14262_v60, %v14261_v35  ;;  %v14232_v55 = vld [vmem:[%s18856_s1 + $0xd8] sm:$0xff]  ;;  %v14263_v17 = vld [vmem:[%s18856_s1 + $0x1d0] sm:$0xff]  ;;  %v14218_v60 = vld [vmem:[%s18856_s1 + $0x68] sm:$0xff] }
0x1138   : > { %17028 = vmatprep.subr.bf16.mxu0 %v17027_v7  ;;  %v17037_v7 = vpack.c.bf16 %v14246_v50, %v14245_v33 }
0x1139   : > { %13490 = vmatmul.mubr.f32.gmra.mrb[198].mxu1 %v13278_v5  ;;  %13651 = vmatmul.mubr.f32.gmra.mrb[158].mxu0 %v13278_v5  ;;  %v16999_v5 = vpack.c.bf16 %v14228_v22, %v14227_v49  ;;  %v17007_v49 = vpack.c.bf16 %v14232_v55, %v14231_v28  ;;  %v14264_v22 = vld [vmem:[%s18856_s1 + $0x1d8] sm:$0xff]  ;;  %v14235_v28 = vld [vmem:[%s18856_s1 + $0xf0] sm:$0xff] }
0x113a   : > { %13495 = vmatprep.mubr.f32.mxu1 %v22557_v10  ;;  %13656 = vmatprep.mubr.f32.mxu0 %v22557_v10  ;;  %v17039_v57 = vpack.c.bf16 %v14264_v22, %v14263_v17  ;;  %v14236_v55 = vld [vmem:[%s18856_s1 + $0xf8] sm:$0xff]  ;;  %v14267_v17 = vld [vmem:[%s18856_s1 + $0x1f0] sm:$0xff] }
0x113b   : > { %17030 = vmatpush3.bf16.msra.mxu0 %v17029_v14  ;;  %17000 = vmatprep.subr.bf16.mxu1 %v16999_v5  ;;  %v14216_v5 = vld [vmem:[%s18856_s1 + $0x58] sm:$0xff] }
0x113c   : > { %17032 = vmatprep.subr.bf16.mxu0 %v17031_v8  ;;  %17002 = vmatpush3.bf16.msra.mxu1 %v17001_v54  ;;  %v17009_v15 = vpack.c.bf16 %v14216_v5, %v14215_v37  ;;  %v14248_v8 = vld [vmem:[%s18856_s1 + $0x158] sm:$0xff] }
0x113d   : > { %17004 = vmatprep.subr.bf16.mxu1 %v17003_v40  ;;  %v17041_v56 = vpack.c.bf16 %v14248_v8, %v14247_v1  ;;  %v14217_v40 = vld [vmem:[%s18856_s1 + $0x60] sm:$0xff]  ;;  %v14268_v22 = vld [vmem:[%s18856_s1 + $0x1f8] sm:$0xff]  ;;  %v14251_v1 = vld [vmem:[%s18856_s1 + $0x170] sm:$0xff] }
0x113e   : > { %v17013_v21 = vpack.c.bf16 %v14218_v60, %v14217_v40  ;;  %v17047_v5 = vpack.c.bf16 %v14268_v22, %v14267_v17 }
0x113f   : > { %17034 = vmatpush3.bf16.msra.mxu0 %v17033_v20 }
0x1140   : > { %17036 = vmatprep.subr.bf16.mxu0 %v17035_v39  ;;  %17006 = vmatpush3.bf16.msra.mxu1 %v17005_v42  ;;  %v14250_v39 = vld [vmem:[%s18856_s1 + $0x168] sm:$0xff] }
0x1141   : > { %17008 = vmatprep.subr.bf16.mxu1 %v17007_v49  ;;  %v17015_v49 = vpack.c.bf16 %v14236_v55, %v14235_v28 }
0x1143   : > { %17038 = vmatpush3.bf16.msra.mxu0 %v17037_v7 }
0x1144   : > { %17040 = vmatprep.subr.bf16.mxu0 %v17039_v57  ;;  %17010 = vmatpush3.bf16.msra.mxu1 %v17009_v15  ;;  %v14219_v57 = vld [vmem:[%s18856_s1 + $0x70] sm:$0xff]  ;;  %v14220_v15 = vld [vmem:[%s18856_s1 + $0x78] sm:$0xff] }
0x1147   : > { %17042 = vmatpush3.bf16.msra.mxu0 %v17041_v56 }
0x1152   : > { %v13172_v46 = vpop.xlane.xlu1 %13171 }
0x1153   : > { %v13192_v53 = vmul.f32 0.0078125, %v13172_v46  ;;  %v13170_v44 = vpop.xlane.xlu0 %13169 }
0x1154   : > { %v13191_v48 = vmul.f32 0.0078125, %v13170_v44  ;;  %v14234_v44 = vld [vmem:[%s18856_s1 + $0xe8] sm:$0xff] }
0x1155   : > { %v13208_v16 = vadd.f32 1e-05, %v13192_v53  ;;  %v14233_v53 = vld [vmem:[%s18856_s1 + $0xe0] sm:$0xff] }
0x1156   : > { %v13207_v25 = vadd.f32 1e-05, %v13191_v48  ;;  %v13176_v6 = vpop.xlane.xlu1 %13175  ;;  %v17011_v35 = vpack.c.bf16 %v14234_v44, %v14233_v53  ;;  %v14266_v48 = vld [vmem:[%s18856_s1 + $0x1e8] sm:$0xff] }
0x1157   : > { %17603 = vrsqrt.f32 %v13208_v16  ;;  %v13194_v61 = vmul.f32 0.0078125, %v13176_v6  ;;  %v13174_v52 = vpop.xlane.xlu0 %13173  ;;  %v17043_v32 = vpack.c.bf16 %v14266_v48, %v14265_v0  ;;  %v14249_v16 = vld [vmem:[%s18856_s1 + $0x160] sm:$0xff] }
0x1158   : > { %17605 = vrsqrt.f32 %v13207_v25  ;;  %v13193_v14 = vmul.f32 0.0078125, %v13174_v52  ;;  %17012 = vmatprep.subr.bf16.mxu1 %v17011_v35  ;;  %v17045_v50 = vpack.c.bf16 %v14250_v39, %v14249_v16  ;;  %v22670_v16 = vld [vmem:[#allocation43_spill] sm:$0xff] }
0x1159   : > { %v13210_v54 = vadd.f32 1e-05, %v13194_v61  ;;  %17044 = vmatprep.subr.bf16.mxu0 %v17043_v32  ;;  %17014 = vmatpush3.bf16.msra.mxu1 %v17013_v21 }
0x115a   : > { %v13209_v23 = vadd.f32 1e-05, %v13193_v14  ;;  %v13180_v46 = vpop.xlane.xlu1 %13179  ;;  %17046 = vmatpush3.bf16.msra.mxu0 %v17045_v50  ;;  %17016 = vmatprep.subr.bf16.mxu1 %v17015_v49 }
0x115b   : > { %v13178_v20 = vpop.xlane.xlu0 %13177  ;;  %v13196_v42 = vmul.f32 0.0078125, %v13180_v46  ;;  %17048 = vmatprep.subr.bf16.mxu0 %v17047_v5 }
0x115c   : > { %17607 = vrsqrt.f32 %v13209_v23  ;;  %v13195_v11 = vmul.f32 0.0078125, %v13178_v20  ;;  %v14252_v23 = vld [vmem:[%s18856_s1 + $0x178] sm:$0xff] }
0x115d   : > { %17609 = vrsqrt.f32 %v13210_v54  ;;  %v13212_v7 = vadd.f32 1e-05, %v13196_v42  ;;  %v17017_v54 = vpack.c.bf16 %v14220_v15, %v14219_v57  ;;  %v17049_v46 = vpack.c.bf16 %v14252_v23, %v14251_v1  ;;  %v22671_v42 = vld [vmem:[#allocation42_spill] sm:$0xff] }
0x115e   : > { %v13211_v33 = vadd.f32 1e-05, %v13195_v11 }
0x115f   : > { %17018 = vmatpush3.bf16.msra.mxu1 %v17017_v54  ;;  %17050 = vmatpush3.bf16.msra.mxu0 %v17049_v46 }
0x1160   : > { %17611 = vrsqrt.f32 %v13211_v33 }
0x1161   : > { %v17604_v25 = vpop.eup %17603  ;;  %17613 = vrsqrt.f32 %v13212_v7 }
0x1162   : > { %v17606_v6 = vpop.eup %17605  ;;  %v13240_v52 = vmul.f32 %v17604_v25, %v21628_v24 }
0x1163   : > { %v13239_v61 = vmul.f32 %v17606_v6, %v21631_v4 }
0x1164   : > { %v13260_v4 = vmul.f32 %v21660_v12, %v13240_v52 }
0x1165   : > { %v13259_v14 = vmul.f32 %v21660_v12, %v13239_v61 }
0x1166   : > { %v17608_v37 = vpop.eup %17607  ;;  %v13280_v20 = vadd.f32 %v21663_v18, %v13260_v4 }
0x1167   : > { %v13279_v8 = vadd.f32 %v21663_v18, %v13259_v14  ;;  %v13241_v24 = vmul.f32 %v17608_v37, %v21641_v51  ;;  %v17610_v56 = vpop.eup %17609 }
0x1168   : > { %v13242_v44 = vmul.f32 %v17610_v56, %v21638_v43 }
0x1169   : > { %13496 = vmatmul.mubr.f32.gmra.mrb[200].mxu1 %v13279_v8  ;;  %13657 = vmatmul.mubr.f32.gmra.mrb[160].mxu0 %v13279_v8  ;;  %v13261_v53 = vmul.f32 %v21660_v12, %v13241_v24 }
0x116a   : > { %13501 = vmatprep.mubr.f32.mxu1 %v22557_v10  ;;  %13662 = vmatprep.mubr.f32.mxu0 %v22557_v10  ;;  %v17612_v51 = vpop.eup %17611  ;;  %v13262_v11 = vmul.f32 %v21660_v12, %v13242_v44 }
0x116b   : > { %v13281_v0 = vadd.f32 %v21663_v18, %v13261_v53  ;;  %v13243_v35 = vmul.f32 %v17612_v51, %v21651_v29  ;;  %v17614_v48 = vpop.eup %17613 }
0x116c   : > { %v13282_v43 = vadd.f32 %v21663_v18, %v13262_v11  ;;  %v13244_v60 = vmul.f32 %v17614_v48, %v21648_v9  ;;  %v13349_v9 = vld [vmem:[%s18872_s0] sm:$0xf]  ;;  %s22682_s0 = sld [smem:[#allocation29_spill]] }
0x116d   : > { %13502 = vmatmul.mubr.f32.gmra.mrb[202].mxu1 %v13280_v20  ;;  %13663 = vmatmul.mubr.f32.gmra.mrb[162].mxu0 %v13280_v20  ;;  %v13263_v40 = vmul.f32 %v21660_v12, %v13243_v35  ;;  %v21808_v39 = vrot.slane %v13349_v9, %v22670_v16  ;;  %v21811_v33 = vrot.slane %v13349_v9, %v22671_v42 }
0x116e   : > { %13507 = vmatprep.mubr.f32.mxu1 %v22557_v10  ;;  %13668 = vmatprep.mubr.f32.mxu0 %v22557_v10  ;;  %v13264_v32 = vmul.f32 %v21660_v12, %v13244_v60  ;;  %v21814_v50 = vrot.slane %v13349_v9, %v22659_v19  ;;  %v22672_v12 = vsub.s32 3, %v22669_v2 }
0x116f   : > { %v13283_v29 = vadd.f32 %v21663_v18, %v13263_v40 }
0x1170   : > { %v13284_v21 = vadd.f32 %v21663_v18, %v13264_v32  ;;  %v21818_v25 = vrot.slane %v13349_v9, %v22672_v12 }
0x1171   : > { %13508 = vmatmul.mubr.f32.gmra.mrb[204].mxu1 %v13281_v0  ;;  %13669 = vmatmul.mubr.f32.gmra.mrb[164].mxu0 %v13281_v0 }
0x1172   : > { %13513 = vmatprep.mubr.f32.mxu1 %v22557_v10  ;;  %13674 = vmatprep.mubr.f32.mxu0 %v22557_v10  ;;  %p15251_p8 = scmp.ne.s32.totalorder %s22682_s0, 1 }
0x1175   : > { %13514 = vmatmul.mubr.f32.gmra.mrb[206].mxu1 %v13282_v43  ;;  %13675 = vmatmul.mubr.f32.gmra.mrb[166].mxu0 %v13282_v43 }
0x1176   : > { %13519 = vmatprep.mubr.f32.mxu1 %v22557_v10  ;;  %13680 = vmatprep.mubr.f32.mxu0 %v22557_v10 }
0x1179   : > { %13520 = vmatmul.mubr.f32.gmra.mrb[208].mxu1 %v13283_v29  ;;  %13681 = vmatmul.mubr.f32.gmra.mrb[168].mxu0 %v13283_v29 }
0x117a   : > { %13525 = vmatprep.mubr.f32.mxu1 %v22557_v10  ;;  %13686 = vmatprep.mubr.f32.mxu0 %v22557_v10 }
0x117d   : > { %13526 = vmatmul.mubr.f32.gmra.mrb[210].mxu1 %v13284_v21  ;;  %13687 = vmatmul.mubr.f32.gmra.mrb[170].mxu0 %v13284_v21 }
0x11b4   : > { %v13437_v6 = vpop.f32.mrb[180].mxu1  ;;  %v13598_v10 = vpop.f32.mrb[140].mxu0 }
0x11b5   : > { %v21821_v18 = vadd.f32 %v13437_v6, %v21808_v39  ;;  %v21824_v7 = vadd.f32 %v13598_v10, %v21811_v33  ;;  %v13439_v61 = vpop.f32.mrb[181].mxu1  ;;  %v13600_v52 = vpop.f32.mrb[141].mxu0 }
0x11b6   : > { %v21827_v28 = vadd.f32 %v13439_v61, %v21814_v50  ;;  %v21830_v19 = vadd.f32 %v13600_v52, %v21818_v25 }
0x11b7   : > { %v15187_v2 = vmul.f32 -1.702, %v21821_v18  ;;  %v15189_v55 = vmul.f32 -1.702, %v21824_v7 }
0x11b8   : > { %v15188_v17 = vmul.f32 -1.702, %v21827_v28  ;;  %v15190_v14 = vmul.f32 -1.702, %v21830_v19  ;;  %v13443_v49 = vpop.f32.mrb[182].mxu1  ;;  %v13604_v22 = vpop.f32.mrb[142].mxu0 }
0x11b9   : > { %v13821_v37 = vmul.f32 1.442695, %v15187_v2  ;;  %v13825_v5 = vmul.f32 1.442695, %v15189_v55  ;;  %v21837_v57 = vadd.f32 %v13443_v49, %v21808_v39  ;;  %v21840_v15 = vadd.f32 %v13604_v22, %v21811_v33  ;;  %v13445_v1 = vpop.f32.mrb[183].mxu1  ;;  %v13606_v8 = vpop.f32.mrb[143].mxu0 }
0x11ba   : > { %v13823_v4 = vmul.f32 1.442695, %v15188_v17  ;;  %v13827_v24 = vmul.f32 1.442695, %v15190_v14  ;;  %v21843_v54 = vadd.f32 %v13445_v1, %v21814_v50  ;;  %v21846_v23 = vadd.f32 %v13606_v8, %v21818_v25 }
0x11bb   : > { %17615 = vpow2.f32 %v13821_v37  ;;  %v15191_v56 = vmul.f32 -1.702, %v21837_v57  ;;  %v15193_v46 = vmul.f32 -1.702, %v21840_v15 }
0x11bc   : > { %17617 = vpow2.f32 %v13825_v5  ;;  %v15192_v20 = vmul.f32 -1.702, %v21843_v54  ;;  %v15194_v53 = vmul.f32 -1.702, %v21846_v23  ;;  %v13449_v44 = vpop.f32.mrb[184].mxu1  ;;  %v13610_v51 = vpop.f32.mrb[144].mxu0 }
0x11bd   : > { %17619 = vpow2.f32 %v13823_v4  ;;  %v13829_v0 = vmul.f32 1.442695, %v15191_v56  ;;  %v13833_v11 = vmul.f32 1.442695, %v15193_v46  ;;  %v21853_v35 = vadd.f32 %v13449_v44, %v21808_v39  ;;  %v13451_v48 = vpop.f32.mrb[185].mxu1  ;;  %v13612_v43 = vpop.f32.mrb[145].mxu0 }
0x11be   : > { %17621 = vpow2.f32 %v13827_v24  ;;  %v13831_v40 = vmul.f32 1.442695, %v15192_v20  ;;  %v13835_v60 = vmul.f32 1.442695, %v15194_v53  ;;  %v21856_v29 = vadd.f32 %v13610_v51, %v21811_v33 }
0x11bf   : > { %17623 = vpow2.f32 %v13829_v0  ;;  %v15195_v32 = vmul.f32 -1.702, %v21853_v35  ;;  %v21860_v21 = vadd.f32 %v13451_v48, %v21814_v50  ;;  %v21863_v9 = vadd.f32 %v13612_v43, %v21818_v25 }
0x11c0   : > { %17625 = vpow2.f32 %v13833_v11  ;;  %v15197_v16 = vmul.f32 -1.702, %v21856_v29  ;;  %v13455_v12 = vpop.f32.mrb[186].mxu1  ;;  %v13616_v6 = vpop.f32.mrb[146].mxu0 }
0x11c1   : > { %17627 = vpow2.f32 %v13831_v40  ;;  %v13837_v10 = vmul.f32 1.442695, %v15195_v32  ;;  %v15196_v61 = vmul.f32 -1.702, %v21860_v21  ;;  %v15198_v52 = vmul.f32 -1.702, %v21863_v9 }
0x11c2   : > { %17629 = vpow2.f32 %v13835_v60  ;;  %v13841_v2 = vmul.f32 1.442695, %v15197_v16  ;;  %v13457_v55 = vpop.f32.mrb[187].mxu1  ;;  %v13618_v17 = vpop.f32.mrb[147].mxu0  ;;  %v21869_v1 = vadd.f32 %v13455_v12, %v21808_v39  ;;  %v21872_v46 = vadd.f32 %v13616_v6, %v21811_v33 }
0x11c3   : > { %17631 = vpow2.f32 %v13837_v10  ;;  %v13839_v14 = vmul.f32 1.442695, %v15196_v61  ;;  %v13843_v49 = vmul.f32 1.442695, %v15198_v52  ;;  %v21875_v0 = vadd.f32 %v13457_v55, %v21814_v50 }
0x11c4   : > { %17633 = vpow2.f32 %v13841_v2  ;;  %v13461_v22 = vpop.f32.mrb[188].mxu1  ;;  %v13622_v37 = vpop.f32.mrb[148].mxu0  ;;  %v15199_v40 = vmul.f32 -1.702, %v21869_v1  ;;  %v15201_v12 = vmul.f32 -1.702, %v21872_v46  ;;  %v21880_v6 = vadd.f32 %v13618_v17, %v21818_v25 }
0x11c5   : > { %v17616_v5 = vpop.eup %17615  ;;  %17635 = vpow2.f32 %v13839_v14  ;;  %v13463_v8 = vpop.f32.mrb[189].mxu1  ;;  %v21883_v2 = vadd.f32 %v13461_v22, %v21808_v39 }
0x11c6   : > { %v13624_v4 = vpop.f32.mrb[149].mxu0  ;;  %v17618_v24 = vpop.eup %17617  ;;  %v13949_v56 = vadd.f32 1.0, %v17616_v5  ;;  %17637 = vpow2.f32 %v13843_v49  ;;  %v15200_v5 = vmul.f32 -1.702, %v21875_v0 }
0x11c7   : > { %v17620_v20 = vpop.eup %17619  ;;  %v13951_v53 = vadd.f32 1.0, %v17618_v24  ;;  %v21887_v24 = vadd.f32 %v13622_v37, %v21811_v33  ;;  %v21895_v37 = vadd.f32 %v13624_v4, %v21818_v25 }
0x11c8   : > { %v17622_v44 = vpop.eup %17621  ;;  %17639 = vrcp.f32 %v13949_v56  ;;  %v13950_v51 = vadd.f32 1.0, %v17620_v20  ;;  %v13467_v11 = vpop.f32.mrb[190].mxu1  ;;  %v13845_v20 = vmul.f32 1.442695, %v15199_v40 }
0x11c9   : > { %v17624_v48 = vpop.eup %17623  ;;  %17641 = vrcp.f32 %v13951_v53  ;;  %v13952_v43 = vadd.f32 1.0, %v17622_v44  ;;  %v13628_v60 = vpop.f32.mrb[150].mxu0  ;;  %v21890_v53 = vadd.f32 %v13463_v8, %v21814_v50  ;;  %v15205_v8 = vmul.f32 -1.702, %v21887_v24 }
0x11ca   : > { %v17626_v32 = vpop.eup %17625  ;;  %17643 = vrcp.f32 %v13950_v51  ;;  %v13953_v16 = vadd.f32 1.0, %v17624_v48  ;;  %v13469_v10 = vpop.f32.mrb[191].mxu1  ;;  %v13849_v51 = vmul.f32 1.442695, %v15201_v12  ;;  %v15202_v48 = vmul.f32 -1.702, %v21880_v6 }
0x11cb   : > { %v17628_v61 = vpop.eup %17627  ;;  %17645 = vrcp.f32 %v13952_v43  ;;  %v13955_v52 = vadd.f32 1.0, %v17626_v32  ;;  %v13630_v55 = vpop.f32.mrb[151].mxu0  ;;  %v13857_v36 = vmul.f32 1.442695, %v15205_v8 }
0x11cc   : > { %v17630_v14 = vpop.eup %17629  ;;  %17647 = vrcp.f32 %v13953_v16  ;;  %v13954_v49 = vadd.f32 1.0, %v17628_v61  ;;  %v15203_v16 = vmul.f32 -1.702, %v21883_v2  ;;  %v13851_v4 = vmul.f32 1.442695, %v15202_v48 }
0x11cd   : > { %v17632_v56 = vpop.eup %17631  ;;  %17649 = vrcp.f32 %v13955_v52  ;;  %v13956_v17 = vadd.f32 1.0, %v17630_v14  ;;  %v21899_v52 = vadd.f32 %v13467_v11, %v21808_v39  ;;  %v15204_v14 = vmul.f32 -1.702, %v21890_v53 }
0x11ce   : > { %v17634_v44 = vpop.eup %17633  ;;  %17651 = vrcp.f32 %v13954_v49  ;;  %v13957_v22 = vadd.f32 1.0, %v17632_v56  ;;  %v21903_v49 = vadd.f32 %v13628_v60, %v21811_v33  ;;  %v15206_v11 = vmul.f32 -1.702, %v21895_v37 }
0x11cf   : > { %v17636_v43 = vpop.eup %17635  ;;  %17653 = vrcp.f32 %v13956_v17  ;;  %v13959_v32 = vadd.f32 1.0, %v17634_v44  ;;  %v13847_v17 = vmul.f32 1.442695, %v15200_v5  ;;  %v21906_v44 = vadd.f32 %v13469_v10, %v21814_v50 }
0x11d0   : > { %v17638_v61 = vpop.eup %17637  ;;  %17655 = vrcp.f32 %v13957_v22  ;;  %v13958_v40 = vadd.f32 1.0, %v17636_v43  ;;  %v13853_v43 = vmul.f32 1.442695, %v15203_v16  ;;  %v15207_v5 = vmul.f32 -1.702, %v21899_v52 }
0x11d1   : > { %17657 = vrcp.f32 %v13959_v32  ;;  %v13960_v12 = vadd.f32 1.0, %v17638_v61  ;;  %v21910_v32 = vadd.f32 %v13630_v55, %v21818_v25  ;;  %v13855_v55 = vmul.f32 1.442695, %v15204_v14 }
0x11d2   : > { %v17640_v56 = vpop.eup %17639  ;;  %17659 = vrcp.f32 %v13958_v40  ;;  %v15209_v41 = vmul.f32 -1.702, %v21903_v49  ;;  %v13859_v31 = vmul.f32 1.442695, %v15206_v11 }
0x11d3   : > { %v17642_v22 = vpop.eup %17641  ;;  %17661 = vrcp.f32 %v13960_v12  ;;  %v13473_v61 = vpop.f32.mrb[192].mxu1  ;;  %v15210_v34 = vmul.f32 -1.702, %v21910_v32 }
0x11d4   : > { %v21912_v62 = vpop.f32.mrb[152].mxu0  ;;  %v17644_v60 = vpop.eup %17643  ;;  %17663 = vpow2.f32 %v13845_v20  ;;  %v21916_v48 = vadd.f32 %v13473_v61, %v21808_v39  ;;  %v14141_v20 = vmul.f32 %v17640_v56, %v21821_v18  ;;  %v15208_v61 = vmul.f32 -1.702, %v21906_v44 }
0x11d5   : > { %v21918_v10 = vpop.f32.mrb[193].mxu1  ;;  %v21920_v40 = vpop.f32.mrb[153].mxu0  ;;  %v14142_v12 = vmul.f32 %v17644_v60, %v21827_v28  ;;  %17665 = vpow2.f32 %v13849_v51  ;;  %v14143_v45 = vmul.f32 %v17642_v22, %v21824_v7  ;;  %v13861_v18 = vmul.f32 1.442695, %v15207_v5 }
0x11d6   : > { %v17646_v16 = vpop.eup %17645  ;;  %17667 = vpow2.f32 %v13847_v17  ;;  %v13865_v22 = vmul.f32 1.442695, %v15209_v41  ;;  %v13863_v5 = vmul.f32 1.442695, %v15208_v61 }
0x11d7   : > { %v17648_v38 = vpop.eup %17647  ;;  %v14144_v8 = vmul.f32 %v17646_v16, %v21830_v19  ;;  %17669 = vpow2.f32 %v13851_v4  ;;  %14337 = vmatprep.mubr.f32.mxu1 %v14142_v12  ;;  %v21929_v28 = vpop.f32.mrb[194].mxu1  ;;  %v15211_v19 = vmul.f32 -1.702, %v21916_v48 }
0x11d8   : > { %v17650_v3 = vpop.eup %17649  ;;  %v21931_v51 = vpop.f32.mrb[154].mxu0  ;;  %17671 = vpow2.f32 %v13853_v43  ;;  %14338 = vmatmul.mubr.f32.vlgmr.msra.gmra.mrb[212].mxu1 %v14141_v20  ;;  %v14145_v60 = vmul.f32 %v17648_v38, %v21837_v57  ;;  %v13867_v20 = vmul.f32 1.442695, %v15210_v34 }
0x11d9   : > { %v17652_v14 = vpop.eup %17651  ;;  %14482 = vmatprep.mubr.f32.mxu0 %v14144_v8  ;;  %v21934_v56 = vpop.f32.mrb[195].mxu1  ;;  %17673 = vpow2.f32 %v13857_v36  ;;  %v14147_v12 = vmul.f32 %v17650_v3, %v21840_v15  ;;  %v13869_v27 = vmul.f32 1.442695, %v15211_v19  ;;  %v21956_v19 = vadd.f32 %v21920_v40, %v21818_v25 }
0x11da   : > { %v21936_v17 = vpop.f32.mrb[155].mxu0  ;;  %v17654_v7 = vpop.eup %17653  ;;  %v14146_v4 = vmul.f32 %v17652_v14, %v21843_v54  ;;  %14483 = vmatmul.mubr.f32.vlgmr.msra.gmra.mrb[172].mxu0 %v14143_v45  ;;  %17675 = vpow2.f32 %v13855_v55  ;;  %v21952_v14 = vadd.f32 %v21918_v10, %v21814_v50 }
0x11db   : > { %v17656_v11 = vpop.eup %17655  ;;  %v14148_v43 = vmul.f32 %v17654_v7, %v21846_v23  ;;  %17677 = vpow2.f32 %v13859_v31 }
0x11dc   : > { %v17658_v16 = vpop.eup %17657  ;;  %14342 = vmatprep.mubr.f32.mxu1 %v14146_v4  ;;  %17679 = vpow2.f32 %v13861_v18  ;;  %v14149_v36 = vmul.f32 %v17656_v11, %v21853_v35 }
0x11dd   : > { %v17660_v8 = vpop.eup %17659  ;;  %14487 = vmatprep.mubr.f32.mxu0 %v14148_v43  ;;  %14343 = vmatmul.mubr.f32.gmra.mrb[214].mxu1 %v14145_v60  ;;  %17681 = vpow2.f32 %v13865_v22  ;;  %v14151_v31 = vmul.f32 %v17658_v16, %v21856_v29  ;;  %v21965_v60 = vadd.f32 %v21931_v51, %v21811_v33  ;;  %v21970_v16 = vadd.f32 %v21934_v56, %v21814_v50 }
0x11de   : > { %v17662_v41 = vpop.eup %17661  ;;  %v14150_v45 = vmul.f32 %v17660_v8, %v21860_v21  ;;  %14488 = vmatmul.mubr.f32.gmra.mrb[174].mxu0 %v14147_v12  ;;  %17683 = vpow2.f32 %v13863_v5  ;;  %v15212_v5 = vmul.f32 -1.702, %v21952_v14  ;;  %v21975_v8 = vadd.f32 %v21936_v17, %v21818_v25 }
0x11df   : > { %v17664_v38 = vpop.eup %17663  ;;  %v14152_v57 = vmul.f32 %v17662_v41, %v21863_v9  ;;  %17685 = vpow2.f32 %v13867_v20  ;;  %v21948_v9 = vadd.f32 %v21912_v62, %v21811_v33  ;;  %v21960_v62 = vadd.f32 %v21929_v28, %v21808_v39 }
0x11e0   : > { %v17666_v3 = vpop.eup %17665  ;;  %v13961_v34 = vadd.f32 1.0, %v17664_v38  ;;  %14347 = vmatprep.mubr.f32.mxu1 %v14150_v45  ;;  %17687 = vpow2.f32 %v13869_v27  ;;  %v15214_v20 = vmul.f32 -1.702, %v21956_v19  ;;  %v15217_v56 = vmul.f32 -1.702, %v21965_v60 }
0x11e1   : > { %v17668_v15 = vpop.eup %17667  ;;  %v13963_v54 = vadd.f32 1.0, %v17666_v3  ;;  %14492 = vmatprep.mubr.f32.mxu0 %v14152_v57  ;;  %14348 = vmatmul.mubr.f32.gmra.mrb[216].mxu1 %v14149_v36  ;;  %v15213_v10 = vmul.f32 -1.702, %v21948_v9  ;;  %v15215_v45 = vmul.f32 -1.702, %v21960_v62 }
0x11e2   : > { %v17670_v23 = vpop.eup %17669  ;;  %17689 = vrcp.f32 %v13961_v34  ;;  %v13962_v21 = vadd.f32 1.0, %v17668_v15  ;;  %14493 = vmatmul.mubr.f32.gmra.mrb[176].mxu0 %v14151_v31  ;;  %v13871_v31 = vmul.f32 1.442695, %v15212_v5  ;;  %v15216_v34 = vmul.f32 -1.702, %v21970_v16 }
0x11e3   : > { %v17672_v55 = vpop.eup %17671  ;;  %17691 = vrcp.f32 %v13963_v54  ;;  %v13964_v35 = vadd.f32 1.0, %v17670_v23  ;;  %v13873_v57 = vmul.f32 1.442695, %v15213_v10  ;;  %v13875_v17 = vmul.f32 1.442695, %v15214_v20 }
0x11e4   : > { %v17674_v29 = vpop.eup %17673  ;;  %17693 = vrcp.f32 %v13962_v21  ;;  %v13965_v61 = vadd.f32 1.0, %v17672_v55  ;;  %v15218_v54 = vmul.f32 -1.702, %v21975_v8  ;;  %v13877_v21 = vmul.f32 1.442695, %v15215_v45 }
0x11e5   : > { %v17676_v27 = vpop.eup %17675  ;;  %17695 = vrcp.f32 %v13964_v35  ;;  %v13967_v18 = vadd.f32 1.0, %v17674_v29  ;;  %v13881_v29 = vmul.f32 1.442695, %v15217_v56 }
0x11e6   : > { %v17678_v7 = vpop.eup %17677  ;;  %17697 = vrcp.f32 %v13965_v61  ;;  %v13966_v4 = vadd.f32 1.0, %v17676_v27 }
0x11e7   : > { %v17680_v22 = vpop.eup %17679  ;;  %17699 = vrcp.f32 %v13967_v18  ;;  %v13968_v11 = vadd.f32 1.0, %v17678_v7  ;;  %v13879_v7 = vmul.f32 1.442695, %v15216_v34 }
0x11e8   : > { %v17682_v43 = vpop.eup %17681  ;;  %17701 = vrcp.f32 %v13966_v4  ;;  %v13969_v40 = vadd.f32 1.0, %v17680_v22 }
0x11e9   : > { %v17684_v28 = vpop.eup %17683  ;;  %17703 = vrcp.f32 %v13968_v11  ;;  %v13971_v12 = vadd.f32 1.0, %v17682_v43  ;;  %v13883_v11 = vmul.f32 1.442695, %v15218_v54 }
0x11ea   : > { %v17686_v51 = vpop.eup %17685  ;;  %17705 = vrcp.f32 %v13969_v40  ;;  %v13970_v41 = vadd.f32 1.0, %v17684_v28 }
0x11eb   : > { %v17688_v38 = vpop.eup %17687  ;;  %17707 = vrcp.f32 %v13971_v12  ;;  %v13972_v36 = vadd.f32 1.0, %v17686_v51 }
0x11ec   : > { %v17690_v3 = vpop.eup %17689  ;;  %17709 = vrcp.f32 %v13970_v41 }
0x11ed   : > { %v17692_v15 = vpop.eup %17691  ;;  %17711 = vrcp.f32 %v13972_v36  ;;  %v14153_v27 = vmul.f32 %v17690_v3, %v21869_v1 }
0x11ee   : > { %v17694_v23 = vpop.eup %17693  ;;  %17713 = vpow2.f32 %v13873_v57  ;;  %v14155_v22 = vmul.f32 %v17692_v15, %v21872_v46 }
0x11ef   : > { %v17696_v55 = vpop.eup %17695  ;;  %v14154_v35 = vmul.f32 %v17694_v23, %v21875_v0  ;;  %17715 = vpow2.f32 %v13871_v31 }
0x11f0   : > { %v17698_v61 = vpop.eup %17697  ;;  %v14156_v18 = vmul.f32 %v17696_v55, %v21880_v6  ;;  %17717 = vpow2.f32 %v13875_v17 }
0x11f1   : > { %v17700_v4 = vpop.eup %17699  ;;  %14352 = vmatprep.mubr.f32.mxu1 %v14154_v35  ;;  %17719 = vpow2.f32 %v13877_v21  ;;  %v14157_v6 = vmul.f32 %v17698_v61, %v21883_v2 }
0x11f2   : > { %v17702_v10 = vpop.eup %17701  ;;  %14497 = vmatprep.mubr.f32.mxu0 %v14156_v18  ;;  %14353 = vmatmul.mubr.f32.gmra.mrb[218].mxu1 %v14153_v27  ;;  %17721 = vpow2.f32 %v13881_v29  ;;  %v14159_v46 = vmul.f32 %v17700_v4, %v21887_v24 }
0x11f3   : > { %v17704_v0 = vpop.eup %17703  ;;  %v14158_v43 = vmul.f32 %v17702_v10, %v21890_v53  ;;  %14498 = vmatmul.mubr.f32.gmra.mrb[178].mxu0 %v14155_v22  ;;  %17723 = vpow2.f32 %v13879_v7  ;;  %v13973_v53 = vadd.f32 1.0, %v17688_v38 }
0x11f4   : > { %v17706_v1 = vpop.eup %17705  ;;  %v14160_v40 = vmul.f32 %v17704_v0, %v21895_v37  ;;  %17725 = vpow2.f32 %v13883_v11 }
0x11f5   : > { %v17708_v5 = vpop.eup %17707  ;;  %14357 = vmatprep.mubr.f32.mxu1 %v14158_v43  ;;  %v14161_v51 = vmul.f32 %v17706_v1, %v21899_v52  ;;  %17727 = vrcp.f32 %v13973_v53 }
0x11f6   : > { %v17710_v28 = vpop.eup %17709  ;;  %14502 = vmatprep.mubr.f32.mxu0 %v14160_v40  ;;  %14358 = vmatmul.mubr.f32.gmra.mrb[220].mxu1 %v14157_v6  ;;  %v14163_v37 = vmul.f32 %v17708_v5, %v21903_v49 }
0x11f7   : > { %v17712_v12 = vpop.eup %17711  ;;  %v14162_v20 = vmul.f32 %v17710_v28, %v21906_v44  ;;  %14503 = vmatmul.mubr.f32.gmra.mrb[180].mxu0 %v14159_v46 }
0x11f8   : > { %v14164_v2 = vmul.f32 %v17712_v12, %v21910_v32  ;;  %v17714_v41 = vpop.eup %17713 }
0x11f9   : > { %14362 = vmatprep.mubr.f32.mxu1 %v14162_v20  ;;  %v17716_v45 = vpop.eup %17715  ;;  %v13975_v24 = vadd.f32 1.0, %v17714_v41 }
0x11fa   : > { %14507 = vmatprep.mubr.f32.mxu0 %v14164_v2  ;;  %14363 = vmatmul.mubr.f32.gmra.mrb[222].mxu1 %v14161_v51  ;;  %v17718_v36 = vpop.eup %17717  ;;  %v13974_v57 = vadd.f32 1.0, %v17716_v45 }
0x11fb   : > { %14508 = vmatmul.mubr.f32.gmra.mrb[182].mxu0 %v14163_v37  ;;  %v17720_v56 = vpop.eup %17719  ;;  %17729 = vrcp.f32 %v13975_v24  ;;  %v13976_v44 = vadd.f32 1.0, %v17718_v36 }
0x11fc   : > { %v17722_v38 = vpop.eup %17721  ;;  %17731 = vrcp.f32 %v13974_v57  ;;  %v13977_v52 = vadd.f32 1.0, %v17720_v56 }
0x11fd   : > { %v17724_v3 = vpop.eup %17723  ;;  %17733 = vrcp.f32 %v13976_v44  ;;  %v13979_v32 = vadd.f32 1.0, %v17722_v38 }
0x11fe   : > { %v17726_v31 = vpop.eup %17725  ;;  %17735 = vrcp.f32 %v13977_v52  ;;  %v13978_v49 = vadd.f32 1.0, %v17724_v3 }
0x11ff   : > { %17737 = vrcp.f32 %v13979_v32  ;;  %v13980_v34 = vadd.f32 1.0, %v17726_v31  ;;  %v17728_v15 = vpop.eup %17727 }
0x1200   : > { %17739 = vrcp.f32 %v13978_v49  ;;  %v14165_v35 = vmul.f32 %v17728_v15, %v21916_v48 }
0x1201   : > { %17741 = vrcp.f32 %v13980_v34 }
0x1205   : > { %v17730_v17 = vpop.eup %17729 }
0x1206   : > { %v17732_v54 = vpop.eup %17731  ;;  %v14167_v7 = vmul.f32 %v17730_v17, %v21948_v9 }
0x1207   : > { %v17734_v23 = vpop.eup %17733  ;;  %v14166_v21 = vmul.f32 %v17732_v54, %v21952_v14 }
0x1208   : > { %v17736_v55 = vpop.eup %17735  ;;  %v14168_v29 = vmul.f32 %v17734_v23, %v21956_v19  ;;  %v13485_v61 = vpop.f32.mrb[196].mxu1 }
0x1209   : > { %v13646_v27 = vpop.f32.mrb[156].mxu0  ;;  %v17738_v18 = vpop.eup %17737  ;;  %14367 = vmatprep.mubr.f32.mxu1 %v14166_v21  ;;  %v21998_v4 = vadd.f32 %v13485_v61, %v21808_v39  ;;  %v14169_v9 = vmul.f32 %v17736_v55, %v21960_v62 }
0x120a   : > { %v22001_v22 = vadd.f32 %v13646_v27, %v21811_v33  ;;  %v13487_v11 = vpop.f32.mrb[197].mxu1  ;;  %v13648_v10 = vpop.f32.mrb[157].mxu0  ;;  %14512 = vmatprep.mubr.f32.mxu0 %v14168_v29  ;;  %14368 = vmatmul.mubr.f32.gmra.mrb[224].mxu1 %v14165_v35  ;;  %v14171_v40 = vmul.f32 %v17738_v18, %v21965_v60 }
0x120b   : > { %v17740_v14 = vpop.eup %17739  ;;  %v22004_v48 = vadd.f32 %v13487_v11, %v21814_v50  ;;  %v22007_v19 = vadd.f32 %v13648_v10, %v21818_v25  ;;  %14513 = vmatmul.mubr.f32.gmra.mrb[184].mxu0 %v14167_v7  ;;  %v15219_v1 = vmul.f32 -1.702, %v21998_v4 }
0x120c   : > { %v17742_v0 = vpop.eup %17741  ;;  %v14170_v43 = vmul.f32 %v17740_v14, %v21970_v16  ;;  %v15221_v6 = vmul.f32 -1.702, %v22001_v22  ;;  %v13491_v12 = vpop.f32.mrb[198].mxu1 }
0x120d   : > { %v14172_v5 = vmul.f32 %v17742_v0, %v21975_v8  ;;  %v15220_v46 = vmul.f32 -1.702, %v22004_v48  ;;  %v15222_v28 = vmul.f32 -1.702, %v22007_v19  ;;  %v13652_v20 = vpop.f32.mrb[158].mxu0  ;;  %v22018_v16 = vadd.f32 %v13491_v12, %v21808_v39  ;;  %v13493_v2 = vpop.f32.mrb[199].mxu1 }
0x120e   : > { %14372 = vmatprep.mubr.f32.mxu1 %v14170_v43  ;;  %v13885_v53 = vmul.f32 1.442695, %v15219_v1  ;;  %v13889_v62 = vmul.f32 1.442695, %v15221_v6  ;;  %v22021_v51 = vadd.f32 %v13652_v20, %v21811_v33  ;;  %v13654_v41 = vpop.f32.mrb[159].mxu0  ;;  %v13494_v37 = vadd.f32 %v13493_v2, %v21814_v50 }
0x120f   : > { %14517 = vmatprep.mubr.f32.mxu0 %v14172_v5  ;;  %14373 = vmatmul.mubr.f32.gmra.mrb[226].mxu1 %v14169_v9  ;;  %v13887_v60 = vmul.f32 1.442695, %v15220_v46  ;;  %v13891_v8 = vmul.f32 1.442695, %v15222_v28  ;;  %v13655_v45 = vadd.f32 %v13654_v41, %v21818_v25  ;;  %v15223_v24 = vmul.f32 -1.702, %v22018_v16 }
0x1210   : > { %14518 = vmatmul.mubr.f32.gmra.mrb[186].mxu0 %v14171_v40  ;;  %17743 = vpow2.f32 %v13885_v53  ;;  %v15225_v36 = vmul.f32 -1.702, %v22021_v51  ;;  %v15224_v57 = vmul.f32 -1.702, %v13494_v37 }
0x1211   : > { %17745 = vpow2.f32 %v13889_v62  ;;  %v15226_v56 = vmul.f32 -1.702, %v13655_v45  ;;  %v13893_v44 = vmul.f32 1.442695, %v15223_v24 }
0x1212   : > { %17747 = vpow2.f32 %v13887_v60  ;;  %v13897_v38 = vmul.f32 1.442695, %v15225_v36  ;;  %v13895_v52 = vmul.f32 1.442695, %v15224_v57 }
0x1213   : > { %17749 = vpow2.f32 %v13891_v8  ;;  %v13899_v3 = vmul.f32 1.442695, %v15226_v56 }
0x1214   : > { %17751 = vpow2.f32 %v13893_v44 }
0x1215   : > { %17753 = vpow2.f32 %v13897_v38 }
0x1216   : > { %17755 = vpow2.f32 %v13895_v52 }
0x1217   : > { %17757 = vpow2.f32 %v13899_v3 }
0x121a   : > { %v17744_v32 = vpop.eup %17743 }
0x121b   : > { %v17746_v31 = vpop.eup %17745  ;;  %v13981_v49 = vadd.f32 1.0, %v17744_v32 }
0x121c   : > { %v17748_v34 = vpop.eup %17747  ;;  %v13983_v15 = vadd.f32 1.0, %v17746_v31 }
0x121d   : > { %v17750_v17 = vpop.eup %17749  ;;  %17759 = vrcp.f32 %v13981_v49  ;;  %v13982_v54 = vadd.f32 1.0, %v17748_v34 }
0x121e   : > { %v17752_v23 = vpop.eup %17751  ;;  %17761 = vrcp.f32 %v13983_v15  ;;  %v13984_v21 = vadd.f32 1.0, %v17750_v17 }
0x121f   : > { %v17754_v55 = vpop.eup %17753  ;;  %17763 = vrcp.f32 %v13982_v54  ;;  %v13985_v35 = vadd.f32 1.0, %v17752_v23 }
0x1220   : > { %v17756_v29 = vpop.eup %17755  ;;  %17765 = vrcp.f32 %v13984_v21  ;;  %v13987_v61 = vadd.f32 1.0, %v17754_v55 }
0x1221   : > { %v17758_v27 = vpop.eup %17757  ;;  %17767 = vrcp.f32 %v13985_v35  ;;  %v13986_v18 = vadd.f32 1.0, %v17756_v29 }
0x1222   : > { %17769 = vrcp.f32 %v13987_v61  ;;  %v13988_v7 = vadd.f32 1.0, %v17758_v27 }
0x1223   : > { %17771 = vrcp.f32 %v13986_v18 }
0x1224   : > { %17773 = vrcp.f32 %v13988_v7 }
0x1227   : > { %v17760_v11 = vpop.eup %17759 }
0x1228   : > { %v17762_v10 = vpop.eup %17761  ;;  %v14173_v1 = vmul.f32 %v17760_v11, %v21998_v4 }
0x1229   : > { %v17764_v14 = vpop.eup %17763  ;;  %v14175_v5 = vmul.f32 %v17762_v10, %v22001_v22 }
0x122a   : > { %v17766_v0 = vpop.eup %17765  ;;  %v14174_v9 = vmul.f32 %v17764_v14, %v22004_v48 }
0x122b   : > { %v17768_v43 = vpop.eup %17767  ;;  %v14176_v6 = vmul.f32 %v17766_v0, %v22007_v19 }
0x122c   : > { %v17770_v40 = vpop.eup %17769  ;;  %14377 = vmatprep.mubr.f32.mxu1 %v14174_v9  ;;  %v14177_v20 = vmul.f32 %v17768_v43, %v22018_v16 }
0x122d   : > { %v17772_v46 = vpop.eup %17771  ;;  %14522 = vmatprep.mubr.f32.mxu0 %v14176_v6  ;;  %14378 = vmatmul.mubr.f32.gmra.mrb[228].mxu1 %v14173_v1  ;;  %v14179_v48 = vmul.f32 %v17770_v40, %v22021_v51 }
0x122e   : > { %v17774_v28 = vpop.eup %17773  ;;  %v14178_v12 = vmul.f32 %v17772_v46, %v13494_v37  ;;  %14523 = vmatmul.mubr.f32.gmra.mrb[188].mxu0 %v14175_v5 }
0x122f   : > { %v14180_v53 = vmul.f32 %v17774_v28, %v13655_v45 }
0x1230   : > { %14382 = vmatprep.mubr.f32.mxu1 %v14178_v12 }
0x1231   : > { %14527 = vmatprep.mubr.f32.mxu0 %v14180_v53  ;;  %14383 = vmatmul.mubr.f32.gmra.mrb[230].mxu1 %v14177_v20 }
0x1232   : > { %14528 = vmatmul.mubr.f32.gmra.mrb[190].mxu0 %v14179_v48 }
0x123c   : > { %v13497_v4 = vpop.f32.mrb[200].mxu1  ;;  %v13658_v19 = vpop.f32.mrb[160].mxu0 }
0x123d   : > { %v22034_v22 = vadd.f32 %v13497_v4, %v21808_v39  ;;  %v22037_v62 = vadd.f32 %v13658_v19, %v21811_v33  ;;  %v13499_v2 = vpop.f32.mrb[201].mxu1  ;;  %v13660_v41 = vpop.f32.mrb[161].mxu0 }
0x123e   : > { %v22040_v60 = vadd.f32 %v13499_v2, %v21814_v50  ;;  %v22043_v16 = vadd.f32 %v13660_v41, %v21818_v25 }
0x123f   : > { %v15227_v51 = vmul.f32 -1.702, %v22034_v22  ;;  %v15229_v8 = vmul.f32 -1.702, %v22037_v62 }
0x1240   : > { %v15228_v37 = vmul.f32 -1.702, %v22040_v60  ;;  %v15230_v45 = vmul.f32 -1.702, %v22043_v16  ;;  %v13503_v24 = vpop.f32.mrb[202].mxu1  ;;  %v13664_v36 = vpop.f32.mrb[162].mxu0 }
0x1241   : > { %v13901_v57 = vmul.f32 1.442695, %v15227_v51  ;;  %v13905_v56 = vmul.f32 1.442695, %v15229_v8  ;;  %v22050_v44 = vadd.f32 %v13503_v24, %v21808_v39  ;;  %v22053_v38 = vadd.f32 %v13664_v36, %v21811_v33  ;;  %v13505_v52 = vpop.f32.mrb[203].mxu1  ;;  %v13666_v3 = vpop.f32.mrb[163].mxu0 }
0x1242   : > { %v13903_v32 = vmul.f32 1.442695, %v15228_v37  ;;  %v13907_v31 = vmul.f32 1.442695, %v15230_v45  ;;  %v22056_v49 = vadd.f32 %v13505_v52, %v21814_v50  ;;  %v22059_v34 = vadd.f32 %v13666_v3, %v21818_v25 }
0x1243   : > { %17775 = vpow2.f32 %v13901_v57  ;;  %v15231_v15 = vmul.f32 -1.702, %v22050_v44  ;;  %v15233_v17 = vmul.f32 -1.702, %v22053_v38 }
0x1244   : > { %17777 = vpow2.f32 %v13905_v56  ;;  %v15232_v54 = vmul.f32 -1.702, %v22056_v49  ;;  %v15234_v23 = vmul.f32 -1.702, %v22059_v34  ;;  %v13509_v21 = vpop.f32.mrb[204].mxu1  ;;  %v13670_v55 = vpop.f32.mrb[164].mxu0 }
0x1245   : > { %17779 = vpow2.f32 %v13903_v32  ;;  %v13909_v35 = vmul.f32 1.442695, %v15231_v15  ;;  %v13913_v29 = vmul.f32 1.442695, %v15233_v17  ;;  %v22066_v61 = vadd.f32 %v13509_v21, %v21808_v39  ;;  %v13511_v27 = vpop.f32.mrb[205].mxu1  ;;  %v13672_v18 = vpop.f32.mrb[165].mxu0 }
0x1246   : > { %17781 = vpow2.f32 %v13907_v31  ;;  %v13911_v7 = vmul.f32 1.442695, %v15232_v54  ;;  %v13915_v11 = vmul.f32 1.442695, %v15234_v23  ;;  %v22069_v10 = vadd.f32 %v13670_v55, %v21811_v33 }
0x1247   : > { %17783 = vpow2.f32 %v13909_v35  ;;  %v15235_v14 = vmul.f32 -1.702, %v22066_v61  ;;  %v22073_v0 = vadd.f32 %v13511_v27, %v21814_v50  ;;  %v22076_v9 = vadd.f32 %v13672_v18, %v21818_v25 }
0x1248   : > { %17785 = vpow2.f32 %v13913_v29  ;;  %v15237_v43 = vmul.f32 -1.702, %v22069_v10  ;;  %v13515_v1 = vpop.f32.mrb[206].mxu1  ;;  %v13676_v6 = vpop.f32.mrb[166].mxu0 }
0x1249   : > { %17787 = vpow2.f32 %v13911_v7  ;;  %v13917_v40 = vmul.f32 1.442695, %v15235_v14  ;;  %v15236_v5 = vmul.f32 -1.702, %v22073_v0  ;;  %v15238_v46 = vmul.f32 -1.702, %v22076_v9 }
0x124a   : > { %17789 = vpow2.f32 %v13915_v11  ;;  %v13921_v28 = vmul.f32 1.442695, %v15237_v43  ;;  %v13517_v12 = vpop.f32.mrb[207].mxu1  ;;  %v13678_v20 = vpop.f32.mrb[167].mxu0  ;;  %v22082_v41 = vadd.f32 %v13515_v1, %v21808_v39  ;;  %v22085_v24 = vadd.f32 %v13676_v6, %v21811_v33 }
0x124b   : > { %17791 = vpow2.f32 %v13917_v40  ;;  %v13919_v53 = vmul.f32 1.442695, %v15236_v5  ;;  %v13923_v48 = vmul.f32 1.442695, %v15238_v46  ;;  %v22088_v3 = vadd.f32 %v13517_v12, %v21814_v50 }
0x124c   : > { %17793 = vpow2.f32 %v13921_v28  ;;  %v13521_v4 = vpop.f32.mrb[208].mxu1  ;;  %v13682_v19 = vpop.f32.mrb[168].mxu0  ;;  %v15239_v17 = vmul.f32 -1.702, %v22082_v41  ;;  %v15241_v55 = vmul.f32 -1.702, %v22085_v24  ;;  %v22093_v35 = vadd.f32 %v13678_v20, %v21818_v25 }
0x124d   : > { %v17776_v2 = vpop.eup %17775  ;;  %17795 = vpow2.f32 %v13919_v53  ;;  %v13523_v51 = vpop.f32.mrb[209].mxu1  ;;  %v22096_v7 = vadd.f32 %v13521_v4, %v21808_v39  ;;  %v15240_v1 = vmul.f32 -1.702, %v22088_v3  ;;  %v22100_v6 = vadd.f32 %v13682_v19, %v21811_v33 }
0x124e   : > { %v13684_v8 = vpop.f32.mrb[169].mxu0  ;;  %v17778_v37 = vpop.eup %17777  ;;  %v13989_v45 = vadd.f32 1.0, %v17776_v2  ;;  %17797 = vpow2.f32 %v13923_v48  ;;  %v13925_v46 = vmul.f32 1.442695, %v15239_v17  ;;  %v22103_v28 = vadd.f32 %v13523_v51, %v21814_v50 }
0x124f   : > { %v17780_v36 = vpop.eup %17779  ;;  %v13991_v57 = vadd.f32 1.0, %v17778_v37  ;;  %v13929_v53 = vmul.f32 1.442695, %v15241_v55  ;;  %v15242_v48 = vmul.f32 -1.702, %v22093_v35  ;;  %v22108_v19 = vadd.f32 %v13684_v8, %v21818_v25 }
0x1250   : > { %v17782_v56 = vpop.eup %17781  ;;  %17799 = vrcp.f32 %v13989_v45  ;;  %v13990_v52 = vadd.f32 1.0, %v17780_v36  ;;  %v13527_v32 = vpop.f32.mrb[210].mxu1  ;;  %v15243_v37 = vmul.f32 -1.702, %v22096_v7  ;;  %v15245_v51 = vmul.f32 -1.702, %v22100_v6 }
0x1251   : > { %v17784_v31 = vpop.eup %17783  ;;  %17801 = vrcp.f32 %v13991_v57  ;;  %v13992_v15 = vadd.f32 1.0, %v17782_v56  ;;  %v13688_v54 = vpop.f32.mrb[170].mxu0  ;;  %v22112_v57 = vadd.f32 %v13527_v32, %v21808_v39  ;;  %v13927_v17 = vmul.f32 1.442695, %v15240_v1 }
0x1252   : > { %v17786_v23 = vpop.eup %17785  ;;  %17803 = vrcp.f32 %v13990_v52  ;;  %v13993_v21 = vadd.f32 1.0, %v17784_v31  ;;  %v13529_v29 = vpop.f32.mrb[211].mxu1  ;;  %v15244_v52 = vmul.f32 -1.702, %v22103_v28  ;;  %v22116_v31 = vadd.f32 %v13688_v54, %v21811_v33 }
0x1253   : > { %v17788_v27 = vpop.eup %17787  ;;  %17805 = vrcp.f32 %v13992_v15  ;;  %v13995_v18 = vadd.f32 1.0, %v17786_v23  ;;  %v13690_v11 = vpop.f32.mrb[171].mxu0  ;;  %v22119_v8 = vadd.f32 %v13529_v29, %v21814_v50  ;;  %v15246_v55 = vmul.f32 -1.702, %v22108_v19 }
0x1254   : > { %v17790_v14 = vpop.eup %17789  ;;  %17807 = vrcp.f32 %v13993_v21  ;;  %v13994_v43 = vadd.f32 1.0, %v17788_v27  ;;  %v13931_v21 = vmul.f32 1.442695, %v15242_v48  ;;  %v22123_v39 = vadd.f32 %v13690_v11, %v21818_v25 }
0x1255   : > { %v17792_v40 = vpop.eup %17791  ;;  %17809 = vrcp.f32 %v13995_v18  ;;  %v13996_v5 = vadd.f32 1.0, %v17790_v14  ;;  %v13933_v27 = vmul.f32 1.442695, %v15243_v37  ;;  %v13937_v18 = vmul.f32 1.442695, %v15245_v51 }
0x1256   : > { %v17794_v12 = vpop.eup %17793  ;;  %17811 = vrcp.f32 %v13994_v43  ;;  %v13997_v20 = vadd.f32 1.0, %v17792_v40  ;;  %v15247_v33 = vmul.f32 -1.702, %v22112_v57  ;;  %v13935_v50 = vmul.f32 1.442695, %v15244_v52 }
0x1257   : > { %v17796_v4 = vpop.eup %17795  ;;  %17813 = vrcp.f32 %v13996_v5  ;;  %v13999_v2 = vadd.f32 1.0, %v17794_v12  ;;  %v15249_v29 = vmul.f32 -1.702, %v22116_v31  ;;  %v15248_v25 = vmul.f32 -1.702, %v22119_v8 }
0x1258   : > { %v17798_v45 = vpop.eup %17797  ;;  %17815 = vrcp.f32 %v13997_v20  ;;  %v13998_v36 = vadd.f32 1.0, %v17796_v4  ;;  %v15250_v12 = vmul.f32 -1.702, %v22123_v39  ;;  %v13941_v20 = vmul.f32 1.442695, %v15247_v33 }
0x1259   : > { %17817 = vrcp.f32 %v13999_v2  ;;  %v14000_v56 = vadd.f32 1.0, %v17798_v45  ;;  %v13943_v2 = vmul.f32 1.442695, %v15248_v25 }
0x125a   : > { %v17800_v15 = vpop.eup %17799  ;;  %17819 = vrcp.f32 %v13998_v36  ;;  %v13947_v36 = vmul.f32 1.442695, %v15250_v12 }
0x125b   : > { %v17802_v23 = vpop.eup %17801  ;;  %17821 = vrcp.f32 %v14000_v56  ;;  %v14181_v1 = vmul.f32 %v17800_v15, %v22034_v22 }
0x125c   : > { %v17804_v32 = vpop.eup %17803  ;;  %17823 = vpow2.f32 %v13925_v46  ;;  %v14183_v5 = vmul.f32 %v17802_v23, %v22037_v62  ;;  %v13939_v46 = vmul.f32 1.442695, %v15246_v55 }
0x125d   : > { %v17806_v54 = vpop.eup %17805  ;;  %v14182_v14 = vmul.f32 %v17804_v32, %v22040_v60  ;;  %17825 = vpow2.f32 %v13929_v53 }
0x125e   : > { %v17808_v43 = vpop.eup %17807  ;;  %v14184_v40 = vmul.f32 %v17806_v54, %v22043_v16  ;;  %17827 = vpow2.f32 %v13927_v17  ;;  %v13945_v16 = vmul.f32 1.442695, %v15249_v29 }
0x125f   : > { %v17810_v11 = vpop.eup %17809  ;;  %17829 = vpow2.f32 %v13931_v21  ;;  %14387 = vmatprep.mubr.f32.mxu1 %v14182_v14  ;;  %v14185_v4 = vmul.f32 %v17808_v43, %v22050_v44 }
0x1260   : > { %v17812_v60 = vpop.eup %17811  ;;  %17831 = vpow2.f32 %v13933_v27  ;;  %14532 = vmatprep.mubr.f32.mxu0 %v14184_v40  ;;  %14388 = vmatmul.mubr.f32.gmra.mrb[232].mxu1 %v14181_v1  ;;  %v14187_v45 = vmul.f32 %v17810_v11, %v22053_v38 }
0x1261   : > { %v17814_v53 = vpop.eup %17813  ;;  %v14186_v22 = vmul.f32 %v17812_v60, %v22056_v49  ;;  %17833 = vpow2.f32 %v13937_v18  ;;  %14533 = vmatmul.mubr.f32.gmra.mrb[192].mxu0 %v14183_v5 }
0x1262   : > { %v17816_v48 = vpop.eup %17815  ;;  %v14188_v62 = vmul.f32 %v17814_v53, %v22059_v34  ;;  %17835 = vpow2.f32 %v13935_v50 }
0x1263   : > { %v17818_v37 = vpop.eup %17817  ;;  %17837 = vpow2.f32 %v13939_v46  ;;  %14392 = vmatprep.mubr.f32.mxu1 %v14186_v22  ;;  %v14189_v34 = vmul.f32 %v17816_v48, %v22066_v61 }
0x1264   : > { %v17820_v51 = vpop.eup %17819  ;;  %17839 = vpow2.f32 %v13941_v20  ;;  %14537 = vmatprep.mubr.f32.mxu0 %v14188_v62  ;;  %14393 = vmatmul.mubr.f32.gmra.mrb[234].mxu1 %v14185_v4  ;;  %v14191_v38 = vmul.f32 %v17818_v37, %v22069_v10 }
0x1265   : > { %v17822_v49 = vpop.eup %17821  ;;  %v14190_v56 = vmul.f32 %v17820_v51, %v22073_v0  ;;  %17841 = vpow2.f32 %v13945_v16  ;;  %14538 = vmatmul.mubr.f32.gmra.mrb[194].mxu0 %v14187_v45 }
0x1266   : > { %v17824_v44 = vpop.eup %17823  ;;  %v14192_v52 = vmul.f32 %v17822_v49, %v22076_v9  ;;  %17843 = vpow2.f32 %v13943_v2 }
0x1267   : > { %v17826_v15 = vpop.eup %17825  ;;  %v14001_v17 = vadd.f32 1.0, %v17824_v44  ;;  %17845 = vpow2.f32 %v13947_v36  ;;  %14397 = vmatprep.mubr.f32.mxu1 %v14190_v56 }
0x1268   : > { %v17828_v23 = vpop.eup %17827  ;;  %v14003_v21 = vadd.f32 1.0, %v17826_v15  ;;  %14542 = vmatprep.mubr.f32.mxu0 %v14192_v52  ;;  %14398 = vmatmul.mubr.f32.gmra.mrb[236].mxu1 %v14189_v34 }
0x1269   : > { %v17830_v55 = vpop.eup %17829  ;;  %17847 = vrcp.f32 %v14001_v17  ;;  %v14002_v0 = vadd.f32 1.0, %v17828_v23  ;;  %14543 = vmatmul.mubr.f32.gmra.mrb[196].mxu0 %v14191_v38 }
0x126a   : > { %v17832_v32 = vpop.eup %17831  ;;  %17849 = vrcp.f32 %v14003_v21  ;;  %v14004_v61 = vadd.f32 1.0, %v17830_v55 }
0x126b   : > { %v17834_v27 = vpop.eup %17833  ;;  %17851 = vrcp.f32 %v14002_v0  ;;  %v14005_v9 = vadd.f32 1.0, %v17832_v32 }
0x126c   : > { %v17836_v18 = vpop.eup %17835  ;;  %17853 = vrcp.f32 %v14004_v61  ;;  %v14007_v10 = vadd.f32 1.0, %v17834_v27 }
0x126d   : > { %v17838_v33 = vpop.eup %17837  ;;  %17855 = vrcp.f32 %v14005_v9  ;;  %v14006_v54 = vadd.f32 1.0, %v17836_v18 }
0x126e   : > { %v17840_v14 = vpop.eup %17839  ;;  %17857 = vrcp.f32 %v14007_v10  ;;  %v14008_v50 = vadd.f32 1.0, %v17838_v33 }
0x126f   : > { %v17842_v29 = vpop.eup %17841  ;;  %17859 = vrcp.f32 %v14006_v54  ;;  %v14009_v43 = vadd.f32 1.0, %v17840_v14 }
0x1270   : > { %v17844_v1 = vpop.eup %17843  ;;  %17861 = vrcp.f32 %v14008_v50  ;;  %v14011_v40 = vadd.f32 1.0, %v17842_v29 }
0x1271   : > { %v17846_v25 = vpop.eup %17845  ;;  %17863 = vrcp.f32 %v14009_v43  ;;  %v14010_v11 = vadd.f32 1.0, %v17844_v1 }
0x1272   : > { %17865 = vrcp.f32 %v14011_v40  ;;  %v14012_v5 = vadd.f32 1.0, %v17846_v25 }
0x1273   : > { %v17848_v46 = vpop.eup %17847  ;;  %17867 = vrcp.f32 %v14010_v11 }
0x1274   : > { %v17850_v12 = vpop.eup %17849  ;;  %17869 = vrcp.f32 %v14012_v5  ;;  %v14193_v16 = vmul.f32 %v17848_v46, %v22082_v41 }
0x1275   : > { %v17852_v60 = vpop.eup %17851  ;;  %v14195_v62 = vmul.f32 %v17850_v12, %v22085_v24 }
0x1276   : > { %v17854_v20 = vpop.eup %17853  ;;  %v14194_v53 = vmul.f32 %v17852_v60, %v22088_v3 }
0x1277   : > { %v17856_v22 = vpop.eup %17855  ;;  %v14196_v48 = vmul.f32 %v17854_v20, %v22093_v35 }
0x1278   : > { %v17858_v4 = vpop.eup %17857  ;;  %14402 = vmatprep.mubr.f32.mxu1 %v14194_v53  ;;  %v14197_v51 = vmul.f32 %v17856_v22, %v22096_v7 }
0x1279   : > { %v17860_v2 = vpop.eup %17859  ;;  %14547 = vmatprep.mubr.f32.mxu0 %v14196_v48  ;;  %14403 = vmatmul.mubr.f32.gmra.mrb[238].mxu1 %v14193_v16  ;;  %v14199_v41 = vmul.f32 %v17858_v4, %v22100_v6 }
0x127a   : > { %v17862_v37 = vpop.eup %17861  ;;  %v14198_v45 = vmul.f32 %v17860_v2, %v22103_v28  ;;  %14548 = vmatmul.mubr.f32.gmra.mrb[198].mxu0 %v14195_v62 }
0x127b   : > { %v17864_v36 = vpop.eup %17863  ;;  %v14200_v3 = vmul.f32 %v17862_v37, %v22108_v19  ;;  %v17889_v19 = vld [vmem:[%s18867_s14 + $0x8] sm:$0x7] }
0x127c   : > { %v17866_v49 = vpop.eup %17865  ;;  %14407 = vmatprep.mubr.f32.mxu1 %v14198_v45  ;;  %v14201_v28 = vmul.f32 %v17864_v36, %v22112_v57  ;;  %v22155_v34 = vrot.slane %v17889_v19, %v22671_v42 }
0x127d   : > { %v17868_v35 = vpop.eup %17867  ;;  %14552 = vmatprep.mubr.f32.mxu0 %v14200_v3  ;;  %14408 = vmatmul.mubr.f32.gmra.mrb[240].mxu1 %v14197_v51  ;;  %v14203_v7 = vmul.f32 %v17866_v49, %v22116_v31 }
0x127e   : > { %v17870_v24 = vpop.eup %17869  ;;  %v14202_v56 = vmul.f32 %v17868_v35, %v22119_v8  ;;  %14553 = vmatmul.mubr.f32.gmra.mrb[200].mxu0 %v14199_v41 }
0x127f   : > { %v14204_v44 = vmul.f32 %v17870_v24, %v22123_v39 }
0x1280   : > { %14412 = vmatprep.mubr.f32.mxu1 %v14202_v56 }
0x1281   : > { %14557 = vmatprep.mubr.f32.mxu0 %v14204_v44  ;;  %14413 = vmatmul.mubr.f32.gmra.mrb[242].mxu1 %v14201_v28 }
0x1282   : > { %14558 = vmatmul.mubr.f32.gmra.mrb[202].mxu0 %v14203_v7 }
0x12ab   : > { %v15731_v6 = vpop.f32.mrb[212].mxu1 }
0x12ac   : > { %v15732_v15 = vpop.f32.mrb[213].mxu1 }
0x12ad   : > { %v15811_v52 = vpop.f32.mrb[172].mxu0  ;;  %v15733_v38 = vadd.f32 %v15732_v15, %v15731_v6 }
0x12ae   : > { %v15812_v8 = vpop.f32.mrb[173].mxu0 }
0x12af   : > { %v15813_v17 = vadd.f32 %v15812_v8, %v15811_v52  ;;  %v14340_v57 = vadd.f32 %v15733_v38, %v22155_v34 }
0x12b0   : > { %v15734_v23 = vpop.f32.mrb[214].mxu1 }
0x12b1   : > { %v15814_v39 = vpop.f32.mrb[174].mxu0  ;;  %v15735_v21 = vpop.f32.mrb[215].mxu1  ;;  %v14485_v31 = vadd.f32 %v15813_v17, %v14340_v57 }
0x12b2   : > { %v15736_v55 = vadd.f32 %v15735_v21, %v15734_v23  ;;  %v15815_v0 = vpop.f32.mrb[175].mxu0  ;;  %v22673_v21 = vld [vmem:[#allocation100_spill] sm:$0xff] }
0x12b3   : > { %v15816_v32 = vadd.f32 %v15815_v0, %v15814_v39  ;;  %v22159_v61 = vadd.f32 %v14485_v31, %v21453_v47 }
0x12b4   : > { %v14345_v42 = vadd.f32 %v15736_v55, %v22155_v34  ;;  %v15737_v27 = vpop.f32.mrb[216].mxu1 }
0x12b5   : > { %v15817_v9 = vpop.f32.mrb[176].mxu0  ;;  %v15738_v18 = vpop.f32.mrb[217].mxu1  ;;  %14579 = vst [vmem:[#allocation2] sm:$0xff] %v22159_v61  ;;  %14599 = vst [vmem:[%s18875_s2] sm:$0xff] (!%p15251_p8), %v22159_v61 }
0x12b6   : > { %v14490_v10 = vadd.f32 %v15816_v32, %v14345_v42  ;;  %v15739_v33 = vadd.f32 %v15738_v18, %v15737_v27  ;;  %v15818_v54 = vpop.f32.mrb[177].mxu0 }
0x12b7   : > { %v15819_v14 = vadd.f32 %v15818_v54, %v15817_v9 }
0x12b8   : > { %v22164_v50 = vadd.f32 %v14490_v10, %v21451_v26  ;;  %v14350_v29 = vadd.f32 %v15739_v33, %v22155_v34 }
0x12ba   : > { %14580 = vst [vmem:[#allocation2 + $0x8] sm:$0xff] %v22164_v50  ;;  %v14495_v47 = vadd.f32 %v15819_v14, %v14350_v29  ;;  %14600 = vst [vmem:[%s18875_s2 + $0x8] sm:$0xff] (!%p15251_p8), %v22164_v50 }
0x12bc   : > { %v22169_v43 = vadd.f32 %v14495_v47, %v21461_v63 }
0x12be   : > { %14581 = vst [vmem:[#allocation2 + $0x10] sm:$0xff] %v22169_v43  ;;  %14601 = vst [vmem:[%s18875_s2 + $0x10] sm:$0xff] (!%p15251_p8), %v22169_v43 }
0x12c5   : > { %v15740_v1 = vpop.f32.mrb[218].mxu1 }
0x12c6   : > { %v15820_v40 = vpop.f32.mrb[178].mxu0  ;;  %v15741_v25 = vpop.f32.mrb[219].mxu1 }
0x12c7   : > { %v15742_v11 = vadd.f32 %v15741_v25, %v15740_v1  ;;  %v15821_v5 = vpop.f32.mrb[179].mxu0  ;;  %v22674_v1 = vld [vmem:[#allocation72_spill] sm:$0xff] }
0x12c8   : > { %v15822_v46 = vadd.f32 %v15821_v5, %v15820_v40  ;;  %v22675_v5 = vld [vmem:[#allocation101_spill] sm:$0xff] }
0x12c9   : > { %v14355_v12 = vadd.f32 %v15742_v11, %v22155_v34  ;;  %v15743_v26 = vpop.f32.mrb[220].mxu1 }
0x12ca   : > { %v15823_v60 = vpop.f32.mrb[180].mxu0  ;;  %v15744_v20 = vpop.f32.mrb[221].mxu1 }
0x12cb   : > { %v14500_v53 = vadd.f32 %v15822_v46, %v14355_v12  ;;  %v15745_v22 = vadd.f32 %v15744_v20, %v15743_v26  ;;  %v15824_v16 = vpop.f32.mrb[181].mxu0 }
0x12cc   : > { %v15825_v48 = vadd.f32 %v15824_v16, %v15823_v60 }
0x12cd   : > { %v22174_v63 = vadd.f32 %v14500_v53, %v21459_v13  ;;  %v14360_v4 = vadd.f32 %v15745_v22, %v22155_v34  ;;  %v15746_v62 = vpop.f32.mrb[222].mxu1 }
0x12ce   : > { %v15826_v2 = vpop.f32.mrb[182].mxu0  ;;  %v15747_v37 = vpop.f32.mrb[223].mxu1 }
0x12cf   : > { %14582 = vst [vmem:[#allocation2 + $0x18] sm:$0xff] %v22174_v63  ;;  %v14505_v45 = vadd.f32 %v15825_v48, %v14360_v4  ;;  %v15748_v36 = vadd.f32 %v15747_v37, %v15746_v62  ;;  %v15827_v51 = vpop.f32.mrb[183].mxu0  ;;  %14602 = vst [vmem:[%s18875_s2 + $0x18] sm:$0xff] (!%p15251_p8), %v22174_v63 }
0x12d0   : > { %v15828_v3 = vadd.f32 %v15827_v51, %v15826_v2  ;;  %v22676_v51 = vld [vmem:[#allocation74_spill] sm:$0xff] }
0x12d1   : > { %v22179_v49 = vadd.f32 %v14505_v45, %v21469_v58  ;;  %v14365_v41 = vadd.f32 %v15748_v36, %v22155_v34 }
0x12d3   : > { %14583 = vst [vmem:[#allocation2 + $0x20] sm:$0xff] %v22179_v49  ;;  %v14510_v13 = vadd.f32 %v15828_v3, %v14365_v41  ;;  %14603 = vst [vmem:[%s18875_s2 + $0x20] sm:$0xff] (!%p15251_p8), %v22179_v49 }
0x12d5   : > { %v22184_v35 = vadd.f32 %v14510_v13, %v21467_v59 }
0x12d7   : > { %14584 = vst [vmem:[#allocation2 + $0x28] sm:$0xff] %v22184_v35  ;;  %14604 = vst [vmem:[%s18875_s2 + $0x28] sm:$0xff] (!%p15251_p8), %v22184_v35 }
0x12dd   : > { %v15749_v24 = vpop.f32.mrb[224].mxu1 }
0x12de   : > { %v15829_v56 = vpop.f32.mrb[184].mxu0  ;;  %v15750_v28 = vpop.f32.mrb[225].mxu1 }
0x12df   : > { %v15751_v44 = vadd.f32 %v15750_v28, %v15749_v24  ;;  %v15830_v7 = vpop.f32.mrb[185].mxu0 }
0x12e0   : > { %v15831_v6 = vadd.f32 %v15830_v7, %v15829_v56 }
0x12e1   : > { %v14370_v19 = vadd.f32 %v15751_v44, %v22155_v34 }
0x12e2   : > { %v15752_v58 = vpop.f32.mrb[226].mxu1 }
0x12e3   : > { %v15832_v52 = vpop.f32.mrb[186].mxu0  ;;  %v15753_v15 = vpop.f32.mrb[227].mxu1  ;;  %v14515_v38 = vadd.f32 %v15831_v6, %v14370_v19  ;;  %v22677_v19 = vld [vmem:[#allocation70_spill] sm:$0xff] }
0x12e4   : > { %v15754_v8 = vadd.f32 %v15753_v15, %v15752_v58  ;;  %v15833_v17 = vpop.f32.mrb[187].mxu0 }
0x12e5   : > { %v15834_v57 = vadd.f32 %v15833_v17, %v15832_v52  ;;  %v22189_v59 = vadd.f32 %v14515_v38, %v21477_v30  ;;  %v22678_v38 = vld [vmem:[#allocation77_spill] sm:$0xff] }
0x12e6   : > { %v14375_v23 = vadd.f32 %v15754_v8, %v22155_v34 }
0x12e7   : > { %14585 = vst [vmem:[#allocation2 + $0x30] sm:$0xff] %v22189_v59  ;;  %14605 = vst [vmem:[%s18875_s2 + $0x30] sm:$0xff] (!%p15251_p8), %v22189_v59 }
0x12e8   : > { %v14520_v39 = vadd.f32 %v15834_v57, %v14375_v23 }
0x12ea   : > { %v22194_v31 = vadd.f32 %v14520_v39, %v22673_v21 }
0x12ec   : > { %14586 = vst [vmem:[#allocation2 + $0x38] sm:$0xff] %v22194_v31  ;;  %14606 = vst [vmem:[%s18875_s2 + $0x38] sm:$0xff] (!%p15251_p8), %v22194_v31 }
0x1300   : > { %v15755_v55 = vpop.f32.mrb[228].mxu1 }
0x1301   : > { %v15835_v0 = vpop.f32.mrb[188].mxu0  ;;  %v15756_v32 = vpop.f32.mrb[229].mxu1 }
0x1302   : > { %v15757_v42 = vadd.f32 %v15756_v32, %v15755_v55  ;;  %v15836_v27 = vpop.f32.mrb[189].mxu0 }
0x1303   : > { %v15837_v9 = vadd.f32 %v15836_v27, %v15835_v0 }
0x1304   : > { %v14380_v18 = vadd.f32 %v15757_v42, %v22155_v34  ;;  %v15758_v30 = vpop.f32.mrb[230].mxu1 }
0x1305   : > { %v15838_v10 = vpop.f32.mrb[190].mxu0  ;;  %v15759_v33 = vpop.f32.mrb[231].mxu1 }
0x1306   : > { %v14525_v54 = vadd.f32 %v15837_v9, %v14380_v18  ;;  %v15760_v14 = vadd.f32 %v15759_v33, %v15758_v30  ;;  %v15839_v29 = vpop.f32.mrb[191].mxu0  ;;  %v22679_v33 = vld [vmem:[#allocation75_spill] sm:$0xff] }
0x1307   : > { %v15840_v47 = vadd.f32 %v15839_v29, %v15838_v10 }
0x1308   : > { %v22199_v40 = vadd.f32 %v14525_v54, %v22674_v1  ;;  %v14385_v25 = vadd.f32 %v15760_v14, %v22155_v34 }
0x130a   : > { %14587 = vst [vmem:[#allocation2 + $0x40] sm:$0xff] %v22199_v40  ;;  %v14530_v11 = vadd.f32 %v15840_v47, %v14385_v25  ;;  %14607 = vst [vmem:[%s18875_s2 + $0x40] sm:$0xff] (!%p15251_p8), %v22199_v40 }
0x130c   : > { %v22204_v46 = vadd.f32 %v14530_v11, %v22675_v5 }
0x130e   : > { %14588 = vst [vmem:[#allocation2 + $0x48] sm:$0xff] %v22204_v46  ;;  %14608 = vst [vmem:[%s18875_s2 + $0x48] sm:$0xff] (!%p15251_p8), %v22204_v46 }
0x1333   : > { %v15761_v12 = vpop.f32.mrb[232].mxu1 }
0x1334   : > { %v15841_v26 = vpop.f32.mrb[192].mxu0  ;;  %v15762_v60 = vpop.f32.mrb[233].mxu1 }
0x1335   : > { %v15763_v20 = vadd.f32 %v15762_v60, %v15761_v12  ;;  %v15842_v53 = vpop.f32.mrb[193].mxu0 }
0x1336   : > { %v15843_v22 = vadd.f32 %v15842_v53, %v15841_v26  ;;  %v22680_v26 = vld [vmem:[#allocation73_spill] sm:$0xff] }
0x1337   : > { %v14390_v16 = vadd.f32 %v15763_v20, %v22155_v34  ;;  %v15764_v48 = vpop.f32.mrb[234].mxu1 }
0x1338   : > { %v15844_v4 = vpop.f32.mrb[194].mxu0  ;;  %v15765_v62 = vpop.f32.mrb[235].mxu1 }
0x1339   : > { %v14535_v2 = vadd.f32 %v15843_v22, %v14390_v16  ;;  %v15766_v37 = vadd.f32 %v15765_v62, %v15764_v48  ;;  %v15845_v45 = vpop.f32.mrb[195].mxu0  ;;  %v22681_v22 = vld [vmem:[#allocation71_spill] sm:$0xff] }
0x133a   : > { %v15846_v36 = vadd.f32 %v15845_v45, %v15844_v4 }
0x133b   : > { %v14573_v3 = vadd.f32 %v14535_v2, %v22676_v51  ;;  %v14395_v41 = vadd.f32 %v15766_v37, %v22155_v34  ;;  %v15767_v13 = vpop.f32.mrb[236].mxu1 }
0x133c   : > { %v15847_v24 = vpop.f32.mrb[196].mxu0  ;;  %v15768_v56 = vpop.f32.mrb[237].mxu1 }
0x133d   : > { %14589 = vst [vmem:[#allocation2 + $0x50] sm:$0xff] %v14573_v3  ;;  %v14540_v28 = vadd.f32 %v15846_v36, %v14395_v41  ;;  %v15769_v44 = vadd.f32 %v15768_v56, %v15767_v13  ;;  %v15848_v7 = vpop.f32.mrb[197].mxu0  ;;  %14609 = vst [vmem:[%s18875_s2 + $0x50] sm:$0xff] (!%p15251_p8), %v14573_v3 }
0x133e   : > { %v15849_v6 = vadd.f32 %v15848_v7, %v15847_v24 }
0x133f   : > { %v14574_v58 = vadd.f32 %v14540_v28, %v22677_v19  ;;  %v14400_v52 = vadd.f32 %v15769_v44, %v22155_v34 }
0x1341   : > { %14590 = vst [vmem:[#allocation2 + $0x58] sm:$0xff] %v14574_v58  ;;  %v14545_v15 = vadd.f32 %v15849_v6, %v14400_v52  ;;  %14610 = vst [vmem:[%s18875_s2 + $0x58] sm:$0xff] (!%p15251_p8), %v14574_v58 }
0x1343   : > { %v14575_v8 = vadd.f32 %v14545_v15, %v22678_v38 }
0x1345   : > { %14591 = vst [vmem:[#allocation2 + $0x60] sm:$0xff] %v14575_v8  ;;  %14611 = vst [vmem:[%s18875_s2 + $0x60] sm:$0xff] (!%p15251_p8), %v14575_v8 }
0x134c   : > { %v15770_v17 = vpop.f32.mrb[238].mxu1 }
0x134d   : > { %v15850_v57 = vpop.f32.mrb[198].mxu0  ;;  %v15771_v23 = vpop.f32.mrb[239].mxu1 }
0x134e   : > { %v15772_v39 = vadd.f32 %v15771_v23, %v15770_v17  ;;  %v15851_v21 = vpop.f32.mrb[199].mxu0 }
0x134f   : > { %v15852_v55 = vadd.f32 %v15851_v21, %v15850_v57 }
0x1350   : > { %v14405_v0 = vadd.f32 %v15772_v39, %v22155_v34  ;;  %v15773_v32 = vpop.f32.mrb[240].mxu1 }
0x1351   : > { %v15853_v42 = vpop.f32.mrb[200].mxu0  ;;  %v15774_v27 = vpop.f32.mrb[241].mxu1 }
0x1352   : > { %v14550_v9 = vadd.f32 %v15852_v55, %v14405_v0  ;;  %v15775_v18 = vadd.f32 %v15774_v27, %v15773_v32  ;;  %v15854_v30 = vpop.f32.mrb[201].mxu0 }
0x1353   : > { %v15855_v10 = vadd.f32 %v15854_v30, %v15853_v42 }
0x1354   : > { %v14576_v54 = vadd.f32 %v14550_v9, %v22679_v33  ;;  %v14410_v14 = vadd.f32 %v15775_v18, %v22155_v34  ;;  %v15776_v29 = vpop.f32.mrb[242].mxu1 }
0x1355   : > { %v15856_v47 = vpop.f32.mrb[202].mxu0  ;;  %v15777_v1 = vpop.f32.mrb[243].mxu1 }
0x1356   : > { %14592 = vst [vmem:[#allocation2 + $0x68] sm:$0xff] %v14576_v54  ;;  %v14555_v25 = vadd.f32 %v15855_v10, %v14410_v14  ;;  %v15778_v11 = vadd.f32 %v15777_v1, %v15776_v29  ;;  %v15857_v5 = vpop.f32.mrb[203].mxu0  ;;  %14612 = vst [vmem:[%s18875_s2 + $0x68] sm:$0xff] (!%p15251_p8), %v14576_v54 }
0x1357   : > { %v15858_v12 = vadd.f32 %v15857_v5, %v15856_v47 }
0x1358   : > { %v14577_v60 = vadd.f32 %v14555_v25, %v22680_v26  ;;  %v14415_v20 = vadd.f32 %v15778_v11, %v22155_v34  ;;  %14598 = sbr.rel (%p15251_p8) target bundleno = 4959 (0x135f), region = 100 }
0x135a   : > { %14593 = vst [vmem:[#allocation2 + $0x70] sm:$0xff] %v14577_v60  ;;  %v14560_v53 = vadd.f32 %v15858_v12, %v14415_v20  ;;  %14613 = vst [vmem:[%s18875_s2 + $0x70] sm:$0xff] (!%p15251_p8), %v14577_v60 }
0x135c   : > { %v14578_v16 = vadd.f32 %v14560_v53, %v22681_v22 }
0x135e   : > { %14594 = vst [vmem:[#allocation2 + $0x78] sm:$0xff] %v14578_v16  ;;  %14614 = vst [vmem:[%s18875_s2 + $0x78] sm:$0xff] (!%p15251_p8), %v14578_v16 }
0x135f PF: > { %s22683_s13 = sld [smem:[#allocation30_spill]]  ;;  %s22684_s25 = sld [smem:[#allocation34_spill]] }
0x1360   : > { %s22685_s3 = sld [smem:[#allocation109_spill]]  ;;  %s14629_s1 = sshll.u32 %s18875_s2, 4  ;;  %s22253_s1 = int_to_ptr.vmem [resolvable:$true] %s14629_s1 }
0x1361   : > { %s14616_s19 = scalar_lea.sflag [#allocation5], %s18812_s8  ;;  %s18130_s30 = scalar_lea.vmem %s22253_s1, 2048 }
0x1362   : > { %p18131_p1 = scmp.ne.s32.totalorder %s22253_s1, %s18130_s30  ;;  %s18291_s16 = smov [#allocation17]  }
0x1363   : > { %s18134_s12 = sshll.u32 %s18291_s16, 4  ;;  %s18135_s12 = int_to_ptr.vmem [resolvable:$false] %s18134_s12 }
0x1364   : > { %s18136_s20 = scalar_lea.vmem %s18135_s12, 4096  ;;  %p18137_p2 = scmp.lt.s32.totalorder %s22253_s1, %s18135_s12 }
0x1365   : > { %s15266_s27 = sshll.u32 %s22683_s13, 11  ;;  %p22686_p10 = scmp.ne.s32.totalorder %s22684_s25, 0 }
0x1366   : > { %s22250_s28 = scalar_lea.hbm %s22685_s3, %s15266_s27  ;;  %p18138_p12 = scmp.lt.s32.totalorder %s18136_s20, %s18130_s30 }
0x1367   : > { %p18132_p7 = pnand %p18131_p1, %p22686_p10 }
0x1368   : > { %p18139_p5 = por %p18138_p12, %p18137_p2 }
0x1369   : > { %p18133_p3 = pneg %p18132_p7 }
0x136b   : > { %p18140_p11 = pnand %p18139_p5, %p18133_p3 }
0x136d   : > { %18143 = shalt.err (!%p18140_p11)
}
0x136e   : > { %s18144_s2 = scalar_lea.hbm %s22250_s28, 2048  ;;  %s18148_s14 = scalar_lea.hbm %s22685_s3, 4096 }
0x136f   : > { %p18145_p13 = scmp.ne.s32.totalorder %s22250_s28, %s18144_s2  ;;  %p18149_p9 = scmp.lt.u32.totalorder %s22250_s28, %s22685_s3 }
0x1370   : > { %p18150_p0 = scmp.lt.u32.totalorder %s18148_s14, %s18144_s2  ;;  %p18152_p1 = scmp.lt.u32.totalorder %s18144_s2, %s22250_s28 }
0x1371   : > { %p18146_p4 = pnand %p18145_p13, %p22686_p10 }
0x1372   : > { %p18151_p8 = por %p18150_p0, %p18149_p9 }
0x1373   : > { %p18147_p6 = pneg %p18146_p4 }
0x1374   : > { %p18153_p7 = por %p18152_p1, %p18151_p8 }
0x1376   : > { %p18154_p3 = pnand %p18153_p7, %p18147_p6 }
0x1378   : > { %18157 = shalt.err (!%p18154_p3)
}
0x1379   : > { %s18292_s26 = smov 128   ;;  %s18293_s24 = smov 8  }
0x137a   : > { %17131 = dma.vmem_to_hbm [thread:$0]  (%p22686_p10), %s22253_s1, 2048, %s22250_s28, %s14616_s19, %s18292_s26, %s18292_s26, %s18293_s24  }
0x137b PF: > { %s22687_s17 = sld [smem:[#allocation31_spill]]  ;;  %s22688_s11 = sld [smem:[#allocation27_spill]] }
0x137c   : > { %s22689_s0 = sld [smem:[#allocation35_spill]] }
0x1381   : > { %p17163_p2 = scmp.ge.s32.totalorder %s22687_s17, 2  ;;  %s14644_s13 = sand.u32 1, %s22688_s11  }
0x1382   : > { %p22690_p12 = scmp.ne.s32.totalorder %s22689_s0, 0  ;;  %s14645_s27 = scalar_lea.sflag [#allocation5], %s14644_s13 }
0x1384   : > { %p17159_p5 = pnand %p17163_p2, %p22690_p12 }
0x1386   : > { %18227 = dma.done.wait (!%p17159_p5), %s14645_s27, 2048  }
0x1387   : > { %18229 = vsyncadd (!%p17159_p5), %s14645_s27, 4294965248  ;;  %s38_s23 = sadd.s32 1, %s22687_s17   ;;  %s22691_s13 = sld [smem:[#allocation25_spill]] }
0x1388   : > { %p35_p11 = scmp.ge.s32.totalorder %s38_s23, 6   ;;  %s22692_s14 = sld [smem:[#allocation26_spill]] }
0x1389   : > { %s22693_s15 = sld [smem:[#allocation39_spill]]  ;;  %s22694_s16 = sld [smem:[#allocation28_spill]] }
0x138a   : > { %s22695_s8 = sld [smem:[#allocation40_spill]]  ;;  %s22696_s25 = sld [smem:[#allocation36_spill]] }
0x138b   : > { %s22697_s5 = sld [smem:[#allocation38_spill]]  ;;  %s22698_s17 = smov %s18252_s18 }
0x138c   : > { %s22700_s19 = smov %s18264_s21  ;;  %s22701_s20 = smov %s18268_s22 }
0x138d   :  { %37 = sbr.rel (!%p35_p11) target bundleno = 26 (0x1a), region = 204 }
0x1390   : > { %s22699_s18 = smov %s22695_s8  ;;  %s22702_s21 = smov %s22696_s25 }
0x1391   : > { %s22703_s22 = smov %s22697_s5 }
0x1394   :  { %14650 = vsyncpa [#allocation4], 1 }
0x1395   :  { %14652 = vsyncpa [#allocation4 + $0x1], 1 }
0x1396   :  { %14653 = vsyncpa [#allocation7], 1 }
0x1397   :  { %14655 = vsyncpa [#allocation7 + $0x1], 1 }
0x1398   :  { %14656 = vsyncpa [#allocation10], 1 }
0x1399   :  { %14658 = vsyncpa [#allocation10 + $0x1], 1 }
0x139a   :  { %14659 = vsyncpa [#allocation13], 1 }
0x139b   :  { %14661 = vsyncpa [#allocation13 + $0x1], 1 }
0x139c   :  { %14662 = vsyncpa [#allocation16], 1 }
0x139d   :  { %14664 = vsyncpa [#allocation16 + $0x1], 1 }
0x139e   :  { %14665 = vsyncpa [#allocation5], 1 }
0x139f   :  { %14667 = vsyncpa [#allocation5 + $0x1], 1 }

</bundles_post_ra>
